<compile_context>
chip_gen: v7x
topology: tpu7x:2x2x1
jax: 0.10.0
libtpu: 0.0.40
codegen_flags: <defaults>
</compile_context>

<pallas_src>
import numpy as np
import jax
import jax.numpy as jnp
from jax import lax
from jax.experimental import pallas as pl
from jax.experimental.pallas import tpu as pltpu

FD = 256          # feat_dim fixed by the module (Linear(256, ...))
MARGIN = 0.2      # trip.margin
EPS = 1e-6        # get_bin_sim eps
NEG_INF = -1e9    # additive softmax mask for padded columns


def _round_up(x, m):
    return (x + m - 1) // m * m


def _softmax_last(x):
    m = jnp.max(x, axis=-1, keepdims=True)
    e = jnp.exp(x - m)
    return e / jnp.sum(e, axis=-1, keepdims=True)


def _make_kernel(n_way, k_shot, query, bins_per_step):
    NS = n_way * k_shot          # support samples per bin
    NQ = n_way * query           # query samples per bin
    B = n_way + NQ               # batch after [proto ; query] concat
    NSP = _round_up(NS, 8)       # padded support rows (tile aligned)
    NQP = _round_up(NQ, 8)       # padded query rows
    NTP = NSP + NQP              # padded rows per bin
    BP = _round_up(B, 8)         # padded [proto ; query] rows
    BINS = bins_per_step

    def kernel(feat_ref, ws_ref, bias_ref, sel_ref, tmask_ref, binw_ref,
               loss_out, dqp_out):
        x_bf = feat_ref[...]                        # (BINS, NTP, FD) bf16
        x_f = x_bf.astype(jnp.float32)
        xs_bf = x_bf[:, :NSP, :]                    # padded support rows
        xq_bf = x_bf[:, NSP:, :]                    # padded query rows
        xs_f = x_f[:, :NSP, :]
        xq_f = x_f[:, NSP:, :]
        bias = bias_ref[...]                        # (1, FD) f32

        # ---- cosine similarity (get_bin_sim): norms on VPU, grams on MXU ----
        ns = jnp.sqrt(jnp.sum(xs_f * xs_f, axis=-1))     # (BINS, NSP)
        nq = jnp.sqrt(jnp.sum(xq_f * xq_f, axis=-1))     # (BINS, NQP)
        gram_sq = jnp.einsum('bsd,bqd->bsq', xs_bf, xq_bf,
                             preferred_element_type=jnp.float32)
        cos = gram_sq / jnp.maximum(ns[:, :, None] * nq[:, None, :], EPS)
        gram_qs = jnp.einsum('bqd,bsd->bqs', xq_bf, xs_bf,
                             preferred_element_type=jnp.float32)
        cos_t = gram_qs / jnp.maximum(nq[:, :, None] * ns[:, None, :], EPS)

        # mask padded columns out of the softmaxes
        if NQP > NQ:
            qcol = lax.broadcasted_iota(jnp.int32, (1, 1, NQP), 2)
            cos = cos + jnp.where(qcol < NQ, 0.0, NEG_INF)
        if NSP > NS:
            scol = lax.broadcasted_iota(jnp.int32, (1, 1, NSP), 2)
            cos_t = cos_t + jnp.where(scol < NS, 0.0, NEG_INF)

        s2q = _softmax_last(cos)                    # (BINS, NSP, NQP)
        q2s = _softmax_last(cos_t)                  # (BINS, NQP, NSP)

        agg_q = jnp.einsum('bsq,bqd->bsd', s2q.astype(jnp.bfloat16), xq_bf,
                           preferred_element_type=jnp.float32)   # (BINS, NSP, FD)
        agg_s = jnp.einsum('bqs,bsd->bqd', q2s.astype(jnp.bfloat16), xs_bf,
                           preferred_element_type=jnp.float32)   # (BINS, NQP, FD)

        # ---- shared-weight fusion: ONE stacked matmul, M=BINS*NTP, K=2*FD ----
        agg = jnp.concatenate([agg_q, agg_s], axis=1).astype(jnp.bfloat16)
        x_cat = jnp.concatenate([x_bf, agg], axis=-1)            # (BINS, NTP, 2FD)
        h = jnp.dot(x_cat.reshape(BINS * NTP, 2 * FD), ws_ref[...],
                    preferred_element_type=jnp.float32).reshape(BINS, NTP, FD)
        cross = jnp.maximum(h + bias, 0.0) + x_f                 # relu + residual

        # ---- nf = [proto(mean over k_shot) ; cross_query] via one batched
        #      selection/averaging matmul (padded rows carry zero weight) ----
        sel = jnp.broadcast_to(sel_ref[...][None], (BINS, BP, NTP))
        nf = jnp.einsum('bpt,btf->bpf', sel, cross,
                        preferred_element_type=jnp.float32)      # (BINS, BP, FD)

        # ---- pairwise euclidean distances (cdist), f32 ----
        sq = jnp.sum(nf * nf, axis=-1)                           # (BINS, BP)
        gram = jnp.einsum('bif,bjf->bij', nf, nf,
                          preferred_element_type=jnp.float32)
        d = jnp.sqrt(jnp.maximum(sq[:, :, None] + sq[:, None, :] - 2.0 * gram,
                                 0.0))                           # (BINS, BP, BP)

        binw = binw_ref[...]                                     # (BINS, 1)

        # query -> proto distances, accumulated over the bins of this step
        dqp = d[:, n_way:n_way + NQ, :n_way]                     # (BINS, NQ, n_way)
        dqp_out[0] = jnp.sum(dqp * binw[:, :, None], axis=0)

        # ---- triplet loss, vectorized over (anchor, pos, neg) ----
        raw = jnp.maximum(MARGIN + d[:, :, :, None] - d[:, :, None, :], 0.0)
        m = tmask_ref[...]                                       # (BP, BP, BP)
        s = jnp.sum(jnp.sum(jnp.sum(raw * m, axis=3), axis=2),
                    axis=1, keepdims=True)                       # (BINS, 1)
        nz = jnp.where(raw > 0.0, 1.0, 0.0) * m
        c = jnp.sum(jnp.sum(jnp.sum(nz, axis=3), axis=2),
                    axis=1, keepdims=True)                       # (BINS, 1)
        loss_b = jnp.where(c == 0.0, 0.0, s / jnp.where(c == 0.0, 1.0, c))
        loss_out[0] = jnp.sum(loss_b * binw, axis=0, keepdims=True)   # (1, 1)

    return kernel, NS, NQ, B, NSP, NQP, NTP, BP


def make_forward(n_way, k_shot, query, bins_per_step=16):
    (kernel, NS, NQ, B, NSP, NQP, NTP, BP) = _make_kernel(
        n_way, k_shot, query, bins_per_step)
    BINS = bins_per_step

    # static selection matrix: rows 0..n_way-1 average the k_shot support rows
    # of each class, rows n_way..n_way+NQ-1 pick the query rows.
    sel_np = np.zeros((BP, NTP), np.float32)
    for c in range(n_way):
        for k in range(k_shot):
            sel_np[c, c * k_shot + k] = 1.0 / float(k_shot)
    for j in range(NQ):
        sel_np[n_way + j, NSP + j] = 1.0
    sel_const = jnp.asarray(sel_np)

    @jax.jit
    def forward(feat, label, w_support, b_support):
        nbins = feat.shape[0]
        nbins_pad = _round_up(nbins, BINS)
        nsteps = nbins_pad // BINS

        # pad rows to 8-row tiles and bins to a multiple of BINS; bf16 for MXU
        sup = jnp.pad(feat[:, :NS, :],
                      ((0, nbins_pad - nbins), (0, NSP - NS), (0, 0)))
        qry = jnp.pad(feat[:, NS:, :],
                      ((0, nbins_pad - nbins), (0, NQP - NQ), (0, 0)))
        feat_p = jnp.concatenate([sup, qry], axis=1).astype(jnp.bfloat16)

        # per-bin validity weight (padded bins contribute 0 to loss / dqp)
        binw = (jnp.arange(nbins_pad) < nbins).astype(jnp.float32)[:, None]

        ws_t = jnp.transpose(w_support).astype(jnp.bfloat16)      # (2*FD, FD)
        bias2d = b_support.reshape(1, FD).astype(jnp.float32)

        # fused triplet mask: tmask[i,j,k] = same_label(i,j) * diff_label(i,k)
        hp = (label[:, None] == label[None, :]).astype(jnp.float32)
        hn = 1.0 - hp
        hp_p = jnp.pad(hp, ((0, BP - B), (0, BP - B)))
        hn_p = jnp.pad(hn, ((0, BP - B), (0, BP - B)))
        tmask = hp_p[:, :, None] * hn_p[:, None, :]               # (BP, BP, BP)

        loss_steps, dqp_steps = pl.pallas_call(
            kernel,
            out_shape=(jax.ShapeDtypeStruct((nsteps, 1, 1), jnp.float32),
                       jax.ShapeDtypeStruct((nsteps, NQ, n_way), jnp.float32)),
            grid_spec=pltpu.PrefetchScalarGridSpec(
                num_scalar_prefetch=0,
                grid=(nsteps,),
                in_specs=[
                    pl.BlockSpec((BINS, NTP, FD), lambda s: (s, 0, 0)),  # feat
                    pl.BlockSpec((2 * FD, FD), lambda s: (0, 0)),        # W^T
                    pl.BlockSpec((1, FD), lambda s: (0, 0)),             # bias
                    pl.BlockSpec((BP, NTP), lambda s: (0, 0)),           # sel
                    pl.BlockSpec((BP, BP, BP), lambda s: (0, 0, 0)),     # tmask
                    pl.BlockSpec((BINS, 1), lambda s: (s, 0)),           # bin wts
                ],
                out_specs=[
                    pl.BlockSpec((1, 1, 1), lambda s: (s, 0, 0)),        # loss sum
                    pl.BlockSpec((1, NQ, n_way), lambda s: (s, 0, 0)),   # dqp sum
                ],
            ),
            compiler_params=pltpu.CompilerParams(
                dimension_semantics=("parallel",)),
        )(feat_p, ws_t, bias2d, sel_const, tmask, binw)

        loss = jnp.sum(loss_steps) / float(nbins)                 # mean over bins
        dist_mean = jnp.sum(dqp_steps, axis=0) / float(nbins)     # (NQ, n_way)
        y_pred = jax.nn.softmax(-dist_mean, axis=1)
        return y_pred, loss

    return forward


def reference_forward(feat, label, w_support, b_support, n_way, k_shot, query):
    """Pure-JAX f32 reference mirroring the PyTorch forward semantics."""
    nbins = feat.shape[0]
    NS = n_way * k_shot
    support, queries = feat[:, :NS, :], feat[:, NS:, :]
    norm_a = jnp.linalg.norm(support, axis=-1)
    norm_b = jnp.linalg.norm(queries, axis=-1)
    prod_norm = norm_a[:, :, None] * norm_b[:, None, :]
    prod_norm = jnp.where(prod_norm < EPS, EPS, prod_norm)
    cos = jnp.einsum('bid,bjd->bij', support, queries) / prod_norm
    s2q = jax.nn.softmax(cos, axis=-1)
    s_cat_q = jnp.concatenate([support, jnp.einsum('bij,bjd->bid', s2q, queries)], axis=-1)
    cross_support = jax.nn.relu(s_cat_q @ w_support.T + b_support) + support
    q2s = jax.nn.softmax(jnp.swapaxes(cos, 1, 2), axis=-1)
    q_cat_s = jnp.concatenate([queries, jnp.einsum('bqs,bsd->bqd', q2s, support)], axis=-1)
    cross_query = jax.nn.relu(q_cat_s @ w_support.T + b_support) + queries
    proto = jnp.mean(cross_support.reshape(nbins, n_way, k_shot, FD), axis=2)
    nf = jnp.concatenate([proto, cross_query], axis=1)            # (bins, B, FD)
    sq = jnp.sum(nf * nf, -1)
    gram = jnp.einsum('bid,bjd->bij', nf, nf)
    d = jnp.sqrt(jnp.maximum(sq[:, :, None] + sq[:, None, :] - 2.0 * gram, 0.0))
    hp = (label[:, None] == label[None, :])
    hn = ~hp
    raw = jax.nn.relu(MARGIN + d[:, :, :, None] - d[:, :, None, :])
    mask = (hp[None, :, :, None] & hn[None, :, None, :]).astype(jnp.float32)
    s = jnp.sum(raw * mask, axis=(1, 2, 3))
    c = jnp.sum(mask * (raw > 0.0), axis=(1, 2, 3))
    loss_bins = jnp.where(c == 0.0, 0.0, s / jnp.where(c == 0.0, 1.0, c))
    loss = loss_bins.mean()
    dqp = d[:, n_way:, :n_way]
    y_pred = jax.nn.softmax(-jnp.mean(dqp, axis=0), axis=1)
    return y_pred, loss


if __name__ == "__main__":
    n_way, k_shot, query = 2, 2, 3
    nbins = 31                              # = sum(bin_num) = 1+2+4+8+16
    NS, NQ = n_way * k_shot, n_way * query
    NT, B = NS + NQ, n_way + NQ

    key = jax.random.PRNGKey(0)
    k1, k2, k3 = jax.random.split(key, 3)
    feat = jax.random.normal(k1, (nbins, NT, FD), jnp.float32)
    # support_weight = Linear(512 -> 256) params, deterministic init
    w_support = jax.random.normal(k2, (FD, 2 * FD), jnp.float32) * (1.0 / jnp.sqrt(2.0 * FD))
    b_support = jax.random.normal(k3, (FD,), jnp.float32) * 0.01
    # labels for [proto(n_way) ; queries(n_way*query)]  (== torch.cat(label))
    label = jnp.concatenate([jnp.arange(n_way),
                             jnp.repeat(jnp.arange(n_way), query)]).astype(jnp.int32)

    # 16 bins per grid step -> stacked MXU M = 256 for the fused matmul, 2 steps.
    forward = make_forward(n_way, k_shot, query, bins_per_step=16)
    y_pred, loss = forward(feat, label, w_support, b_support)
    jax.block_until_ready((y_pred, loss))

    y_ref, loss_ref = reference_forward(feat, label, w_support, b_support,
                                        n_way, k_shot, query)

    assert y_pred.shape == (NQ, n_way)
    assert bool(jnp.all(jnp.isfinite(y_pred))) and bool(jnp.isfinite(loss))
    assert bool(jnp.allclose(jnp.sum(y_pred, axis=1), 1.0, atol=1e-3))
    assert bool(jnp.allclose(y_pred, y_ref, atol=5e-2, rtol=5e-2))
    assert bool(jnp.allclose(loss, loss_ref, atol=5e-2, rtol=5e-2))
    print("KERNEL_OK")
</pallas_src>

<mosaic_0001>
module attributes {stable_mosaic.version = 11 : i64} {
  func.func @kernel(%arg0: i32, %arg1: memref<16x16x256xbf16, #tpu.memory_space<vmem>>, %arg2: memref<512x256xbf16, #tpu.memory_space<vmem>>, %arg3: memref<1x256xf32, #tpu.memory_space<vmem>>, %arg4: memref<8x16xf32, #tpu.memory_space<vmem>>, %arg5: memref<8x8x8xf32, #tpu.memory_space<vmem>>, %arg6: memref<16x1xf32, #tpu.memory_space<vmem>>, %arg7: memref<1x1x1xf32, #tpu.memory_space<vmem>>, %arg8: memref<1x6x2xf32, #tpu.memory_space<vmem>>) attributes {dimension_semantics = [#tpu.dimension_semantics<parallel>], iteration_bounds = array<i64: 2>, scalar_prefetch = 0 : i64, scratch_operands = 0 : i64, tpu.core_type = #tpu.core_type<tc>, window_params = [{transform_indices = @transform_0, window_bounds = array<i64: 16, 16, 256>}, {pipeline_mode = #tpu.pipeline_mode<synchronous>, transform_indices = @transform_1, window_bounds = array<i64: 512, 256>}, {pipeline_mode = #tpu.pipeline_mode<synchronous>, transform_indices = @transform_2, window_bounds = array<i64: 1, 256>}, {pipeline_mode = #tpu.pipeline_mode<synchronous>, transform_indices = @transform_3, window_bounds = array<i64: 8, 16>}, {pipeline_mode = #tpu.pipeline_mode<synchronous>, transform_indices = @transform_4, window_bounds = array<i64: 8, 8, 8>}, {transform_indices = @transform_5, window_bounds = array<i64: 16, 1>}, {transform_indices = @transform_6, window_bounds = array<i64: 1, 1, 1>}, {transform_indices = @transform_7, window_bounds = array<i64: 1, 6, 2>}]} {
    %c0 = arith.constant 0 : index
    %c0_0 = arith.constant 0 : index
    %c0_1 = arith.constant 0 : index
    %0 = vector.load %arg1[%c0, %c0_0, %c0_1] : memref<16x16x256xbf16, #tpu.memory_space<vmem>>, vector<16x16x256xbf16>
    %1 = arith.extf %0 : vector<16x16x256xbf16> to vector<16x16x256xf32>
    %2 = vector.extract_strided_slice %0 {offsets = [0, 0, 0], sizes = [16, 8, 256], strides = [1, 1, 1]} : vector<16x16x256xbf16> to vector<16x8x256xbf16>
    %3 = vector.extract_strided_slice %0 {offsets = [0, 8, 0], sizes = [16, 8, 256], strides = [1, 1, 1]} : vector<16x16x256xbf16> to vector<16x8x256xbf16>
    %4 = vector.extract_strided_slice %1 {offsets = [0, 0, 0], sizes = [16, 8, 256], strides = [1, 1, 1]} : vector<16x16x256xf32> to vector<16x8x256xf32>
    %5 = vector.extract_strided_slice %1 {offsets = [0, 8, 0], sizes = [16, 8, 256], strides = [1, 1, 1]} : vector<16x16x256xf32> to vector<16x8x256xf32>
    %c0_2 = arith.constant 0 : index
    %c0_3 = arith.constant 0 : index
    %6 = vector.load %arg3[%c0_2, %c0_3] : memref<1x256xf32, #tpu.memory_space<vmem>>, vector<1x256xf32>
    %7 = arith.mulf %4, %4 : vector<16x8x256xf32>
    %cst = arith.constant dense<0.000000e+00> : vector<16x8xf32>
    %8 = vector.multi_reduction <add>, %7, %cst [2] : vector<16x8x256xf32> to vector<16x8xf32>
    %9 = math.sqrt %8 : vector<16x8xf32>
    %10 = arith.mulf %5, %5 : vector<16x8x256xf32>
    %cst_4 = arith.constant dense<0.000000e+00> : vector<16x8xf32>
    %11 = vector.multi_reduction <add>, %10, %cst_4 [2] : vector<16x8x256xf32> to vector<16x8xf32>
    %12 = math.sqrt %11 : vector<16x8xf32>
    "tpu.trace_start"() <{level = 10 : i32, message = "bsd,bqd->bsq"}> : () -> ()
    %cst_5 = arith.constant dense<0.000000e+00> : vector<16x8x8xf32>
    %13 = tpu.matmul %2, %3, %cst_5 {dimension_numbers = #tpu.dot_dimension_numbers<[2], [2], [1], [1], [0, 0, 0, 1, 1, 1], [0], [0]>} : vector<16x8x256xbf16>, vector<16x8x256xbf16>, vector<16x8x8xf32> -> vector<16x8x8xf32>
    "tpu.trace_stop"() : () -> ()
    %14 = vector.shape_cast %9 : vector<16x8xf32> to vector<16x8x1xf32>
    %15 = vector.shape_cast %12 : vector<16x8xf32> to vector<16x1x8xf32>
    %16 = vector.broadcast %14 : vector<16x8x1xf32> to vector<16x8x8xf32>
    %17 = vector.broadcast %15 : vector<16x1x8xf32> to vector<16x8x8xf32>
    %18 = arith.mulf %16, %17 : vector<16x8x8xf32>
    %cst_6 = arith.constant 9.99999997E-7 : f32
    %19 = vector.broadcast %cst_6 : f32 to vector<16x8x8xf32>
    %20 = arith.maximumf %18, %19 : vector<16x8x8xf32>
    %21 = arith.divf %13, %20 : vector<16x8x8xf32>
    "tpu.trace_start"() <{level = 10 : i32, message = "bqd,bsd->bqs"}> : () -> ()
    %cst_7 = arith.constant dense<0.000000e+00> : vector<16x8x8xf32>
    %22 = tpu.matmul %3, %2, %cst_7 {dimension_numbers = #tpu.dot_dimension_numbers<[2], [2], [1], [1], [0, 0, 0, 1, 1, 1], [0], [0]>} : vector<16x8x256xbf16>, vector<16x8x256xbf16>, vector<16x8x8xf32> -> vector<16x8x8xf32>
    "tpu.trace_stop"() : () -> ()
    %23 = vector.shape_cast %12 : vector<16x8xf32> to vector<16x8x1xf32>
    %24 = vector.shape_cast %9 : vector<16x8xf32> to vector<16x1x8xf32>
    %25 = vector.broadcast %23 : vector<16x8x1xf32> to vector<16x8x8xf32>
    %26 = vector.broadcast %24 : vector<16x1x8xf32> to vector<16x8x8xf32>
    %27 = arith.mulf %25, %26 : vector<16x8x8xf32>
    %cst_8 = arith.constant 9.99999997E-7 : f32
    %28 = vector.broadcast %cst_8 : f32 to vector<16x8x8xf32>
    %29 = arith.maximumf %27, %28 : vector<16x8x8xf32>
    %30 = arith.divf %22, %29 : vector<16x8x8xf32>
    %31 = tpu.iota {dimensions = array<i32: 2>} : vector<1x1x8xi32>
    %c6_i32 = arith.constant 6 : i32
    %32 = vector.broadcast %c6_i32 : i32 to vector<1x1x8xi32>
    %33 = arith.cmpi slt, %31, %32 : vector<1x1x8xi32>
    %cst_9 = arith.constant 0.000000e+00 : f32
    %cst_10 = arith.constant -1.000000e+09 : f32
    %34 = vector.broadcast %cst_9 : f32 to vector<1x1x8xf32>
    %35 = vector.broadcast %cst_10 : f32 to vector<1x1x8xf32>
    %36 = arith.select %33, %34, %35 : vector<1x1x8xi1>, vector<1x1x8xf32>
    %37 = vector.broadcast %36 : vector<1x1x8xf32> to vector<16x8x8xf32>
    %38 = arith.addf %21, %37 : vector<16x8x8xf32>
    %39 = tpu.iota {dimensions = array<i32: 2>} : vector<1x1x8xi32>
    %c4_i32 = arith.constant 4 : i32
    %40 = vector.broadcast %c4_i32 : i32 to vector<1x1x8xi32>
    %41 = arith.cmpi slt, %39, %40 : vector<1x1x8xi32>
    %cst_11 = arith.constant 0.000000e+00 : f32
    %cst_12 = arith.constant -1.000000e+09 : f32
    %42 = vector.broadcast %cst_11 : f32 to vector<1x1x8xf32>
    %43 = vector.broadcast %cst_12 : f32 to vector<1x1x8xf32>
    %44 = arith.select %41, %42, %43 : vector<1x1x8xi1>, vector<1x1x8xf32>
    %45 = vector.broadcast %44 : vector<1x1x8xf32> to vector<16x8x8xf32>
    %46 = arith.addf %30, %45 : vector<16x8x8xf32>
    %cst_13 = arith.constant dense<0xFF800000> : vector<16x8xf32>
    %47 = vector.multi_reduction <maximumf>, %38, %cst_13 [2] : vector<16x8x8xf32> to vector<16x8xf32>
    %48 = vector.shape_cast %47 : vector<16x8xf32> to vector<16x8x1xf32>
    %49 = vector.broadcast %48 : vector<16x8x1xf32> to vector<16x8x8xf32>
    %50 = arith.subf %38, %49 : vector<16x8x8xf32>
    %51 = math.exp %50 : vector<16x8x8xf32>
    %cst_14 = arith.constant dense<0.000000e+00> : vector<16x8xf32>
    %52 = vector.multi_reduction <add>, %51, %cst_14 [2] : vector<16x8x8xf32> to vector<16x8xf32>
    %53 = vector.shape_cast %52 : vector<16x8xf32> to vector<16x8x1xf32>
    %54 = vector.broadcast %53 : vector<16x8x1xf32> to vector<16x8x8xf32>
    %55 = arith.divf %51, %54 : vector<16x8x8xf32>
    %cst_15 = arith.constant dense<0xFF800000> : vector<16x8xf32>
    %56 = vector.multi_reduction <maximumf>, %46, %cst_15 [2] : vector<16x8x8xf32> to vector<16x8xf32>
    %57 = vector.shape_cast %56 : vector<16x8xf32> to vector<16x8x1xf32>
    %58 = vector.broadcast %57 : vector<16x8x1xf32> to vector<16x8x8xf32>
    %59 = arith.subf %46, %58 : vector<16x8x8xf32>
    %60 = math.exp %59 : vector<16x8x8xf32>
    %cst_16 = arith.constant dense<0.000000e+00> : vector<16x8xf32>
    %61 = vector.multi_reduction <add>, %60, %cst_16 [2] : vector<16x8x8xf32> to vector<16x8xf32>
    %62 = vector.shape_cast %61 : vector<16x8xf32> to vector<16x8x1xf32>
    %63 = vector.broadcast %62 : vector<16x8x1xf32> to vector<16x8x8xf32>
    %64 = arith.divf %60, %63 : vector<16x8x8xf32>
    %65 = arith.truncf %55 : vector<16x8x8xf32> to vector<16x8x8xbf16>
    "tpu.trace_start"() <{level = 10 : i32, message = "bsq,bqd->bsd"}> : () -> ()
    %cst_17 = arith.constant dense<0.000000e+00> : vector<16x8x256xf32>
    %66 = tpu.matmul %65, %3, %cst_17 {dimension_numbers = #tpu.dot_dimension_numbers<[2], [1], [1], [2], [0, 0, 0, 1, 1, 2], [0], [0]>} : vector<16x8x8xbf16>, vector<16x8x256xbf16>, vector<16x8x256xf32> -> vector<16x8x256xf32>
    "tpu.trace_stop"() : () -> ()
    %67 = arith.truncf %64 : vector<16x8x8xf32> to vector<16x8x8xbf16>
    "tpu.trace_start"() <{level = 10 : i32, message = "bqs,bsd->bqd"}> : () -> ()
    %cst_18 = arith.constant dense<0.000000e+00> : vector<16x8x256xf32>
    %68 = tpu.matmul %67, %2, %cst_18 {dimension_numbers = #tpu.dot_dimension_numbers<[2], [1], [1], [2], [0, 0, 0, 1, 1, 2], [0], [0]>} : vector<16x8x8xbf16>, vector<16x8x256xbf16>, vector<16x8x256xf32> -> vector<16x8x256xf32>
    "tpu.trace_stop"() : () -> ()
    %69 = tpu.concatenate %66, %68 in 1 : vector<16x8x256xf32>, vector<16x8x256xf32> -> vector<16x16x256xf32>
    %70 = arith.truncf %69 : vector<16x16x256xf32> to vector<16x16x256xbf16>
    %71 = tpu.concatenate %0, %70 in 2 : vector<16x16x256xbf16>, vector<16x16x256xbf16> -> vector<16x16x512xbf16>
    %72 = vector.shape_cast %71 : vector<16x16x512xbf16> to vector<256x512xbf16>
    %c0_19 = arith.constant 0 : index
    %c0_20 = arith.constant 0 : index
    %73 = vector.load %arg2[%c0_19, %c0_20] : memref<512x256xbf16, #tpu.memory_space<vmem>>, vector<512x256xbf16>
    %cst_21 = arith.constant dense<0.000000e+00> : vector<256x256xf32>
    %74 = tpu.matmul %72, %73, %cst_21 {dimension_numbers = #tpu.dot_dimension_numbers<[1], [0], [0], [1], [0, 0, 1, 1], [], []>} : vector<256x512xbf16>, vector<512x256xbf16>, vector<256x256xf32> -> vector<256x256xf32>
    %75 = vector.shape_cast %74 : vector<256x256xf32> to vector<16x16x256xf32>
    %76 = vector.shape_cast %6 : vector<1x256xf32> to vector<1x1x256xf32>
    %77 = vector.broadcast %76 : vector<1x1x256xf32> to vector<16x16x256xf32>
    %78 = arith.addf %75, %77 : vector<16x16x256xf32>
    %cst_22 = arith.constant 0.000000e+00 : f32
    %79 = vector.broadcast %cst_22 : f32 to vector<16x16x256xf32>
    %80 = arith.maximumf %78, %79 : vector<16x16x256xf32>
    %81 = arith.addf %80, %1 : vector<16x16x256xf32>
    %c0_23 = arith.constant 0 : index
    %c0_24 = arith.constant 0 : index
    %82 = vector.load %arg4[%c0_23, %c0_24] : memref<8x16xf32, #tpu.memory_space<vmem>>, vector<8x16xf32>
    %83 = vector.shape_cast %82 : vector<8x16xf32> to vector<1x8x16xf32>
    %84 = vector.shape_cast %83 : vector<1x8x16xf32> to vector<1x8x16xf32>
    %85 = vector.broadcast %84 : vector<1x8x16xf32> to vector<16x8x16xf32>
    "tpu.trace_start"() <{level = 10 : i32, message = "bpt,btf->bpf"}> : () -> ()
    %cst_25 = arith.constant dense<0.000000e+00> : vector<16x8x256xf32>
    %86 = tpu.matmul %85, %81, %cst_25 {dimension_numbers = #tpu.dot_dimension_numbers<[2], [1], [1], [2], [0, 0, 0, 1, 1, 2], [0], [0]>} : vector<16x8x16xf32>, vector<16x16x256xf32>, vector<16x8x256xf32> -> vector<16x8x256xf32>
    "tpu.trace_stop"() : () -> ()
    %87 = arith.mulf %86, %86 : vector<16x8x256xf32>
    %cst_26 = arith.constant dense<0.000000e+00> : vector<16x8xf32>
    %88 = vector.multi_reduction <add>, %87, %cst_26 [2] : vector<16x8x256xf32> to vector<16x8xf32>
    "tpu.trace_start"() <{level = 10 : i32, message = "bif,bjf->bij"}> : () -> ()
    %cst_27 = arith.constant dense<0.000000e+00> : vector<16x8x8xf32>
    %89 = tpu.matmul %86, %86, %cst_27 {dimension_numbers = #tpu.dot_dimension_numbers<[2], [2], [1], [1], [0, 0, 0, 1, 1, 1], [0], [0]>} : vector<16x8x256xf32>, vector<16x8x256xf32>, vector<16x8x8xf32> -> vector<16x8x8xf32>
    "tpu.trace_stop"() : () -> ()
    %90 = vector.shape_cast %88 : vector<16x8xf32> to vector<16x8x1xf32>
    %91 = vector.shape_cast %88 : vector<16x8xf32> to vector<16x1x8xf32>
    %92 = vector.broadcast %90 : vector<16x8x1xf32> to vector<16x8x8xf32>
    %93 = vector.broadcast %91 : vector<16x1x8xf32> to vector<16x8x8xf32>
    %94 = arith.addf %92, %93 : vector<16x8x8xf32>
    %cst_28 = arith.constant 2.000000e+00 : f32
    %95 = vector.broadcast %cst_28 : f32 to vector<16x8x8xf32>
    %96 = arith.mulf %95, %89 : vector<16x8x8xf32>
    %97 = arith.subf %94, %96 : vector<16x8x8xf32>
    %cst_29 = arith.constant 0.000000e+00 : f32
    %98 = vector.broadcast %cst_29 : f32 to vector<16x8x8xf32>
    %99 = arith.maximumf %97, %98 : vector<16x8x8xf32>
    %100 = math.sqrt %99 : vector<16x8x8xf32>
    %c0_30 = arith.constant 0 : index
    %c0_31 = arith.constant 0 : index
    %101 = vector.load %arg6[%c0_30, %c0_31] : memref<16x1xf32, #tpu.memory_space<vmem>>, vector<16x1xf32>
    %102 = vector.extract_strided_slice %100 {offsets = [0, 2, 0], sizes = [16, 6, 2], strides = [1, 1, 1]} : vector<16x8x8xf32> to vector<16x6x2xf32>
    %103 = vector.shape_cast %101 : vector<16x1xf32> to vector<16x1x1xf32>
    %104 = vector.broadcast %103 : vector<16x1x1xf32> to vector<16x6x2xf32>
    %105 = arith.mulf %102, %104 : vector<16x6x2xf32>
    %cst_32 = arith.constant dense<0.000000e+00> : vector<6x2xf32>
    %106 = vector.multi_reduction <add>, %105, %cst_32 [0] : vector<16x6x2xf32> to vector<6x2xf32>
    %c0_33 = arith.constant 0 : index
    %c0_34 = arith.constant 0 : index
    %c0_35 = arith.constant 0 : index
    %107 = vector.load %arg8[%c0_33, %c0_34, %c0_35] : memref<1x6x2xf32, #tpu.memory_space<vmem>>, vector<1x6x2xf32>
    %108 = vector.shape_cast %107 : vector<1x6x2xf32> to vector<6x2xf32>
    %109 = vector.shape_cast %106 : vector<6x2xf32> to vector<1x6x2xf32>
    tpu.vector_store %arg8[%c0_33, %c0_34, %c0_35], %109 {strides = array<i32>} : memref<1x6x2xf32, #tpu.memory_space<vmem>>, vector<1x6x2xf32>,
    %110 = vector.shape_cast %100 : vector<16x8x8xf32> to vector<16x8x8x1xf32>
    %cst_36 = arith.constant 2.000000e-01 : f32
    %111 = vector.broadcast %cst_36 : f32 to vector<16x8x8x1xf32>
    %112 = arith.addf %111, %110 : vector<16x8x8x1xf32>
    %113 = vector.shape_cast %100 : vector<16x8x8xf32> to vector<16x8x1x8xf32>
    %114 = vector.broadcast %112 : vector<16x8x8x1xf32> to vector<16x8x8x8xf32>
    %115 = vector.broadcast %113 : vector<16x8x1x8xf32> to vector<16x8x8x8xf32>
    %116 = arith.subf %114, %115 : vector<16x8x8x8xf32>
    %cst_37 = arith.constant 0.000000e+00 : f32
    %117 = vector.broadcast %cst_37 : f32 to vector<16x8x8x8xf32>
    %118 = arith.maximumf %116, %117 : vector<16x8x8x8xf32>
    %c0_38 = arith.constant 0 : index
    %c0_39 = arith.constant 0 : index
    %c0_40 = arith.constant 0 : index
    %119 = vector.load %arg5[%c0_38, %c0_39, %c0_40] : memref<8x8x8xf32, #tpu.memory_space<vmem>>, vector<8x8x8xf32>
    %120 = vector.shape_cast %119 : vector<8x8x8xf32> to vector<1x8x8x8xf32>
    %121 = vector.broadcast %120 : vector<1x8x8x8xf32> to vector<16x8x8x8xf32>
    %122 = arith.mulf %118, %121 : vector<16x8x8x8xf32>
    %cst_41 = arith.constant dense<0.000000e+00> : vector<16x8x8xf32>
    %123 = vector.multi_reduction <add>, %122, %cst_41 [3] : vector<16x8x8x8xf32> to vector<16x8x8xf32>
    %cst_42 = arith.constant dense<0.000000e+00> : vector<16x8xf32>
    %124 = vector.multi_reduction <add>, %123, %cst_42 [2] : vector<16x8x8xf32> to vector<16x8xf32>
    %cst_43 = arith.constant dense<0.000000e+00> : vector<16xf32>
    %125 = vector.multi_reduction <add>, %124, %cst_43 [1] : vector<16x8xf32> to vector<16xf32>
    %126 = vector.shape_cast %125 : vector<16xf32> to vector<16x1xf32>
    %cst_44 = arith.constant 0.000000e+00 : f32
    %127 = vector.broadcast %cst_44 : f32 to vector<16x8x8x8xf32>
    %128 = arith.cmpf ogt, %118, %127 : vector<16x8x8x8xf32>
    %cst_45 = arith.constant 1.000000e+00 : f32
    %cst_46 = arith.constant 0.000000e+00 : f32
    %129 = vector.broadcast %cst_45 : f32 to vector<16x8x8x8xf32>
    %130 = vector.broadcast %cst_46 : f32 to vector<16x8x8x8xf32>
    %131 = arith.select %128, %129, %130 : vector<16x8x8x8xi1>, vector<16x8x8x8xf32>
    %132 = vector.shape_cast %119 : vector<8x8x8xf32> to vector<1x8x8x8xf32>
    %133 = vector.broadcast %132 : vector<1x8x8x8xf32> to vector<16x8x8x8xf32>
    %134 = arith.mulf %131, %133 : vector<16x8x8x8xf32>
    %cst_47 = arith.constant dense<0.000000e+00> : vector<16x8x8xf32>
    %135 = vector.multi_reduction <add>, %134, %cst_47 [3] : vector<16x8x8x8xf32> to vector<16x8x8xf32>
    %cst_48 = arith.constant dense<0.000000e+00> : vector<16x8xf32>
    %136 = vector.multi_reduction <add>, %135, %cst_48 [2] : vector<16x8x8xf32> to vector<16x8xf32>
    %cst_49 = arith.constant dense<0.000000e+00> : vector<16xf32>
    %137 = vector.multi_reduction <add>, %136, %cst_49 [1] : vector<16x8xf32> to vector<16xf32>
    %138 = vector.shape_cast %137 : vector<16xf32> to vector<16x1xf32>
    %cst_50 = arith.constant 0.000000e+00 : f32
    %139 = vector.broadcast %cst_50 : f32 to vector<16x1xf32>
    %140 = arith.cmpf oeq, %138, %139 : vector<16x1xf32>
    %cst_51 = arith.constant 0.000000e+00 : f32
    %141 = vector.broadcast %cst_51 : f32 to vector<16x1xf32>
    %142 = arith.cmpf oeq, %138, %141 : vector<16x1xf32>
    %cst_52 = arith.constant 1.000000e+00 : f32
    %143 = vector.broadcast %cst_52 : f32 to vector<16x1xf32>
    %144 = arith.select %142, %143, %138 : vector<16x1xi1>, vector<16x1xf32>
    %145 = arith.divf %126, %144 : vector<16x1xf32>
    %cst_53 = arith.constant 0.000000e+00 : f32
    %146 = vector.broadcast %cst_53 : f32 to vector<16x1xf32>
    %147 = arith.select %140, %146, %145 : vector<16x1xi1>, vector<16x1xf32>
    %148 = arith.mulf %147, %101 : vector<16x1xf32>
    %cst_54 = arith.constant dense<0.000000e+00> : vector<1xf32>
    %149 = vector.multi_reduction <add>, %148, %cst_54 [0] : vector<16x1xf32> to vector<1xf32>
    %150 = vector.shape_cast %149 : vector<1xf32> to vector<1x1xf32>
    %c0_55 = arith.constant 0 : index
    %c0_56 = arith.constant 0 : index
    %c0_57 = arith.constant 0 : index
    %151 = vector.load %arg7[%c0_55, %c0_56, %c0_57] : memref<1x1x1xf32, #tpu.memory_space<vmem>>, vector<1x1x1xf32>
    %152 = vector.shape_cast %151 : vector<1x1x1xf32> to vector<1x1xf32>
    %153 = vector.shape_cast %150 : vector<1x1xf32> to vector<1x1x1xf32>
    tpu.vector_store %arg7[%c0_55, %c0_56, %c0_57], %153 {strides = array<i32>} : memref<1x1x1xf32, #tpu.memory_space<vmem>>, vector<1x1x1xf32>,
    return
  }
  func.func @transform_0(%arg0: i32) -> (i32, i32, i32) {
    %c0_i32 = arith.constant 0 : i32
    %c0_i32_0 = arith.constant 0 : i32
    %c0_i32_1 = arith.constant 0 : i32
    return %arg0, %c0_i32, %c0_i32_0 : i32, i32, i32
  }
  func.func @transform_1(%arg0: i32) -> (i32, i32) {
    %c0_i32 = arith.constant 0 : i32
    %c0_i32_0 = arith.constant 0 : i32
    %c0_i32_1 = arith.constant 0 : i32
    return %c0_i32, %c0_i32_0 : i32, i32
  }
  func.func @transform_2(%arg0: i32) -> (i32, i32) {
    %c0_i32 = arith.constant 0 : i32
    %c0_i32_0 = arith.constant 0 : i32
    %c0_i32_1 = arith.constant 0 : i32
    return %c0_i32, %c0_i32_0 : i32, i32
  }
  func.func @transform_3(%arg0: i32) -> (i32, i32) {
    %c0_i32 = arith.constant 0 : i32
    %c0_i32_0 = arith.constant 0 : i32
    %c0_i32_1 = arith.constant 0 : i32
    return %c0_i32, %c0_i32_0 : i32, i32
  }
  func.func @transform_4(%arg0: i32) -> (i32, i32, i32) {
    %c0_i32 = arith.constant 0 : i32
    %c0_i32_0 = arith.constant 0 : i32
    %c0_i32_1 = arith.constant 0 : i32
    %c0_i32_2 = arith.constant 0 : i32
    return %c0_i32, %c0_i32_0, %c0_i32_1 : i32, i32, i32
  }
  func.func @transform_5(%arg0: i32) -> (i32, i32) {
    %c0_i32 = arith.constant 0 : i32
    %c0_i32_0 = arith.constant 0 : i32
    return %arg0, %c0_i32 : i32, i32
  }
  func.func @transform_6(%arg0: i32) -> (i32, i32, i32) {
    %c0_i32 = arith.constant 0 : i32
    %c0_i32_0 = arith.constant 0 : i32
    %c0_i32_1 = arith.constant 0 : i32
    return %arg0, %c0_i32, %c0_i32_0 : i32, i32, i32
  }
  func.func @transform_7(%arg0: i32) -> (i32, i32, i32) {
    %c0_i32 = arith.constant 0 : i32
    %c0_i32_0 = arith.constant 0 : i32
    %c0_i32_1 = arith.constant 0 : i32
    return %arg0, %c0_i32, %c0_i32_0 : i32, i32, i32
  }
}

</mosaic_0001>

<bundles_post_ra>
// kernel: forward.1
= control target key start
LH: loop header
LB: loop body
LE: loop exit
PB: predicated region body
PF: predicated region fallthrough
CT: control target
= control target key end

     0   :  { %s15889_s24 = smov 0   ;;  %s22458_s0 = inlined_call_operand.vmem [shape: bf16[32,16,256], index: 0, kind: input, shape index: {}]   ;;  %s22459_s1 = inlined_call_operand.vmem [shape: bf16[512,256], index: 1, kind: input, shape index: {}]   ;;  %s22460_s2 = inlined_call_operand.vmem [shape: f32[1,256], index: 2, kind: input, shape index: {}]   ;;  %s22461_s3 = inlined_call_operand.vmem [shape: f32[8,16], index: 3, kind: input, shape index: {}]   ;;  %s22462_s4 = inlined_call_operand.vmem [shape: f32[8,8,8], index: 4, kind: input, shape index: {}]   ;;  %s22463_s5 = inlined_call_operand.vmem [shape: f32[32,1], index: 5, kind: input, shape index: {}]   ;;  %s22464_s6 = inlined_call_operand.vmem [shape: f32[2,1,1], index: 6, kind: output, shape index: {0}]   ;;  %s22465_s7 = inlined_call_operand.vmem [shape: f32[2,6,2], index: 7, kind: output, shape index: {1}]  }
   0x1 LB: > { %s15895_s25 = sadd.s32 4294967295, %s15843_s24   ;;  %p14861_p0 = scmp.ge.s32.totalorder %s15843_s24, 1  ;;  %s15843_s24 = sphi %s15889_s24, %s18_s24  }
   0x2   : > { %p253_p1 = scmp.lt.s32.totalorder %s15843_s24, 3 }
   0x4   : > { %p254_p2 = pnand %p14861_p0, %p253_p1 }
   0x6   : > { %257 = sbr.rel (%p254_p2) target bundleno = 2859 (0xb2b), region = 44 }
   0xd   : > { %s14862_s26 = sshll.u32 %s15895_s25, 4  ;;  %s14865_s19 = sshll.u32 %s15895_s25, 1 }
   0xe   : > { %p294_p3 = scmp.lt.s32.totalorder %s14862_s26, 31  ;;  %p301_p4 = scmp.lt.s32.totalorder %s14865_s19, 3 }
   0xf   : > { %p306_p5 = scmp.lt.s32.totalorder %s15895_s25, 1 }
  0x10   : > { %s23323_s26 = smov (!%p294_p3, %s14862_s26), 31  ;;  %s23325_s19 = smov (!%p301_p4, %s14865_s19), 3 }
  0x11   : > { %s15110_s27 = sshll.u32 %s23323_s26, 4  ;;  %s14866_s20 = sshll.u32 %s23325_s19, 3 }
  0x12   : > { %s15903_s30 = scalar_lea.vmem %s22458_s0, %s15110_s27  ;;  %s18395_s23 = scalar_lea.vmem %s22463_s5, %s14866_s20 }
  0x13   : > { %v315_v0 = vld [vmem:[%s15903_s30 + $0x8] sm:$0xff]  ;;  %v317_v1 = vld [vmem:[%s15903_s30 + $0x18] sm:$0xff]  ;;  %v314_v2 = vld [vmem:[%s15903_s30] sm:$0xff]  ;;  %s23327_s25 = smov (!%p306_p5, %s15895_s25), 1 }
  0x14   : > { %v15908_v3 = vcombine.high %v315_v0, %v315_v0  ;;  %v15910_v4 = vcombine.high %v317_v1, %v317_v1  ;;  %v15912_v5 = vcombine.low %v315_v0, %v315_v0  ;;  %v15914_v6 = vcombine.low %v317_v1, %v317_v1  ;;  %v15917_v7 = vld [vmem:[%s15903_s30 + $0x10] sm:$0xff]  ;;  %v319_v8 = vld [vmem:[%s15903_s30 + $0x28] sm:$0xff]  ;;  %v15921_v9 = vld [vmem:[%s15903_s30 + $0x38] sm:$0xff]  ;;  %s308_s10 = scalar_lea.vmem %s22464_s6, %s23327_s25 }
  0x15   : > { %v15923_v10 = vcombine.high %v314_v2, %v314_v2  ;;  %v15927_v11 = vcombine.high %v15917_v7, %v15917_v7  ;;  %v15931_v12 = vcombine.high %v319_v8, %v319_v8  ;;  %v15935_v13 = vcombine.high %v15921_v9, %v15921_v9  ;;  %v318_v15 = vld [vmem:[%s15903_s30 + $0x20] sm:$0xff]  ;;  %v15951_v18 = vld [vmem:[%s15903_s30 + $0x30] sm:$0xff]  ;;  %v15962_v22 = vld [vmem:[%s15903_s30 + $0x48] sm:$0xff] }
  0x16   : > { %22667 = vst [vmem:[#allocation2_spill] sm:$0xff] %v15908_v3  ;;  %22668 = vst [vmem:[#allocation3_spill] sm:$0xff] %v15910_v4  ;;  %809 = vmatprep.subr.bf16.mxu0 %v15908_v3  ;;  %863 = vmatprep.subr.bf16.mxu1 %v15910_v4  ;;  %v15939_v14 = vunpack.c.l.bf16 %v315_v0  ;;  %v15944_v16 = vunpack.c.h.bf16 %v315_v0  ;;  %v15946_v17 = vunpack.c.l.bf16 %v317_v1  ;;  %v15953_v19 = vunpack.c.h.bf16 %v317_v1  ;;  %v15965_v23 = vld [vmem:[%s15903_s30 + $0x58] sm:$0xff]  ;;  %v16006_v39 = vld [vmem:[%s15903_s30 + $0x40] sm:$0xff] }
  0x17   : > { %22669 = vst [vmem:[#allocation4_spill] sm:$0xff] %v15912_v5  ;;  %22670 = vst [vmem:[#allocation5_spill] sm:$0xff] %v15914_v6  ;;  %810 = vmatpush1.bf16.xpose.msra.mxu0 %v15912_v5  ;;  %864 = vmatpush1.bf16.xpose.msra.mxu1 %v15914_v6  ;;  %v15955_v20 = vcombine.low %v314_v2, %v314_v2  ;;  %v15959_v21 = vcombine.low %v15917_v7, %v15917_v7  ;;  %v15995_v34 = vunpack.c.l.bf16 %v314_v2  ;;  %v16009_v40 = vld [vmem:[%s15903_s30 + $0x50] sm:$0xff]  ;;  %v16016_v42 = vld [vmem:[%s15903_s30 + $0x68] sm:$0xff] }
  0x18   : > { %22671 = vst [vmem:[#allocation6_spill] sm:$0xff] %v15923_v10  ;;  %22672 = vst [vmem:[#allocation7_spill] sm:$0xff] %v15927_v11  ;;  %841 = vmatprep.mubr.bf16.mxu0 %v15923_v10  ;;  %895 = vmatprep.mubr.bf16.mxu1 %v15927_v11  ;;  %v15967_v24 = vcombine.low %v319_v8, %v319_v8  ;;  %v15971_v25 = vcombine.low %v15921_v9, %v15921_v9  ;;  %v15999_v37 = vunpack.c.h.bf16 %v314_v2  ;;  %v16019_v43 = vld [vmem:[%s15903_s30 + $0x78] sm:$0xff]  ;;  %v16076_v62 = vld [vmem:[%s15903_s30 + $0x60] sm:$0xff] }
  0x19   : > { %22673 = vst [vmem:[#allocation8_spill] sm:$0xff] %v15931_v12  ;;  %22674 = vst [vmem:[#allocation9_spill] sm:$0xff] %v15935_v13  ;;  %917 = vmatprep.subr.bf16.mxu0 %v15931_v12  ;;  %971 = vmatprep.subr.bf16.mxu1 %v15935_v13  ;;  %v15973_v26 = vcombine.high %v318_v15, %v318_v15  ;;  %v603_v27 = vmul.f32 %v15939_v14, %v15939_v14  ;;  %v16001_v38 = vunpack.c.l.bf16 %v319_v8  ;;  %v16079_v63 = vld [vmem:[%s15903_s30 + $0x70] sm:$0xff]  ;;  %v16084_v0 = vld [vmem:[%s15903_s30 + $0x88] sm:$0xff] }
  0x1a   : > { %22675 = vst [vmem:[#allocation10_spill] sm:$0xff] %v15939_v14  ;;  %22676 = vst [vmem:[#allocation11_spill] sm:$0xff] %v15944_v16  ;;  %v15979_v28 = vcombine.high %v15951_v18, %v15951_v18  ;;  %v604_v29 = vmul.f32 %v15944_v16, %v15944_v16  ;;  %v605_v30 = vmul.f32 %v15946_v17, %v15946_v17  ;;  %v16011_v41 = vunpack.c.h.bf16 %v319_v8  ;;  %v16087_v1 = vld [vmem:[%s15903_s30 + $0x98] sm:$0xff] }
  0x1b   : > { %22677 = vst [vmem:[#allocation12_spill] sm:$0xff] %v15946_v17  ;;  %22678 = vst [vmem:[#allocation13_spill] sm:$0xff] %v15953_v19  ;;  %v606_v31 = vmul.f32 %v15953_v19, %v15953_v19  ;;  %v15989_v32 = vcombine.high %v15962_v22, %v15962_v22  ;;  %v15993_v33 = vcombine.high %v15965_v23, %v15965_v23  ;;  %v16062_v56 = vunpack.c.l.bf16 %v15917_v7 }
  0x1c   : > { %22679 = vst [vmem:[#allocation14_spill] sm:$0xff] %v15955_v20  ;;  %22680 = vst [vmem:[#allocation15_spill] sm:$0xff] %v15959_v21  ;;  %v635_v35 = vadd.f32 %v604_v29, %v603_v27  ;;  %v16021_v44 = vcombine.low %v318_v15, %v318_v15  ;;  %v16025_v45 = vcombine.low %v15951_v18, %v15951_v18  ;;  %v16065_v57 = vunpack.c.h.bf16 %v15917_v7 }
  0x1d   : > { %22681 = vst [vmem:[#allocation16_spill] sm:$0xff] %v15967_v24  ;;  %22682 = vst [vmem:[#allocation17_spill] sm:$0xff] %v15971_v25  ;;  %v638_v36 = vadd.f32 %v606_v31, %v605_v30  ;;  %v411_v46 = vmul.f32 %v15995_v34, %v15995_v34  ;;  %v412_v47 = vmul.f32 %v15999_v37, %v15999_v37  ;;  %v16069_v60 = vunpack.c.l.bf16 %v318_v15 }
  0x1e   : > { %22683 = vst [vmem:[#allocation18_spill] sm:$0xff] %v15973_v26  ;;  %22684 = vst [vmem:[#allocation19_spill] sm:$0xff] %v15979_v28  ;;  %842 = vmatmul.mubr.bf16.vlgmr.msra.gmra.mrb[0].mxu0 %v15955_v20  ;;  %896 = vmatmul.mubr.bf16.vlgmr.msra.gmra.mrb[0].mxu1 %v15959_v21  ;;  %v607_v48 = vmul.f32 %v16001_v38, %v16001_v38  ;;  %v608_v49 = vmul.f32 %v16011_v41, %v16011_v41  ;;  %v16071_v61 = vunpack.c.h.bf16 %v318_v15 }
  0x1f   : > { %22685 = vst [vmem:[#allocation20_spill] sm:$0xff] %v15989_v32  ;;  %22686 = vst [vmem:[#allocation21_spill] sm:$0xff] %v15993_v33  ;;  %918 = vmatpush1.bf16.xpose.msra.mxu0 %v15967_v24  ;;  %972 = vmatpush1.bf16.xpose.msra.mxu1 %v15971_v25  ;;  %v16039_v50 = vcombine.low %v15962_v22, %v15962_v22  ;;  %v16043_v51 = vcombine.low %v15965_v23, %v15965_v23 }
  0x20   : > { %22687 = vst [vmem:[#allocation22_spill] sm:$0xff] %v15995_v34  ;;  %22688 = vst [vmem:[#allocation23_spill] sm:$0xff] %v15999_v37  ;;  %949 = vmatprep.mubr.bf16.mxu0 %v15973_v26  ;;  %1003 = vmatprep.mubr.bf16.mxu1 %v15979_v28  ;;  %v16047_v52 = vcombine.high %v16006_v39, %v16006_v39  ;;  %v16051_v53 = vcombine.high %v16009_v40, %v16009_v40  ;;  %v16218_v34 = vunpack.c.l.bf16 %v16016_v42 }
  0x21   : > { %22689 = vst [vmem:[#allocation24_spill] sm:$0xff] %v16001_v38  ;;  %22690 = vst [vmem:[#allocation25_spill] sm:$0xff] %v16011_v41  ;;  %1025 = vmatprep.subr.bf16.mxu0 %v15989_v32  ;;  %1079 = vmatprep.subr.bf16.mxu1 %v15993_v33  ;;  %v16055_v54 = vcombine.high %v16016_v42, %v16016_v42  ;;  %v16059_v55 = vcombine.high %v16019_v43, %v16019_v43  ;;  %v16140_v41 = vunpack.c.l.bf16 %v15921_v9  ;;  %v16171_v38 = vld [vmem:[%s15903_s30 + $0xb8] sm:$0xff] }
  0x22   : > { %22691 = vst [vmem:[#allocation26_spill] sm:$0xff] %v16021_v44  ;;  %22692 = vst [vmem:[#allocation27_spill] sm:$0xff] %v16025_v45  ;;  %636 = vadd.xlane.f32.xlu0 %v635_v35  ;;  %639 = vadd.xlane.f32.xlu1 %v638_v36  ;;  %v443_v58 = vadd.f32 %v412_v47, %v411_v46  ;;  %v641_v59 = vadd.f32 %v608_v49, %v607_v48  ;;  %v16132_v49 = vunpack.c.l.bf16 %v15962_v22 }
  0x23   : > { %22693 = vst [vmem:[#allocation28_spill] sm:$0xff] %v16039_v50  ;;  %22694 = vst [vmem:[#allocation29_spill] sm:$0xff] %v16043_v51  ;;  %v16091_v2 = vcombine.low %v16006_v39, %v16006_v39  ;;  %v413_v7 = vmul.f32 %v16062_v56, %v16062_v56  ;;  %v414_v8 = vmul.f32 %v16065_v57, %v16065_v57 }
  0x24   : > { %22695 = vst [vmem:[#allocation30_spill] sm:$0xff] %v16047_v52  ;;  %22696 = vst [vmem:[#allocation31_spill] sm:$0xff] %v16051_v53  ;;  %v16101_v15 = vcombine.low %v16009_v40, %v16009_v40  ;;  %v415_v27 = vmul.f32 %v16069_v60, %v16069_v60  ;;  %v416_v29 = vmul.f32 %v16071_v61, %v16071_v61 }
  0x25   : > { %22697 = vst [vmem:[#allocation32_spill] sm:$0xff] %v16055_v54  ;;  %22698 = vst [vmem:[#allocation33_spill] sm:$0xff] %v16059_v55  ;;  %v16109_v30 = vcombine.low %v16019_v43, %v16019_v43  ;;  %v16113_v31 = vcombine.low %v16016_v42, %v16016_v42  ;;  %v16117_v35 = vcombine.high %v16076_v62, %v16076_v62 }
  0x26   : > { %22699 = vst [vmem:[#allocation34_spill] sm:$0xff] %v16062_v56  ;;  %22700 = vst [vmem:[#allocation35_spill] sm:$0xff] %v16065_v57  ;;  %950 = vmatmul.mubr.bf16.vlgmr.msra.gmra.mrb[4].mxu0 %v16021_v44  ;;  %1004 = vmatmul.mubr.bf16.vlgmr.msra.gmra.mrb[4].mxu1 %v16025_v45  ;;  %v16121_v36 = vcombine.high %v16079_v63, %v16079_v63  ;;  %v16125_v46 = vcombine.high %v16084_v0, %v16084_v0  ;;  %v16205_v56 = vunpack.c.h.bf16 %v15951_v18 }
  0x27   : > { %22701 = vst [vmem:[#allocation36_spill] sm:$0xff] %v16069_v60  ;;  %22702 = vst [vmem:[#allocation37_spill] sm:$0xff] %v16071_v61  ;;  %1026 = vmatpush1.bf16.xpose.msra.mxu0 %v16039_v50  ;;  %1080 = vmatpush1.bf16.xpose.msra.mxu1 %v16043_v51  ;;  %v16129_v47 = vcombine.high %v16087_v1, %v16087_v1  ;;  %v446_v48 = vadd.f32 %v414_v8, %v413_v7  ;;  %v16143_v7 = vunpack.c.h.bf16 %v15921_v9  ;;  %v16160_v9 = vld [vmem:[%s15903_s30 + $0x80] sm:$0xff]  ;;  %v16168_v61 = vld [vmem:[%s15903_s30 + $0xa8] sm:$0xff] }
  0x28   : > { %1057 = vmatprep.mubr.bf16.mxu0 %v16047_v52  ;;  %1111 = vmatprep.mubr.bf16.mxu1 %v16051_v53  ;;  %22703 = vst [vmem:[#allocation38_spill] sm:$0xff] %v16091_v2  ;;  %22704 = vst [vmem:[#allocation39_spill] sm:$0xff] %v16101_v15  ;;  %v16155_v8 = vcombine.low %v16079_v63, %v16079_v63  ;;  %v609_v19 = vmul.f32 %v16140_v41, %v16140_v41 }
  0x29   : > { %1133 = vmatprep.subr.bf16.mxu0 %v16055_v54  ;;  %1187 = vmatprep.subr.bf16.mxu1 %v16059_v55  ;;  %22705 = vst [vmem:[#allocation40_spill] sm:$0xff] %v16109_v30  ;;  %22706 = vst [vmem:[#allocation41_spill] sm:$0xff] %v16113_v31  ;;  %v610_v57 = vmul.f32 %v16143_v7, %v16143_v7  ;;  %v16181_v17 = vcombine.low %v16084_v0, %v16084_v0 }
  0x2a   : > { %444 = vadd.xlane.f32.xlu0 %v443_v58  ;;  %642 = vadd.xlane.f32.xlu1 %v641_v59  ;;  %22707 = vst [vmem:[#allocation42_spill] sm:$0xff] %v16117_v35  ;;  %22708 = vst [vmem:[#allocation43_spill] sm:$0xff] %v16121_v36  ;;  %v449_v58 = vadd.f32 %v416_v29, %v415_v27  ;;  %v16137_v59 = vunpack.c.h.bf16 %v15962_v22  ;;  %v16151_v22 = vcombine.low %v16076_v62, %v16076_v62  ;;  %v16163_v27 = vld [vmem:[%s15903_s30 + $0x90] sm:$0xff] }
  0x2b   : > { %22709 = vst [vmem:[#allocation44_spill] sm:$0xff] %v16125_v46  ;;  %22710 = vst [vmem:[#allocation45_spill] sm:$0xff] %v16129_v47  ;;  %v611_v29 = vmul.f32 %v16132_v49, %v16132_v49  ;;  %v16209_v16 = vcombine.high %v16168_v61, %v16168_v61  ;;  %v644_v14 = vadd.f32 %v610_v57, %v609_v19  ;;  %v16236_v57 = vunpack.c.l.bf16 %v15965_v23 }
  0x2c   : > { %22711 = vst [vmem:[#allocation46_spill] sm:$0xff] %v16132_v49  ;;  %22712 = vst [vmem:[#allocation47_spill] sm:$0xff] %v16137_v59  ;;  %v612_v60 = vmul.f32 %v16137_v59, %v16137_v59  ;;  %v16191_v49 = vunpack.c.h.bf16 %v16006_v39  ;;  %v16195_v59 = vcombine.high %v16160_v9, %v16160_v9 }
  0x2d   : > { %22713 = vst [vmem:[#allocation48_spill] sm:$0xff] %v16140_v41  ;;  %22714 = vst [vmem:[#allocation49_spill] sm:$0xff] %v16143_v7  ;;  %v16199_v7 = vcombine.high %v16163_v27, %v16163_v27  ;;  %v16202_v41 = vunpack.c.l.bf16 %v15951_v18  ;;  %v16221_v18 = vunpack.c.h.bf16 %v16016_v42  ;;  %v418_v42 = vmul.f32 %v16205_v56, %v16205_v56 }
  0x2e   : > { %1058 = vmatmul.mubr.bf16.vlgmr.msra.gmra.mrb[8].mxu0 %v16091_v2  ;;  %1112 = vmatmul.mubr.bf16.vlgmr.msra.gmra.mrb[8].mxu1 %v16101_v15  ;;  %22715 = vst [vmem:[#allocation50_spill] sm:$0xff] %v16151_v22  ;;  %22716 = vst [vmem:[#allocation51_spill] sm:$0xff] %v16155_v8  ;;  %v647_v37 = vadd.f32 %v612_v60, %v611_v29  ;;  %v16239_v60 = vunpack.c.h.bf16 %v15965_v23  ;;  %v16243_v29 = vcombine.low %v16160_v9, %v16160_v9 }
  0x2f   : > { %1188 = vmatpush1.bf16.xpose.msra.mxu1 %v16109_v30  ;;  %1134 = vmatpush1.bf16.xpose.msra.mxu0 %v16113_v31  ;;  %22717 = vst [vmem:[#allocation52_spill] sm:$0xff] %v16181_v17  ;;  %22720 = vst [vmem:[#allocation55_spill] sm:$0xff] %v16191_v49  ;;  %v417_v19 = vmul.f32 %v16202_v41, %v16202_v41  ;;  %v16257_v23 = vcombine.low %v16171_v38, %v16171_v38  ;;  %v16273_v30 = vld [vmem:[%s15903_s30 + $0xd8] sm:$0xff]  ;;  %v16282_v31 = vunpack.c.l.bf16 %v16009_v40 }
  0x30   : > { %1165 = vmatprep.mubr.bf16.mxu0 %v16117_v35  ;;  %1219 = vmatprep.mubr.bf16.mxu1 %v16121_v36  ;;  %22721 = vst [vmem:[#allocation56_spill] sm:$0xff] %v16195_v59  ;;  %22722 = vst [vmem:[#allocation57_spill] sm:$0xff] %v16199_v7 }
  0x31   : > { %1241 = vmatprep.subr.bf16.mxu0 %v16125_v46  ;;  %1295 = vmatprep.subr.bf16.mxu1 %v16129_v47  ;;  %22723 = vst [vmem:[#allocation58_spill] sm:$0xff] %v16202_v41  ;;  %22724 = vst [vmem:[#allocation59_spill] sm:$0xff] %v16205_v56  ;;  %v420_v46 = vmul.f32 %v16191_v49, %v16191_v49  ;;  %v16247_v49 = vcombine.low %v16163_v27, %v16163_v27  ;;  %v16260_v56 = vld [vmem:[%s15903_s30 + $0xa0] sm:$0xff]  ;;  %v16263_v41 = vld [vmem:[%s15903_s30 + $0xb0] sm:$0xff] }
  0x32   : > { %447 = vadd.xlane.f32.xlu0 %v446_v48  ;;  %450 = vadd.xlane.f32.xlu1 %v449_v58  ;;  %v16185_v48 = vcombine.low %v16087_v1, %v16087_v1  ;;  %v16188_v58 = vunpack.c.l.bf16 %v16006_v39  ;;  %22725 = vst [vmem:[#allocation60_spill] sm:$0xff] %v16209_v16  ;;  %v16213_v39 = vcombine.high %v16171_v38, %v16171_v38  ;;  %22727 = vst [vmem:[#allocation62_spill] sm:$0xff] %v16218_v34 }
  0x33   : > { %22728 = vst [vmem:[#allocation63_spill] sm:$0xff] %v16221_v18  ;;  %22729 = vst [vmem:[#allocation64_spill] sm:$0xff] %v16236_v57 }
  0x34   : > { %22718 = vst [vmem:[#allocation53_spill] sm:$0xff] %v16185_v48  ;;  %22719 = vst [vmem:[#allocation54_spill] sm:$0xff] %v16188_v58  ;;  %v419_v47 = vmul.f32 %v16188_v58, %v16188_v58  ;;  %v16253_v58 = vcombine.low %v16168_v61, %v16168_v61 }
  0x35   : > { %22726 = vst [vmem:[#allocation61_spill] sm:$0xff] %v16213_v39  ;;  %22730 = vst [vmem:[#allocation65_spill] sm:$0xff] %v16239_v60 }
  0x36   : > { %1166 = vmatmul.mubr.bf16.vlgmr.msra.gmra.mrb[12].mxu0 %v16151_v22  ;;  %1220 = vmatmul.mubr.bf16.vlgmr.msra.gmra.mrb[12].mxu1 %v16155_v8  ;;  %22731 = vst [vmem:[#allocation66_spill] sm:$0xff] %v16243_v29  ;;  %22732 = vst [vmem:[#allocation67_spill] sm:$0xff] %v16247_v49 }
  0x37   : > { %1242 = vmatpush1.bf16.xpose.msra.mxu0 %v16181_v17  ;;  %1296 = vmatpush1.bf16.xpose.msra.mxu1 %v16185_v48  ;;  %22733 = vst [vmem:[#allocation68_spill] sm:$0xff] %v16253_v58  ;;  %22734 = vst [vmem:[#allocation69_spill] sm:$0xff] %v16257_v23  ;;  %v16266_v48 = vld [vmem:[%s15903_s30 + $0xc8] sm:$0xff]  ;;  %v455_v17 = vadd.f32 %v420_v46, %v419_v47  ;;  %v16289_v46 = vunpack.c.h.bf16 %v16009_v40  ;;  %v16293_v47 = vcombine.high %v16260_v56, %v16260_v56 }
  0x38   : > { %1273 = vmatprep.mubr.bf16.mxu0 %v16195_v59  ;;  %1327 = vmatprep.mubr.bf16.mxu1 %v16199_v7  ;;  %22737 = vst [vmem:[#allocation72_spill] sm:$0xff] %v16282_v31  ;;  %v452_v7 = vadd.f32 %v418_v42, %v417_v19  ;;  %v613_v59 = vmul.f32 %v16236_v57, %v16236_v57 }
  0x39   : > { %1349 = vmatprep.subr.bf16.mxu0 %v16209_v16  ;;  %1403 = vmatprep.subr.bf16.mxu1 %v16213_v39  ;;  %v615_v16 = vmul.f32 %v16218_v34, %v16218_v34  ;;  %v616_v39 = vmul.f32 %v16221_v18, %v16221_v18  ;;  %v614_v34 = vmul.f32 %v16239_v60, %v16239_v60  ;;  %v16310_v18 = vunpack.c.l.bf16 %v16084_v0 }
  0x3a   : > { %648 = vadd.xlane.f32.xlu1 %v647_v37  ;;  %645 = vadd.xlane.f32.xlu0 %v644_v14  ;;  %v16276_v37 = vunpack.c.l.bf16 %v16076_v62  ;;  %v16279_v14 = vunpack.c.h.bf16 %v16076_v62  ;;  %22738 = vst [vmem:[#allocation73_spill] sm:$0xff] %v16289_v46  ;;  %22739 = vst [vmem:[#allocation74_spill] sm:$0xff] %v16293_v47  ;;  %v16297_v62 = vcombine.high %v16263_v41, %v16263_v41  ;;  %v16313_v60 = vunpack.c.h.bf16 %v16084_v0 }
  0x3b   : > { %v16301_v19 = vcombine.high %v16266_v48, %v16266_v48  ;;  %v16307_v40 = vcombine.high %v16273_v30, %v16273_v30  ;;  %v653_v42 = vadd.f32 %v616_v39, %v615_v16  ;;  %22743 = vst [vmem:[#allocation78_spill] sm:$0xff] %v16310_v18  ;;  %v421_v16 = vmul.f32 %v16282_v31, %v16282_v31 }
  0x3c   : > { %22735 = vst [vmem:[#allocation70_spill] sm:$0xff] %v16276_v37  ;;  %22736 = vst [vmem:[#allocation71_spill] sm:$0xff] %v16279_v14  ;;  %v423_v57 = vmul.f32 %v16276_v37, %v16276_v37  ;;  %v650_v0 = vadd.f32 %v614_v34, %v613_v59  ;;  %v422_v39 = vmul.f32 %v16289_v46, %v16289_v46  ;;  %v16329_v37 = vunpack.c.h.bf16 %v16019_v43  ;;  %v16358_v46 = vld [vmem:[%s15903_s30 + $0xe8] sm:$0xff] }
  0x3d   : > { %22740 = vst [vmem:[#allocation75_spill] sm:$0xff] %v16297_v62  ;;  %22741 = vst [vmem:[#allocation76_spill] sm:$0xff] %v16301_v19  ;;  %v16339_v34 = vcombine.low %v16263_v41, %v16263_v41  ;;  %v16343_v59 = vcombine.low %v16266_v48, %v16266_v48  ;;  %v619_v31 = vmul.f32 %v16310_v18, %v16310_v18 }
  0x3e   : > { %1274 = vmatmul.mubr.bf16.vlgmr.msra.gmra.mrb[16].mxu0 %v16243_v29  ;;  %1328 = vmatmul.mubr.bf16.vlgmr.msra.gmra.mrb[16].mxu1 %v16247_v49  ;;  %22742 = vst [vmem:[#allocation77_spill] sm:$0xff] %v16307_v40  ;;  %22744 = vst [vmem:[#allocation79_spill] sm:$0xff] %v16313_v60  ;;  %v424_v49 = vmul.f32 %v16279_v14, %v16279_v14  ;;  %v16355_v14 = vld [vmem:[%s15903_s30 + $0xd0] sm:$0xff]  ;;  %v16374_v29 = vunpack.c.l.bf16 %v16079_v63  ;;  %v458_v55 = vadd.f32 %v422_v39, %v421_v16 }
  0x3f   : > { %1350 = vmatpush1.bf16.xpose.msra.mxu0 %v16253_v58  ;;  %1404 = vmatpush1.bf16.xpose.msra.mxu1 %v16257_v23  ;;  %v16326_v23 = vunpack.c.l.bf16 %v16019_v43  ;;  %22746 = vst [vmem:[#allocation81_spill] sm:$0xff] %v16329_v37  ;;  %22748 = vst [vmem:[#allocation83_spill] sm:$0xff] %v16339_v34  ;;  %v16349_v43 = vcombine.low %v16273_v30, %v16273_v30  ;;  %v620_v58 = vmul.f32 %v16313_v60, %v16313_v60 }
  0x40   : > { %456 = vadd.xlane.f32.xlu1 %v455_v17  ;;  %453 = vadd.xlane.f32.xlu0 %v452_v7  ;;  %v16335_v17 = vcombine.low %v16260_v56, %v16260_v56  ;;  %22749 = vst [vmem:[#allocation84_spill] sm:$0xff] %v16343_v59  ;;  %v16352_v7 = vld [vmem:[%s15903_s30 + $0xc0] sm:$0xff]  ;;  %22753 = vst [vmem:[#allocation88_spill] sm:$0xff] %v16374_v29  ;;  %v16405_v39 = vunpack.c.h.bf16 %v16168_v61 }
  0x41   : > { %22745 = vst [vmem:[#allocation80_spill] sm:$0xff] %v16326_v23  ;;  %1381 = vmatprep.mubr.bf16.mxu0 %v16293_v47  ;;  %1435 = vmatprep.mubr.bf16.mxu1 %v16297_v62  ;;  %22750 = vst [vmem:[#allocation85_spill] sm:$0xff] %v16349_v43  ;;  %v461_v62 = vadd.f32 %v424_v49, %v423_v57  ;;  %v16371_v47 = vunpack.c.h.bf16 %v16160_v9  ;;  %v617_v18 = vmul.f32 %v16326_v23, %v16326_v23 }
  0x42   : > { %22747 = vst [vmem:[#allocation82_spill] sm:$0xff] %v16335_v17  ;;  %1457 = vmatprep.subr.bf16.mxu0 %v16301_v19  ;;  %1511 = vmatprep.subr.bf16.mxu1 %v16307_v40  ;;  %v16365_v19 = vld [vmem:[%s15903_s30 + $0xf8] sm:$0xff]  ;;  %v16368_v40 = vunpack.c.l.bf16 %v16160_v9  ;;  %v618_v49 = vmul.f32 %v16329_v37, %v16329_v37  ;;  %v16381_v57 = vunpack.c.h.bf16 %v16079_v63  ;;  %v16385_v60 = vcombine.high %v16352_v7, %v16352_v7 }
  0x43   : > { %22752 = vst [vmem:[#allocation87_spill] sm:$0xff] %v16371_v47  ;;  %v16389_v9 = vcombine.high %v16355_v14, %v16355_v14  ;;  %v16399_v63 = vcombine.high %v16365_v19, %v16365_v19  ;;  %v659_v16 = vadd.f32 %v620_v58, %v619_v31  ;;  %22760 = vst [vmem:[#allocation95_spill] sm:$0xff] %v16405_v39 }
  0x44   : > { %22751 = vst [vmem:[#allocation86_spill] sm:$0xff] %v16368_v40  ;;  %654 = vadd.xlane.f32.xlu1 %v653_v42  ;;  %651 = vadd.xlane.f32.xlu0 %v650_v0  ;;  %22754 = vst [vmem:[#allocation89_spill] sm:$0xff] %v16381_v57  ;;  %v16393_v42 = vcombine.high %v16358_v46, %v16358_v46  ;;  %v16402_v0 = vunpack.c.l.bf16 %v16168_v61  ;;  %v427_v37 = vmul.f32 %v16368_v40, %v16368_v40 }
  0x45   : > { %22755 = vst [vmem:[#allocation90_spill] sm:$0xff] %v16385_v60  ;;  %22756 = vst [vmem:[#allocation91_spill] sm:$0xff] %v16389_v9  ;;  %v428_v23 = vmul.f32 %v16371_v47, %v16371_v47  ;;  %v425_v31 = vmul.f32 %v16374_v29, %v16374_v29  ;;  %v656_v58 = vadd.f32 %v618_v49, %v617_v18  ;;  %v16447_v49 = vld [vmem:[%s15903_s30 + $0xf0] sm:$0xff] }
  0x46   : > { %22757 = vst [vmem:[#allocation92_spill] sm:$0xff] %v16393_v42  ;;  %1382 = vmatmul.mubr.bf16.vlgmr.msra.gmra.mrb[20].mxu0 %v16335_v17  ;;  %1436 = vmatmul.mubr.bf16.vlgmr.msra.gmra.mrb[20].mxu1 %v16339_v34  ;;  %22758 = vst [vmem:[#allocation93_spill] sm:$0xff] %v16399_v63  ;;  %v426_v61 = vmul.f32 %v16381_v57, %v16381_v57  ;;  %v16427_v47 = vcombine.low %v16352_v7, %v16352_v7 }
  0x47   : > { %22759 = vst [vmem:[#allocation94_spill] sm:$0xff] %v16402_v0  ;;  %1458 = vmatpush1.bf16.xpose.msra.mxu0 %v16343_v59  ;;  %1512 = vmatpush1.bf16.xpose.msra.mxu1 %v16349_v43  ;;  %v16418_v59 = vunpack.c.l.bf16 %v16087_v1  ;;  %v16421_v43 = vunpack.c.h.bf16 %v16087_v1  ;;  %v16435_v18 = vcombine.low %v16358_v46, %v16358_v46  ;;  %v16441_v1 = vcombine.low %v16365_v19, %v16365_v19 }
  0x48   : > { %462 = vadd.xlane.f32.xlu1 %v461_v62  ;;  %459 = vadd.xlane.f32.xlu0 %v458_v55  ;;  %22763 = vst [vmem:[#allocation98_spill] sm:$0xff] %v16427_v47  ;;  %v16431_v55 = vcombine.low %v16355_v14, %v16355_v14  ;;  %v16444_v62 = vld [vmem:[%s15903_s30 + $0xe0] sm:$0xff]  ;;  %v623_v40 = vmul.f32 %v16402_v0, %v16402_v0 }
  0x49   : > { %22761 = vst [vmem:[#allocation96_spill] sm:$0xff] %v16418_v59  ;;  %22762 = vst [vmem:[#allocation97_spill] sm:$0xff] %v16421_v43  ;;  %1489 = vmatprep.mubr.bf16.mxu0 %v16385_v60  ;;  %1543 = vmatprep.mubr.bf16.mxu1 %v16389_v9  ;;  %v624_v57 = vmul.f32 %v16405_v39, %v16405_v39  ;;  %v467_v29 = vadd.f32 %v428_v23, %v427_v37  ;;  %v16454_v9 = vunpack.c.l.bf16 %v16260_v56 }
  0x4a   : > { %22764 = vst [vmem:[#allocation99_spill] sm:$0xff] %v16431_v55  ;;  %22765 = vst [vmem:[#allocation100_spill] sm:$0xff] %v16435_v18  ;;  %1565 = vmatprep.subr.bf16.mxu0 %v16393_v42  ;;  %1619 = vmatprep.subr.bf16.mxu1 %v16399_v63  ;;  %v16457_v63 = vunpack.c.h.bf16 %v16260_v56  ;;  %v16460_v42 = vunpack.c.l.bf16 %v16163_v27  ;;  %v464_v60 = vadd.f32 %v426_v61, %v425_v31  ;;  %v16467_v23 = vunpack.c.h.bf16 %v16163_v27 }
  0x4b   : > { %22766 = vst [vmem:[#allocation101_spill] sm:$0xff] %v16441_v1  ;;  %22767 = vst [vmem:[#allocation102_spill] sm:$0xff] %v16454_v9  ;;  %v621_v34 = vmul.f32 %v16418_v59, %v16418_v59  ;;  %v622_v0 = vmul.f32 %v16421_v43, %v16421_v43  ;;  %v16471_v37 = vcombine.high %v16444_v62, %v16444_v62  ;;  %v16480_v31 = vunpack.c.l.bf16 %v16266_v48 }
  0x4c   : > { %22768 = vst [vmem:[#allocation103_spill] sm:$0xff] %v16457_v63  ;;  %22769 = vst [vmem:[#allocation104_spill] sm:$0xff] %v16460_v42  ;;  %660 = vadd.xlane.f32.xlu1 %v659_v16  ;;  %657 = vadd.xlane.f32.xlu0 %v656_v58  ;;  %v16475_v56 = vcombine.high %v16447_v49, %v16447_v49  ;;  %v665_v16 = vadd.f32 %v624_v57, %v623_v40  ;;  %v16483_v58 = vunpack.c.h.bf16 %v16266_v48 }
  0x4d   : > { %22770 = vst [vmem:[#allocation105_spill] sm:$0xff] %v16467_v23  ;;  %22771 = vst [vmem:[#allocation106_spill] sm:$0xff] %v16471_v37  ;;  %v431_v27 = vmul.f32 %v16454_v9, %v16454_v9  ;;  %v432_v61 = vmul.f32 %v16457_v63, %v16457_v63  ;;  %v429_v39 = vmul.f32 %v16460_v42, %v16460_v42  ;;  %v16496_v57 = vunpack.c.l.bf16 %v16171_v38 }
  0x4e   : > { %22772 = vst [vmem:[#allocation107_spill] sm:$0xff] %v16475_v56  ;;  %1490 = vmatmul.mubr.bf16.vlgmr.msra.gmra.mrb[24].mxu0 %v16427_v47  ;;  %1544 = vmatmul.mubr.bf16.vlgmr.msra.gmra.mrb[24].mxu1 %v16431_v55  ;;  %22773 = vst [vmem:[#allocation108_spill] sm:$0xff] %v16480_v31  ;;  %v662_v40 = vadd.f32 %v622_v0, %v621_v34  ;;  %v430_v48 = vmul.f32 %v16467_v23, %v16467_v23  ;;  %v16499_v43 = vunpack.c.h.bf16 %v16171_v38 }
  0x4f   : > { %22774 = vst [vmem:[#allocation109_spill] sm:$0xff] %v16483_v58  ;;  %1566 = vmatpush1.bf16.xpose.msra.mxu0 %v16435_v18  ;;  %1620 = vmatpush1.bf16.xpose.msra.mxu1 %v16441_v1  ;;  %22775 = vst [vmem:[#allocation110_spill] sm:$0xff] %v16496_v57  ;;  %v16505_v63 = vcombine.low %v16444_v62, %v16444_v62  ;;  %v627_v38 = vmul.f32 %v16480_v31, %v16480_v31  ;;  %v16518_v34 = vunpack.c.l.bf16 %v16352_v7 }
  0x50   : > { %468 = vadd.xlane.f32.xlu1 %v467_v29  ;;  %465 = vadd.xlane.f32.xlu0 %v464_v60  ;;  %22776 = vst [vmem:[#allocation111_spill] sm:$0xff] %v16499_v43  ;;  %v16509_v60 = vcombine.low %v16447_v49, %v16447_v49  ;;  %v628_v29 = vmul.f32 %v16483_v58, %v16483_v58  ;;  %v16521_v9 = vunpack.c.h.bf16 %v16352_v7  ;;  %v16524_v23 = vunpack.c.l.bf16 %v16263_v41 }
  0x51   : > { %1597 = vmatprep.mubr.bf16.mxu0 %v16471_v37  ;;  %1651 = vmatprep.mubr.bf16.mxu1 %v16475_v56  ;;  %22777 = vst [vmem:[#allocation112_spill] sm:$0xff] %v16505_v63  ;;  %22779 = vst [vmem:[#allocation114_spill] sm:$0xff] %v16518_v34  ;;  %v473_v0 = vadd.f32 %v432_v61, %v431_v27  ;;  %v470_v59 = vadd.f32 %v430_v48, %v429_v39  ;;  %v16531_v58 = vunpack.c.h.bf16 %v16263_v41 }
  0x52   : > { %22778 = vst [vmem:[#allocation113_spill] sm:$0xff] %v16509_v60  ;;  %1924 = vmatprep.subr.bf16.mxu0 %v15923_v10  ;;  %1964 = vmatprep.subr.bf16.mxu1 %v15927_v11  ;;  %22780 = vst [vmem:[#allocation115_spill] sm:$0xff] %v16521_v9  ;;  %v625_v42 = vmul.f32 %v16496_v57, %v16496_v57  ;;  %v626_v31 = vmul.f32 %v16499_v43, %v16499_v43  ;;  %v16544_v41 = vunpack.c.l.bf16 %v16273_v30  ;;  %v22817_v43 = vld [vmem:[#allocation84_spill] sm:$0xff] }
  0x53   : > { %22781 = vst [vmem:[#allocation116_spill] sm:$0xff] %v16524_v23  ;;  %22782 = vst [vmem:[#allocation117_spill] sm:$0xff] %v16531_v58  ;;  %v671_v7 = vadd.f32 %v628_v29, %v627_v38  ;;  %v435_v27 = vmul.f32 %v16518_v34, %v16518_v34  ;;  %v436_v39 = vmul.f32 %v16521_v9, %v16521_v9  ;;  %v16547_v61 = vunpack.c.h.bf16 %v16273_v30  ;;  %v22819_v57 = vld [vmem:[#allocation92_spill] sm:$0xff] }
  0x54   : > { %666 = vadd.xlane.f32.xlu1 %v665_v16  ;;  %663 = vadd.xlane.f32.xlu0 %v662_v40  ;;  %v433_v16 = vmul.f32 %v16524_v23, %v16524_v23  ;;  %22783 = vst [vmem:[#allocation118_spill] sm:$0xff] %v16544_v41  ;;  %v668_v40 = vadd.f32 %v626_v31, %v625_v42  ;;  %v16552_v38 = vunpack.c.l.bf16 %v16358_v46  ;;  %v16555_v29 = vunpack.c.h.bf16 %v16358_v46  ;;  %v22820_v23 = vld [vmem:[#allocation93_spill] sm:$0xff] }
  0x55   : > { %22784 = vst [vmem:[#allocation119_spill] sm:$0xff] %v16547_v61  ;;  %v434_v48 = vmul.f32 %v16531_v58, %v16531_v58  ;;  %v16562_v30 = vunpack.c.l.bf16 %v16355_v14  ;;  %v629_v42 = vmul.f32 %v16544_v41, %v16544_v41  ;;  %v630_v31 = vmul.f32 %v16547_v61, %v16547_v61  ;;  %v22813_v61 = vld [vmem:[#allocation68_spill] sm:$0xff]  ;;  %v22818_v58 = vld [vmem:[#allocation85_spill] sm:$0xff] }
  0x56   : > { %1598 = vmatmul.mubr.bf16.vlgmr.msra.gmra.mrb[28].mxu0 %v16505_v63  ;;  %1652 = vmatmul.mubr.bf16.vlgmr.msra.gmra.mrb[28].mxu1 %v16509_v60  ;;  %22785 = vst [vmem:[#allocation120_spill] sm:$0xff] %v16552_v38  ;;  %22786 = vst [vmem:[#allocation121_spill] sm:$0xff] %v16555_v29  ;;  %v16569_v46 = vunpack.c.h.bf16 %v16355_v14  ;;  %v631_v9 = vmul.f32 %v16552_v38, %v16552_v38  ;;  %v632_v34 = vmul.f32 %v16555_v29, %v16555_v29  ;;  %v22811_v38 = vld [vmem:[#allocation90_spill] sm:$0xff]  ;;  %v22815_v41 = vld [vmem:[#allocation76_spill] sm:$0xff] }
  0x57   : > { %1925 = vmatpush1.bf16.xpose.msra.mxu0 %v15955_v20  ;;  %1965 = vmatpush1.bf16.xpose.msra.mxu1 %v15959_v21  ;;  %22787 = vst [vmem:[#allocation122_spill] sm:$0xff] %v16562_v30  ;;  %v437_v14 = vmul.f32 %v16562_v30, %v16562_v30  ;;  %v16613_v29 = vunpack.c.h.bf16 %v16447_v49  ;;  %v22816_v30 = vld [vmem:[#allocation77_spill] sm:$0xff] }
  0x58   : > { %474 = vadd.xlane.f32.xlu1 %v473_v0  ;;  %471 = vadd.xlane.f32.xlu0 %v470_v59  ;;  %v479_v59 = vadd.f32 %v436_v39, %v435_v27  ;;  %22788 = vst [vmem:[#allocation123_spill] sm:$0xff] %v16569_v46  ;;  %v476_v0 = vadd.f32 %v434_v48, %v433_v16  ;;  %v16578_v27 = vunpack.c.l.bf16 %v16444_v62  ;;  %v16581_v39 = vunpack.c.h.bf16 %v16444_v62 }
  0x59   : > { %1956 = vmatprep.mubr.bf16.mxu0 %v15908_v3  ;;  %1996 = vmatprep.mubr.bf16.mxu1 %v15910_v4  ;;  %v674_v16 = vadd.f32 %v630_v31, %v629_v42  ;;  %v16590_v48 = vunpack.c.l.bf16 %v16365_v19  ;;  %v16593_v62 = vunpack.c.h.bf16 %v16365_v19  ;;  %22794 = vst [vmem:[#allocation129_spill] sm:$0xff] %v16613_v29 }
  0x5a   : > { %2004 = vmatprep.subr.bf16.mxu0 %v15973_v26  ;;  %2044 = vmatprep.subr.bf16.mxu1 %v15979_v28  ;;  %22789 = vst [vmem:[#allocation124_spill] sm:$0xff] %v16578_v27  ;;  %22790 = vst [vmem:[#allocation125_spill] sm:$0xff] %v16581_v39 }
  0x5b   : > { %22791 = vst [vmem:[#allocation126_spill] sm:$0xff] %v16590_v48  ;;  %22792 = vst [vmem:[#allocation127_spill] sm:$0xff] %v16593_v62  ;;  %v633_v19 = vmul.f32 %v16590_v48, %v16590_v48  ;;  %v634_v42 = vmul.f32 %v16593_v62, %v16593_v62  ;;  %v22805_v62 = vld [vmem:[#allocation75_spill] sm:$0xff]  ;;  %v22807_v48 = vld [vmem:[#allocation53_spill] sm:$0xff] }
  0x5c   : > { %672 = vadd.xlane.f32.xlu1 %v671_v7  ;;  %669 = vadd.xlane.f32.xlu0 %v668_v40  ;;  %v438_v7 = vmul.f32 %v16569_v46, %v16569_v46  ;;  %v677_v40 = vadd.f32 %v632_v34, %v631_v9  ;;  %v440_v9 = vmul.f32 %v16581_v39, %v16581_v39  ;;  %v22810_v39 = vld [vmem:[#allocation61_spill] sm:$0xff] }
  0x5d   : > { %v22814_v46 = vld [vmem:[#allocation69_spill] sm:$0xff] }
  0x5e   : > { %1957 = vmatmul.mubr.bf16.vlgmr.msra.gmra.mrb[32].mxu0 %v15912_v5  ;;  %1997 = vmatmul.mubr.bf16.vlgmr.msra.gmra.mrb[32].mxu1 %v15914_v6  ;;  %v482_v34 = vadd.f32 %v438_v7, %v437_v14  ;;  %v680_v14 = vadd.f32 %v634_v42, %v633_v19  ;;  %v22799_v19 = vld [vmem:[#allocation40_spill] sm:$0xff]  ;;  %v22800_v42 = vld [vmem:[#allocation66_spill] sm:$0xff] }
  0x5f   : > { %2005 = vmatpush1.bf16.xpose.msra.mxu0 %v16021_v44  ;;  %2045 = vmatpush1.bf16.xpose.msra.mxu1 %v16025_v45 }
  0x60   : > { %480 = vadd.xlane.f32.xlu1 %v479_v59  ;;  %477 = vadd.xlane.f32.xlu0 %v476_v0  ;;  %v439_v59 = vmul.f32 %v16578_v27, %v16578_v27  ;;  %v16610_v0 = vunpack.c.l.bf16 %v16447_v49  ;;  %v442_v49 = vmul.f32 %v16613_v29, %v16613_v29  ;;  %v22806_v29 = vld [vmem:[#allocation52_spill] sm:$0xff]  ;;  %v22812_v27 = vld [vmem:[#allocation91_spill] sm:$0xff] }
  0x61   : > { %2036 = vmatprep.mubr.bf16.mxu0 %v15931_v12  ;;  %2076 = vmatprep.mubr.bf16.mxu1 %v15935_v13 }
  0x62   : > { %2084 = vmatprep.subr.bf16.mxu0 %v16047_v52  ;;  %2124 = vmatprep.subr.bf16.mxu1 %v16051_v53  ;;  %v485_v31 = vadd.f32 %v440_v9, %v439_v59  ;;  %22793 = vst [vmem:[#allocation128_spill] sm:$0xff] %v16610_v0  ;;  %v441_v7 = vmul.f32 %v16610_v0, %v16610_v0  ;;  %v22796_v59 = vld [vmem:[#allocation56_spill] sm:$0xff]  ;;  %v22797_v9 = vld [vmem:[#allocation57_spill] sm:$0xff] }
  0x63   : > { %v22809_v0 = vld [vmem:[#allocation60_spill] sm:$0xff] }
  0x64   : > { %675 = vadd.xlane.f32.xlu0 %v674_v16  ;;  %678 = vadd.xlane.f32.xlu1 %v677_v40  ;;  %v488_v16 = vadd.f32 %v442_v49, %v441_v7  ;;  %v22795_v40 = vld [vmem:[#allocation33_spill] sm:$0xff]  ;;  %v22804_v49 = vld [vmem:[#allocation74_spill] sm:$0xff] }
  0x65   : > { %v22803_v7 = vld [vmem:[#allocation45_spill] sm:$0xff] }
  0x66   : > { %2037 = vmatmul.mubr.bf16.vlgmr.msra.gmra.mrb[36].mxu0 %v15967_v24  ;;  %2077 = vmatmul.mubr.bf16.vlgmr.msra.gmra.mrb[36].mxu1 %v15971_v25 }
  0x67   : > { %2085 = vmatpush1.bf16.xpose.msra.mxu0 %v16091_v2  ;;  %2125 = vmatpush1.bf16.xpose.msra.mxu1 %v16101_v15 }
  0x68   : > { %483 = vadd.xlane.f32.xlu0 %v482_v34  ;;  %2116 = vmatprep.mubr.bf16.mxu0 %v15989_v32  ;;  %v22798_v34 = vld [vmem:[#allocation41_spill] sm:$0xff] }
  0x69   : > { %2156 = vmatprep.mubr.bf16.mxu1 %v15993_v33  ;;  %2164 = vmatprep.subr.bf16.mxu0 %v16117_v35 }
  0x6a   : > { %2204 = vmatprep.subr.bf16.mxu1 %v16121_v36  ;;  %486 = vadd.xlane.f32.xlu1 %v485_v31  ;;  %v22801_v31 = vld [vmem:[#allocation67_spill] sm:$0xff] }
  0x6c   : > { %681 = vadd.xlane.f32.xlu0 %v680_v14  ;;  %v22802_v14 = vld [vmem:[#allocation44_spill] sm:$0xff] }
  0x6e   : > { %2117 = vmatmul.mubr.bf16.vlgmr.msra.gmra.mrb[40].mxu0 %v16039_v50  ;;  %2157 = vmatmul.mubr.bf16.vlgmr.msra.gmra.mrb[40].mxu1 %v16043_v51 }
  0x6f   : > { %2165 = vmatpush1.bf16.xpose.msra.mxu0 %v16151_v22  ;;  %2205 = vmatpush1.bf16.xpose.msra.mxu1 %v16155_v8 }
  0x70   : > { %2196 = vmatprep.mubr.bf16.mxu0 %v16055_v54  ;;  %2236 = vmatprep.mubr.bf16.mxu1 %v22795_v40 }
  0x71   : > { %2244 = vmatprep.subr.bf16.mxu0 %v22796_v59  ;;  %2284 = vmatprep.subr.bf16.mxu1 %v22797_v9 }
  0x72   : > { %489 = vadd.xlane.f32.xlu1 %v488_v16  ;;  %v22808_v16 = vld [vmem:[#allocation83_spill] sm:$0xff] }
  0x76   : > { %2197 = vmatmul.mubr.bf16.vlgmr.msra.gmra.mrb[44].mxu0 %v22798_v34  ;;  %2237 = vmatmul.mubr.bf16.vlgmr.msra.gmra.mrb[44].mxu1 %v22799_v19 }
  0x77   : > { %2245 = vmatpush1.bf16.xpose.msra.mxu0 %v22800_v42  ;;  %2285 = vmatpush1.bf16.xpose.msra.mxu1 %v22801_v31 }
  0x78   : > { %2276 = vmatprep.mubr.bf16.mxu0 %v22802_v14  ;;  %2316 = vmatprep.mubr.bf16.mxu1 %v22803_v7 }
  0x79   : > { %2324 = vmatprep.subr.bf16.mxu0 %v22804_v49  ;;  %2364 = vmatprep.subr.bf16.mxu1 %v22805_v62 }
  0x7e   : > { %2277 = vmatmul.mubr.bf16.vlgmr.msra.gmra.mrb[48].mxu0 %v22806_v29  ;;  %2317 = vmatmul.mubr.bf16.vlgmr.msra.gmra.mrb[48].mxu1 %v22807_v48 }
  0x7f   : > { %2325 = vmatpush1.bf16.xpose.msra.mxu0 %v16335_v17  ;;  %2365 = vmatpush1.bf16.xpose.msra.mxu1 %v22808_v16 }
  0x80   : > { %2356 = vmatprep.mubr.bf16.mxu0 %v22809_v0  ;;  %2396 = vmatprep.mubr.bf16.mxu1 %v22810_v39 }
  0x81   : > { %2404 = vmatprep.subr.bf16.mxu0 %v22811_v38  ;;  %2444 = vmatprep.subr.bf16.mxu1 %v22812_v27 }
  0x86   : > { %2357 = vmatmul.mubr.bf16.vlgmr.msra.gmra.mrb[52].mxu0 %v22813_v61  ;;  %2397 = vmatmul.mubr.bf16.vlgmr.msra.gmra.mrb[52].mxu1 %v22814_v46 }
  0x87   : > { %2405 = vmatpush1.bf16.xpose.msra.mxu0 %v16427_v47  ;;  %2445 = vmatpush1.bf16.xpose.msra.mxu1 %v16431_v55 }
  0x88   : > { %2436 = vmatprep.mubr.bf16.mxu0 %v22815_v41  ;;  %2476 = vmatprep.mubr.bf16.mxu1 %v22816_v30 }
  0x89   : > { %2484 = vmatprep.subr.bf16.mxu0 %v16471_v37  ;;  %2524 = vmatprep.subr.bf16.mxu1 %v16475_v56 }
  0x8e   : > { %2437 = vmatmul.mubr.bf16.vlgmr.msra.gmra.mrb[56].mxu0 %v22817_v43  ;;  %2477 = vmatmul.mubr.bf16.vlgmr.msra.gmra.mrb[56].mxu1 %v22818_v58 }
  0x8f   : > { %2485 = vmatpush1.bf16.xpose.msra.mxu0 %v16505_v63  ;;  %2525 = vmatpush1.bf16.xpose.msra.mxu1 %v16509_v60  ;;  %v1675_v63 = vlaneseq }
  0x90   : > { %2516 = vmatprep.mubr.bf16.mxu0 %v22819_v57  ;;  %2556 = vmatprep.mubr.bf16.mxu1 %v22820_v23 }
  0x91   : > { %v16672_v31 = vand.u32 127, %v1675_v63  ;;  %v16675_v42 = vshrl.u32 %v1675_v63, 7 }
  0x93   : > { %22821 = vst [vmem:[#allocation130_spill] sm:$0xff] %v16675_v42  ;;  %vm2820_vm5 = vcmp.lt.s32.totalorder %v16672_v31, 6 }
  0x96   : > { %2517 = vmatmul.mubr.bf16.vlgmr.msra.gmra.mrb[60].mxu0 %v16435_v18  ;;  %2557 = vmatmul.mubr.bf16.vlgmr.msra.gmra.mrb[60].mxu1 %v16441_v1 }
  0xaf   : > { %v637_v55 = vpop.xlane.xlu0 %636  ;;  %v640_v37 = vpop.xlane.xlu1 %639 }
  0xb0   : > { %15479 = vrsqrt.f32 %v637_v55  ;;  %vm685_vm0 = vcmp.eq.f32.partialorder %v637_v55, inf  ;;  %v688_v62 = vand.u32 2147483648, %v637_v55  ;;  %vm687_vm1 = vcmp.eq.f32.partialorder %v637_v55, 0.0 }
  0xb1   : > { %vm692_vm4 = vcmp.eq.f32.partialorder %v640_v37, inf  ;;  %vm694_vm6 = vcmp.eq.f32.partialorder %v640_v37, 0.0 }
  0xb7   : > { %v445_v56 = vpop.xlane.xlu0 %444  ;;  %v16665_v27 = vpop.xlane.xlu1 %642 }
  0xb8   : > { %15481 = vrsqrt.f32 %v445_v56  ;;  %vm493_vm2 = vcmp.eq.f32.partialorder %v445_v56, inf  ;;  %vm495_vm3 = vcmp.eq.f32.partialorder %v445_v56, 0.0  ;;  %vm699_vm7 = vcmp.eq.f32.partialorder %v16665_v27, inf }
  0xb9   : > { %15483 = vrsqrt.f32 %v640_v37  ;;  %vm701_vm8 = vcmp.eq.f32.partialorder %v16665_v27, 0.0  ;;  %v702_v52 = vand.u32 2147483648, %v16665_v27 }
  0xba   : > { %v15480_v47 = vpop.eup %15479  ;;  %15485 = vrsqrt.f32 %v16665_v27 }
  0xbb   : > { %v684_v16 = vmul.f32 %v15480_v47, %v637_v55 }
  0xbd   : > { %v686_v49 = vsel %vm685_vm0, %v637_v55, %v684_v16  ;;  %v16687_v55 = vsub.s32 %v16672_v31, %v16675_v42  ;;  %v496_v16 = vand.u32 2147483648, %v445_v56 }
  0xbe   : > { %v16683_v22 = vsel %vm687_vm1, %v688_v62, %v686_v49  ;;  %v695_v62 = vand.u32 2147483648, %v640_v37 }
  0xbf   : > { %v16668_v60 = vpop.xlane.xlu1 %450  ;;  %v16670_v38 = vpop.xlane.xlu0 %447  ;;  %22822 = vst [vmem:[#allocation131_spill] sm:$0xff] %v16687_v55  ;;  %v1680_v35 = vrot.slane %v16683_v22, %v16687_v55 }
  0xc0   : > { %15487 = vrsqrt.f32 %v16670_v38  ;;  %vm500_vm9 = vcmp.eq.f32.partialorder %v16670_v38, inf  ;;  %vm502_vm10 = vcmp.eq.f32.partialorder %v16670_v38, 0.0  ;;  %v503_v44 = vand.u32 2147483648, %v16670_v38 }
  0xc1   : > { %15489 = vrsqrt.f32 %v16668_v60  ;;  %vm507_vm11 = vcmp.eq.f32.partialorder %v16668_v60, inf  ;;  %vm509_vm12 = vcmp.eq.f32.partialorder %v16668_v60, 0.0 }
  0xc2   : > { %v15482_v17 = vpop.eup %15481 }
  0xc3   : > { %v492_v9 = vmul.f32 %v15482_v17, %v445_v56  ;;  %v15484_v59 = vpop.eup %15483 }
  0xc4   : > { %v15486_v17 = vpop.eup %15485  ;;  %v691_v63 = vmul.f32 %v15484_v59, %v640_v37 }
  0xc5   : > { %v494_v36 = vsel %vm493_vm2, %v445_v56, %v492_v9  ;;  %v698_v49 = vmul.f32 %v15486_v17, %v16665_v27 }
  0xc6   : > { %v16699_v42 = vsel %vm495_vm3, %v496_v16, %v494_v36  ;;  %v693_v9 = vsel %vm692_vm4, %v640_v37, %v691_v63  ;;  %v22604_v36 = vmov -1e+09  }
  0xc7   : > { %v16678_v47 = vpop.xlane.xlu1 %648  ;;  %v16680_v8 = vpop.xlane.xlu0 %645  ;;  %v1860_v56 = vmul.f32 %v1680_v35, %v16699_v42  ;;  %v16713_v37 = vsel %vm2820_vm5, 0.0, %v22604_v36  ;;  %v700_v35 = vsel %vm699_vm7, %v16665_v27, %v698_v49  ;;  %v16718_v28 = vsel %vm694_vm6, %v695_v62, %v693_v9 }
  0xc8   : > { %15491 = vrsqrt.f32 %v16678_v47  ;;  %v510_v49 = vand.u32 2147483648, %v16668_v60  ;;  %vm713_vm13 = vcmp.eq.f32.partialorder %v16678_v47, inf  ;;  %vm715_vm14 = vcmp.eq.f32.partialorder %v16678_v47, 0.0 }
  0xc9   : > { %15493 = vrsqrt.f32 %v16680_v8  ;;  %v1876_v26 = vmax.f32 %v1860_v56, 1e-06  ;;  %v1684_v56 = vrot.slane %v16718_v28, %v16687_v55  ;;  %vm706_vm15 = vcmp.eq.f32.partialorder %v16680_v8, inf }
  0xca   : > { %v15488_v59 = vpop.eup %15487  ;;  %vm708_vm0 = vcmp.eq.f32.partialorder %v16680_v8, 0.0 }
  0xcb   : > { %v15490_v2 = vpop.eup %15489  ;;  %v499_v63 = vmul.f32 %v15488_v59, %v16670_v38 }
  0xcc   : > { %v506_v36 = vmul.f32 %v15490_v2, %v16668_v60  ;;  %v16737_v2 = vsel %vm701_vm8, %v702_v52, %v700_v35  ;;  %v709_v35 = vand.u32 2147483648, %v16680_v8 }
  0xcd   : > { %v16692_v15 = vpop.xlane.xlu1 %456  ;;  %v16694_v53 = vpop.xlane.xlu0 %453  ;;  %v501_v11 = vsel %vm500_vm9, %v16670_v38, %v499_v63  ;;  %v1688_v63 = vrot.slane %v16737_v2, %v16687_v55 }
  0xce   : > { %15495 = vrsqrt.f32 %v16692_v15  ;;  %v508_v52 = vsel %vm507_vm11, %v16668_v60, %v506_v36  ;;  %vm521_vm1 = vcmp.eq.f32.partialorder %v16692_v15, inf  ;;  %vm523_vm2 = vcmp.eq.f32.partialorder %v16692_v15, 0.0 }
  0xcf   : > { %15497 = vrsqrt.f32 %v16694_v53  ;;  %v16766_v36 = vsel %vm502_vm10, %v503_v44, %v501_v11  ;;  %v524_v23 = vand.u32 2147483648, %v16692_v15  ;;  %vm514_vm3 = vcmp.eq.f32.partialorder %v16694_v53, inf }
  0xd0   : > { %v16779_v11 = vsel %vm509_vm12, %v510_v49, %v508_v52  ;;  %vm516_vm4 = vcmp.eq.f32.partialorder %v16694_v53, 0.0  ;;  %v517_v44 = vand.u32 2147483648, %v16694_v53 }
  0xd1   : > { %v16706_v45 = vpop.xlane.xlu1 %654  ;;  %v16708_v17 = vpop.xlane.xlu0 %651  ;;  %v1862_v38 = vmul.f32 %v1688_v63, %v16779_v11 }
  0xd2   : > { %v15492_v16 = vpop.eup %15491  ;;  %15499 = vrsqrt.f32 %v16708_v17  ;;  %vm727_vm5 = vcmp.eq.f32.partialorder %v16706_v45, inf  ;;  %vm720_vm6 = vcmp.eq.f32.partialorder %v16708_v17, inf  ;;  %vm722_vm7 = vcmp.eq.f32.partialorder %v16708_v17, 0.0 }
  0xd3   : > { %v15494_v21 = vpop.eup %15493  ;;  %v712_v59 = vmul.f32 %v15492_v16, %v16678_v47  ;;  %v716_v16 = vand.u32 2147483648, %v16678_v47  ;;  %15501 = vrsqrt.f32 %v16706_v45  ;;  %vm729_vm8 = vcmp.eq.f32.partialorder %v16706_v45, 0.0 }
  0xd4   : > { %v705_v20 = vmul.f32 %v15494_v21, %v16680_v8  ;;  %15503 = vrcp.f32 %v1876_v26  ;;  %v22823_v0 = vand.u32 2147483648, %v16706_v45 }
  0xd5   : > { %v16729_v62 = vpop.xlane.xlu1 %462  ;;  %v16731_v9 = vpop.xlane.xlu0 %459  ;;  %v714_v21 = vsel %vm713_vm13, %v16678_v47, %v712_v59  ;;  %v1861_v59 = vmul.f32 %v1684_v56, %v16766_v36 }
  0xd6   : > { %15505 = vrsqrt.f32 %v16731_v9  ;;  %v707_v18 = vsel %vm706_vm15, %v16680_v8, %v705_v20  ;;  %v16786_v56 = vsel %vm715_vm14, %v716_v16, %v714_v21  ;;  %vm535_vm9 = vcmp.eq.f32.partialorder %v16729_v62, inf }
  0xd7   : > { %15507 = vrsqrt.f32 %v16729_v62  ;;  %v1877_v47 = vmax.f32 %v1861_v59, 1e-06  ;;  %v16800_v16 = vsel %vm708_vm0, %v709_v35, %v707_v18  ;;  %v1696_v63 = vrot.slane %v16786_v56, %v16687_v55 }
  0xd8   : > { %v15496_v27 = vpop.eup %15495  ;;  %v723_v59 = vand.u32 2147483648, %v16708_v17  ;;  %v1878_v8 = vmax.f32 %v1862_v38, 1e-06  ;;  %vm528_vm10 = vcmp.eq.f32.partialorder %v16731_v9, inf  ;;  %v1692_v30 = vrot.slane %v16800_v16, %v16687_v55 }
  0xd9   : > { %v16760_v26 = vpop.xlane.xlu1 %660  ;;  %v16762_v1 = vpop.xlane.xlu0 %657  ;;  %v520_v58 = vmul.f32 %v15496_v27, %v16692_v15  ;;  %vm530_vm11 = vcmp.eq.f32.partialorder %v16731_v9, 0.0  ;;  %v531_v38 = vand.u32 2147483648, %v16731_v9  ;;  %vm537_vm13 = vcmp.eq.f32.partialorder %v16729_v62, 0.0 }
  0xda   : > { %v15498_v10 = vpop.eup %15497  ;;  %15509 = vrsqrt.f32 %v16762_v1  ;;  %vm741_vm12 = vcmp.eq.f32.partialorder %v16760_v26, inf  ;;  %vm734_vm14 = vcmp.eq.f32.partialorder %v16762_v1, inf  ;;  %vm736_vm15 = vcmp.eq.f32.partialorder %v16762_v1, 0.0 }
  0xdb   : > { %v513_v20 = vmul.f32 %v15498_v10, %v16694_v53  ;;  %15511 = vrsqrt.f32 %v16760_v26  ;;  %v522_v10 = vsel %vm521_vm1, %v16692_v15, %v520_v58  ;;  %vm743_vm1 = vcmp.eq.f32.partialorder %v16760_v26, 0.0 }
  0xdc   : > { %v15500_v57 = vpop.eup %15499 }
  0xdd   : > { %v16792_v60 = vpop.xlane.xlu1 %468  ;;  %v16794_v49 = vpop.xlane.xlu0 %465  ;;  %v719_v52 = vmul.f32 %v15500_v57, %v16708_v17  ;;  %v515_v58 = vsel %vm514_vm3, %v16694_v53, %v513_v20  ;;  %v16831_v20 = vsel %vm523_vm2, %v524_v23, %v522_v10 }
  0xde   : > { %15513 = vrsqrt.f32 %v16794_v49  ;;  %v15502_v21 = vpop.eup %15501  ;;  %v1864_v41 = vmul.f32 %v1696_v63, %v16831_v20  ;;  %v16842_v15 = vsel %vm516_vm4, %v517_v44, %v515_v58  ;;  %vm549_vm0 = vcmp.eq.f32.partialorder %v16792_v60, inf }
  0xdf   : > { %15515 = vrsqrt.f32 %v16792_v60  ;;  %v16813_v18 = vpop.eup %15503  ;;  %v726_v57 = vmul.f32 %v15502_v21, %v16706_v45  ;;  %v721_v46 = vsel %vm720_vm6, %v16708_v17, %v719_v52  ;;  %v1863_v63 = vmul.f32 %v1692_v30, %v16842_v15 }
  0xe0   : > { %v15506_v43 = vpop.eup %15505  ;;  %v737_v21 = vand.u32 2147483648, %v16762_v1  ;;  %v16858_v53 = vsel %vm722_vm7, %v723_v59, %v721_v46  ;;  %v1880_v58 = vmax.f32 %v1864_v41, 1e-06  ;;  %vm542_vm2 = vcmp.eq.f32.partialorder %v16794_v49, inf }
  0xe1   : > { %v16820_v35 = vpop.xlane.xlu1 %666  ;;  %v16822_v27 = vpop.xlane.xlu0 %663  ;;  %v527_v10 = vmul.f32 %v15506_v43, %v16731_v9  ;;  %v728_v44 = vsel %vm727_vm5, %v16706_v45, %v726_v57  ;;  %vm544_vm3 = vcmp.eq.f32.partialorder %v16794_v49, 0.0  ;;  %v1879_v41 = vmax.f32 %v1863_v63, 1e-06 }
  0xe2   : > { %15517 = vrsqrt.f32 %v16820_v35  ;;  %v15508_v39 = vpop.eup %15507  ;;  %v1700_v57 = vrot.slane %v16858_v53, %v16687_v55  ;;  %v545_v48 = vand.u32 2147483648, %v16794_v49  ;;  %vm755_vm4 = vcmp.eq.f32.partialorder %v16820_v35, inf }
  0xe3   : > { %15519 = vrcp.f32 %v1877_v47  ;;  %v529_v17 = vsel %vm528_vm10, %v16731_v9, %v527_v10  ;;  %v16887_v10 = vsel %vm729_vm8, %v22823_v0, %v728_v44  ;;  %vm2856_vm5 = vcmask 64512  }
  0xe4   : > { %15521 = vrcp.f32 %v1878_v8  ;;  %v15510_v23 = vpop.eup %15509  ;;  %v534_v8 = vmul.f32 %v15508_v39, %v16729_v62  ;;  %v16901_v45 = vsel %vm530_vm11, %v531_v38, %v529_v17  ;;  %vm551_vm6 = vcmp.eq.f32.partialorder %v16792_v60, 0.0 }
  0xe5   : > { %v16848_v47 = vpop.xlane.xlu1 %474  ;;  %v16850_v52 = vpop.xlane.xlu0 %471  ;;  %15523 = vrsqrt.f32 %v16822_v27  ;;  %v733_v30 = vmul.f32 %v15510_v23, %v16762_v1  ;;  %vm748_vm7 = vcmp.eq.f32.partialorder %v16822_v27, inf  ;;  %vm750_vm10 = vcmp.eq.f32.partialorder %v16822_v27, 0.0 }
  0xe6   : > { %v15512_v43 = vpop.eup %15511  ;;  %15525 = vrsqrt.f32 %v16848_v47  ;;  %v536_v63 = vsel %vm535_vm9, %v16729_v62, %v534_v8  ;;  %vm563_vm8 = vcmp.eq.f32.partialorder %v16848_v47, inf  ;;  %vm556_vm9 = vcmp.eq.f32.partialorder %v16850_v52, inf }
  0xe7   : > { %15527 = vrsqrt.f32 %v16850_v52  ;;  %v740_v61 = vmul.f32 %v15512_v43, %v16760_v26  ;;  %v735_v7 = vsel %vm734_vm14, %v16762_v1, %v733_v30  ;;  %vm558_vm14 = vcmp.eq.f32.partialorder %v16850_v52, 0.0 }
  0xe8   : > { %v15514_v46 = vpop.eup %15513  ;;  %v16922_v17 = vsel %vm736_vm15, %v737_v21, %v735_v7  ;;  %v22824_v7 = vand.u32 2147483648, %v16729_v62  ;;  %v22827_v13 = vand.u32 2147483648, %v16822_v27  ;;  %v22832_v3 = vand.u32 2147483648, %v16848_v47 }
  0xe9   : > { %v16874_v39 = vpop.xlane.xlu1 %672  ;;  %v16876_v59 = vpop.xlane.xlu0 %669  ;;  %v541_v29 = vmul.f32 %v15514_v46, %v16794_v49  ;;  %v1865_v46 = vmul.f32 %v1700_v57, %v16901_v45  ;;  %v742_v9 = vsel %vm741_vm12, %v16760_v26, %v740_v61  ;;  %v1704_v57 = vrot.slane %v16887_v10, %v16687_v55 }
  0xea   : > { %v15516_v23 = vpop.eup %15515  ;;  %15529 = vrsqrt.f32 %v16874_v39  ;;  %vm769_vm11 = vcmp.eq.f32.partialorder %v16874_v39, inf  ;;  %v16939_v21 = vsel %vm537_vm13, %v22824_v7, %v536_v63  ;;  %v1708_v1 = vrot.slane %v16922_v17, %v16687_v55 }
  0xeb   : > { %15531 = vrcp.f32 %v1880_v58  ;;  %v548_v44 = vmul.f32 %v15516_v23, %v16792_v60  ;;  %v543_v23 = vsel %vm542_vm2, %v16794_v49, %v541_v29  ;;  %v1881_v14 = vmax.f32 %v1865_v46, 1e-06 }
  0xec   : > { %v15518_v43 = vpop.eup %15517  ;;  %15533 = vrsqrt.f32 %v16876_v59  ;;  %vm762_vm12 = vcmp.eq.f32.partialorder %v16876_v59, inf  ;;  %vm757_vm13 = vcmp.eq.f32.partialorder %v16820_v35, 0.0  ;;  %vm565_vm2 = vcmp.eq.f32.partialorder %v16848_v47, 0.0 }
  0xed   : > { %v15520_v0 = vpop.eup %15519  ;;  %v16907_v30 = vpop.xlane.xlu1 %480  ;;  %15535 = vrcp.f32 %v1879_v41  ;;  %v754_v41 = vmul.f32 %v15518_v43, %v16820_v35  ;;  %v550_v43 = vsel %vm549_vm0, %v16792_v60, %v548_v44  ;;  %v22825_v44 = vand.u32 2147483648, %v16760_v26 }
  0xee   : > { %v16909_v58 = vpop.xlane.xlu0 %477  ;;  %v16912_v19 = vpop.eup %15521  ;;  %15537 = vrsqrt.f32 %v16907_v30  ;;  %vm577_vm15 = vcmp.eq.f32.partialorder %v16907_v30, inf  ;;  %vm764_vm0 = vcmp.eq.f32.partialorder %v16876_v59, 0.0  ;;  %v22831_v6 = vand.u32 2147483648, %v16876_v59 }
  0xef   : > { %15539 = vrsqrt.f32 %v16909_v58  ;;  %v15524_v61 = vpop.eup %15523  ;;  %v16956_v38 = vsel %vm743_vm1, %v22825_v44, %v742_v9  ;;  %v16961_v54 = vsel %vm755_vm4, %v16820_v35, %v754_v41  ;;  %vm570_vm1 = vcmp.eq.f32.partialorder %v16909_v58, inf }
  0xf0   : > { %v15526_v40 = vpop.eup %15525  ;;  %vm771_vm4 = vcmp.eq.f32.partialorder %v16874_v39, 0.0 }
  0xf1   : > { %v843_v8 = vpop.f32.mrb[0].mxu0  ;;  %v897_v29 = vpop.f32.mrb[0].mxu1 }
  0xf2   : > { %v1893_v62 = vmul.f32 %v16813_v18, %v843_v8  ;;  %v1895_v63 = vmul.f32 %v15520_v0, %v897_v29  ;;  %v845_v7 = vpop.f32.mrb[1].mxu0  ;;  %v16950_v51 = vpop.xlane.xlu0 %675  ;;  %v747_v18 = vmul.f32 %v15524_v61, %v16822_v27  ;;  %v1866_v29 = vmul.f32 %v1704_v57, %v16939_v21 }
  0xf3   : > { %v15528_v46 = vpop.eup %15527  ;;  %v846_v0 = vpop.f32.mrb[2].mxu0  ;;  %v16968_v7 = vsel %vm544_vm3, %v545_v48, %v543_v23  ;;  %15541 = vrsqrt.f32 %v16950_v51  ;;  %v562_v57 = vmul.f32 %v15526_v40, %v16848_v47  ;;  %vm572_vm3 = vcmp.eq.f32.partialorder %v16909_v58, 0.0 }
  0xf4   : > { %v899_v8 = vpop.f32.mrb[1].mxu1  ;;  %v15530_v26 = vpop.eup %15529  ;;  %v16973_v34 = vadd.f32 %v16713_v37, %v1893_v62  ;;  %v16976_v61 = vadd.f32 %v16713_v37, %v1895_v63  ;;  %15543 = vrcp.f32 %v1881_v14  ;;  %v1867_v23 = vmul.f32 %v1708_v1, %v16968_v7 }
  0xf5   : > { %v847_v44 = vpop.f32.mrb[3].mxu0  ;;  %v900_v41 = vpop.f32.mrb[2].mxu1  ;;  %v1712_v62 = vrot.slane %v16956_v38, %v16687_v55  ;;  %v555_v63 = vmul.f32 %v15528_v46, %v16850_v52  ;;  %v768_v1 = vmul.f32 %v15530_v26, %v16874_v39  ;;  %v1882_v46 = vmax.f32 %v1866_v29, 1e-06 }
  0xf6   : > { %v16978_v0 = vpop.eup %15531  ;;  %v901_v48 = vpop.f32.mrb[3].mxu1  ;;  %v2857_v40 = vsel %vm2856_vm5, %v16973_v34, -inf  ;;  %v2860_v44 = vsel %vm2856_vm5, %v16976_v61, -inf  ;;  %v749_v9 = vsel %vm748_vm7, %v16822_v27, %v747_v18  ;;  %v22826_v26 = vand.u32 2147483648, %v16792_v60 }
  0xf7   : > { %v16983_v49 = vpop.xlane.xlu1 %678  ;;  %v15534_v8 = vpop.eup %15533  ;;  %2858 = vmax.xlane.f32.xlu0 %v2857_v40  ;;  %2861 = vmax.xlane.f32.xlu1 %v2860_v44  ;;  %v17015_v29 = vsel %vm563_vm8, %v16848_v47, %v562_v57  ;;  %v1883_v25 = vmax.f32 %v1867_v23, 1e-06  ;;  %v557_v33 = vsel %vm556_vm9, %v16850_v52, %v555_v63  ;;  %v17029_v23 = vsel %vm769_vm11, %v16874_v39, %v768_v1 }
  0xf8   : > { %v16994_v41 = vpop.xlane.xlu0 %483  ;;  %15545 = vrsqrt.f32 %v16983_v49  ;;  %v15536_v14 = vpop.eup %15535  ;;  %v17010_v40 = vsel %vm551_vm6, %v22826_v26, %v550_v43  ;;  %v761_v18 = vmul.f32 %v15534_v8, %v16876_v59  ;;  %vm776_vm6 = vcmp.eq.f32.partialorder %v16950_v51, inf }
  0xf9   : > { %15547 = vrsqrt.f32 %v16994_v41  ;;  %v15538_v48 = vpop.eup %15537  ;;  %v951_v50 = vpop.f32.mrb[4].mxu0  ;;  %v1868_v24 = vmul.f32 %v1712_v62, %v17010_v40  ;;  %vm584_vm7 = vcmp.eq.f32.partialorder %v16994_v41, inf  ;;  %v17036_v60 = vsel %vm750_vm10, %v22827_v13, %v749_v9 }
  0xfa   : > { %v15540_v44 = vpop.eup %15539  ;;  %v1005_v32 = vpop.f32.mrb[4].mxu1  ;;  %v1897_v43 = vmul.f32 %v16912_v19, %v951_v50  ;;  %15549 = vrcp.f32 %v1882_v46  ;;  %v763_v46 = vsel %vm762_vm12, %v16876_v59, %v761_v18  ;;  %vm778_vm8 = vcmp.eq.f32.partialorder %v16950_v51, 0.0 }
  0xfb   : > { %v1899_v57 = vmul.f32 %v15536_v14, %v1005_v32  ;;  %v953_v26 = vpop.f32.mrb[5].mxu0  ;;  %v1007_v8 = vpop.f32.mrb[5].mxu1  ;;  %v576_v32 = vmul.f32 %v15538_v48, %v16907_v30  ;;  %v569_v50 = vmul.f32 %v15540_v44, %v16909_v58  ;;  %15551 = vrcp.f32 %v1883_v25 }
  0xfc   : > { %v954_v62 = vpop.f32.mrb[6].mxu0  ;;  %v1008_v63 = vpop.f32.mrb[6].mxu1  ;;  %v17041_v14 = vadd.f32 %v16713_v37, %v1897_v43  ;;  %v1884_v9 = vmax.f32 %v1868_v24, 1e-06  ;;  %v1716_v48 = vrot.slane %v17036_v60, %v16687_v55  ;;  %vm579_vm9 = vcmp.eq.f32.partialorder %v16907_v30, 0.0 }
  0xfd   : > { %v955_v19 = vpop.f32.mrb[7].mxu0  ;;  %v17044_v1 = vadd.f32 %v16713_v37, %v1899_v57  ;;  %v1009_v26 = vpop.f32.mrb[7].mxu1  ;;  %v22829_v25 = vand.u32 2147483648, %v16820_v35  ;;  %vm586_vm10 = vcmp.eq.f32.partialorder %v16994_v41, 0.0  ;;  %vm783_vm11 = vcmp.eq.f32.partialorder %v16983_v49, inf }
  0xfe   : > { %22828 = vst [vmem:[#allocation132_spill] sm:$0xff] %v17041_v14  ;;  %v17050_v13 = vpop.xlane.xlu1 %486  ;;  %v17052_v27 = vpop.xlane.xlu0 %681  ;;  %v2863_v43 = vsel %vm2856_vm5, %v17041_v14, -inf  ;;  %v578_v63 = vsel %vm577_vm15, %v16907_v30, %v576_v32  ;;  %vm785_vm12 = vcmp.eq.f32.partialorder %v16983_v49, 0.0  ;;  %v22830_v19 = vand.u32 2147483648, %v16850_v52 }
  0xff   : > { %v15542_v44 = vpop.eup %15541  ;;  %v2866_v18 = vsel %vm2856_vm5, %v17044_v1, -inf  ;;  %15553 = vrsqrt.f32 %v17050_v13  ;;  %v17067_v24 = vsel %vm757_vm13, %v22829_v25, %v16961_v54  ;;  %2864 = vmax.xlane.f32.xlu0 %v2863_v43  ;;  %v571_v54 = vsel %vm570_vm1, %v16909_v58, %v569_v50 }
 0x100   : > { %v15544_v57 = vpop.eup %15543  ;;  %2867 = vmax.xlane.f32.xlu1 %v2866_v18  ;;  %15555 = vrsqrt.f32 %v17052_v27  ;;  %v17085_v26 = vsel %vm558_vm14, %v22830_v19, %v557_v33  ;;  %v775_v18 = vmul.f32 %v15542_v44, %v16950_v51  ;;  %v1720_v50 = vrot.slane %v17067_v24, %v16687_v55 }
 0x101   : > { %v1059_v25 = vpop.f32.mrb[8].mxu0  ;;  %v1113_v8 = vpop.f32.mrb[8].mxu1  ;;  %v1869_v32 = vmul.f32 %v1716_v48, %v17085_v26  ;;  %v17095_v35 = vsel %vm764_vm0, %v22831_v6, %v763_v46  ;;  %15557 = vrcp.f32 %v1884_v9  ;;  %v17104_v14 = vsel %vm565_vm2, %v22832_v3, %v17015_v29 }
 0x102   : > { %v15546_v62 = vpop.eup %15545  ;;  %v1901_v33 = vmul.f32 %v16978_v0, %v1059_v25  ;;  %v1903_v19 = vmul.f32 %v15544_v57, %v1113_v8  ;;  %v1061_v12 = vpop.f32.mrb[9].mxu0  ;;  %v22833_v6 = vand.u32 2147483648, %v16909_v58  ;;  %vm591_vm13 = vcmp.eq.f32.partialorder %v17050_v13, inf }
 0x103   : > { %v15548_v43 = vpop.eup %15547  ;;  %v1115_v44 = vpop.f32.mrb[9].mxu1  ;;  %v1885_v48 = vmax.f32 %v1869_v32, 1e-06  ;;  %v1724_v12 = vrot.slane %v17095_v35, %v16687_v55  ;;  %v777_v58 = vsel %vm776_vm6, %v16950_v51, %v775_v18  ;;  %vm593_vm14 = vcmp.eq.f32.partialorder %v17050_v13, 0.0 }
 0x104   : > { %v583_v52 = vmul.f32 %v15548_v43, %v16994_v41  ;;  %v1062_v4 = vpop.f32.mrb[10].mxu0  ;;  %v1116_v5 = vpop.f32.mrb[10].mxu1  ;;  %v17110_v59 = vsel %vm572_vm3, %v22833_v6, %v571_v54  ;;  %v17117_v0 = vadd.f32 %v16713_v37, %v1901_v33  ;;  %v17120_v3 = vadd.f32 %v16713_v37, %v1903_v19 }
 0x105   : > { %v782_v4 = vmul.f32 %v15546_v62, %v16983_v49  ;;  %v1063_v5 = vpop.f32.mrb[11].mxu0  ;;  %v1117_v47 = vpop.f32.mrb[11].mxu1  ;;  %v1870_v57 = vmul.f32 %v1720_v50, %v17104_v14  ;;  %v22835_v8 = vand.u32 2147483648, %v16874_v39  ;;  %vm790_vm15 = vcmp.eq.f32.partialorder %v17052_v27, inf }
 0x106   : > { %22834 = vst [vmem:[#allocation133_spill] sm:$0xff] %v17117_v0  ;;  %v15550_v29 = vpop.eup %15549  ;;  %v17127_v9 = vpop.xlane.xlu1 %489  ;;  %v585_v54 = vsel %vm584_vm7, %v16994_v41, %v583_v52  ;;  %v2869_v43 = vsel %vm2856_vm5, %v17117_v0, -inf  ;;  %v2872_v18 = vsel %vm2856_vm5, %v17120_v3, -inf  ;;  %vm792_vm0 = vcmp.eq.f32.partialorder %v17052_v27, 0.0 }
 0x107   : > { %v17135_v62 = vsel %vm771_vm4, %v22835_v8, %v17029_v23  ;;  %15559 = vrsqrt.f32 %v17127_v9  ;;  %v15552_v25 = vpop.eup %15551  ;;  %2870 = vmax.xlane.f32.xlu0 %v2869_v43  ;;  %2873 = vmax.xlane.f32.xlu1 %v2872_v18  ;;  %v1871_v39 = vmul.f32 %v1724_v12, %v17110_v59  ;;  %v784_v32 = vsel %vm783_vm11, %v16983_v49, %v782_v4 }
 0x108   : > { %15561 = vrcp.f32 %v1885_v48  ;;  %v793_v50 = vand.u32 2147483648, %v17052_v27  ;;  %v1728_v52 = vrot.slane %v17135_v62, %v16687_v55  ;;  %v22836_v33 = vand.u32 2147483648, %v16950_v51 }
 0x109   : > { %v15554_v23 = vpop.eup %15553  ;;  %v1167_v6 = vpop.f32.mrb[12].mxu0  ;;  %v1886_v5 = vmax.f32 %v1870_v57, 1e-06  ;;  %v22837_v47 = vand.u32 2147483648, %v16907_v30  ;;  %v22838_v8 = vand.u32 2147483648, %v16994_v41  ;;  %vm598_vm1 = vcmp.eq.f32.partialorder %v17127_v9, inf }
 0x10a   : > { %v17158_v19 = vsel %vm778_vm8, %v22836_v33, %v777_v58  ;;  %v15556_v44 = vpop.eup %15555  ;;  %v590_v48 = vmul.f32 %v15554_v23, %v17050_v13  ;;  %v1221_v12 = vpop.f32.mrb[12].mxu1  ;;  %v1905_v51 = vmul.f32 %v15550_v29, %v1167_v6  ;;  %v1887_v0 = vmax.f32 %v1871_v39, 1e-06 }
 0x10b   : > { %v17165_v4 = vsel %vm579_vm9, %v22837_v47, %v578_v63  ;;  %v17171_v43 = vsel %vm586_vm10, %v22838_v8, %v585_v54  ;;  %v1907_v58 = vmul.f32 %v15552_v25, %v1221_v12  ;;  %v789_v18 = vmul.f32 %v15556_v44, %v17052_v27  ;;  %v1169_v23 = vpop.f32.mrb[13].mxu0  ;;  %v1223_v57 = vpop.f32.mrb[13].mxu1 }
 0x10c   : > { %v1170_v33 = vpop.f32.mrb[14].mxu0  ;;  %v1224_v46 = vpop.f32.mrb[14].mxu1  ;;  %v1732_v30 = vrot.slane %v17158_v19, %v16687_v55  ;;  %v22839_v63 = vand.u32 2147483648, %v16983_v49  ;;  %v2595_v29 = vrot.slane %v16842_v15, %v16687_v55  ;;  %v1872_v49 = vmul.f32 %v1728_v52, %v17165_v4 }
 0x10d   : > { %v15558_v54 = vpop.eup %15557  ;;  %v791_v25 = vsel %vm790_vm15, %v17052_v27, %v789_v18  ;;  %v1171_v44 = vpop.f32.mrb[15].mxu0  ;;  %v17189_v46 = vadd.f32 %v16713_v37, %v1905_v51  ;;  %v17192_v39 = vadd.f32 %v16713_v37, %v1907_v58  ;;  %vm600_vm2 = vcmp.eq.f32.partialorder %v17127_v9, 0.0 }
 0x10e   : > { %v17181_v41 = vsel %vm785_vm12, %v22839_v63, %v784_v32  ;;  %v1225_v6 = vpop.f32.mrb[15].mxu1  ;;  %v592_v32 = vsel %vm591_vm13, %v17050_v13, %v590_v48  ;;  %v601_v15 = vand.u32 2147483648, %v17127_v9  ;;  %15563 = vrcp.f32 %v1886_v5 }
 0x10f   : > { %v2875_v12 = vsel %vm2856_vm5, %v17189_v46, -inf  ;;  %v2878_v47 = vsel %vm2856_vm5, %v17192_v39, -inf  ;;  %v1736_v8 = vrot.slane %v17181_v41, %v16687_v55  ;;  %v17208_v52 = vsel %vm792_vm0, %v793_v50, %v791_v25 }
 0x110   : > { %2876 = vmax.xlane.f32.xlu0 %v2875_v12  ;;  %2879 = vmax.xlane.f32.xlu1 %v2878_v47  ;;  %15565 = vrcp.f32 %v1887_v0  ;;  %v1873_v48 = vmul.f32 %v1732_v30, %v17171_v43  ;;  %v17212_v5 = vmul.f32 %v2595_v29, %v16800_v16  ;;  %v2599_v51 = vrot.slane %v16831_v20, %v16687_v55 }
 0x111   : > { %v15560_v58 = vpop.eup %15559  ;;  %v1888_v18 = vmax.f32 %v1872_v49, 1e-06  ;;  %v22840_v23 = vand.u32 2147483648, %v17050_v13  ;;  %v2603_v50 = vrot.slane %v16901_v45, %v16687_v55  ;;  %v2607_v0 = vrot.slane %v16939_v21, %v16687_v55  ;;  %v1275_v33 = vpop.f32.mrb[16].mxu0 }
 0x112   : > { %v15562_v57 = vpop.eup %15561  ;;  %v597_v16 = vmul.f32 %v15560_v58, %v17127_v9  ;;  %v1329_v30 = vpop.f32.mrb[16].mxu1  ;;  %v1740_v20 = vrot.slane %v17208_v52, %v16687_v55  ;;  %v17230_v63 = vmul.f32 %v2599_v51, %v16786_v56  ;;  %v2611_v13 = vrot.slane %v16968_v7, %v16687_v55 }
 0x113   : > { %v17220_v27 = vsel %vm593_vm14, %v22840_v23, %v592_v32  ;;  %v1909_v29 = vmul.f32 %v15558_v54, %v1275_v33  ;;  %v1911_v25 = vmul.f32 %v15562_v57, %v1329_v30  ;;  %v1277_v45 = vpop.f32.mrb[17].mxu0  ;;  %v1331_v44 = vpop.f32.mrb[17].mxu1  ;;  %v17235_v21 = vmul.f32 %v2603_v50, %v16858_v53 }
 0x114   : > { %v2615_v6 = vrot.slane %v17010_v40, %v16687_v55  ;;  %v599_v49 = vsel %vm598_vm1, %v17127_v9, %v597_v16  ;;  %v1278_v32 = vpop.f32.mrb[18].mxu0  ;;  %v1332_v56 = vpop.f32.mrb[18].mxu1  ;;  %v1889_v12 = vmax.f32 %v1873_v48, 1e-06  ;;  %v17243_v47 = vmul.f32 %v2607_v0, %v16887_v10 }
 0x115   : > { %v1279_v7 = vpop.f32.mrb[19].mxu0  ;;  %v17246_v54 = vadd.f32 %v16713_v37, %v1909_v29  ;;  %v17249_v53 = vadd.f32 %v16713_v37, %v1911_v25  ;;  %v1333_v51 = vpop.f32.mrb[19].mxu1  ;;  %v1874_v40 = vmul.f32 %v1736_v8, %v17220_v27  ;;  %v602_v58 = vsel %vm600_vm2, %v601_v15, %v599_v49 }
 0x116   : > { %v1875_v23 = vmul.f32 %v1740_v20, %v602_v58  ;;  %v17255_v50 = vmul.f32 %v2611_v13, %v16922_v17  ;;  %15567 = vrcp.f32 %v1888_v18  ;;  %v17262_v0 = vmul.f32 %v2615_v6, %v16956_v38 }
 0x117   : > { %v2881_v10 = vsel %vm2856_vm5, %v17246_v54, -inf  ;;  %v2884_v48 = vsel %vm2856_vm5, %v17249_v53, -inf  ;;  %15569 = vrcp.f32 %v1889_v12  ;;  %v2619_v9 = vrot.slane %v17085_v26, %v16687_v55 }
 0x118   : > { %v15564_v57 = vpop.eup %15563  ;;  %2882 = vmax.xlane.f32.xlu0 %v2881_v10  ;;  %2885 = vmax.xlane.f32.xlu1 %v2884_v48  ;;  %v1890_v15 = vmax.f32 %v1874_v40, 1e-06  ;;  %v2623_v17 = vrot.slane %v17104_v14, %v16687_v55  ;;  %v2627_v8 = vrot.slane %v17110_v59, %v16687_v55  ;;  %v2631_v18 = vrot.slane %v17165_v4, %v16687_v55 }
 0x119   : > { %v1383_v38 = vpop.f32.mrb[20].mxu0  ;;  %v1437_v33 = vpop.f32.mrb[20].mxu1  ;;  %v1891_v30 = vmax.f32 %v1875_v23, 1e-06  ;;  %v17273_v20 = vmul.f32 %v2619_v9, %v17036_v60  ;;  %v2635_v26 = vrot.slane %v17171_v43, %v16687_v55  ;;  %v2639_v13 = vrot.slane %v17220_v27, %v16687_v55 }
 0x11a   : > { %v15566_v16 = vpop.eup %15565  ;;  %v1913_v14 = vmul.f32 %v15564_v57, %v1383_v38  ;;  %v1385_v25 = vpop.f32.mrb[21].mxu0  ;;  %v2583_v4 = vrot.slane %v16699_v42, %v16687_v55  ;;  %v17282_v45 = vmul.f32 %v2623_v17, %v17067_v24  ;;  %v2587_v60 = vrot.slane %v16766_v36, %v16687_v55 }
 0x11b   : > { %v1915_v29 = vmul.f32 %v15566_v16, %v1437_v33  ;;  %v1439_v59 = vpop.f32.mrb[21].mxu1  ;;  %v1386_v44 = vpop.f32.mrb[22].mxu0  ;;  %v17287_v43 = vmul.f32 %v2627_v8, %v17095_v35  ;;  %v17290_v27 = vmul.f32 %v2631_v18, %v17135_v62  ;;  %15571 = vrcp.f32 %v1890_v15 }
 0x11c   : > { %v1440_v6 = vpop.f32.mrb[22].mxu1  ;;  %v1387_v49 = vpop.f32.mrb[23].mxu0  ;;  %v17293_v32 = vadd.f32 %v16713_v37, %v1913_v14  ;;  %v17299_v56 = vmul.f32 %v2635_v26, %v17158_v19  ;;  %15573 = vrcp.f32 %v1891_v30  ;;  %v17302_v36 = vmul.f32 %v2639_v13, %v17181_v41 }
 0x11d   : > { %v17296_v42 = vadd.f32 %v16713_v37, %v1915_v29  ;;  %v1441_v24 = vpop.f32.mrb[23].mxu1  ;;  %v2756_v12 = vmul.f32 %v2583_v4, %v16683_v22  ;;  %v2757_v7 = vmul.f32 %v2587_v60, %v16718_v28  ;;  %v2643_v51 = vrot.slane %v602_v58, %v16687_v55 }
 0x11e   : > { %v2887_v35 = vsel %vm2856_vm5, %v17293_v32, -inf  ;;  %v2591_v22 = vrot.slane %v16779_v11, %v16687_v55  ;;  %v2775_v24 = vmax.f32 %v17212_v5, 1e-06  ;;  %vm2838_vm3 = vcmp.lt.s32.totalorder %v16672_v31, 4 }
 0x11f   : > { %v2890_v62 = vsel %vm2856_vm5, %v17296_v42, -inf  ;;  %2888 = vmax.xlane.f32.xlu0 %v2887_v35  ;;  %v17312_v41 = vmul.f32 %v2643_v51, %v17208_v52  ;;  %v2772_v17 = vmax.f32 %v2756_v12, 1e-06  ;;  %v2773_v28 = vmax.f32 %v2757_v7, 1e-06 }
 0x120   : > { %2891 = vmax.xlane.f32.xlu1 %v2890_v62  ;;  %v15568_v19 = vpop.eup %15567  ;;  %v2758_v11 = vmul.f32 %v2591_v22, %v16737_v2  ;;  %v2777_v31 = vmax.f32 %v17235_v21, 1e-06  ;;  %vm3228_vm4 = vcmask 1043456   ;;  %vm5912_vm6 = vcmask 130048  }
 0x121   : > { %v15570_v40 = vpop.eup %15569  ;;  %v1491_v23 = vpop.f32.mrb[24].mxu0  ;;  %15575 = vrcp.f32 %v2772_v17  ;;  %v2776_v17 = vmax.f32 %v17230_v63, 1e-06  ;;  %vm8866_vm11 = vcmask 15362  }
 0x122   : > { %v1545_v10 = vpop.f32.mrb[24].mxu1  ;;  %v1917_v48 = vmul.f32 %v15568_v19, %v1491_v23  ;;  %v1493_v9 = vpop.f32.mrb[25].mxu0  ;;  %15577 = vrcp.f32 %v2773_v28  ;;  %v2774_v6 = vmax.f32 %v2758_v11, 1e-06 }
 0x123   : > { %v1919_v57 = vmul.f32 %v15570_v40, %v1545_v10  ;;  %v1547_v15 = vpop.f32.mrb[25].mxu1  ;;  %v1494_v8 = vpop.f32.mrb[26].mxu0 }
 0x124   : > { %v1548_v18 = vpop.f32.mrb[26].mxu1  ;;  %v1495_v16 = vpop.f32.mrb[27].mxu0  ;;  %v17317_v58 = vadd.f32 %v16713_v37, %v1917_v48  ;;  %15579 = vrcp.f32 %v2774_v6  ;;  %v2779_v6 = vmax.f32 %v17255_v50, 1e-06 }
 0x125   : > { %v17320_v38 = vadd.f32 %v16713_v37, %v1919_v57  ;;  %v1549_v52 = vpop.f32.mrb[27].mxu1  ;;  %v15572_v33 = vpop.eup %15571  ;;  %15581 = vrcp.f32 %v2775_v24 }
 0x126   : > { %v2893_v30 = vsel %vm2856_vm5, %v17317_v58, -inf  ;;  %v15574_v13 = vpop.eup %15573  ;;  %15583 = vrcp.f32 %v2776_v17 }
 0x127   : > { %v2896_v26 = vsel %vm2856_vm5, %v17320_v38, -inf  ;;  %2894 = vmax.xlane.f32.xlu0 %v2893_v30  ;;  %15585 = vrcp.f32 %v2777_v31 }
 0x128   : > { %2897 = vmax.xlane.f32.xlu1 %v2896_v26 }
 0x129   : > { %v1599_v14 = vpop.f32.mrb[28].mxu0  ;;  %v1653_v29 = vpop.f32.mrb[28].mxu1 }
 0x12a   : > { %v1921_v25 = vmul.f32 %v15572_v33, %v1599_v14  ;;  %v1923_v59 = vmul.f32 %v15574_v13, %v1653_v29  ;;  %v1601_v4 = vpop.f32.mrb[29].mxu0  ;;  %v1655_v44 = vpop.f32.mrb[29].mxu1 }
 0x12b   : > { %v1602_v60 = vpop.f32.mrb[30].mxu0  ;;  %v1656_v49 = vpop.f32.mrb[30].mxu1 }
 0x12c   : > { %v17329_v35 = vadd.f32 %v16713_v37, %v1921_v25  ;;  %v17332_v2 = vadd.f32 %v16713_v37, %v1923_v59  ;;  %v1603_v62 = vpop.f32.mrb[31].mxu0  ;;  %v1657_v12 = vpop.f32.mrb[31].mxu1  ;;  %v22841_v37 = vmov -1e+09   ;;  %v2778_v59 = vmax.f32 %v17243_v47, 1e-06 }
 0x12d   : > { %v15576_v5 = vpop.eup %15575  ;;  %v17340_v10 = vsel %vm2838_vm3, 0.0, %v22841_v37 }
 0x12e   : > { %v2899_v7 = vsel %vm2856_vm5, %v17329_v35, -inf  ;;  %v2902_v51 = vsel %vm2856_vm5, %v17332_v2, -inf  ;;  %v15578_v19 = vpop.eup %15577  ;;  %15587 = vrcp.f32 %v2778_v59 }
 0x12f   : > { %2900 = vmax.xlane.f32.xlu0 %v2899_v7  ;;  %2903 = vmax.xlane.f32.xlu1 %v2902_v51  ;;  %v15580_v63 = vpop.eup %15579  ;;  %15589 = vrcp.f32 %v2779_v6 }
 0x130   : > { %v15582_v21 = vpop.eup %15581 }
 0x131   : > { %v1958_v40 = vpop.f32.mrb[32].mxu0  ;;  %v1998_v23 = vpop.f32.mrb[32].mxu1 }
 0x132   : > { %v2789_v48 = vmul.f32 %v15576_v5, %v1958_v40  ;;  %v2791_v57 = vmul.f32 %v15578_v19, %v1998_v23  ;;  %v1960_v9 = vpop.f32.mrb[33].mxu0  ;;  %v2000_v15 = vpop.f32.mrb[33].mxu1 }
 0x133   : > { %v1961_v22 = vpop.f32.mrb[34].mxu0  ;;  %v2001_v8 = vpop.f32.mrb[34].mxu1  ;;  %v2781_v15 = vmax.f32 %v17273_v20, 1e-06  ;;  %v2782_v20 = vmax.f32 %v17282_v45, 1e-06 }
 0x134   : > { %v17345_v18 = vadd.f32 %v17340_v10, %v2789_v48  ;;  %v17348_v28 = vadd.f32 %v17340_v10, %v2791_v57  ;;  %v1962_v16 = vpop.f32.mrb[35].mxu0  ;;  %v2002_v52 = vpop.f32.mrb[35].mxu1  ;;  %v2780_v48 = vmax.f32 %v17262_v0, 1e-06 }
 0x135   : > { %v15584_v7 = vpop.eup %15583 }
 0x136   : > { %v3033_v33 = vsel %vm2856_vm5, %v17345_v18, -inf  ;;  %v3036_v30 = vsel %vm2856_vm5, %v17348_v28, -inf  ;;  %v15586_v47 = vpop.eup %15585  ;;  %15591 = vrcp.f32 %v2780_v48 }
 0x137   : > { %3034 = vmax.xlane.f32.xlu0 %v3033_v33  ;;  %3037 = vmax.xlane.f32.xlu1 %v3036_v30  ;;  %15593 = vrcp.f32 %v2781_v15 }
 0x138   : > { %v15588_v16 = vpop.eup %15587  ;;  %15595 = vrcp.f32 %v2782_v20 }
 0x139   : > { %v2038_v26 = vpop.f32.mrb[36].mxu0  ;;  %v2078_v11 = vpop.f32.mrb[36].mxu1 }
 0x13a   : > { %v2793_v13 = vmul.f32 %v15580_v63, %v2038_v26  ;;  %v2795_v14 = vmul.f32 %v15582_v21, %v2078_v11  ;;  %v2040_v29 = vpop.f32.mrb[37].mxu0  ;;  %v2080_v25 = vpop.f32.mrb[37].mxu1 }
 0x13b   : > { %v2041_v4 = vpop.f32.mrb[38].mxu0  ;;  %v2081_v44 = vpop.f32.mrb[38].mxu1 }
 0x13c   : > { %v17357_v60 = vadd.f32 %v17340_v10, %v2793_v13  ;;  %v2042_v49 = vpop.f32.mrb[39].mxu0  ;;  %v2082_v24 = vpop.f32.mrb[39].mxu1  ;;  %v17360_v62 = vadd.f32 %v17340_v10, %v2795_v14  ;;  %v2783_v14 = vmax.f32 %v17287_v43, 1e-06  ;;  %v2784_v43 = vmax.f32 %v17290_v27, 1e-06 }
 0x13d   : > { %v15590_v52 = vpop.eup %15589 }
 0x13e   : > { %v3039_v12 = vsel %vm2856_vm5, %v17357_v60, -inf  ;;  %v3042_v40 = vsel %vm2856_vm5, %v17360_v62, -inf  ;;  %15597 = vrcp.f32 %v2783_v14 }
 0x13f   : > { %3040 = vmax.xlane.f32.xlu0 %v3039_v12  ;;  %15599 = vrcp.f32 %v2784_v43 }
 0x140   : > { %v15592_v44 = vpop.eup %15591 }
 0x141   : > { %v2118_v51 = vpop.f32.mrb[40].mxu0  ;;  %v2158_v5 = vpop.f32.mrb[40].mxu1 }
 0x142   : > { %v2797_v19 = vmul.f32 %v15584_v7, %v2118_v51  ;;  %v2799_v50 = vmul.f32 %v15586_v47, %v2158_v5  ;;  %v2120_v23 = vpop.f32.mrb[41].mxu0  ;;  %v2160_v37 = vpop.f32.mrb[41].mxu1 }
 0x143   : > { %3043 = vmax.xlane.f32.xlu0 %v3042_v40  ;;  %v2121_v57 = vpop.f32.mrb[42].mxu0  ;;  %v2161_v9 = vpop.f32.mrb[42].mxu1 }
 0x144   : > { %v2122_v17 = vpop.f32.mrb[43].mxu0  ;;  %v2162_v22 = vpop.f32.mrb[43].mxu1  ;;  %v17369_v8 = vadd.f32 %v17340_v10, %v2797_v19  ;;  %v17372_v31 = vadd.f32 %v17340_v10, %v2799_v50  ;;  %v2785_v19 = vmax.f32 %v17299_v56, 1e-06  ;;  %v2786_v56 = vmax.f32 %v17302_v36, 1e-06 }
 0x145   : > { %v15594_v6 = vpop.eup %15593 }
 0x146   : > { %15601 = vrcp.f32 %v2785_v19  ;;  %v15596_v48 = vpop.eup %15595 }
 0x147   : > { %15603 = vrcp.f32 %v2786_v56 }
 0x148   : > { %v15598_v57 = vpop.eup %15597 }
 0x149   : > { %v2198_v33 = vpop.f32.mrb[44].mxu0  ;;  %v2238_v30 = vpop.f32.mrb[44].mxu1 }
 0x14a   : > { %v2801_v0 = vmul.f32 %v15588_v16, %v2198_v33  ;;  %v2803_v63 = vmul.f32 %v15590_v52, %v2238_v30  ;;  %v2200_v21 = vpop.f32.mrb[45].mxu0  ;;  %v2240_v26 = vpop.f32.mrb[45].mxu1  ;;  %v2787_v30 = vmax.f32 %v17312_v41, 1e-06 }
 0x14b   : > { %v2201_v11 = vpop.f32.mrb[46].mxu0  ;;  %v2241_v13 = vpop.f32.mrb[46].mxu1 }
 0x14c   : > { %v2202_v29 = vpop.f32.mrb[47].mxu0  ;;  %v2242_v25 = vpop.f32.mrb[47].mxu1  ;;  %v17377_v59 = vadd.f32 %v17340_v10, %v2801_v0  ;;  %v17380_v4 = vadd.f32 %v17340_v10, %v2803_v63  ;;  %15605 = vrcp.f32 %v2787_v30 }
 0x14d   : > { %v15600_v20 = vpop.eup %15599 }
 0x150   : > { %v15602_v11 = vpop.eup %15601 }
 0x151   : > { %v2278_v49 = vpop.f32.mrb[48].mxu0  ;;  %v2318_v24 = vpop.f32.mrb[48].mxu1 }
 0x152   : > { %v2805_v12 = vmul.f32 %v15592_v44, %v2278_v49  ;;  %v2807_v45 = vmul.f32 %v15594_v6, %v2318_v24  ;;  %v2280_v7 = vpop.f32.mrb[49].mxu0  ;;  %v2320_v47 = vpop.f32.mrb[49].mxu1 }
 0x153   : > { %v2281_v51 = vpop.f32.mrb[50].mxu0  ;;  %v2321_v5 = vpop.f32.mrb[50].mxu1 }
 0x154   : > { %v2282_v50 = vpop.f32.mrb[51].mxu0  ;;  %v2322_v40 = vpop.f32.mrb[51].mxu1  ;;  %v17385_v23 = vadd.f32 %v17340_v10, %v2805_v12  ;;  %v17388_v37 = vadd.f32 %v17340_v10, %v2807_v45 }
 0x155   : > { %v15604_v7 = vpop.eup %15603 }
 0x156   : > { %v15606_v47 = vpop.eup %15605 }
 0x159   : > { %v2358_v9 = vpop.f32.mrb[52].mxu0  ;;  %v2398_v15 = vpop.f32.mrb[52].mxu1 }
 0x15a   : > { %v2809_v17 = vmul.f32 %v15596_v48, %v2358_v9  ;;  %v2811_v27 = vmul.f32 %v15598_v57, %v2398_v15  ;;  %v2360_v22 = vpop.f32.mrb[53].mxu0  ;;  %v2400_v16 = vpop.f32.mrb[53].mxu1 }
 0x15b   : > { %v2361_v52 = vpop.f32.mrb[54].mxu0  ;;  %v2401_v33 = vpop.f32.mrb[54].mxu1 }
 0x15c   : > { %v2362_v0 = vpop.f32.mrb[55].mxu0  ;;  %v2402_v63 = vpop.f32.mrb[55].mxu1  ;;  %v17393_v21 = vadd.f32 %v17340_v10, %v2809_v17  ;;  %v17396_v26 = vadd.f32 %v17340_v10, %v2811_v27 }
 0x161   : > { %v2438_v13 = vpop.f32.mrb[56].mxu0  ;;  %v2478_v14 = vpop.f32.mrb[56].mxu1 }
 0x162   : > { %v2813_v29 = vmul.f32 %v15600_v20, %v2438_v13  ;;  %v2815_v36 = vmul.f32 %v15602_v11, %v2478_v14  ;;  %v2440_v25 = vpop.f32.mrb[57].mxu0  ;;  %v2480_v44 = vpop.f32.mrb[57].mxu1  ;;  %v22842_v11 = vld [vmem:[#allocation132_spill] sm:$0xff] }
 0x163   : > { %v2441_v6 = vpop.f32.mrb[58].mxu0  ;;  %v2481_v41 = vpop.f32.mrb[58].mxu1  ;;  %v22843_v25 = vld [vmem:[#allocation133_spill] sm:$0xff] }
 0x164   : > { %v2442_v49 = vpop.f32.mrb[59].mxu0  ;;  %v2482_v24 = vpop.f32.mrb[59].mxu1  ;;  %v17399_v12 = vadd.f32 %v17340_v10, %v2813_v29  ;;  %v17402_v45 = vadd.f32 %v17340_v10, %v2815_v36 }
 0x169   : > { %v2518_v43 = vpop.f32.mrb[60].mxu0  ;;  %v2558_v51 = vpop.f32.mrb[60].mxu1 }
 0x16a   : > { %v2817_v5 = vmul.f32 %v15604_v7, %v2518_v43  ;;  %v2819_v19 = vmul.f32 %v15606_v47, %v2558_v51  ;;  %v2520_v50 = vpop.f32.mrb[61].mxu0  ;;  %v2560_v40 = vpop.f32.mrb[61].mxu1 }
 0x16b   : > { %v2521_v48 = vpop.f32.mrb[62].mxu0  ;;  %v2561_v57 = vpop.f32.mrb[62].mxu1 }
 0x16c   : > { %v2522_v9 = vpop.f32.mrb[63].mxu0  ;;  %v17405_v15 = vadd.f32 %v17340_v10, %v2817_v5  ;;  %v17408_v17 = vadd.f32 %v17340_v10, %v2819_v19  ;;  %v2562_v27 = vpop.f32.mrb[63].mxu1  ;;  %v3045_v5 = vsel %vm2856_vm5, %v17369_v8, -inf }
 0x184   : > { %v2862_v22 = vpop.xlane.xlu1 %2861  ;;  %v2859_v16 = vpop.xlane.xlu0 %2858 }
 0x185   : > { %v2906_v56 = vsub.f32 %v16976_v61, %v2862_v22  ;;  %v2905_v52 = vsub.f32 %v16973_v34, %v2859_v16  ;;  %v3048_v16 = vsel %vm2856_vm5, %v17372_v31, -inf }
 0x187   : > { %v2921_v33 = vmul.f32 1.442695, %v2905_v52  ;;  %v2923_v30 = vmul.f32 1.442695, %v2906_v56 }
 0x189   : > { %15607 = vpow2.f32 %v2921_v33 }
 0x18a   : > { %15609 = vpow2.f32 %v2923_v30 }
 0x18c   : > { %v2865_v63 = vpop.xlane.xlu0 %2864 }
 0x18d   : > { %v2868_v0 = vpop.xlane.xlu1 %2867  ;;  %v2907_v13 = vsub.f32 %v22842_v11, %v2865_v63 }
 0x18e   : > { %v2908_v20 = vsub.f32 %v17044_v1, %v2868_v0 }
 0x18f   : > { %v2925_v14 = vmul.f32 1.442695, %v2907_v13  ;;  %v3051_v13 = vsel %vm2856_vm5, %v17377_v59, -inf }
 0x190   : > { %v2927_v10 = vmul.f32 1.442695, %v2908_v20 }
 0x191   : > { %15611 = vpow2.f32 %v2925_v14 }
 0x192   : > { %15613 = vpow2.f32 %v2927_v10 }
 0x193   : > { %v17414_v29 = vpop.eup %15607 }
 0x194   : > { %v2874_v36 = vpop.xlane.xlu1 %2873  ;;  %v2871_v61 = vpop.xlane.xlu0 %2870  ;;  %v2953_v6 = vsel %vm2856_vm5, %v17414_v29, 0.0 }
 0x195   : > { %v2910_v34 = vsub.f32 %v17120_v3, %v2874_v36  ;;  %v2909_v44 = vsub.f32 %v22843_v25, %v2871_v61  ;;  %v17420_v41 = vpop.eup %15609  ;;  %2954 = vadd.xlane.f32.xlu1 %v2953_v6  ;;  %v22844_v25 = vld [vmem:[#allocation2_spill] sm:$0xff]  ;;  %v15846_v6 = vmov 0  }
 0x196   : > { %v2956_v24 = vsel %vm2856_vm5, %v17420_v41, 0.0  ;;  %14932 = vmatprep.subr.msk.bf16.mxu0 %vm3228_vm4, %v22844_v25  ;;  %3267 = vmatprep.mubr.bf16.mxu0 %v15846_v6 }
 0x197   : > { %v2929_v1 = vmul.f32 1.442695, %v2909_v44  ;;  %v2931_v49 = vmul.f32 1.442695, %v2910_v34  ;;  %v22846_v44 = vld [vmem:[#allocation3_spill] sm:$0xff]  ;;  %3317 = vmatprep.mubr.bf16.mxu1 %v15846_v6  ;;  %15284 = vset.pattern.permute.xlu1 %v15846_v6 }
 0x198   : > { %14934 = vmatprep.subr.msk.bf16.mxu1 %vm3228_vm4, %v22846_v44  ;;  %15283 = vset.pattern.permute.xlu0 %v15846_v6 }
 0x199   : > { %15615 = vpow2.f32 %v2929_v1  ;;  %2957 = vadd.xlane.f32.xlu1 %v2956_v24 }
 0x19a   : > { %15617 = vpow2.f32 %v2931_v49 }
 0x19b   : > { %v17424_v7 = vpop.eup %15611 }
 0x19c   : > { %v2959_v19 = vsel %vm2856_vm5, %v17424_v7, 0.0  ;;  %v17432_v50 = vpop.eup %15613 }
 0x19d   : > { %v2880_v47 = vpop.xlane.xlu1 %2879  ;;  %v2877_v3 = vpop.xlane.xlu0 %2876  ;;  %3046 = vmax.xlane.f32.xlu1 %v3045_v5  ;;  %2960 = vadd.xlane.f32.xlu0 %v2959_v19  ;;  %v2962_v57 = vsel %vm2856_vm5, %v17432_v50, 0.0 }
 0x19e   : > { %v2912_v43 = vsub.f32 %v17192_v39, %v2880_v47  ;;  %v2911_v51 = vsub.f32 %v17189_v46, %v2877_v3  ;;  %v22847_v47 = vld [vmem:[#allocation8_spill] sm:$0xff] }
 0x1a0   : > { %v2933_v40 = vmul.f32 1.442695, %v2911_v51  ;;  %v2935_v48 = vmul.f32 1.442695, %v2912_v43  ;;  %v3054_v51 = vsel %vm2856_vm5, %v17380_v4, -inf }
 0x1a1   : > { %2963 = vadd.xlane.f32.xlu0 %v2962_v57  ;;  %v22848_v57 = vld [vmem:[#allocation5_spill] sm:$0xff] }
 0x1a2   : > { %15619 = vpow2.f32 %v2933_v40 }
 0x1a3   : > { %v17436_v39 = vpop.eup %15615  ;;  %15621 = vpow2.f32 %v2935_v48 }
 0x1a4   : > { %v2965_v56 = vsel %vm2856_vm5, %v17436_v39, 0.0  ;;  %v17444_v52 = vpop.eup %15617 }
 0x1a5   : > { %v2886_v46 = vpop.xlane.xlu1 %2885  ;;  %v2883_v9 = vpop.xlane.xlu0 %2882  ;;  %3049 = vmax.xlane.f32.xlu0 %v3048_v16  ;;  %2966 = vadd.xlane.f32.xlu1 %v2965_v56  ;;  %v2968_v0 = vsel %vm2856_vm5, %v17444_v52, 0.0 }
 0x1a6   : > { %v2914_v27 = vsub.f32 %v17249_v53, %v2886_v46  ;;  %v2913_v22 = vsub.f32 %v17246_v54, %v2883_v9  ;;  %v3280_v46 = vsel %vm3228_vm4, %v22848_v57, 0 }
 0x1a7   : > { %3286 = vmatpush1.bf16.msra.mxu1 %v3280_v46  ;;  %v3075_v46 = vsel %vm2856_vm5, %v17405_v15, -inf }
 0x1a8   : > { %v2937_v33 = vmul.f32 1.442695, %v2913_v22  ;;  %v2939_v30 = vmul.f32 1.442695, %v2914_v27 }
 0x1a9   : > { %2969 = vadd.xlane.f32.xlu1 %v2968_v0 }
 0x1aa   : > { %15623 = vpow2.f32 %v2937_v33  ;;  %v3057_v33 = vsel %vm2856_vm5, %v17385_v23, -inf }
 0x1ab   : > { %15625 = vpow2.f32 %v2939_v30 }
 0x1ac   : > { %v17448_v53 = vpop.eup %15619  ;;  %v2889_v63 = vpop.xlane.xlu0 %2888 }
 0x1ad   : > { %v2892_v54 = vpop.xlane.xlu1 %2891  ;;  %v2915_v11 = vsub.f32 %v17293_v32, %v2889_v63  ;;  %v2971_v14 = vsel %vm2856_vm5, %v17448_v53, 0.0  ;;  %v17456_v10 = vpop.eup %15621  ;;  %3052 = vmax.xlane.f32.xlu1 %v3051_v13  ;;  %v22845_v32 = vld [vmem:[#allocation4_spill] sm:$0xff] }
 0x1ae   : > { %v2916_v20 = vsub.f32 %v17296_v42, %v2892_v54  ;;  %2972 = vadd.xlane.f32.xlu0 %v2971_v14  ;;  %v2974_v34 = vsel %vm2856_vm5, %v17456_v10, 0.0  ;;  %v3230_v42 = vsel %vm3228_vm4, %v22845_v32, 0 }
 0x1af   : > { %v2941_v36 = vmul.f32 1.442695, %v2915_v11  ;;  %3236 = vmatpush1.bf16.msra.mxu0 %v3230_v42 }
 0x1b0   : > { %v2943_v61 = vmul.f32 1.442695, %v2916_v20  ;;  %14936 = vmatprep.subr.msk.bf16.mxu0 %vm3228_vm4, %v22847_v47 }
 0x1b1   : > { %15627 = vpow2.f32 %v2941_v36  ;;  %v3060_v36 = vsel %vm2856_vm5, %v17388_v37, -inf }
 0x1b2   : > { %2975 = vadd.xlane.f32.xlu0 %v2974_v34  ;;  %15629 = vpow2.f32 %v2943_v61 }
 0x1b4   : > { %v17468_v1 = vpop.eup %15623  ;;  %v2895_v24 = vpop.xlane.xlu0 %2894 }
 0x1b5   : > { %v2898_v49 = vpop.xlane.xlu1 %2897  ;;  %v2917_v43 = vsub.f32 %v17317_v58, %v2895_v24  ;;  %v2977_v5 = vsel %vm2856_vm5, %v17468_v1, 0.0  ;;  %v17480_v19 = vpop.eup %15625  ;;  %v3069_v24 = vsel %vm2856_vm5, %v17399_v12, -inf }
 0x1b6   : > { %v2918_v3 = vsub.f32 %v17320_v38, %v2898_v49  ;;  %3055 = vmax.xlane.f32.xlu0 %v3054_v51  ;;  %2978 = vadd.xlane.f32.xlu1 %v2977_v5  ;;  %v2980_v58 = vsel %vm2856_vm5, %v17480_v19, 0.0  ;;  %v22849_v38 = vld [vmem:[#allocation9_spill] sm:$0xff] }
 0x1b7   : > { %v2945_v40 = vmul.f32 1.442695, %v2917_v43  ;;  %14938 = vmatprep.subr.msk.bf16.mxu1 %vm3228_vm4, %v22849_v38 }
 0x1b8   : > { %v2947_v48 = vmul.f32 1.442695, %v2918_v3 }
 0x1b9   : > { %15631 = vpow2.f32 %v2945_v40  ;;  %v3066_v40 = vsel %vm2856_vm5, %v17396_v26, -inf }
 0x1ba   : > { %2981 = vadd.xlane.f32.xlu1 %v2980_v58  ;;  %15633 = vpow2.f32 %v2947_v48 }
 0x1bb   : > { %v17488_v9 = vpop.eup %15627 }
 0x1bc   : > { %v2904_v27 = vpop.xlane.xlu1 %2903  ;;  %v2901_v22 = vpop.xlane.xlu0 %2900  ;;  %v2983_v30 = vsel %vm2856_vm5, %v17488_v9, 0.0 }
 0x1bd   : > { %v2920_v16 = vsub.f32 %v17332_v2, %v2904_v27  ;;  %v2919_v56 = vsub.f32 %v17329_v35, %v2901_v22  ;;  %v17496_v0 = vpop.eup %15629  ;;  %2984 = vadd.xlane.f32.xlu0 %v2983_v30  ;;  %v3078_v30 = vsel %vm2856_vm5, %v17408_v17, -inf }
 0x1be   : > { %3058 = vmax.xlane.f32.xlu1 %v3057_v33  ;;  %v2986_v20 = vsel %vm2856_vm5, %v17496_v0, 0.0 }
 0x1bf   : > { %v2949_v54 = vmul.f32 1.442695, %v2919_v56  ;;  %v2951_v63 = vmul.f32 1.442695, %v2920_v16 }
 0x1c1   : > { %15635 = vpow2.f32 %v2949_v54  ;;  %2987 = vadd.xlane.f32.xlu0 %v2986_v20 }
 0x1c2   : > { %15637 = vpow2.f32 %v2951_v63 }
 0x1c3   : > { %v17500_v2 = vpop.eup %15631 }
 0x1c4   : > { %v3038_v35 = vpop.xlane.xlu1 %3037  ;;  %v3035_v11 = vpop.xlane.xlu0 %3034  ;;  %v2989_v61 = vsel %vm2856_vm5, %v17500_v2, 0.0 }
 0x1c5   : > { %v3082_v13 = vsub.f32 %v17348_v28, %v3038_v35  ;;  %v3081_v14 = vsub.f32 %v17345_v18, %v3035_v11  ;;  %v17508_v34 = vpop.eup %15633  ;;  %3061 = vmax.xlane.f32.xlu0 %v3060_v36  ;;  %2990 = vadd.xlane.f32.xlu1 %v2989_v61  ;;  %v3063_v28 = vsel %vm2856_vm5, %v17393_v21, -inf }
 0x1c6   : > { %v2992_v42 = vsel %vm2856_vm5, %v17508_v34, 0.0 }
 0x1c7   : > { %v3097_v25 = vmul.f32 1.442695, %v3081_v14  ;;  %v3099_v32 = vmul.f32 1.442695, %v3082_v13 }
 0x1c9   : > { %15639 = vpow2.f32 %v3097_v25  ;;  %2993 = vadd.xlane.f32.xlu0 %v2992_v42  ;;  %3064 = vmax.xlane.f32.xlu1 %v3063_v28 }
 0x1ca   : > { %15641 = vpow2.f32 %v3099_v32  ;;  %v22850_v32 = vld [vmem:[#allocation16_spill] sm:$0xff] }
 0x1cb   : > { %v17514_v18 = vpop.eup %15635  ;;  %v3330_v42 = vsel %vm3228_vm4, %v22850_v32, 0 }
 0x1cc   : > { %v3041_v44 = vpop.xlane.xlu0 %3040  ;;  %v2995_v47 = vsel %vm2856_vm5, %v17514_v18, 0.0  ;;  %v17521_v3 = vpop.eup %15637 }
 0x1cd   : > { %v3083_v49 = vsub.f32 %v17357_v60, %v3041_v44  ;;  %3070 = vmax.xlane.f32.xlu0 %v3069_v24  ;;  %2996 = vadd.xlane.f32.xlu1 %v2995_v47  ;;  %v2998_v60 = vsel %vm2856_vm5, %v17521_v3, 0.0  ;;  %v22851_v47 = vld [vmem:[#allocation17_spill] sm:$0xff] }
 0x1cf   : > { %v3101_v43 = vmul.f32 1.442695, %v3083_v49 }
 0x1d0   : > { %v3044_v51 = vpop.xlane.xlu0 %3043 }
 0x1d1   : > { %15643 = vpow2.f32 %v3101_v43  ;;  %v3084_v5 = vsub.f32 %v17360_v62, %v3044_v51  ;;  %3067 = vmax.xlane.f32.xlu0 %v3066_v40  ;;  %2999 = vadd.xlane.f32.xlu1 %v2998_v60  ;;  %v3072_v62 = vsel %vm2856_vm5, %v17402_v45, -inf  ;;  %v3380_v43 = vsel %vm3228_vm4, %v22851_v47, 0  ;;  %v22852_v51 = vld [vmem:[#allocation20_spill] sm:$0xff] }
 0x1d3   : > { %v3103_v48 = vmul.f32 1.442695, %v3084_v5  ;;  %v17528_v57 = vpop.eup %15639 }
 0x1d4   : > { %v3129_v58 = vsel %vm2856_vm5, %v17528_v57, 0.0  ;;  %v17534_v38 = vpop.eup %15641 }
 0x1d5   : > { %15645 = vpow2.f32 %v3103_v48  ;;  %3076 = vmax.xlane.f32.xlu0 %v3075_v46  ;;  %3130 = vadd.xlane.f32.xlu1 %v3129_v58  ;;  %v3132_v27 = vsel %vm2856_vm5, %v17534_v38, 0.0  ;;  %v22853_v48 = vld [vmem:[#allocation28_spill] sm:$0xff]  ;;  %v22854_v58 = vld [vmem:[#allocation21_spill] sm:$0xff] }
 0x1d6   : > { %v3430_v46 = vsel %vm3228_vm4, %v22853_v48, 0 }
 0x1d9   : > { %3073 = vmax.xlane.f32.xlu0 %v3072_v62  ;;  %3133 = vadd.xlane.f32.xlu1 %v3132_v27 }
 0x1db   : > { %v17540_v22 = vpop.eup %15643 }
 0x1dc   : > { %v3135_v16 = vsel %vm2856_vm5, %v17540_v22, 0.0 }
 0x1dd   : > { %3136 = vadd.xlane.f32.xlu1 %v3135_v16 }
 0x1df   : > { %v17544_v56 = vpop.eup %15645 }
 0x1e0   : > { %v3138_v33 = vsel %vm2856_vm5, %v17544_v56, 0.0 }
 0x1e1   : > { %3139 = vadd.xlane.f32.xlu0 %v3138_v33  ;;  %3079 = vmax.xlane.f32.xlu1 %v3078_v30 }
 0x222   : > { %v2955_v54 = vpop.xlane.xlu1 %2954 }
 0x223   : > { %15647 = vrcp.f32 %v2955_v54 }
 0x226   : > { %v2958_v63 = vpop.xlane.xlu1 %2957 }
 0x227   : > { %15649 = vrcp.f32 %v2958_v63  ;;  %v22855_v63 = vld [vmem:[#allocation32_spill] sm:$0xff] }
 0x22a   : > { %v3047_v20 = vpop.xlane.xlu1 %3046  ;;  %v2961_v35 = vpop.xlane.xlu0 %2960 }
 0x22b   : > { %v3085_v11 = vsub.f32 %v17369_v8, %v3047_v20  ;;  %15651 = vrcp.f32 %v2961_v35 }
 0x22d   : > { %v15648_v13 = vpop.eup %15647  ;;  %v3105_v14 = vmul.f32 1.442695, %v3085_v11 }
 0x22e   : > { %v2964_v36 = vpop.xlane.xlu0 %2963  ;;  %v3002_v61 = vmul.f32 %v15648_v13, %v17414_v29  ;;  %v22856_v13 = vld [vmem:[#allocation29_spill] sm:$0xff] }
 0x22f   : > { %15653 = vpow2.f32 %v3105_v14  ;;  %v3480_v14 = vsel %vm3228_vm4, %v22856_v13, 0 }
 0x230   : > { %15655 = vrcp.f32 %v2964_v36  ;;  %v3209_v25 = vpack.c.bf16 %v3002_v61, %v3002_v61 }
 0x231   : > { %v15650_v28 = vpop.eup %15649 }
 0x232   : > { %14933 = vmatmul.mubr.msk.bf16.vlgmr.msra.gmra.mrb[64].mxu0 %vm2856_vm5, %v3209_v25  ;;  %v2967_v44 = vpop.xlane.xlu1 %2966  ;;  %v3050_v49 = vpop.xlane.xlu0 %3049  ;;  %v3004_v24 = vmul.f32 %v15650_v28, %v17420_v41 }
 0x233   : > { %15657 = vrcp.f32 %v2967_v44  ;;  %v3086_v8 = vsub.f32 %v17372_v31, %v3050_v49  ;;  %3336 = vmatpush1.bf16.msra.mxu0 %v3330_v42  ;;  %3367 = vmatprep.mubr.bf16.mxu0 %v15846_v6  ;;  %v22858_v42 = vld [vmem:[#allocation33_spill] sm:$0xff] }
 0x234   : > { %v3210_v29 = vpack.c.bf16 %v3004_v24, %v3004_v24  ;;  %14940 = vmatprep.subr.msk.bf16.mxu0 %vm3228_vm4, %v22852_v51 }
 0x235   : > { %v15652_v5 = vpop.eup %15651  ;;  %v3107_v40 = vmul.f32 1.442695, %v3086_v8 }
 0x236   : > { %14935 = vmatmul.mubr.msk.bf16.vlgmr.msra.gmra.mrb[64].mxu1 %vm2856_vm5, %v3210_v29  ;;  %v2970_v60 = vpop.xlane.xlu1 %2969  ;;  %v3006_v41 = vmul.f32 %v15652_v5, %v17424_v7  ;;  %v22859_v29 = vld [vmem:[#allocation44_spill] sm:$0xff] }
 0x237   : > { %15659 = vpow2.f32 %v3107_v40  ;;  %3386 = vmatpush1.bf16.msra.mxu1 %v3380_v43  ;;  %3417 = vmatprep.mubr.bf16.mxu1 %v15846_v6  ;;  %v22860_v5 = vld [vmem:[#allocation40_spill] sm:$0xff] }
 0x238   : > { %15661 = vrcp.f32 %v2970_v60  ;;  %v3211_v31 = vpack.c.bf16 %v3006_v41, %v3006_v41  ;;  %14942 = vmatprep.subr.msk.bf16.mxu1 %vm3228_vm4, %v22854_v58  ;;  %v3580_v40 = vsel %vm3228_vm4, %v22860_v5, 0 }
 0x239   : > { %v17569_v62 = vpop.eup %15653 }
 0x23a   : > { %v15656_v27 = vpop.eup %15655  ;;  %v3053_v16 = vpop.xlane.xlu1 %3052  ;;  %14937 = vmatmul.mubr.msk.bf16.vlgmr.msra.gmra.mrb[68].mxu0 %vm2856_vm5, %v3211_v31  ;;  %v3141_v7 = vsel %vm2856_vm5, %v17569_v62, 0.0 }
 0x23b   : > { %v2973_v33 = vpop.xlane.xlu0 %2972  ;;  %v3087_v30 = vsub.f32 %v17377_v59, %v3053_v16  ;;  %3142 = vadd.xlane.f32.xlu0 %v3141_v7  ;;  %v3008_v54 = vmul.f32 %v15656_v27, %v17432_v50  ;;  %3436 = vmatpush1.bf16.msra.mxu0 %v3430_v46  ;;  %v22857_v50 = vld [vmem:[#allocation41_spill] sm:$0xff] }
 0x23c   : > { %15663 = vrcp.f32 %v2973_v33  ;;  %3467 = vmatprep.mubr.bf16.mxu0 %v15846_v6  ;;  %14944 = vmatprep.subr.msk.bf16.mxu0 %vm3228_vm4, %v22855_v63  ;;  %v3530_v25 = vsel %vm3228_vm4, %v22857_v50, 0  ;;  %v22862_v46 = vld [vmem:[#allocation45_spill] sm:$0xff] }
 0x23d   : > { %v15658_v20 = vpop.eup %15657  ;;  %v3109_v35 = vmul.f32 1.442695, %v3087_v30  ;;  %v3212_v11 = vpack.c.bf16 %v3008_v54, %v3008_v54  ;;  %v22863_v30 = vld [vmem:[#allocation60_spill] sm:$0xff] }
 0x23e   : > { %v3010_v61 = vmul.f32 %v15658_v20, %v17436_v39 }
 0x23f   : > { %v2976_v36 = vpop.xlane.xlu0 %2975  ;;  %15665 = vpow2.f32 %v3109_v35  ;;  %14939 = vmatmul.mubr.msk.bf16.vlgmr.msra.gmra.mrb[68].mxu1 %vm2856_vm5, %v3212_v11  ;;  %v22864_v35 = vld [vmem:[#allocation53_spill] sm:$0xff] }
 0x240   : > { %15667 = vrcp.f32 %v2976_v36  ;;  %v3213_v59 = vpack.c.bf16 %v3010_v61, %v3010_v61  ;;  %3486 = vmatpush1.bf16.msra.mxu1 %v3480_v14  ;;  %3517 = vmatprep.mubr.bf16.mxu1 %v15846_v6  ;;  %v3680_v11 = vsel %vm3228_vm4, %v22864_v35, 0 }
 0x241   : > { %v17586_v32 = vpop.eup %15659  ;;  %14946 = vmatprep.subr.msk.bf16.mxu1 %vm3228_vm4, %v22858_v42 }
 0x242   : > { %v15662_v28 = vpop.eup %15661  ;;  %14941 = vmatmul.mubr.msk.bf16.vlgmr.msra.gmra.mrb[72].mxu0 %vm2856_vm5, %v3213_v59  ;;  %v3144_v49 = vsel %vm2856_vm5, %v17586_v32, 0.0  ;;  %v22866_v59 = vld [vmem:[#allocation61_spill] sm:$0xff] }
 0x243   : > { %v2979_v44 = vpop.xlane.xlu1 %2978  ;;  %v3056_v39 = vpop.xlane.xlu0 %3055  ;;  %3145 = vadd.xlane.f32.xlu1 %v3144_v49  ;;  %v3012_v8 = vmul.f32 %v15662_v28, %v17444_v52  ;;  %3536 = vmatpush1.bf16.msra.mxu0 %v3530_v25  ;;  %v22861_v52 = vld [vmem:[#allocation52_spill] sm:$0xff] }
 0x244   : > { %15669 = vrcp.f32 %v2979_v44  ;;  %v3088_v24 = vsub.f32 %v17380_v4, %v3056_v39  ;;  %3567 = vmatprep.mubr.bf16.mxu0 %v15846_v6  ;;  %14948 = vmatprep.subr.msk.bf16.mxu0 %vm3228_vm4, %v22859_v29  ;;  %v3630_v31 = vsel %vm3228_vm4, %v22861_v52, 0  ;;  %v22867_v39 = vld [vmem:[#allocation76_spill] sm:$0xff]  ;;  %v22868_v29 = vld [vmem:[#allocation69_spill] sm:$0xff] }
 0x245   : > { %v3214_v51 = vpack.c.bf16 %v3012_v8, %v3012_v8  ;;  %v22870_v52 = vld [vmem:[#allocation77_spill] sm:$0xff] }
 0x246   : > { %v15664_v47 = vpop.eup %15663  ;;  %v3111_v43 = vmul.f32 1.442695, %v3088_v24 }
 0x247   : > { %v2982_v60 = vpop.xlane.xlu1 %2981  ;;  %v3014_v41 = vmul.f32 %v15664_v47, %v17448_v53  ;;  %14943 = vmatmul.mubr.msk.bf16.vlgmr.msra.gmra.mrb[72].mxu1 %vm2856_vm5, %v3214_v51  ;;  %v3780_v47 = vsel %vm3228_vm4, %v22868_v29, 0 }
 0x248   : > { %15671 = vpow2.f32 %v3111_v43  ;;  %3586 = vmatpush1.bf16.msra.mxu1 %v3580_v40  ;;  %3617 = vmatprep.mubr.bf16.mxu1 %v15846_v6  ;;  %v22869_v40 = vld [vmem:[#allocation84_spill] sm:$0xff] }
 0x249   : > { %15673 = vrcp.f32 %v2982_v60  ;;  %v3215_v4 = vpack.c.bf16 %v3014_v41, %v3014_v41  ;;  %v17605_v48 = vpop.eup %15665  ;;  %14950 = vmatprep.subr.msk.bf16.mxu1 %vm3228_vm4, %v22862_v46  ;;  %v3830_v60 = vsel %vm3228_vm4, %v22869_v40, 0  ;;  %v22878_v40 = vld [vmem:[#allocation7_spill] sm:$0xff] }
 0x24a   : > { %v15668_v58 = vpop.eup %15667  ;;  %v2985_v53 = vpop.xlane.xlu0 %2984  ;;  %v3147_v16 = vsel %vm2856_vm5, %v17605_v48, 0.0 }
 0x24b   : > { %v3059_v27 = vpop.xlane.xlu1 %3058  ;;  %14945 = vmatmul.mubr.msk.bf16.vlgmr.msra.gmra.mrb[76].mxu0 %vm2856_vm5, %v3215_v4  ;;  %15675 = vrcp.f32 %v2985_v53  ;;  %3148 = vadd.xlane.f32.xlu0 %v3147_v16  ;;  %v3016_v7 = vmul.f32 %v15668_v58, %v17456_v10  ;;  %v22865_v10 = vld [vmem:[#allocation68_spill] sm:$0xff] }
 0x24c   : > { %v3089_v33 = vsub.f32 %v17385_v23, %v3059_v27  ;;  %3636 = vmatpush1.bf16.msra.mxu0 %v3630_v31  ;;  %3667 = vmatprep.mubr.bf16.mxu0 %v15846_v6  ;;  %v3730_v36 = vsel %vm3228_vm4, %v22865_v10, 0  ;;  %v22871_v53 = vld [vmem:[#allocation92_spill] sm:$0xff]  ;;  %v22874_v10 = vld [vmem:[#allocation93_spill] sm:$0xff] }
 0x24d   : > { %14952 = vmatprep.subr.msk.bf16.mxu0 %vm3228_vm4, %v22863_v30  ;;  %v3216_v20 = vpack.c.bf16 %v3016_v7, %v3016_v7  ;;  %v22872_v30 = vld [vmem:[#allocation85_spill] sm:$0xff] }
 0x24e   : > { %v15670_v54 = vpop.eup %15669  ;;  %v3113_v63 = vmul.f32 1.442695, %v3089_v33  ;;  %v2988_v13 = vpop.xlane.xlu0 %2987 }
 0x24f   : > { %v3018_v14 = vmul.f32 %v15670_v54, %v17468_v1  ;;  %14947 = vmatmul.mubr.msk.bf16.vlgmr.msra.gmra.mrb[76].mxu1 %vm2856_vm5, %v3216_v20  ;;  %v3880_v54 = vsel %vm3228_vm4, %v22872_v30, 0 }
 0x250   : > { %15677 = vpow2.f32 %v3113_v63  ;;  %3686 = vmatpush1.bf16.msra.mxu1 %v3680_v11  ;;  %3717 = vmatprep.mubr.bf16.mxu1 %v15846_v6  ;;  %v22873_v11 = vld [vmem:[#allocation100_spill] sm:$0xff] }
 0x251   : > { %15679 = vrcp.f32 %v2988_v13  ;;  %v3217_v23 = vpack.c.bf16 %v3018_v14, %v3018_v14  ;;  %14954 = vmatprep.subr.msk.bf16.mxu1 %vm3228_vm4, %v22866_v59  ;;  %v3930_v13 = vsel %vm3228_vm4, %v22873_v11, 0 }
 0x252   : > { %v17624_v61 = vpop.eup %15671  ;;  %v2991_v25 = vpop.xlane.xlu1 %2990 }
 0x253   : > { %v15674_v50 = vpop.eup %15673  ;;  %14949 = vmatmul.mubr.msk.bf16.vlgmr.msra.gmra.mrb[80].mxu0 %vm2856_vm5, %v3217_v23  ;;  %v3062_v1 = vpop.xlane.xlu0 %3061  ;;  %v3150_v42 = vsel %vm2856_vm5, %v17624_v61, 0.0  ;;  %15681 = vrcp.f32 %v2991_v25 }
 0x254   : > { %v3090_v28 = vsub.f32 %v17388_v37, %v3062_v1  ;;  %3151 = vadd.xlane.f32.xlu1 %v3150_v42  ;;  %v3020_v44 = vmul.f32 %v15674_v50, %v17480_v19  ;;  %3736 = vmatpush1.bf16.msra.mxu0 %v3730_v36  ;;  %v22875_v1 = vld [vmem:[#allocation6_spill] sm:$0xff] }
 0x255   : > { %3767 = vmatprep.mubr.bf16.mxu0 %v15846_v6  ;;  %14956 = vmatprep.subr.msk.bf16.mxu0 %vm3228_vm4, %v22867_v39  ;;  %v15676_v49 = vpop.eup %15675  ;;  %v22876_v39 = vld [vmem:[#allocation101_spill] sm:$0xff] }
 0x256   : > { %v3115_v24 = vmul.f32 1.442695, %v3090_v28  ;;  %v3218_v8 = vpack.c.bf16 %v3020_v44, %v3020_v44  ;;  %v3065_v43 = vpop.xlane.xlu1 %3064  ;;  %v3022_v5 = vmul.f32 %v15676_v49, %v17488_v9  ;;  %v3980_v49 = vsel %vm3228_vm4, %v22876_v39, 0  ;;  %v22887_v39 = vld [vmem:[#allocation39_spill] sm:$0xff] }
 0x257   : > { %v2994_v51 = vpop.xlane.xlu0 %2993  ;;  %v3091_v37 = vsub.f32 %v17393_v21, %v3065_v43 }
 0x258   : > { %15683 = vpow2.f32 %v3115_v24  ;;  %14951 = vmatmul.mubr.msk.bf16.vlgmr.msra.gmra.mrb[80].mxu1 %vm2856_vm5, %v3218_v8  ;;  %v3219_v19 = vpack.c.bf16 %v3022_v5, %v3022_v5 }
 0x259   : > { %15685 = vrcp.f32 %v2994_v51  ;;  %3786 = vmatpush1.bf16.msra.mxu1 %v3780_v47  ;;  %3817 = vmatprep.mubr.bf16.mxu1 %v15846_v6  ;;  %v3117_v4 = vmul.f32 1.442695, %v3091_v37  ;;  %v22877_v37 = vld [vmem:[#allocation14_spill] sm:$0xff] }
 0x25a   : > { %v17644_v41 = vpop.eup %15677  ;;  %14958 = vmatprep.subr.msk.bf16.mxu1 %vm3228_vm4, %v22870_v52  ;;  %v2997_v31 = vpop.xlane.xlu1 %2996 }
 0x25b   : > { %v15680_v9 = vpop.eup %15679  ;;  %14953 = vmatmul.mubr.msk.bf16.vlgmr.msra.gmra.mrb[84].mxu0 %vm2856_vm5, %v3219_v19  ;;  %v3071_v21 = vpop.xlane.xlu0 %3070  ;;  %v3153_v46 = vsel %vm2856_vm5, %v17644_v41, 0.0  ;;  %15687 = vpow2.f32 %v3117_v4  ;;  %v4046_v19 = vsel %vm3228_vm4, %v22877_v37, 0 }
 0x25c   : > { %v3093_v58 = vsub.f32 %v17399_v12, %v3071_v21  ;;  %3154 = vadd.xlane.f32.xlu0 %v3153_v46  ;;  %v3024_v27 = vmul.f32 %v15680_v9, %v17496_v0  ;;  %3836 = vmatpush1.bf16.msra.mxu0 %v3830_v60  ;;  %15689 = vrcp.f32 %v2997_v31  ;;  %v22879_v21 = vld [vmem:[#allocation15_spill] sm:$0xff] }
 0x25d   : > { %3867 = vmatprep.mubr.bf16.mxu0 %v15846_v6  ;;  %14960 = vmatprep.subr.msk.bf16.mxu0 %vm3228_vm4, %v22871_v53  ;;  %v15682_v16 = vpop.eup %15681  ;;  %v4096_v46 = vsel %vm3228_vm4, %v22879_v21, 0 }
 0x25e   : > { %v3121_v33 = vmul.f32 1.442695, %v3093_v58  ;;  %v3220_v7 = vpack.c.bf16 %v3024_v27, %v3024_v27  ;;  %v3000_v63 = vpop.xlane.xlu1 %2999  ;;  %v3026_v12 = vmul.f32 %v15682_v16, %v17500_v2  ;;  %v22880_v58 = vld [vmem:[#allocation18_spill] sm:$0xff] }
 0x25f   : > { %v3068_v20 = vpop.xlane.xlu0 %3067 }
 0x260   : > { %15691 = vpow2.f32 %v3121_v33  ;;  %14955 = vmatmul.mubr.msk.bf16.vlgmr.msra.gmra.mrb[84].mxu1 %vm2856_vm5, %v3220_v7  ;;  %v3092_v0 = vsub.f32 %v17396_v26, %v3068_v20  ;;  %v3221_v35 = vpack.c.bf16 %v3026_v12, %v3026_v12  ;;  %v22882_v12 = vld [vmem:[#allocation19_spill] sm:$0xff] }
 0x261   : > { %15693 = vrcp.f32 %v3000_v63  ;;  %3886 = vmatpush1.bf16.msra.mxu1 %v3880_v54  ;;  %3917 = vmatprep.mubr.bf16.mxu1 %v15846_v6  ;;  %v22881_v63 = vld [vmem:[#allocation26_spill] sm:$0xff] }
 0x262   : > { %v17664_v14 = vpop.eup %15683  ;;  %v3119_v23 = vmul.f32 1.442695, %v3092_v0  ;;  %14962 = vmatprep.subr.msk.bf16.mxu1 %vm3228_vm4, %v22874_v10  ;;  %v3131_v36 = vpop.xlane.xlu1 %3130  ;;  %v4146_v20 = vsel %vm3228_vm4, %v22881_v63, 0  ;;  %v22884_v10 = vld [vmem:[#allocation30_spill] sm:$0xff] }
 0x263   : > { %v15686_v2 = vpop.eup %15685  ;;  %14957 = vmatmul.mubr.msk.bf16.vlgmr.msra.gmra.mrb[88].mxu0 %vm2856_vm5, %v3221_v35  ;;  %v3077_v59 = vpop.xlane.xlu0 %3076  ;;  %v3156_v26 = vsel %vm2856_vm5, %v17664_v14, 0.0 }
 0x264   : > { %15695 = vpow2.f32 %v3119_v23  ;;  %v3095_v50 = vsub.f32 %v17405_v15, %v3077_v59  ;;  %3157 = vadd.xlane.f32.xlu1 %v3156_v26  ;;  %v3028_v25 = vmul.f32 %v15686_v2, %v17508_v34  ;;  %3936 = vmatpush1.bf16.msra.mxu0 %v3930_v13  ;;  %v22883_v13 = vld [vmem:[#allocation27_spill] sm:$0xff] }
 0x265   : > { %15697 = vrcp.f32 %v3131_v36  ;;  %3967 = vmatprep.mubr.bf16.mxu0 %v15846_v6  ;;  %14964 = vmatprep.subr.msk.bf16.mxu0 %vm3228_vm4, %v22875_v1  ;;  %v17676_v42 = vpop.eup %15687  ;;  %v4196_v23 = vsel %vm3228_vm4, %v22883_v13, 0 }
 0x266   : > { %v3125_v28 = vmul.f32 1.442695, %v3095_v50  ;;  %v3222_v44 = vpack.c.bf16 %v3028_v25, %v3028_v25  ;;  %v15690_v24 = vpop.eup %15689  ;;  %v3134_v8 = vpop.xlane.xlu1 %3133  ;;  %v3159_v34 = vsel %vm2856_vm5, %v17676_v42, 0.0  ;;  %v22885_v25 = vld [vmem:[#allocation38_spill] sm:$0xff] }
 0x267   : > { %v3074_v15 = vpop.xlane.xlu0 %3073  ;;  %3160 = vadd.xlane.f32.xlu0 %v3159_v34  ;;  %v3030_v47 = vmul.f32 %v15690_v24, %v17514_v18  ;;  %v4246_v1 = vsel %vm3228_vm4, %v22885_v25, 0  ;;  %v22888_v24 = vld [vmem:[#allocation42_spill] sm:$0xff] }
 0x268   : > { %15699 = vpow2.f32 %v3125_v28  ;;  %14959 = vmatmul.mubr.msk.bf16.vlgmr.msra.gmra.mrb[88].mxu1 %vm2856_vm5, %v3222_v44  ;;  %v3094_v29 = vsub.f32 %v17402_v45, %v3074_v15  ;;  %v22886_v28 = vld [vmem:[#allocation31_spill] sm:$0xff] }
 0x269   : > { %15701 = vrcp.f32 %v3134_v8  ;;  %3986 = vmatpush1.bf16.msra.mxu1 %v3980_v49  ;;  %4017 = vmatprep.mubr.bf16.mxu1 %v15846_v6  ;;  %v3223_v5 = vpack.c.bf16 %v3030_v47, %v3030_v47  ;;  %v4296_v49 = vsel %vm3228_vm4, %v22887_v39, 0  ;;  %v22889_v8 = vld [vmem:[#allocation43_spill] sm:$0xff] }
 0x26a   : > { %v17686_v43 = vpop.eup %15691  ;;  %v3123_v51 = vmul.f32 1.442695, %v3094_v29  ;;  %14966 = vmatprep.subr.msk.bf16.mxu1 %vm3228_vm4, %v22878_v40  ;;  %v3137_v4 = vpop.xlane.xlu1 %3136  ;;  %v22891_v40 = vld [vmem:[#allocation56_spill] sm:$0xff] }
 0x26b   : > { %v15694_v60 = vpop.eup %15693  ;;  %v3165_v45 = vsel %vm2856_vm5, %v17686_v43, 0.0  ;;  %14961 = vmatmul.mubr.msk.bf16.vlgmr.msra.gmra.mrb[92].mxu0 %vm2856_vm5, %v3223_v5  ;;  %v22890_v5 = vld [vmem:[#allocation50_spill] sm:$0xff] }
 0x26c   : > { %15703 = vpow2.f32 %v3123_v51  ;;  %3166 = vadd.xlane.f32.xlu1 %v3165_v45  ;;  %v3032_v18 = vmul.f32 %v15694_v60, %v17521_v3  ;;  %4052 = vmatpush1.bf16.msra.mxu0 %v4046_v19  ;;  %v4346_v37 = vsel %vm3228_vm4, %v22890_v5, 0 }
 0x26d   : > { %15705 = vrcp.f32 %v3137_v4  ;;  %4083 = vmatprep.mubr.bf16.mxu0 %v15846_v6  ;;  %14968 = vmatprep.subr.msk.bf16.mxu0 %vm3228_vm4, %v22880_v58 }
 0x26e   : > { %v17697_v52 = vpop.eup %15695  ;;  %v3224_v9 = vpack.c.bf16 %v3032_v18, %v3032_v18  ;;  %v3140_v31 = vpop.xlane.xlu0 %3139  ;;  %v22892_v18 = vld [vmem:[#allocation51_spill] sm:$0xff] }
 0x26f   : > { %v15698_v27 = vpop.eup %15697  ;;  %v3080_v53 = vpop.xlane.xlu1 %3079  ;;  %15707 = vrcp.f32 %v3140_v31  ;;  %v3162_v3 = vsel %vm2856_vm5, %v17697_v52, 0.0  ;;  %v22893_v31 = vld [vmem:[#allocation57_spill] sm:$0xff] }
 0x270   : > { %v3096_v16 = vsub.f32 %v17408_v17, %v3080_v53  ;;  %14963 = vmatmul.mubr.msk.bf16.vlgmr.msra.gmra.mrb[92].mxu1 %vm2856_vm5, %v3224_v9  ;;  %3163 = vadd.xlane.f32.xlu0 %v3162_v3  ;;  %v3178_v33 = vmul.f32 %v15698_v27, %v17528_v57  ;;  %v22894_v27 = vld [vmem:[#allocation66_spill] sm:$0xff] }
 0x271   : > { %4102 = vmatpush1.bf16.msra.mxu1 %v4096_v46  ;;  %4133 = vmatprep.mubr.bf16.mxu1 %v15846_v6  ;;  %v22895_v3 = vld [vmem:[#allocation74_spill] sm:$0xff] }
 0x272   : > { %v17709_v7 = vpop.eup %15699  ;;  %v3127_v30 = vmul.f32 1.442695, %v3096_v16  ;;  %v4026_v54 = vpack.c.bf16 %v3178_v33, %v3178_v33  ;;  %14970 = vmatprep.subr.msk.bf16.mxu1 %vm3228_vm4, %v22882_v12 }
 0x273   : > { %v15702_v0 = vpop.eup %15701  ;;  %v3171_v17 = vsel %vm2856_vm5, %v17709_v7, 0.0 }
 0x274   : > { %15709 = vpow2.f32 %v3127_v30  ;;  %14965 = vmatmul.mubr.msk.bf16.vlgmr.msra.gmra.mrb[96].mxu0 %vm2856_vm5, %v4026_v54  ;;  %3172 = vadd.xlane.f32.xlu1 %v3171_v17  ;;  %v3180_v57 = vmul.f32 %v15702_v0, %v17534_v38  ;;  %v22896_v54 = vld [vmem:[#allocation67_spill] sm:$0xff] }
 0x275   : > { %4152 = vmatpush1.bf16.msra.mxu0 %v4146_v20  ;;  %4183 = vmatprep.mubr.bf16.mxu0 %v15846_v6  ;;  %v22897_v20 = vld [vmem:[#allocation75_spill] sm:$0xff] }
 0x276   : > { %v17720_v35 = vpop.eup %15703  ;;  %v4027_v11 = vpack.c.bf16 %v3180_v57, %v3180_v57  ;;  %14972 = vmatprep.subr.msk.bf16.mxu0 %vm3228_vm4, %v22884_v10  ;;  %v22898_v57 = vld [vmem:[#allocation82_spill] sm:$0xff] }
 0x277   : > { %v15706_v2 = vpop.eup %15705  ;;  %v3168_v36 = vsel %vm2856_vm5, %v17720_v35, 0.0 }
 0x278   : > { %14967 = vmatmul.mubr.msk.bf16.vlgmr.msra.gmra.mrb[96].mxu1 %vm2856_vm5, %v4027_v11  ;;  %3169 = vadd.xlane.f32.xlu0 %v3168_v36  ;;  %v3182_v38 = vmul.f32 %v15706_v2, %v17540_v22  ;;  %v4546_v11 = vsel %vm3228_vm4, %v22898_v57, 0 }
 0x279   : > { %v15708_v59 = vpop.eup %15707  ;;  %4202 = vmatpush1.bf16.msra.mxu1 %v4196_v23  ;;  %4233 = vmatprep.mubr.bf16.mxu1 %v15846_v6  ;;  %v22899_v23 = vld [vmem:[#allocation90_spill] sm:$0xff] }
 0x27a   : > { %v4028_v26 = vpack.c.bf16 %v3182_v38, %v3182_v38  ;;  %v3184_v50 = vmul.f32 %v15708_v59, %v17544_v56  ;;  %14974 = vmatprep.subr.msk.bf16.mxu1 %vm3228_vm4, %v22886_v28  ;;  %v22900_v38 = vld [vmem:[#allocation83_spill] sm:$0xff]  ;;  %v22901_v28 = vld [vmem:[#allocation98_spill] sm:$0xff] }
 0x27b   : > { %v4596_v59 = vsel %vm3228_vm4, %v22900_v38, 0  ;;  %v15355_v38 = vld [vmem:[%s22459_s1 + $0x20] ss:$8 sps:$4 sm:$0xff]  }
 0x27c   : > { %14969 = vmatmul.mubr.msk.bf16.vlgmr.msra.gmra.mrb[100].mxu0 %vm2856_vm5, %v4028_v26  ;;  %v4029_v44 = vpack.c.bf16 %v3184_v50, %v3184_v50 }
 0x27d   : > { %4252 = vmatpush1.bf16.msra.mxu0 %v4246_v1  ;;  %4283 = vmatprep.mubr.bf16.mxu0 %v15846_v6 }
 0x27e   : > { %v17738_v22 = vpop.eup %15709  ;;  %14976 = vmatprep.subr.msk.bf16.mxu0 %vm3228_vm4, %v22888_v24 }
 0x27f   : > { %v3174_v56 = vsel %vm2856_vm5, %v17738_v22, 0.0 }
 0x280   : > { %14971 = vmatmul.mubr.msk.bf16.vlgmr.msra.gmra.mrb[100].mxu1 %vm2856_vm5, %v4029_v44  ;;  %3175 = vadd.xlane.f32.xlu1 %v3174_v56  ;;  %v4646_v44 = vsel %vm3228_vm4, %v22901_v28, 0  ;;  %v15358_v28 = vld [vmem:[%s22459_s1 + $0x30] ss:$8 sps:$4 sm:$0xff]  }
 0x281   : > { %4302 = vmatpush1.bf16.msra.mxu1 %v4296_v49  ;;  %4333 = vmatprep.mubr.bf16.mxu1 %v15846_v6 }
 0x282   : > { %14978 = vmatprep.subr.msk.bf16.mxu1 %vm3228_vm4, %v22889_v8  ;;  %v22903_v8 = vld [vmem:[#allocation106_spill] sm:$0xff] }
 0x2c8   : > { %v3143_v15 = vpop.xlane.xlu0 %3142 }
 0x2c9   : > { %15711 = vrcp.f32 %v3143_v15 }
 0x2d0   : > { %v3146_v34 = vpop.xlane.xlu1 %3145 }
 0x2d1   : > { %15713 = vrcp.f32 %v3146_v34 }
 0x2d3   : > { %v15712_v29 = vpop.eup %15711 }
 0x2d4   : > { %v3186_v47 = vmul.f32 %v15712_v29, %v17569_v62  ;;  %v4396_v62 = vsel %vm3228_vm4, %v22892_v18, 0 }
 0x2d6   : > { %v4030_v51 = vpack.c.bf16 %v3186_v47, %v3186_v47 }
 0x2d8   : > { %14973 = vmatmul.mubr.msk.bf16.vlgmr.msra.gmra.mrb[104].mxu0 %vm2856_vm5, %v4030_v51  ;;  %v3149_v19 = vpop.xlane.xlu0 %3148 }
 0x2d9   : > { %15715 = vrcp.f32 %v3149_v19  ;;  %4352 = vmatpush1.bf16.msra.mxu0 %v4346_v37  ;;  %4383 = vmatprep.mubr.bf16.mxu0 %v15846_v6 }
 0x2da   : > { %14980 = vmatprep.subr.msk.bf16.mxu0 %vm3228_vm4, %v22891_v40  ;;  %v22904_v40 = vld [vmem:[#allocation112_spill] sm:$0xff] }
 0x2db   : > { %v15714_v60 = vpop.eup %15713 }
 0x2dc   : > { %v3188_v4 = vmul.f32 %v15714_v60, %v17586_v32  ;;  %v4446_v32 = vsel %vm3228_vm4, %v22894_v27, 0  ;;  %v4746_v60 = vsel %vm3228_vm4, %v22904_v40, 0 }
 0x2de   : > { %v4031_v45 = vpack.c.bf16 %v3188_v4, %v3188_v4  ;;  %v22905_v4 = vld [vmem:[#allocation99_spill] sm:$0xff] }
 0x2e0   : > { %14975 = vmatmul.mubr.msk.bf16.vlgmr.msra.gmra.mrb[104].mxu1 %vm2856_vm5, %v4031_v45 }
 0x2e1   : > { %v3152_v9 = vpop.xlane.xlu1 %3151  ;;  %4402 = vmatpush1.bf16.msra.mxu1 %v4396_v62  ;;  %4433 = vmatprep.mubr.bf16.mxu1 %v15846_v6  ;;  %v15351_v62 = vld [vmem:[%s22459_s1 + $0x4] ss:$8 sps:$4 sm:$0xff]  }
 0x2e2   : > { %15717 = vrcp.f32 %v3152_v9  ;;  %14982 = vmatprep.subr.msk.bf16.mxu1 %vm3228_vm4, %v22893_v31 }
 0x2e3   : > { %v15716_v21 = vpop.eup %15715 }
 0x2e4   : > { %v3190_v46 = vmul.f32 %v15716_v21, %v17605_v48  ;;  %v4496_v48 = vsel %vm3228_vm4, %v22896_v54, 0 }
 0x2e6   : > { %v4032_v58 = vpack.c.bf16 %v3190_v46, %v3190_v46 }
 0x2e8   : > { %14977 = vmatmul.mubr.msk.bf16.vlgmr.msra.gmra.mrb[108].mxu0 %vm2856_vm5, %v4032_v58 }
 0x2e9   : > { %v3155_v53 = vpop.xlane.xlu0 %3154  ;;  %4452 = vmatpush1.bf16.msra.mxu0 %v4446_v32  ;;  %4483 = vmatprep.mubr.bf16.mxu0 %v15846_v6  ;;  %v22906_v32 = vld [vmem:[#allocation107_spill] sm:$0xff] }
 0x2ea   : > { %15719 = vrcp.f32 %v3155_v53  ;;  %14984 = vmatprep.subr.msk.bf16.mxu0 %vm3228_vm4, %v22895_v3 }
 0x2ec   : > { %v15718_v16 = vpop.eup %15717 }
 0x2ed   : > { %v3192_v33 = vmul.f32 %v15718_v16, %v17624_v61  ;;  %v15349_v16 = vld [vmem:[%s22459_s1] ss:$8 sps:$4 sm:$0xff]  }
 0x2ef   : > { %v4033_v30 = vpack.c.bf16 %v3192_v33, %v3192_v33 }
 0x2f1   : > { %v3158_v63 = vpop.xlane.xlu1 %3157  ;;  %14979 = vmatmul.mubr.msk.bf16.vlgmr.msra.gmra.mrb[108].mxu1 %vm2856_vm5, %v4033_v30 }
 0x2f2   : > { %15721 = vrcp.f32 %v3158_v63  ;;  %4502 = vmatpush1.bf16.msra.mxu1 %v4496_v48  ;;  %4533 = vmatprep.mubr.bf16.mxu1 %v15846_v6  ;;  %v22907_v48 = vld [vmem:[#allocation113_spill] sm:$0xff] }
 0x2f3   : > { %14986 = vmatprep.subr.msk.bf16.mxu1 %vm3228_vm4, %v22897_v20  ;;  %v4796_v63 = vsel %vm3228_vm4, %v22907_v48, 0 }
 0x2f4   : > { %v15720_v12 = vpop.eup %15719  ;;  %v3161_v0 = vpop.xlane.xlu0 %3160 }
 0x2f5   : > { %v3194_v17 = vmul.f32 %v15720_v12, %v17644_v41  ;;  %15723 = vrcp.f32 %v3161_v0  ;;  %v17841_v12 = vld [vmem:[%s15903_s30 + $0x8] sm:$0xff] }
 0x2f7   : > { %v4034_v61 = vpack.c.bf16 %v3194_v17, %v3194_v17 }
 0x2f9   : > { %v3167_v13 = vpop.xlane.xlu1 %3166  ;;  %14981 = vmatmul.mubr.msk.bf16.vlgmr.msra.gmra.mrb[112].mxu0 %vm2856_vm5, %v4034_v61 }
 0x2fa   : > { %15725 = vrcp.f32 %v3167_v13  ;;  %4552 = vmatpush1.bf16.msra.mxu0 %v4546_v11  ;;  %4583 = vmatprep.mubr.bf16.mxu0 %v15846_v6  ;;  %v15352_v11 = vld [vmem:[%s22459_s1 + $0x10] ss:$8 sps:$4 sm:$0xff]  }
 0x2fb   : > { %14988 = vmatprep.subr.msk.bf16.mxu0 %vm3228_vm4, %v22899_v23  ;;  %v15357_v23 = vld [vmem:[%s22459_s1 + $0x24] ss:$8 sps:$4 sm:$0xff]  }
 0x2fc   : > { %v15722_v10 = vpop.eup %15721 }
 0x2fd   : > { %v3164_v2 = vpop.xlane.xlu0 %3163  ;;  %v3196_v36 = vmul.f32 %v15722_v10, %v17664_v14  ;;  %v22902_v14 = vld [vmem:[#allocation91_spill] sm:$0xff] }
 0x2fe   : > { %15727 = vrcp.f32 %v3164_v2 }
 0x2ff   : > { %v4035_v41 = vpack.c.bf16 %v3196_v36, %v3196_v36  ;;  %v15724_v26 = vpop.eup %15723 }
 0x300   : > { %v3198_v25 = vmul.f32 %v15724_v26, %v17676_v42  ;;  %v15360_v26 = vld [vmem:[%s22459_s1 + $0x34] ss:$8 sps:$4 sm:$0xff]  }
 0x301   : > { %v3173_v50 = vpop.xlane.xlu1 %3172  ;;  %14983 = vmatmul.mubr.msk.bf16.vlgmr.msra.gmra.mrb[112].mxu1 %vm2856_vm5, %v4035_v41 }
 0x302   : > { %15729 = vrcp.f32 %v3173_v50  ;;  %4602 = vmatpush1.bf16.msra.mxu1 %v4596_v59  ;;  %4633 = vmatprep.mubr.bf16.mxu1 %v15846_v6  ;;  %v4036_v1 = vpack.c.bf16 %v3198_v25, %v3198_v25 }
 0x303   : > { %14990 = vmatprep.subr.msk.bf16.mxu1 %vm3228_vm4, %v22902_v14  ;;  %v15363_v14 = vld [vmem:[%s22459_s1 + $0x44] ss:$8 sps:$4 sm:$0xff]  }
 0x304   : > { %v15726_v39 = vpop.eup %15725  ;;  %14985 = vmatmul.mubr.msk.bf16.vlgmr.msra.gmra.mrb[116].mxu0 %vm2856_vm5, %v4036_v1 }
 0x305   : > { %v3170_v49 = vpop.xlane.xlu0 %3169  ;;  %v17796_v24 = vpop.f32.mrb[64].mxu0  ;;  %4652 = vmatpush1.bf16.msra.mxu0 %v4646_v44  ;;  %4683 = vmatprep.mubr.bf16.mxu0 %v15846_v6  ;;  %v3202_v56 = vmul.f32 %v15726_v39, %v17686_v43  ;;  %v4696_v43 = vsel %vm3228_vm4, %v22905_v4, 0 }
 0x306   : > { %15731 = vrcp.f32 %v3170_v49  ;;  %v17799_v42 = vpop.f32.mrb[65].mxu0  ;;  %14992 = vmatprep.subr.msk.bf16.mxu0 %vm3228_vm4, %v22903_v8 }
 0x307   : > { %v3273_v34 = vpop.f32.mrb[66].mxu0  ;;  %v4038_v19 = vpack.c.bf16 %v3202_v56, %v3202_v56  ;;  %v15361_v56 = vld [vmem:[%s22459_s1 + $0x40] ss:$8 sps:$4 sm:$0xff]  }
 0x308   : > { %v15728_v15 = vpop.eup %15727  ;;  %v3274_v29 = vpop.f32.mrb[67].mxu0 }
 0x309   : > { %v3200_v47 = vmul.f32 %v15728_v15, %v17697_v52  ;;  %v17805_v51 = vpop.f32.mrb[64].mxu1  ;;  %v15366_v15 = vld [vmem:[%s22459_s1 + $0x54] ss:$8 sps:$4 sm:$0xff]  }
 0x30a   : > { %v17807_v5 = vpop.f32.mrb[65].mxu1 }
 0x30b   : > { %v4037_v37 = vpack.c.bf16 %v3200_v47, %v3200_v47  ;;  %v3323_v18 = vpop.f32.mrb[66].mxu1 }
 0x30c   : > { %v15730_v45 = vpop.eup %15729  ;;  %v3324_v9 = vpop.f32.mrb[67].mxu1  ;;  %14989 = vmatmul.mubr.msk.bf16.vlgmr.msra.gmra.mrb[120].mxu0 %vm2856_vm5, %v4038_v19  ;;  %v15364_v19 = vld [vmem:[%s22459_s1 + $0x50] ss:$8 sps:$4 sm:$0xff]  }
 0x30d   : > { %v3176_v52 = vpop.xlane.xlu1 %3175  ;;  %14987 = vmatmul.mubr.msk.bf16.vlgmr.msra.gmra.mrb[116].mxu1 %vm2856_vm5, %v4037_v37  ;;  %v17818_v31 = vpop.f32.mrb[68].mxu0  ;;  %4752 = vmatpush1.bf16.msra.mxu0 %v4746_v60  ;;  %v3206_v46 = vmul.f32 %v15730_v45, %v17709_v7  ;;  %v15354_v7 = vld [vmem:[%s22459_s1 + $0x14] ss:$8 sps:$4 sm:$0xff]   ;;  %v15369_v60 = vld [vmem:[%s22459_s1 + $0x64] ss:$8 sps:$4 sm:$0xff]  }
 0x30e   : > { %15733 = vrcp.f32 %v3176_v52  ;;  %4702 = vmatpush1.bf16.msra.mxu1 %v4696_v43  ;;  %v17820_v21 = vpop.f32.mrb[69].mxu0  ;;  %4733 = vmatprep.mubr.bf16.mxu1 %v15846_v6  ;;  %v15367_v45 = vld [vmem:[%s22459_s1 + $0x60] ss:$8 sps:$4 sm:$0xff]  }
 0x30f   : > { %4783 = vmatprep.mubr.bf16.mxu0 %v15846_v6  ;;  %v3373_v27 = vpop.f32.mrb[70].mxu0  ;;  %5322 = vmatprep.subr.bf16.mxu0 %v15351_v62  ;;  %v4040_v54 = vpack.c.bf16 %v3206_v46, %v3206_v46 }
 0x310   : > { %v15732_v58 = vpop.eup %15731  ;;  %14994 = vmatprep.subr.msk.bf16.mxu1 %vm3228_vm4, %v22906_v32  ;;  %v3374_v53 = vpop.f32.mrb[71].mxu0  ;;  %v15370_v27 = vld [vmem:[%s22459_s1 + $0x70] ss:$8 sps:$4 sm:$0xff]  }
 0x311   : > { %v3204_v3 = vmul.f32 %v15732_v58, %v17720_v35  ;;  %v17844_v35 = vld [vmem:[%s15903_s30] sm:$0xff] }
 0x312   : > { %v17831_v33 = vpop.f32.mrb[68].mxu1  ;;  %v14997_v0 = vcombine.high %v17844_v35, %v17841_v12  ;;  %v15375_v53 = vld [vmem:[%s22459_s1 + $0x84] ss:$8 sps:$4 sm:$0xff]  }
 0x313   : > { %v4039_v30 = vpack.c.bf16 %v3204_v3, %v3204_v3  ;;  %v17838_v20 = vpop.f32.mrb[69].mxu1 }
 0x314   : > { %v3423_v17 = vpop.f32.mrb[70].mxu1  ;;  %14993 = vmatmul.mubr.msk.bf16.vlgmr.msra.gmra.mrb[124].mxu0 %vm2856_vm5, %v4040_v54 }
 0x315   : > { %14991 = vmatmul.mubr.msk.bf16.vlgmr.msra.gmra.mrb[120].mxu1 %vm2856_vm5, %v4039_v30  ;;  %v3424_v61 = vpop.f32.mrb[71].mxu1  ;;  %5323 = vmatpush1.bf16.msra.mxu0 %v15349_v16  ;;  %v17850_v57 = vpop.f32.mrb[72].mxu0  ;;  %v15373_v30 = vld [vmem:[%s22459_s1 + $0x80] ss:$8 sps:$4 sm:$0xff]  }
 0x316   : > { %4802 = vmatpush1.bf16.msra.mxu1 %v4796_v63  ;;  %v17855_v13 = vpop.f32.mrb[73].mxu0  ;;  %5324 = vmatprep.subr.bf16.mxu0 %v15354_v7  ;;  %v15376_v61 = vld [vmem:[%s22459_s1 + $0x90] ss:$8 sps:$4 sm:$0xff]  }
 0x317   : > { %4833 = vmatprep.mubr.bf16.mxu1 %v15846_v6  ;;  %v3473_v2 = vpop.f32.mrb[74].mxu0  ;;  %5354 = vmatprep.mubr.bf16.mxu0 %v14997_v0 }
 0x318   : > { %v15734_v10 = vpop.eup %15733  ;;  %15175 = vmatprep.subr.bf16.mxu1 %v15351_v62  ;;  %v3474_v36 = vpop.f32.mrb[75].mxu0  ;;  %v15372_v62 = vld [vmem:[%s22459_s1 + $0x74] ss:$8 sps:$4 sm:$0xff]  }
 0x319   : > { %v3208_v41 = vmul.f32 %v15734_v10, %v17738_v22  ;;  %5325 = vmatpush1.bf16.msra.mxu0 %v15352_v11  ;;  %v15379_v36 = vld [vmem:[%s22459_s1 + $0xa0] ss:$8 sps:$4 sm:$0xff]  }
 0x31a   : > { %v17865_v59 = vpop.f32.mrb[72].mxu1  ;;  %5326 = vmatprep.subr.bf16.mxu0 %v15357_v23 }
 0x31b   : > { %v4041_v6 = vpack.c.bf16 %v3208_v41, %v3208_v41  ;;  %v17870_v50 = vpop.f32.mrb[73].mxu1 }
 0x31c   : > { %v3523_v25 = vpop.f32.mrb[74].mxu1 }
 0x31d   : > { %14995 = vmatmul.mubr.msk.bf16.vlgmr.msra.gmra.mrb[124].mxu1 %vm2856_vm5, %v4041_v6  ;;  %v3524_v1 = vpop.f32.mrb[75].mxu1  ;;  %5327 = vmatpush1.bf16.msra.mxu0 %v15355_v38 }
 0x31e   : > { %v17873_v22 = vpop.f32.mrb[76].mxu0  ;;  %15191 = vmatpush1.bf16.msra.mxu1 %v15349_v16  ;;  %5328 = vmatprep.subr.bf16.mxu0 %v15360_v26  ;;  %v15382_v1 = vld [vmem:[%s22459_s1 + $0xb0] ss:$8 sps:$4 sm:$0xff]  }
 0x31f   : > { %v17878_v44 = vpop.f32.mrb[77].mxu0  ;;  %15176 = vmatprep.subr.bf16.mxu1 %v15354_v7  ;;  %v15378_v7 = vld [vmem:[%s22459_s1 + $0x94] ss:$8 sps:$4 sm:$0xff]  }
 0x320   : > { %v3573_v39 = vpop.f32.mrb[78].mxu0 }
 0x321   : > { %v3574_v49 = vpop.f32.mrb[79].mxu0  ;;  %5329 = vmatpush1.bf16.msra.mxu0 %v15358_v28 }
 0x322   : > { %15192 = vmatpush1.bf16.msra.mxu1 %v15352_v11  ;;  %v17886_v8 = vpop.f32.mrb[76].mxu1  ;;  %5330 = vmatprep.subr.bf16.mxu0 %v15363_v14 }
 0x323   : > { %15177 = vmatprep.subr.bf16.mxu1 %v15357_v23  ;;  %v17891_v34 = vpop.f32.mrb[77].mxu1  ;;  %v15381_v23 = vld [vmem:[%s22459_s1 + $0xa4] ss:$8 sps:$4 sm:$0xff]  }
 0x324   : > { %v3623_v29 = vpop.f32.mrb[78].mxu1 }
 0x325   : > { %v3624_v47 = vpop.f32.mrb[79].mxu1  ;;  %5331 = vmatpush1.bf16.msra.mxu0 %v15361_v56 }
 0x326   : > { %v17893_v37 = vpop.f32.mrb[80].mxu0  ;;  %15193 = vmatpush1.bf16.msra.mxu1 %v15355_v38  ;;  %5332 = vmatprep.subr.bf16.mxu0 %v15366_v15  ;;  %v15384_v38 = vld [vmem:[%s22459_s1 + $0xb4] ss:$8 sps:$4 sm:$0xff]  }
 0x327   : > { %v17898_v40 = vpop.f32.mrb[81].mxu0  ;;  %15178 = vmatprep.subr.bf16.mxu1 %v15360_v26  ;;  %v15390_v47 = vld [vmem:[%s22459_s1 + $0xd4] ss:$8 sps:$4 sm:$0xff]  }
 0x328   : > { %v3673_v4 = vpop.f32.mrb[82].mxu0 }
 0x329   : > { %v3674_v43 = vpop.f32.mrb[83].mxu0  ;;  %5333 = vmatpush1.bf16.msra.mxu0 %v15364_v19 }
 0x32a   : > { %15194 = vmatpush1.bf16.msra.mxu1 %v15358_v28  ;;  %5334 = vmatprep.subr.bf16.mxu0 %v15369_v60  ;;  %v15388_v43 = vld [vmem:[%s22459_s1 + $0xd0] ss:$8 sps:$4 sm:$0xff]  }
 0x32b   : > { %v17906_v18 = vpop.f32.mrb[80].mxu1  ;;  %15179 = vmatprep.subr.bf16.mxu1 %v15363_v14  ;;  %v15387_v14 = vld [vmem:[%s22459_s1 + $0xc4] ss:$8 sps:$4 sm:$0xff]  }
 0x32c   : > { %v17911_v9 = vpop.f32.mrb[81].mxu1 }
 0x32d   : > { %v3723_v52 = vpop.f32.mrb[82].mxu1  ;;  %5335 = vmatpush1.bf16.msra.mxu0 %v15367_v45 }
 0x32e   : > { %v3724_v46 = vpop.f32.mrb[83].mxu1  ;;  %v17913_v58 = vpop.f32.mrb[84].mxu0  ;;  %15195 = vmatpush1.bf16.msra.mxu1 %v15361_v56  ;;  %5336 = vmatprep.subr.bf16.mxu0 %v15372_v62 }
 0x32f   : > { %v17918_v32 = vpop.f32.mrb[85].mxu0  ;;  %15180 = vmatprep.subr.bf16.mxu1 %v15366_v15  ;;  %v15385_v15 = vld [vmem:[%s22459_s1 + $0xc0] ss:$8 sps:$4 sm:$0xff]  }
 0x330   : > { %v3773_v3 = vpop.f32.mrb[86].mxu0 }
 0x331   : > { %v3774_v16 = vpop.f32.mrb[87].mxu0  ;;  %5337 = vmatpush1.bf16.msra.mxu0 %v15370_v27 }
 0x332   : > { %15196 = vmatpush1.bf16.msra.mxu1 %v15364_v19  ;;  %5338 = vmatprep.subr.bf16.mxu0 %v15375_v53  ;;  %v15391_v16 = vld [vmem:[%s22459_s1 + $0xe0] ss:$8 sps:$4 sm:$0xff]  }
 0x333   : > { %v17926_v54 = vpop.f32.mrb[84].mxu1  ;;  %15181 = vmatprep.subr.bf16.mxu1 %v15369_v60 }
 0x334   : > { %v17931_v48 = vpop.f32.mrb[85].mxu1 }
 0x335   : > { %v3823_v63 = vpop.f32.mrb[86].mxu1  ;;  %5339 = vmatpush1.bf16.msra.mxu0 %v15373_v30 }
 0x336   : > { %v3824_v0 = vpop.f32.mrb[87].mxu1  ;;  %v17933_v17 = vpop.f32.mrb[88].mxu0  ;;  %15197 = vmatpush1.bf16.msra.mxu1 %v15367_v45  ;;  %5340 = vmatprep.subr.bf16.mxu0 %v15378_v7 }
 0x337   : > { %v17938_v11 = vpop.f32.mrb[89].mxu0  ;;  %15182 = vmatprep.subr.bf16.mxu1 %v15372_v62  ;;  %v15393_v62 = vld [vmem:[%s22459_s1 + $0xe4] ss:$8 sps:$4 sm:$0xff]  }
 0x338   : > { %v3873_v10 = vpop.f32.mrb[90].mxu0 }
 0x339   : > { %v3874_v2 = vpop.f32.mrb[91].mxu0  ;;  %5341 = vmatpush1.bf16.msra.mxu0 %v15376_v61 }
 0x33a   : > { %15198 = vmatpush1.bf16.msra.mxu1 %v15370_v27  ;;  %5342 = vmatprep.subr.bf16.mxu0 %v15381_v23  ;;  %v15394_v2 = vld [vmem:[%s22459_s1 + $0xf0] ss:$8 sps:$4 sm:$0xff]  }
 0x33b   : > { %v17946_v41 = vpop.f32.mrb[88].mxu1  ;;  %15183 = vmatprep.subr.bf16.mxu1 %v15375_v53 }
 0x33c   : > { %v17951_v6 = vpop.f32.mrb[89].mxu1 }
 0x33d   : > { %v3923_v26 = vpop.f32.mrb[90].mxu1  ;;  %5343 = vmatpush1.bf16.msra.mxu0 %v15379_v36 }
 0x33e   : > { %v3924_v25 = vpop.f32.mrb[91].mxu1  ;;  %15199 = vmatpush1.bf16.msra.mxu1 %v15373_v30  ;;  %v17956_v28 = vpop.f32.mrb[92].mxu0  ;;  %5344 = vmatprep.subr.bf16.mxu0 %v15384_v38 }
 0x33f   : > { %15184 = vmatprep.subr.bf16.mxu1 %v15378_v7  ;;  %v17961_v39 = vpop.f32.mrb[93].mxu0  ;;  %v15396_v7 = vld [vmem:[%s22459_s1 + $0xf4] ss:$8 sps:$4 sm:$0xff]  }
 0x340   : > { %v3973_v49 = vpop.f32.mrb[94].mxu0 }
 0x341   : > { %v3974_v56 = vpop.f32.mrb[95].mxu0  ;;  %5345 = vmatpush1.bf16.msra.mxu0 %v15382_v1 }
 0x342   : > { %15200 = vmatpush1.bf16.msra.mxu1 %v15376_v61  ;;  %5346 = vmatprep.subr.bf16.mxu0 %v15387_v14 }
 0x343   : > { %v17966_v29 = vpop.f32.mrb[92].mxu1  ;;  %15185 = vmatprep.subr.bf16.mxu1 %v15381_v23 }
 0x344   : > { %v17971_v19 = vpop.f32.mrb[93].mxu1 }
 0x345   : > { %v4023_v60 = vpop.f32.mrb[94].mxu1  ;;  %5347 = vmatpush1.bf16.msra.mxu0 %v15385_v15 }
 0x346   : > { %v4024_v4 = vpop.f32.mrb[95].mxu1  ;;  %15201 = vmatpush1.bf16.msra.mxu1 %v15379_v36  ;;  %5348 = vmatprep.subr.bf16.mxu0 %v15390_v47  ;;  %v14996_v60 = vcombine.low %v17844_v35, %v17841_v12  ;;  %v15800_v12 = vld [vmem:[%s15903_s30 + $0xe0] sm:$0xff] }
 0x347   : > { %v17976_v45 = vpop.f32.mrb[96].mxu0  ;;  %15186 = vmatprep.subr.bf16.mxu1 %v15384_v38  ;;  %v15401_v38 = vld [vmem:[%s22459_s1 + $0x104] ss:$8 sps:$4 sm:$0xff]  }
 0x348   : > { %v4842_v52 = vpack.c.bf16 %v17976_v45, %v17796_v24  ;;  %v17983_v46 = vpop.f32.mrb[97].mxu0 }
 0x349   : > { %v4843_v27 = vpack.c.bf16 %v17983_v46, %v17799_v42  ;;  %v4089_v53 = vpop.f32.mrb[98].mxu0  ;;  %5349 = vmatpush1.bf16.msra.mxu0 %v15388_v43 }
 0x34a   : > { %v4090_v3 = vpop.f32.mrb[99].mxu0  ;;  %15202 = vmatpush1.bf16.msra.mxu1 %v15382_v1  ;;  %5350 = vmatprep.subr.bf16.mxu0 %v15393_v62  ;;  %v15773_v1 = vld [vmem:[%s15903_s30 + $0x88] sm:$0xff]  ;;  %v15775_v53 = vld [vmem:[%s15903_s30 + $0x18] sm:$0xff] }
 0x34b   : > { %v17990_v30 = vpop.f32.mrb[96].mxu1  ;;  %15187 = vmatprep.subr.bf16.mxu1 %v15387_v14  ;;  %v15774_v14 = vld [vmem:[%s15903_s30 + $0x80] sm:$0xff]  ;;  %v15776_v3 = vld [vmem:[%s15903_s30 + $0x10] sm:$0xff] }
 0x34c   : > { %v4844_v63 = vpack.c.bf16 %v17990_v30, %v17805_v51  ;;  %v17997_v0 = vpop.f32.mrb[97].mxu1  ;;  %v15013_v49 = vcombine.high %v15774_v14, %v15773_v1 }
 0x34d   : > { %v4845_v61 = vpack.c.bf16 %v17997_v0, %v17807_v5  ;;  %v4139_v23 = vpop.f32.mrb[98].mxu1  ;;  %5351 = vmatpush1.bf16.msra.mxu0 %v15391_v16 }
 0x34e   : > { %v4140_v10 = vpop.f32.mrb[99].mxu1  ;;  %15203 = vmatpush1.bf16.msra.mxu1 %v15385_v15  ;;  %5352 = vmatprep.subr.bf16.mxu0 %v15396_v7  ;;  %v14999_v23 = vcombine.high %v15776_v3, %v15775_v53 }
 0x34f   : > { %v18004_v36 = vpop.f32.mrb[100].mxu0  ;;  %15188 = vmatprep.subr.bf16.mxu1 %v15390_v47  ;;  %v15399_v47 = vld [vmem:[%s22459_s1 + $0x100] ss:$8 sps:$4 sm:$0xff]   ;;  %5434 = vmatprep.mubr.bf16.mxu1 %v15013_v49  ;;  %v14998_v49 = vcombine.low %v15776_v3, %v15775_v53  ;;  %v15410_v3 = vld [vmem:[%s22459_s1 + $0x130] ss:$8 sps:$4 sm:$0xff]  }
 0x350   : > { %v18011_v25 = vpop.f32.mrb[101].mxu0  ;;  %v22908_v42 = vpack.c.bf16 %v18004_v36, %v17818_v31 }
 0x351   : > { %v4847_v56 = vpack.c.bf16 %v18011_v25, %v17820_v21  ;;  %v4189_v15 = vpop.f32.mrb[102].mxu0  ;;  %5353 = vmatpush1.bf16.msra.mxu0 %v15394_v2 }
 0x352   : > { %v4190_v4 = vpop.f32.mrb[103].mxu0  ;;  %15204 = vmatpush1.bf16.msra.mxu1 %v15388_v43  ;;  %5515 = vmatprep.subr.bf16.mxu0 %v15401_v38  ;;  %v15404_v15 = vld [vmem:[%s22459_s1 + $0x114] ss:$8 sps:$4 sm:$0xff]   ;;  %v15402_v38 = vld [vmem:[%s22459_s1 + $0x110] ss:$8 sps:$4 sm:$0xff]  }
 0x353   : > { %v18024_v10 = vpop.f32.mrb[100].mxu1  ;;  %15189 = vmatprep.subr.bf16.mxu1 %v15393_v62  ;;  %v15409_v62 = vld [vmem:[%s22459_s1 + $0x124] ss:$8 sps:$4 sm:$0xff]  }
 0x354   : > { %v18031_v35 = vpop.f32.mrb[101].mxu1  ;;  %5355 = vmatmul.mubr.bf16.vlgmr.msra.gmra.mrb[128].mxu0 %v14996_v60  ;;  %v15777_v60 = vld [vmem:[%s15903_s30 + $0x28] sm:$0xff]  ;;  %v22909_v45 = vpack.c.bf16 %v18024_v10, %v17831_v33 }
 0x355   : > { %v4849_v4 = vpack.c.bf16 %v18031_v35, %v17838_v20  ;;  %v4239_v43 = vpop.f32.mrb[102].mxu1  ;;  %5516 = vmatpush1.bf16.msra.mxu0 %v15399_v47  ;;  %5364 = vmatprep.mubr.bf16.mxu0 %v14999_v23  ;;  %v15778_v47 = vld [vmem:[%s15903_s30 + $0x20] sm:$0xff]  ;;  %v15412_v23 = vld [vmem:[%s22459_s1 + $0x134] ss:$8 sps:$4 sm:$0xff]  }
 0x356   : > { %v4240_v26 = vpop.f32.mrb[103].mxu1  ;;  %5517 = vmatprep.subr.bf16.mxu0 %v15404_v15  ;;  %15205 = vmatpush1.bf16.msra.mxu1 %v15391_v16  ;;  %v15001_v43 = vcombine.high %v15778_v47, %v15777_v60  ;;  %v15012_v15 = vcombine.low %v15774_v14, %v15773_v1  ;;  %v15779_v16 = vld [vmem:[%s15903_s30 + $0x98] sm:$0xff]  ;;  %v15000_v1 = vcombine.low %v15778_v47, %v15777_v60  ;;  %v15415_v14 = vld [vmem:[%s22459_s1 + $0x140] ss:$8 sps:$4 sm:$0xff]   ;;  %v15425_v47 = vld [vmem:[%s22459_s1 + $0x164] ss:$8 sps:$4 sm:$0xff]  }
 0x357   : > { %15190 = vmatprep.subr.bf16.mxu1 %v15396_v7  ;;  %v15407_v26 = vld [vmem:[%s22459_s1 + $0x120] ss:$8 sps:$4 sm:$0xff]   ;;  %v15780_v7 = vld [vmem:[%s15903_s30 + $0x90] sm:$0xff] }
 0x358   : > { %v15015_v53 = vcombine.high %v15780_v7, %v15779_v16  ;;  %v15418_v60 = vld [vmem:[%s22459_s1 + $0x150] ss:$8 sps:$4 sm:$0xff]  }
 0x359   : > { %5518 = vmatpush1.bf16.msra.mxu0 %v15402_v38  ;;  %v15781_v38 = vld [vmem:[%s15903_s30 + $0x38] sm:$0xff] }
 0x35a   : > { %5519 = vmatprep.subr.bf16.mxu0 %v15409_v62  ;;  %15206 = vmatpush1.bf16.msra.mxu1 %v15394_v2  ;;  %v15417_v2 = vld [vmem:[%s22459_s1 + $0x144] ss:$8 sps:$4 sm:$0xff]   ;;  %v15782_v62 = vld [vmem:[%s15903_s30 + $0x30] sm:$0xff] }
 0x35c   : > { %5365 = vmatmul.mubr.bf16.gmra.mrb[132].mxu0 %v14998_v49  ;;  %v15003_v49 = vcombine.high %v15782_v62, %v15781_v38 }
 0x35d   : > { %5520 = vmatpush1.bf16.msra.mxu0 %v15407_v26  ;;  %5374 = vmatprep.mubr.bf16.mxu0 %v15001_v43  ;;  %v15420_v26 = vld [vmem:[%s22459_s1 + $0x154] ss:$8 sps:$4 sm:$0xff]   ;;  %v15014_v43 = vcombine.low %v15780_v7, %v15779_v16  ;;  %v15002_v16 = vcombine.low %v15782_v62, %v15781_v38  ;;  %v15423_v7 = vld [vmem:[%s22459_s1 + $0x160] ss:$8 sps:$4 sm:$0xff]   ;;  %v15426_v38 = vld [vmem:[%s22459_s1 + $0x170] ss:$8 sps:$4 sm:$0xff]  }
 0x35e   : > { %5521 = vmatprep.subr.bf16.mxu0 %v15412_v23  ;;  %5435 = vmatmul.mubr.bf16.vlgmr.msra.gmra.mrb[128].mxu1 %v15012_v15  ;;  %v15783_v23 = vld [vmem:[%s15903_s30 + $0xa8] sm:$0xff]  ;;  %v15784_v15 = vld [vmem:[%s15903_s30 + $0xa0] sm:$0xff] }
 0x35f   : > { %5444 = vmatprep.mubr.bf16.mxu1 %v15015_v53  ;;  %v15017_v53 = vcombine.high %v15784_v15, %v15783_v23  ;;  %v15433_v62 = vld [vmem:[%s22459_s1 + $0x184] ss:$8 sps:$4 sm:$0xff]  }
 0x361   : > { %5522 = vmatpush1.bf16.msra.mxu0 %v15410_v3  ;;  %v15785_v3 = vld [vmem:[%s15903_s30 + $0x48] sm:$0xff] }
 0x362   : > { %5523 = vmatprep.subr.bf16.mxu0 %v15417_v2  ;;  %v15786_v2 = vld [vmem:[%s15903_s30 + $0x40] sm:$0xff] }
 0x364   : > { %5375 = vmatmul.mubr.bf16.gmra.mrb[136].mxu0 %v15000_v1  ;;  %v15005_v1 = vcombine.high %v15786_v2, %v15785_v3 }
 0x365   : > { %5524 = vmatpush1.bf16.msra.mxu0 %v15415_v14  ;;  %5384 = vmatprep.mubr.bf16.mxu0 %v15003_v49  ;;  %v15428_v14 = vld [vmem:[%s22459_s1 + $0x174] ss:$8 sps:$4 sm:$0xff]   ;;  %v15016_v49 = vcombine.low %v15784_v15, %v15783_v23  ;;  %v15004_v23 = vcombine.low %v15786_v2, %v15785_v3  ;;  %v15431_v15 = vld [vmem:[%s22459_s1 + $0x180] ss:$8 sps:$4 sm:$0xff]   ;;  %v15434_v3 = vld [vmem:[%s22459_s1 + $0x190] ss:$8 sps:$4 sm:$0xff]  }
 0x366   : > { %5525 = vmatprep.subr.bf16.mxu0 %v15420_v26  ;;  %5445 = vmatmul.mubr.bf16.gmra.mrb[132].mxu1 %v15014_v43  ;;  %v15787_v26 = vld [vmem:[%s15903_s30 + $0xb8] sm:$0xff]  ;;  %v15788_v43 = vld [vmem:[%s15903_s30 + $0xb0] sm:$0xff]  ;;  %v15441_v2 = vld [vmem:[%s22459_s1 + $0x1a4] ss:$8 sps:$4 sm:$0xff]  }
 0x367   : > { %5454 = vmatprep.mubr.bf16.mxu1 %v15017_v53  ;;  %v15019_v53 = vcombine.high %v15788_v43, %v15787_v26 }
 0x369   : > { %5526 = vmatpush1.bf16.msra.mxu0 %v15418_v60  ;;  %v15789_v60 = vld [vmem:[%s15903_s30 + $0x58] sm:$0xff] }
 0x36a   : > { %5527 = vmatprep.subr.bf16.mxu0 %v15425_v47  ;;  %v15790_v47 = vld [vmem:[%s15903_s30 + $0x50] sm:$0xff] }
 0x36c   : > { %5385 = vmatmul.mubr.bf16.gmra.mrb[140].mxu0 %v15002_v16  ;;  %v15007_v16 = vcombine.high %v15790_v47, %v15789_v60 }
 0x36d   : > { %5528 = vmatpush1.bf16.msra.mxu0 %v15423_v7  ;;  %5394 = vmatprep.mubr.bf16.mxu0 %v15005_v1  ;;  %v15436_v7 = vld [vmem:[%s22459_s1 + $0x194] ss:$8 sps:$4 sm:$0xff]   ;;  %v15018_v1 = vcombine.low %v15788_v43, %v15787_v26  ;;  %v15006_v26 = vcombine.low %v15790_v47, %v15789_v60  ;;  %v15439_v43 = vld [vmem:[%s22459_s1 + $0x1a0] ss:$8 sps:$4 sm:$0xff]   ;;  %v15442_v60 = vld [vmem:[%s22459_s1 + $0x1b0] ss:$8 sps:$4 sm:$0xff]  }
 0x36e   : > { %5529 = vmatprep.subr.bf16.mxu0 %v15428_v14  ;;  %5455 = vmatmul.mubr.bf16.gmra.mrb[136].mxu1 %v15016_v49  ;;  %v15791_v14 = vld [vmem:[%s15903_s30 + $0xc8] sm:$0xff]  ;;  %v15792_v49 = vld [vmem:[%s15903_s30 + $0xc0] sm:$0xff] }
 0x36f   : > { %5464 = vmatprep.mubr.bf16.mxu1 %v15019_v53  ;;  %v15021_v53 = vcombine.high %v15792_v49, %v15791_v14  ;;  %v15449_v47 = vld [vmem:[%s22459_s1 + $0x1c4] ss:$8 sps:$4 sm:$0xff]  }
 0x371   : > { %5530 = vmatpush1.bf16.msra.mxu0 %v15426_v38  ;;  %v15793_v38 = vld [vmem:[%s15903_s30 + $0x68] sm:$0xff] }
 0x372   : > { %5531 = vmatprep.subr.bf16.mxu0 %v15433_v62  ;;  %v15794_v62 = vld [vmem:[%s15903_s30 + $0x60] sm:$0xff] }
 0x374   : > { %5395 = vmatmul.mubr.bf16.gmra.mrb[144].mxu0 %v15004_v23  ;;  %v15009_v23 = vcombine.high %v15794_v62, %v15793_v38 }
 0x375   : > { %5532 = vmatpush1.bf16.msra.mxu0 %v15431_v15  ;;  %5404 = vmatprep.mubr.bf16.mxu0 %v15007_v16  ;;  %v15444_v15 = vld [vmem:[%s22459_s1 + $0x1b4] ss:$8 sps:$4 sm:$0xff]   ;;  %v15020_v16 = vcombine.low %v15792_v49, %v15791_v14  ;;  %v15008_v14 = vcombine.low %v15794_v62, %v15793_v38  ;;  %v15447_v49 = vld [vmem:[%s22459_s1 + $0x1c0] ss:$8 sps:$4 sm:$0xff]   ;;  %v15450_v38 = vld [vmem:[%s22459_s1 + $0x1d0] ss:$8 sps:$4 sm:$0xff]  }
 0x376   : > { %5533 = vmatprep.subr.bf16.mxu0 %v15436_v7  ;;  %5465 = vmatmul.mubr.bf16.gmra.mrb[140].mxu1 %v15018_v1  ;;  %v15795_v7 = vld [vmem:[%s15903_s30 + $0xd8] sm:$0xff]  ;;  %v15796_v1 = vld [vmem:[%s15903_s30 + $0xd0] sm:$0xff]  ;;  %v15457_v62 = vld [vmem:[%s22459_s1 + $0x1e4] ss:$8 sps:$4 sm:$0xff]  }
 0x377   : > { %5474 = vmatprep.mubr.bf16.mxu1 %v15021_v53  ;;  %v15023_v53 = vcombine.high %v15796_v1, %v15795_v7 }
 0x379   : > { %5534 = vmatpush1.bf16.msra.mxu0 %v15434_v3  ;;  %v15797_v3 = vld [vmem:[%s15903_s30 + $0x78] sm:$0xff] }
 0x37a   : > { %5535 = vmatprep.subr.bf16.mxu0 %v15441_v2  ;;  %v15798_v2 = vld [vmem:[%s15903_s30 + $0x70] sm:$0xff] }
 0x37c   : > { %5405 = vmatmul.mubr.bf16.gmra.mrb[148].mxu0 %v15006_v26  ;;  %v15011_v26 = vcombine.high %v15798_v2, %v15797_v3 }
 0x37d   : > { %5536 = vmatpush1.bf16.msra.mxu0 %v15439_v43  ;;  %5414 = vmatprep.mubr.bf16.mxu0 %v15009_v23  ;;  %v15452_v43 = vld [vmem:[%s22459_s1 + $0x1d4] ss:$8 sps:$4 sm:$0xff]   ;;  %v15022_v23 = vcombine.low %v15796_v1, %v15795_v7  ;;  %v15010_v7 = vcombine.low %v15798_v2, %v15797_v3  ;;  %v15455_v1 = vld [vmem:[%s22459_s1 + $0x1e0] ss:$8 sps:$4 sm:$0xff]   ;;  %v15458_v3 = vld [vmem:[%s22459_s1 + $0x1f0] ss:$8 sps:$4 sm:$0xff]  }
 0x37e   : > { %5537 = vmatprep.subr.bf16.mxu0 %v15444_v15  ;;  %5475 = vmatmul.mubr.bf16.gmra.mrb[144].mxu1 %v15020_v16  ;;  %v15799_v15 = vld [vmem:[%s15903_s30 + $0xe8] sm:$0xff] }
 0x37f   : > { %5484 = vmatprep.mubr.bf16.mxu1 %v15023_v53  ;;  %v15025_v16 = vcombine.high %v15800_v12, %v15799_v15  ;;  %v15460_v53 = vld [vmem:[%s22459_s1 + $0x1f4] ss:$8 sps:$4 sm:$0xff]  }
 0x381   : > { %5538 = vmatpush1.bf16.msra.mxu0 %v15442_v60  ;;  %v15024_v60 = vcombine.low %v15800_v12, %v15799_v15 }
 0x382   : > { %5539 = vmatprep.subr.bf16.mxu0 %v15449_v47  ;;  %v15801_v47 = vld [vmem:[%s15903_s30 + $0xf8] sm:$0xff] }
 0x384   : > { %5415 = vmatmul.mubr.bf16.gmra.mrb[152].mxu0 %v15008_v14  ;;  %v15802_v14 = vld [vmem:[%s15903_s30 + $0xf0] sm:$0xff]  ;;  %s14867_s30 = sshll.u32 %s23327_s25, 3 }
 0x385   : > { %5540 = vmatpush1.bf16.msra.mxu0 %v15447_v49  ;;  %5424 = vmatprep.mubr.bf16.mxu0 %v15011_v26  ;;  %v15027_v49 = vcombine.high %v15802_v14, %v15801_v47  ;;  %v15026_v2 = vcombine.low %v15802_v14, %v15801_v47  ;;  %s312_s18 = scalar_lea.vmem %s22465_s7, %s14867_s30 }
 0x386   : > { %5541 = vmatprep.subr.bf16.mxu0 %v15452_v43  ;;  %5485 = vmatmul.mubr.bf16.gmra.mrb[148].mxu1 %v15022_v23 }
 0x387   : > { %5494 = vmatprep.mubr.bf16.mxu1 %v15025_v16 }
 0x389   : > { %5542 = vmatpush1.bf16.msra.mxu0 %v15450_v38 }
 0x38a   : > { %5543 = vmatprep.subr.bf16.mxu0 %v15457_v62 }
 0x38c   : > { %5425 = vmatmul.mubr.bf16.gmra.mrb[156].mxu0 %v15010_v7 }
 0x38d   : > { %5544 = vmatpush1.bf16.msra.mxu0 %v15455_v1  ;;  %5547 = vmatprep.mubr.bf16.mxu0 %v4843_v27 }
 0x38e   : > { %5545 = vmatprep.subr.bf16.mxu0 %v15460_v53  ;;  %5495 = vmatmul.mubr.bf16.gmra.mrb[152].mxu1 %v15024_v60 }
 0x38f   : > { %5504 = vmatprep.mubr.bf16.mxu1 %v15027_v49 }
 0x391   : > { %5546 = vmatpush1.bf16.msra.mxu0 %v15458_v3 }
 0x394   : > { %5548 = vmatmul.mubr.bf16.vlgmr.msra.gmra.mrb[128].mxu0 %v4842_v52 }
 0x395   : > { %5557 = vmatprep.mubr.bf16.mxu0 %v4845_v61 }
 0x396   : > { %5505 = vmatmul.mubr.bf16.gmra.mrb[156].mxu1 %v15026_v2 }
 0x39c   : > { %5558 = vmatmul.mubr.bf16.gmra.mrb[132].mxu0 %v4844_v63 }
 0x39d   : > { %5567 = vmatprep.mubr.bf16.mxu0 %v4847_v56 }
 0x3a4   : > { %5568 = vmatmul.mubr.bf16.gmra.mrb[136].mxu0 %v22908_v42 }
 0x3a5   : > { %5577 = vmatprep.mubr.bf16.mxu0 %v4849_v4 }
 0x3ab   : > { %v4285_v24 = vpop.f32.mrb[104].mxu0 }
 0x3ac   : > { %v4850_v5 = vpack.c.bf16 %v4285_v24, %v17850_v57  ;;  %5578 = vmatmul.mubr.bf16.gmra.mrb[140].mxu0 %v22909_v45  ;;  %v4287_v51 = vpop.f32.mrb[105].mxu0 }
 0x3ad   : > { %v4851_v52 = vpack.c.bf16 %v4287_v51, %v17855_v13  ;;  %v4289_v21 = vpop.f32.mrb[106].mxu0 }
 0x3ae   : > { %v4290_v46 = vpop.f32.mrb[107].mxu0 }
 0x3af   : > { %5587 = vmatprep.mubr.bf16.mxu0 %v4851_v52 }
 0x3b3   : > { %v4335_v27 = vpop.f32.mrb[104].mxu1 }
 0x3b4   : > { %v4852_v31 = vpack.c.bf16 %v4335_v27, %v17865_v59  ;;  %5588 = vmatmul.mubr.bf16.gmra.mrb[144].mxu0 %v4850_v5  ;;  %v4337_v30 = vpop.f32.mrb[105].mxu1 }
 0x3b5   : > { %v4853_v20 = vpack.c.bf16 %v4337_v30, %v17870_v50  ;;  %v4339_v63 = vpop.f32.mrb[106].mxu1 }
 0x3b6   : > { %v4340_v0 = vpop.f32.mrb[107].mxu1 }
 0x3b7   : > { %5597 = vmatprep.mubr.bf16.mxu0 %v4853_v20 }
 0x3bb   : > { %v4385_v57 = vpop.f32.mrb[108].mxu0 }
 0x3bc   : > { %v4854_v33 = vpack.c.bf16 %v4385_v57, %v17873_v22  ;;  %5598 = vmatmul.mubr.bf16.gmra.mrb[148].mxu0 %v4852_v31  ;;  %v4387_v61 = vpop.f32.mrb[109].mxu0 }
 0x3bd   : > { %v4855_v13 = vpack.c.bf16 %v4387_v61, %v17878_v44  ;;  %v4389_v36 = vpop.f32.mrb[110].mxu0 }
 0x3be   : > { %v4390_v25 = vpop.f32.mrb[111].mxu0 }
 0x3bf   : > { %5607 = vmatprep.mubr.bf16.mxu0 %v4855_v13 }
 0x3c4   : > { %v4435_v56 = vpop.f32.mrb[108].mxu1  ;;  %5608 = vmatmul.mubr.bf16.gmra.mrb[152].mxu0 %v4854_v33  ;;  %v22625_v33 = vmov 0.0  }
 0x3c5   : > { %v4856_v59 = vpack.c.bf16 %v4435_v56, %v17886_v8  ;;  %v4437_v10 = vpop.f32.mrb[109].mxu1  ;;  %5980 = vmatprep.mubr.f32.mxu1 %v22625_v33 }
 0x3c6   : > { %v4857_v50 = vpack.c.bf16 %v4437_v10, %v17891_v34  ;;  %v4439_v12 = vpop.f32.mrb[110].mxu1 }
 0x3c7   : > { %v4440_v35 = vpop.f32.mrb[111].mxu1 }
 0x3c8   : > { %5617 = vmatprep.mubr.bf16.mxu0 %v4857_v50 }
 0x3cc   : > { %v4485_v4 = vpop.f32.mrb[112].mxu0  ;;  %5618 = vmatmul.mubr.bf16.gmra.mrb[156].mxu0 %v4856_v59 }
 0x3cd   : > { %v4858_v22 = vpack.c.bf16 %v4485_v4, %v17893_v37  ;;  %v4487_v26 = vpop.f32.mrb[113].mxu0 }
 0x3ce   : > { %v4859_v44 = vpack.c.bf16 %v4487_v26, %v17898_v40  ;;  %v4489_v43 = vpop.f32.mrb[114].mxu0 }
 0x3cf   : > { %v4490_v23 = vpop.f32.mrb[115].mxu0 }
 0x3d0   : > { %5627 = vmatprep.mubr.bf16.mxu0 %v4859_v44 }
 0x3d4   : > { %v4535_v15 = vpop.f32.mrb[112].mxu1  ;;  %5628 = vmatmul.mubr.bf16.gmra.mrb[160].mxu0 %v4858_v22 }
 0x3d5   : > { %v4860_v8 = vpack.c.bf16 %v4535_v15, %v17906_v18  ;;  %v4537_v16 = vpop.f32.mrb[113].mxu1 }
 0x3d6   : > { %v4861_v34 = vpack.c.bf16 %v4537_v16, %v17911_v9  ;;  %v4539_v38 = vpop.f32.mrb[114].mxu1 }
 0x3d7   : > { %v4540_v62 = vpop.f32.mrb[115].mxu1  ;;  %v4585_v7 = vpop.f32.mrb[116].mxu0  ;;  %v22910_v38 = vld [vmem:[#allocation130_spill] sm:$0xff] }
 0x3d8   : > { %5637 = vmatprep.mubr.bf16.mxu0 %v4861_v34  ;;  %v4862_v37 = vpack.c.bf16 %v4585_v7, %v17913_v58  ;;  %v4587_v1 = vpop.f32.mrb[117].mxu0  ;;  %v18246_v62 = vsub.s32 0, %v22910_v38  ;;  %v410_v7 = vld [vmem:[%s22460_s2] sm:$0x3] }
 0x3d9   : > { %v4863_v53 = vpack.c.bf16 %v4587_v1, %v17918_v32  ;;  %v4589_v40 = vpop.f32.mrb[118].mxu0 }
 0x3da   : > { %v4590_v60 = vpop.f32.mrb[119].mxu0 }
 0x3db   : > { %v18261_v60 = vrot.slane %v410_v7, %v18246_v62 }
 0x3dc   : > { %5638 = vmatmul.mubr.bf16.gmra.mrb[164].mxu0 %v4860_v8 }
 0x3dd   : > { %5647 = vmatprep.mubr.bf16.mxu0 %v4863_v53 }
 0x3df   : > { %v4685_v14 = vpop.f32.mrb[120].mxu0 }
 0x3e0   : > { %v4635_v47 = vpop.f32.mrb[116].mxu1  ;;  %v4866_v49 = vpack.c.bf16 %v4685_v14, %v17933_v17  ;;  %v4687_v3 = vpop.f32.mrb[121].mxu0 }
 0x3e1   : > { %v4864_v18 = vpack.c.bf16 %v4635_v47, %v17926_v54  ;;  %v4637_v9 = vpop.f32.mrb[117].mxu1  ;;  %v4867_v42 = vpack.c.bf16 %v4687_v3, %v17938_v11  ;;  %v4689_v24 = vpop.f32.mrb[122].mxu0 }
 0x3e2   : > { %v4865_v2 = vpack.c.bf16 %v4637_v9, %v17931_v48  ;;  %v4639_v58 = vpop.f32.mrb[118].mxu1  ;;  %v4690_v32 = vpop.f32.mrb[123].mxu0 }
 0x3e3   : > { %v4640_v5 = vpop.f32.mrb[119].mxu1 }
 0x3e4   : > { %5648 = vmatmul.mubr.bf16.gmra.mrb[168].mxu0 %v4862_v37  ;;  %v18252_v37 = vsub.s32 1, %v22910_v38 }
 0x3e5   : > { %5657 = vmatprep.mubr.bf16.mxu0 %v4865_v2 }
 0x3e6   : > { %v18266_v14 = vrot.slane %v410_v7, %v18252_v37 }
 0x3e7   : > { %v4785_v51 = vpop.f32.mrb[124].mxu0 }
 0x3e8   : > { %v4735_v45 = vpop.f32.mrb[120].mxu1  ;;  %v4870_v54 = vpack.c.bf16 %v4785_v51, %v17956_v28  ;;  %v4787_v17 = vpop.f32.mrb[125].mxu0 }
 0x3e9   : > { %v4868_v52 = vpack.c.bf16 %v4735_v45, %v17946_v41  ;;  %v4737_v21 = vpop.f32.mrb[121].mxu1  ;;  %v4871_v48 = vpack.c.bf16 %v4787_v17, %v17961_v39  ;;  %v4789_v11 = vpop.f32.mrb[126].mxu0 }
 0x3ea   : > { %v4869_v46 = vpack.c.bf16 %v4737_v21, %v17951_v6  ;;  %v4739_v27 = vpop.f32.mrb[122].mxu1  ;;  %v4790_v30 = vpop.f32.mrb[127].mxu0 }
 0x3eb   : > { %v4740_v31 = vpop.f32.mrb[123].mxu1  ;;  %v22912_v27 = vld [vmem:[#allocation10_spill] sm:$0xff] }
 0x3ec   : > { %5658 = vmatmul.mubr.bf16.gmra.mrb[172].mxu0 %v4864_v18  ;;  %v22913_v31 = vld [vmem:[#allocation23_spill] sm:$0xff] }
 0x3ed   : > { %5667 = vmatprep.mubr.bf16.mxu0 %v4867_v42 }
 0x3f0   : > { %v4835_v20 = vpop.f32.mrb[124].mxu1 }
 0x3f1   : > { %v4872_v63 = vpack.c.bf16 %v4835_v20, %v17966_v29  ;;  %v4837_v0 = vpop.f32.mrb[125].mxu1  ;;  %v22914_v20 = vld [vmem:[#allocation11_spill] sm:$0xff] }
 0x3f2   : > { %v4873_v41 = vpack.c.bf16 %v4837_v0, %v17971_v19  ;;  %v4839_v57 = vpop.f32.mrb[126].mxu1 }
 0x3f3   : > { %v4840_v28 = vpop.f32.mrb[127].mxu1 }
 0x3f4   : > { %5668 = vmatmul.mubr.bf16.gmra.mrb[176].mxu0 %v4866_v49 }
 0x3f5   : > { %5677 = vmatprep.mubr.bf16.mxu0 %v4869_v46  ;;  %v22911_v46 = vld [vmem:[#allocation22_spill] sm:$0xff] }
 0x3fc   : > { %5678 = vmatmul.mubr.bf16.gmra.mrb[180].mxu0 %v4868_v52 }
 0x3fd   : > { %5687 = vmatprep.mubr.bf16.mxu0 %v4871_v48 }
 0x404   : > { %5688 = vmatmul.mubr.bf16.gmra.mrb[184].mxu0 %v4870_v54 }
 0x405   : > { %5697 = vmatprep.mubr.bf16.mxu0 %v4873_v41 }
 0x40c   : > { %5698 = vmatmul.mubr.bf16.gmra.mrb[188].mxu0 %v4872_v63 }
 0x431   : > { %v18197_v6 = vpop.f32.mrb[128].mxu1 }
 0x432   : > { %v18199_v39 = vpop.f32.mrb[129].mxu1 }
 0x433   : > { %v18201_v29 = vpop.f32.mrb[130].mxu1 }
 0x434   : > { %v18203_v61 = vpop.f32.mrb[131].mxu1 }
 0x439   : > { %v18205_v19 = vpop.f32.mrb[132].mxu1 }
 0x43a   : > { %v18207_v13 = vpop.f32.mrb[133].mxu1 }
 0x43b   : > { %v18209_v36 = vpop.f32.mrb[134].mxu1 }
 0x43c   : > { %v18211_v25 = vpop.f32.mrb[135].mxu1 }
 0x441   : > { %v18213_v56 = vpop.f32.mrb[136].mxu1 }
 0x442   : > { %v18215_v59 = vpop.f32.mrb[137].mxu1 }
 0x443   : > { %v18217_v10 = vpop.f32.mrb[138].mxu1 }
 0x444   : > { %v18219_v50 = vpop.f32.mrb[139].mxu1 }
 0x449   : > { %v18221_v12 = vpop.f32.mrb[140].mxu1 }
 0x44a   : > { %v18223_v35 = vpop.f32.mrb[141].mxu1 }
 0x44b   : > { %v18225_v4 = vpop.f32.mrb[142].mxu1 }
 0x44c   : > { %v18227_v22 = vpop.f32.mrb[143].mxu1 }
 0x451   : > { %v18229_v26 = vpop.f32.mrb[144].mxu1 }
 0x452   : > { %v18231_v44 = vpop.f32.mrb[145].mxu1 }
 0x453   : > { %v18233_v43 = vpop.f32.mrb[146].mxu1 }
 0x454   : > { %v18235_v23 = vpop.f32.mrb[147].mxu1 }
 0x459   : > { %v18237_v15 = vpop.f32.mrb[148].mxu1 }
 0x45a   : > { %v18239_v8 = vpop.f32.mrb[149].mxu1 }
 0x45b   : > { %v18241_v16 = vpop.f32.mrb[150].mxu1 }
 0x45c   : > { %v18243_v34 = vpop.f32.mrb[151].mxu1 }
 0x461   : > { %v18254_v1 = vpop.f32.mrb[152].mxu1 }
 0x462   : > { %v18256_v53 = vpop.f32.mrb[153].mxu1 }
 0x463   : > { %v18258_v40 = vpop.f32.mrb[154].mxu1 }
 0x464   : > { %v18263_v47 = vpop.f32.mrb[155].mxu1 }
 0x467   : > { %v5549_v18 = vpop.f32.mrb[128].mxu0 }
 0x468   : > { %v5719_v49 = vadd.f32 %v18261_v60, %v5549_v18  ;;  %v5551_v9 = vpop.f32.mrb[129].mxu0 }
 0x469   : > { %v5720_v3 = vadd.f32 %v18266_v14, %v5551_v9  ;;  %v5553_v2 = vpop.f32.mrb[130].mxu0  ;;  %v18270_v42 = vpop.f32.mrb[156].mxu1 }
 0x46a   : > { %v5783_v58 = vmax.f32 %v5719_v49, 0.0  ;;  %v5721_v24 = vadd.f32 %v18261_v60, %v5553_v2  ;;  %v5555_v5 = vpop.f32.mrb[131].mxu0  ;;  %v18273_v32 = vpop.f32.mrb[157].mxu1 }
 0x46b   : > { %v5784_v45 = vmax.f32 %v5720_v3, 0.0  ;;  %v5722_v51 = vadd.f32 %v18266_v14, %v5555_v5  ;;  %v18276_v52 = vpop.f32.mrb[158].mxu1 }
 0x46c   : > { %v5785_v54 = vmax.f32 %v5721_v24, 0.0  ;;  %v18278_v21 = vpop.f32.mrb[159].mxu1  ;;  %v5847_v48 = vadd.f32 %v5783_v58, %v22911_v46  ;;  %v22916_v46 = vld [vmem:[#allocation12_spill] sm:$0xff] }
 0x46d   : > { %v5786_v17 = vmax.f32 %v5722_v51, 0.0  ;;  %v5848_v30 = vadd.f32 %v5784_v45, %v22913_v31  ;;  %v18291_v45 = vld [vmem:[%s22461_s3] sm:$0xff]  ;;  %v22918_v31 = vld [vmem:[#allocation13_spill] sm:$0xff] }
 0x46e   : > { %v5849_v11 = vadd.f32 %v5785_v54, %v22912_v27  ;;  %v22915_v54 = vld [vmem:[#allocation34_spill] sm:$0xff]  ;;  %v22917_v27 = vld [vmem:[#allocation35_spill] sm:$0xff] }
 0x46f   : > { %v5850_v63 = vadd.f32 %v5786_v17, %v22914_v20  ;;  %v5559_v0 = vpop.f32.mrb[132].mxu0 }
 0x470   : > { %v15113_v41 = vpack.c.bf16 %v5849_v11, %v5847_v48  ;;  %v5723_v57 = vadd.f32 %v18261_v60, %v5559_v0  ;;  %v5561_v28 = vpop.f32.mrb[133].mxu0 }
 0x471   : > { %v5724_v7 = vadd.f32 %v18266_v14, %v5561_v28  ;;  %v5563_v18 = vpop.f32.mrb[134].mxu0  ;;  %v15111_v49 = vpack.c.bf16 %v5850_v63, %v5848_v30 }
 0x472   : > { %v5787_v9 = vmax.f32 %v5723_v57, 0.0  ;;  %v5725_v3 = vadd.f32 %v18261_v60, %v5563_v18  ;;  %v5565_v2 = vpop.f32.mrb[135].mxu0 }
 0x473   : > { %v5788_v58 = vmax.f32 %v5724_v7, 0.0  ;;  %v5726_v24 = vadd.f32 %v18266_v14, %v5565_v2  ;;  %15112 = vmatprep.subr.bf16.mxu1 %v15111_v49 }
 0x474   : > { %v5789_v5 = vmax.f32 %v5725_v3, 0.0  ;;  %15114 = vmatpush1.bf16.msra.mxu1 %v15113_v41  ;;  %v5851_v17 = vadd.f32 %v5787_v9, %v22915_v54  ;;  %v22920_v54 = vld [vmem:[#allocation24_spill] sm:$0xff] }
 0x475   : > { %v5790_v51 = vmax.f32 %v5726_v24, 0.0  ;;  %v5852_v11 = vadd.f32 %v5788_v58, %v22917_v27  ;;  %v22922_v27 = vld [vmem:[#allocation25_spill] sm:$0xff] }
 0x476   : > { %v5853_v48 = vadd.f32 %v5789_v5, %v22916_v46  ;;  %v22919_v5 = vld [vmem:[#allocation36_spill] sm:$0xff]  ;;  %v22921_v46 = vld [vmem:[#allocation37_spill] sm:$0xff] }
 0x477   : > { %v5854_v30 = vadd.f32 %v5790_v51, %v22918_v31  ;;  %v5569_v20 = vpop.f32.mrb[136].mxu0  ;;  %15092 = vmatmul.mubr.msk.f32.vlgmr.msra.gmra.mrb[160].mxu1 %vm5912_vm6, %v18291_v45 }
 0x478   : > { %v15117_v63 = vpack.c.bf16 %v5853_v48, %v5851_v17  ;;  %v5727_v0 = vadd.f32 %v18261_v60, %v5569_v20  ;;  %v5571_v41 = vpop.f32.mrb[137].mxu0  ;;  %6051 = vmatprep.mubr.f32.mxu1 %v22625_v33 }
 0x479   : > { %v5728_v57 = vadd.f32 %v18266_v14, %v5571_v41  ;;  %v5573_v28 = vpop.f32.mrb[138].mxu0  ;;  %v15115_v7 = vpack.c.bf16 %v5854_v30, %v5852_v11 }
 0x47a   : > { %v5791_v18 = vmax.f32 %v5727_v0, 0.0  ;;  %v5729_v49 = vadd.f32 %v18261_v60, %v5573_v28  ;;  %v5575_v9 = vpop.f32.mrb[139].mxu0 }
 0x47b   : > { %v5792_v3 = vmax.f32 %v5728_v57, 0.0  ;;  %v5730_v2 = vadd.f32 %v18266_v14, %v5575_v9  ;;  %15116 = vmatprep.subr.bf16.mxu1 %v15115_v7 }
 0x47c   : > { %v5793_v58 = vmax.f32 %v5729_v49, 0.0  ;;  %15118 = vmatpush1.bf16.msra.mxu1 %v15117_v63  ;;  %v5855_v51 = vadd.f32 %v5791_v18, %v22919_v5  ;;  %v22924_v5 = vld [vmem:[#allocation48_spill] sm:$0xff] }
 0x47d   : > { %v5794_v24 = vmax.f32 %v5730_v2, 0.0  ;;  %v5856_v48 = vadd.f32 %v5792_v3, %v22921_v46  ;;  %v22926_v46 = vld [vmem:[#allocation49_spill] sm:$0xff] }
 0x47e   : > { %v5857_v17 = vadd.f32 %v5793_v58, %v22920_v54  ;;  %v22923_v58 = vld [vmem:[#allocation58_spill] sm:$0xff]  ;;  %v22925_v54 = vld [vmem:[#allocation59_spill] sm:$0xff] }
 0x47f   : > { %v5858_v31 = vadd.f32 %v5794_v24, %v22922_v27  ;;  %v5579_v11 = vpop.f32.mrb[140].mxu0  ;;  %15093 = vmatmul.mubr.msk.f32.vlgmr.msra.gmra.mrb[162].mxu1 %vm5912_vm6, %v18291_v45 }
 0x480   : > { %v15121_v30 = vpack.c.bf16 %v5857_v17, %v5855_v51  ;;  %v5731_v20 = vadd.f32 %v18261_v60, %v5579_v11  ;;  %v5581_v0 = vpop.f32.mrb[141].mxu0  ;;  %6122 = vmatprep.mubr.f32.mxu1 %v22625_v33 }
 0x481   : > { %v5732_v63 = vadd.f32 %v18266_v14, %v5581_v0  ;;  %v5583_v41 = vpop.f32.mrb[142].mxu0  ;;  %v15119_v57 = vpack.c.bf16 %v5858_v31, %v5856_v48 }
 0x482   : > { %v5795_v28 = vmax.f32 %v5731_v20, 0.0  ;;  %v5733_v7 = vadd.f32 %v18261_v60, %v5583_v41  ;;  %v5585_v18 = vpop.f32.mrb[143].mxu0 }
 0x483   : > { %v5796_v49 = vmax.f32 %v5732_v63, 0.0  ;;  %v5734_v9 = vadd.f32 %v18266_v14, %v5585_v18  ;;  %15120 = vmatprep.subr.bf16.mxu1 %v15119_v57 }
 0x484   : > { %v5797_v3 = vmax.f32 %v5733_v7, 0.0  ;;  %15122 = vmatpush1.bf16.msra.mxu1 %v15121_v30  ;;  %v5859_v24 = vadd.f32 %v5795_v28, %v22923_v58  ;;  %v22928_v58 = vld [vmem:[#allocation46_spill] sm:$0xff] }
 0x485   : > { %v5798_v2 = vmax.f32 %v5734_v9, 0.0  ;;  %v5860_v17 = vadd.f32 %v5796_v49, %v22925_v54  ;;  %v22930_v54 = vld [vmem:[#allocation47_spill] sm:$0xff] }
 0x486   : > { %v5861_v51 = vadd.f32 %v5797_v3, %v22924_v5  ;;  %v22927_v3 = vld [vmem:[#allocation54_spill] sm:$0xff]  ;;  %v22929_v5 = vld [vmem:[#allocation55_spill] sm:$0xff] }
 0x487   : > { %v5862_v27 = vadd.f32 %v5798_v2, %v22926_v46  ;;  %v5589_v48 = vpop.f32.mrb[144].mxu0  ;;  %15094 = vmatmul.mubr.msk.f32.vlgmr.msra.gmra.mrb[164].mxu1 %vm5912_vm6, %v18291_v45 }
 0x488   : > { %v15125_v31 = vpack.c.bf16 %v5861_v51, %v5859_v24  ;;  %v5735_v11 = vadd.f32 %v18261_v60, %v5589_v48  ;;  %v5591_v20 = vpop.f32.mrb[145].mxu0  ;;  %6193 = vmatprep.mubr.f32.mxu1 %v22625_v33 }
 0x489   : > { %v5736_v30 = vadd.f32 %v18266_v14, %v5591_v20  ;;  %v5593_v0 = vpop.f32.mrb[146].mxu0  ;;  %v15123_v63 = vpack.c.bf16 %v5862_v27, %v5860_v17 }
 0x48a   : > { %v5799_v41 = vmax.f32 %v5735_v11, 0.0  ;;  %v5737_v57 = vadd.f32 %v18261_v60, %v5593_v0  ;;  %v5595_v28 = vpop.f32.mrb[147].mxu0 }
 0x48b   : > { %v5800_v7 = vmax.f32 %v5736_v30, 0.0  ;;  %v5738_v18 = vadd.f32 %v18266_v14, %v5595_v28  ;;  %15124 = vmatprep.subr.bf16.mxu1 %v15123_v63 }
 0x48c   : > { %v5801_v49 = vmax.f32 %v5737_v57, 0.0  ;;  %15126 = vmatpush1.bf16.msra.mxu1 %v15125_v31  ;;  %v5863_v2 = vadd.f32 %v5799_v41, %v22927_v3  ;;  %v22932_v3 = vld [vmem:[#allocation64_spill] sm:$0xff] }
 0x48d   : > { %v5802_v9 = vmax.f32 %v5738_v18, 0.0  ;;  %v5864_v51 = vadd.f32 %v5800_v7, %v22929_v5  ;;  %v22934_v5 = vld [vmem:[#allocation65_spill] sm:$0xff] }
 0x48e   : > { %v5865_v24 = vadd.f32 %v5801_v49, %v22928_v58  ;;  %v22931_v49 = vld [vmem:[#allocation72_spill] sm:$0xff]  ;;  %v22933_v58 = vld [vmem:[#allocation73_spill] sm:$0xff] }
 0x48f   : > { %v5866_v46 = vadd.f32 %v5802_v9, %v22930_v54  ;;  %v5599_v17 = vpop.f32.mrb[148].mxu0  ;;  %15095 = vmatmul.mubr.msk.f32.vlgmr.msra.gmra.mrb[166].mxu1 %vm5912_vm6, %v18291_v45 }
 0x490   : > { %v15129_v27 = vpack.c.bf16 %v5865_v24, %v5863_v2  ;;  %v5739_v48 = vadd.f32 %v18261_v60, %v5599_v17  ;;  %v5601_v11 = vpop.f32.mrb[149].mxu0  ;;  %6264 = vmatprep.mubr.f32.mxu1 %v22625_v33 }
 0x491   : > { %v5740_v31 = vadd.f32 %v18266_v14, %v5601_v11  ;;  %v5603_v20 = vpop.f32.mrb[150].mxu0  ;;  %v15127_v30 = vpack.c.bf16 %v5866_v46, %v5864_v51 }
 0x492   : > { %v5803_v0 = vmax.f32 %v5739_v48, 0.0  ;;  %v5741_v63 = vadd.f32 %v18261_v60, %v5603_v20  ;;  %v5605_v41 = vpop.f32.mrb[151].mxu0 }
 0x493   : > { %v5804_v57 = vmax.f32 %v5740_v31, 0.0  ;;  %v5742_v28 = vadd.f32 %v18266_v14, %v5605_v41  ;;  %15128 = vmatprep.subr.bf16.mxu1 %v15127_v30 }
 0x494   : > { %v5805_v7 = vmax.f32 %v5741_v63, 0.0  ;;  %15130 = vmatpush1.bf16.msra.mxu1 %v15129_v27  ;;  %v5867_v9 = vadd.f32 %v5803_v0, %v22931_v49  ;;  %v22936_v49 = vld [vmem:[#allocation62_spill] sm:$0xff] }
 0x495   : > { %v5806_v18 = vmax.f32 %v5742_v28, 0.0  ;;  %v5868_v24 = vadd.f32 %v5804_v57, %v22933_v58  ;;  %v22938_v58 = vld [vmem:[#allocation63_spill] sm:$0xff] }
 0x496   : > { %v5869_v2 = vadd.f32 %v5805_v7, %v22932_v3  ;;  %v22935_v7 = vld [vmem:[#allocation70_spill] sm:$0xff]  ;;  %v22937_v3 = vld [vmem:[#allocation71_spill] sm:$0xff] }
 0x497   : > { %v5870_v54 = vadd.f32 %v5806_v18, %v22934_v5  ;;  %v5609_v51 = vpop.f32.mrb[152].mxu0  ;;  %15096 = vmatmul.mubr.msk.f32.vlgmr.msra.gmra.mrb[168].mxu1 %vm5912_vm6, %v18291_v45 }
 0x498   : > { %v15133_v46 = vpack.c.bf16 %v5869_v2, %v5867_v9  ;;  %v5743_v17 = vadd.f32 %v18261_v60, %v5609_v51  ;;  %v5611_v48 = vpop.f32.mrb[153].mxu0  ;;  %6335 = vmatprep.mubr.f32.mxu1 %v22625_v33 }
 0x499   : > { %v5744_v27 = vadd.f32 %v18266_v14, %v5611_v48  ;;  %v5613_v11 = vpop.f32.mrb[154].mxu0  ;;  %v15131_v31 = vpack.c.bf16 %v5870_v54, %v5868_v24 }
 0x49a   : > { %v5807_v20 = vmax.f32 %v5743_v17, 0.0  ;;  %v5745_v30 = vadd.f32 %v18261_v60, %v5613_v11  ;;  %v5615_v0 = vpop.f32.mrb[155].mxu0 }
 0x49b   : > { %v5808_v63 = vmax.f32 %v5744_v27, 0.0  ;;  %v5746_v41 = vadd.f32 %v18266_v14, %v5615_v0  ;;  %15132 = vmatprep.subr.bf16.mxu1 %v15131_v31 }
 0x49c   : > { %v5809_v57 = vmax.f32 %v5745_v30, 0.0  ;;  %15134 = vmatpush1.bf16.msra.mxu1 %v15133_v46  ;;  %v5871_v18 = vadd.f32 %v5807_v20, %v22935_v7  ;;  %v22940_v7 = vld [vmem:[#allocation80_spill] sm:$0xff] }
 0x49d   : > { %v5810_v28 = vmax.f32 %v5746_v41, 0.0  ;;  %v5872_v2 = vadd.f32 %v5808_v63, %v22937_v3  ;;  %v22942_v3 = vld [vmem:[#allocation81_spill] sm:$0xff] }
 0x49e   : > { %v5873_v9 = vadd.f32 %v5809_v57, %v22936_v49  ;;  %v22939_v57 = vld [vmem:[#allocation88_spill] sm:$0xff]  ;;  %v22941_v49 = vld [vmem:[#allocation89_spill] sm:$0xff] }
 0x49f   : > { %v5874_v5 = vadd.f32 %v5810_v28, %v22938_v58  ;;  %v5619_v24 = vpop.f32.mrb[156].mxu0  ;;  %15097 = vmatmul.mubr.msk.f32.vlgmr.msra.gmra.mrb[170].mxu1 %vm5912_vm6, %v18291_v45 }
 0x4a0   : > { %v15137_v54 = vpack.c.bf16 %v5873_v9, %v5871_v18  ;;  %v5747_v51 = vadd.f32 %v18261_v60, %v5619_v24  ;;  %v5621_v17 = vpop.f32.mrb[157].mxu0  ;;  %6406 = vmatprep.mubr.f32.mxu1 %v22625_v33 }
 0x4a1   : > { %v5748_v46 = vadd.f32 %v18266_v14, %v5621_v17  ;;  %v5623_v48 = vpop.f32.mrb[158].mxu0  ;;  %v15135_v27 = vpack.c.bf16 %v5874_v5, %v5872_v2 }
 0x4a2   : > { %v5811_v11 = vmax.f32 %v5747_v51, 0.0  ;;  %v5749_v31 = vadd.f32 %v18261_v60, %v5623_v48  ;;  %v5625_v20 = vpop.f32.mrb[159].mxu0  ;;  %v15848_v48 = vmov 1966171168  }
 0x4a3   : > { %v5812_v30 = vmax.f32 %v5748_v46, 0.0  ;;  %v5750_v0 = vadd.f32 %v18266_v14, %v5625_v20  ;;  %15136 = vmatprep.subr.bf16.mxu1 %v15135_v27  ;;  %v8626_v27 = vunpack.c.l.s4 %v15848_v48 }
 0x4a4   : > { %v5813_v63 = vmax.f32 %v5749_v31, 0.0  ;;  %15138 = vmatpush1.bf16.msra.mxu1 %v15137_v54  ;;  %v5875_v28 = vadd.f32 %v5811_v11, %v22939_v57 }
 0x4a5   : > { %v5814_v41 = vmax.f32 %v5750_v0, 0.0  ;;  %v5876_v9 = vadd.f32 %v5812_v30, %v22941_v49  ;;  %v8627_v57 = vunpack.c.0.s8 %v8626_v27 }
 0x4a6   : > { %v5877_v18 = vadd.f32 %v5813_v63, %v22940_v7 }
 0x4a7   : > { %v5878_v58 = vadd.f32 %v5814_v41, %v22942_v3  ;;  %v5629_v2 = vpop.f32.mrb[160].mxu0  ;;  %15098 = vmatmul.mubr.msk.f32.vlgmr.msra.gmra.mrb[172].mxu1 %vm5912_vm6, %v18291_v45 }
 0x4a8   : > { %v15141_v5 = vpack.c.bf16 %v5877_v18, %v5875_v28  ;;  %v5630_v24 = vadd.f32 %v5629_v2, %v18197_v6  ;;  %v5631_v51 = vpop.f32.mrb[161].mxu0  ;;  %6477 = vmatprep.mubr.f32.mxu1 %v22625_v33  ;;  %v22945_v2 = vld [vmem:[#allocation87_spill] sm:$0xff] }
 0x4a9   : > { %v5632_v54 = vadd.f32 %v5631_v51, %v18199_v39  ;;  %v5633_v17 = vpop.f32.mrb[162].mxu0  ;;  %v15139_v46 = vpack.c.bf16 %v5878_v58, %v5876_v9 }
 0x4aa   : > { %v5751_v11 = vadd.f32 %v18261_v60, %v5630_v24  ;;  %v5634_v31 = vadd.f32 %v5633_v17, %v18201_v29  ;;  %v5635_v20 = vpop.f32.mrb[163].mxu0  ;;  %v22943_v29 = vld [vmem:[#allocation86_spill] sm:$0xff]  ;;  %v22946_v24 = vld [vmem:[#allocation79_spill] sm:$0xff] }
 0x4ab   : > { %v5752_v30 = vadd.f32 %v18266_v14, %v5632_v54  ;;  %v5636_v0 = vadd.f32 %v5635_v20, %v18203_v61  ;;  %15140 = vmatprep.subr.bf16.mxu1 %v15139_v46  ;;  %v22944_v61 = vld [vmem:[#allocation78_spill] sm:$0xff]  ;;  %v18385_v46 = vsub.s32 %v8627_v57, %v22910_v38 }
 0x4ac   : > { %v5815_v6 = vmax.f32 %v5751_v11, 0.0  ;;  %v5753_v63 = vadd.f32 %v18261_v60, %v5634_v31  ;;  %15142 = vmatpush1.bf16.msra.mxu1 %v15141_v5 }
 0x4ad   : > { %v5816_v39 = vmax.f32 %v5752_v30, 0.0  ;;  %v5754_v41 = vadd.f32 %v18266_v14, %v5636_v0 }
 0x4ae   : > { %v5817_v28 = vmax.f32 %v5753_v63, 0.0  ;;  %v5879_v49 = vadd.f32 %v5815_v6, %v22943_v29 }
 0x4af   : > { %v5818_v7 = vmax.f32 %v5754_v41, 0.0  ;;  %v5639_v18 = vpop.f32.mrb[164].mxu0  ;;  %15099 = vmatmul.mubr.msk.f32.vlgmr.msra.gmra.mrb[174].mxu1 %vm5912_vm6, %v18291_v45  ;;  %v5880_v5 = vadd.f32 %v5816_v39, %v22945_v2  ;;  %v22950_v2 = vld [vmem:[#allocation97_spill] sm:$0xff] }
 0x4b0   : > { %v5881_v9 = vadd.f32 %v5817_v28, %v22944_v61  ;;  %v5640_v3 = vadd.f32 %v5639_v18, %v18205_v19  ;;  %v5641_v58 = vpop.f32.mrb[165].mxu0  ;;  %6548 = vmatprep.mubr.f32.mxu1 %v22625_v33  ;;  %v22947_v28 = vld [vmem:[#allocation104_spill] sm:$0xff] }
 0x4b1   : > { %v5882_v51 = vadd.f32 %v5818_v7, %v22946_v24  ;;  %v5642_v54 = vadd.f32 %v5641_v58, %v18207_v13  ;;  %v5643_v17 = vpop.f32.mrb[166].mxu0  ;;  %v22948_v18 = vld [vmem:[#allocation96_spill] sm:$0xff] }
 0x4b2   : > { %v15145_v48 = vpack.c.bf16 %v5881_v9, %v5879_v49  ;;  %v5755_v27 = vadd.f32 %v18261_v60, %v5640_v3  ;;  %v5644_v11 = vadd.f32 %v5643_v17, %v18209_v36  ;;  %v5645_v19 = vpop.f32.mrb[167].mxu0  ;;  %v18399_v36 = vld [vmem:[%s18395_s23] sm:$0xff]  ;;  %v22949_v3 = vld [vmem:[#allocation105_spill] sm:$0xff] }
 0x4b3   : > { %v5756_v31 = vadd.f32 %v18266_v14, %v5642_v54  ;;  %v5646_v20 = vadd.f32 %v5645_v19, %v18211_v25  ;;  %v15143_v30 = vpack.c.bf16 %v5882_v51, %v5880_v5  ;;  %v8631_v25 = vrot.slane %v18399_v36, %v18385_v46 }
 0x4b4   : > { %v5819_v0 = vmax.f32 %v5755_v27, 0.0  ;;  %v5757_v13 = vadd.f32 %v18261_v60, %v5644_v11 }
 0x4b5   : > { %v5820_v6 = vmax.f32 %v5756_v31, 0.0  ;;  %v5758_v63 = vadd.f32 %v18266_v14, %v5646_v20  ;;  %15144 = vmatprep.subr.bf16.mxu1 %v15143_v30  ;;  %v8639_v9 = vcombine.high %v8631_v25, %v8631_v25 }
 0x4b6   : > { %v5821_v39 = vmax.f32 %v5757_v13, 0.0  ;;  %15146 = vmatpush1.bf16.msra.mxu1 %v15145_v48  ;;  %v5883_v7 = vadd.f32 %v5819_v0, %v22947_v28  ;;  %v18420_v0 = vrot.slane %v8631_v25, %v18385_v46  ;;  %v22952_v28 = vld [vmem:[#allocation94_spill] sm:$0xff] }
 0x4b7   : > { %v5822_v41 = vmax.f32 %v5758_v63, 0.0  ;;  %v5649_v57 = vpop.f32.mrb[168].mxu0  ;;  %v5884_v58 = vadd.f32 %v5820_v6, %v22949_v3 }
 0x4b8   : > { %v5885_v29 = vadd.f32 %v5821_v39, %v22948_v18  ;;  %v5650_v49 = vadd.f32 %v5649_v57, %v18213_v56  ;;  %v5651_v61 = vpop.f32.mrb[169].mxu0  ;;  %v8661_v56 = vrot.slane %v8639_v9, %v18385_v46  ;;  %v8669_v63 = vcombine.high %v18420_v0, %v18420_v0  ;;  %v22954_v9 = vld [vmem:[#allocation95_spill] sm:$0xff] }
 0x4b9   : > { %v5886_v5 = vadd.f32 %v5822_v41, %v22950_v2  ;;  %v5652_v24 = vadd.f32 %v5651_v61, %v18215_v59  ;;  %v5653_v51 = vpop.f32.mrb[170].mxu0  ;;  %15100 = vmatmul.mubr.msk.f32.vlgmr.msra.gmra.mrb[176].mxu1 %vm5912_vm6, %v18291_v45  ;;  %v22951_v41 = vld [vmem:[#allocation102_spill] sm:$0xff] }
 0x4ba   : > { %v15149_v54 = vpack.c.bf16 %v5885_v29, %v5883_v7  ;;  %v5759_v17 = vadd.f32 %v18261_v60, %v5650_v49  ;;  %v5654_v48 = vadd.f32 %v5653_v51, %v18217_v10  ;;  %v5655_v27 = vpop.f32.mrb[171].mxu0  ;;  %6619 = vmatprep.mubr.f32.mxu1 %v22625_v33  ;;  %v8729_v30 = vrot.slane %v8661_v56, %v18246_v62  ;;  %v22953_v49 = vld [vmem:[#allocation103_spill] sm:$0xff] }
 0x4bb   : > { %v5760_v11 = vadd.f32 %v18266_v14, %v5652_v24  ;;  %v5656_v19 = vadd.f32 %v5655_v27, %v18219_v50  ;;  %v15147_v31 = vpack.c.bf16 %v5886_v5, %v5884_v58  ;;  %v8733_v29 = vrot.slane %v8669_v63, %v18246_v62 }
 0x4bc   : > { %v5823_v59 = vmax.f32 %v5759_v17, 0.0  ;;  %v5761_v20 = vadd.f32 %v18261_v60, %v5654_v48  ;;  %8791 = vperm.xlu1 %15284, %v8729_v30  }
 0x4bd   : > { %v5824_v13 = vmax.f32 %v5760_v11, 0.0  ;;  %v5762_v10 = vadd.f32 %v18266_v14, %v5656_v19  ;;  %15148 = vmatprep.subr.bf16.mxu1 %v15147_v31 }
 0x4be   : > { %v5825_v6 = vmax.f32 %v5761_v20, 0.0  ;;  %15150 = vmatpush1.bf16.msra.mxu1 %v15149_v54  ;;  %v5887_v57 = vadd.f32 %v5823_v59, %v22951_v41 }
 0x4bf   : > { %v5826_v50 = vmax.f32 %v5762_v10, 0.0  ;;  %v5659_v39 = vpop.f32.mrb[172].mxu0  ;;  %v5888_v61 = vadd.f32 %v5824_v13, %v22953_v49  ;;  %v8621_v49 = vld [vmem:[%s18395_s23 + $0x8] sm:$0xff] }
 0x4c0   : > { %v5889_v7 = vadd.f32 %v5825_v6, %v22952_v28  ;;  %v5660_v18 = vadd.f32 %v5659_v39, %v18221_v12  ;;  %v5661_v25 = vpop.f32.mrb[173].mxu0  ;;  %v8671_v12 = vcombine.high %v8661_v56, %v8661_v56  ;;  %8795 = vperm.xlu1 %15284, %v8733_v29   ;;  %v22956_v6 = vld [vmem:[#allocation110_spill] sm:$0xff] }
 0x4c1   : > { %v5890_v3 = vadd.f32 %v5826_v50, %v22954_v9  ;;  %v5662_v58 = vadd.f32 %v5661_v25, %v18223_v35  ;;  %v5663_v2 = vpop.f32.mrb[174].mxu0  ;;  %15101 = vmatmul.mubr.msk.f32.vlgmr.msra.gmra.mrb[178].mxu1 %vm5912_vm6, %v18291_v45  ;;  %v8624_v35 = vcombine.high %v18399_v36, %v18399_v36  ;;  %v22955_v36 = vld [vmem:[#allocation116_spill] sm:$0xff] }
 0x4c2   : > { %v15153_v5 = vpack.c.bf16 %v5889_v7, %v5887_v57  ;;  %v5763_v24 = vadd.f32 %v18261_v60, %v5660_v18  ;;  %v5664_v51 = vadd.f32 %v5663_v2, %v18225_v4  ;;  %v5665_v54 = vpop.f32.mrb[175].mxu0  ;;  %6690 = vmatprep.mubr.f32.mxu1 %v22625_v33  ;;  %v8737_v31 = vrot.slane %v8671_v12, %v18246_v62  ;;  %v22957_v57 = vld [vmem:[#allocation117_spill] sm:$0xff]  ;;  %v22958_v7 = vld [vmem:[#allocation111_spill] sm:$0xff] }
 0x4c3   : > { %v5764_v17 = vadd.f32 %v18266_v14, %v5662_v58  ;;  %v5666_v48 = vadd.f32 %v5665_v54, %v18227_v22  ;;  %v15151_v27 = vpack.c.bf16 %v5890_v3, %v5888_v61  ;;  %v8638_v56 = vrot.slane %v8624_v35, %v18385_v46 }
 0x4c4   : > { %v5827_v11 = vmax.f32 %v5763_v24, 0.0  ;;  %v5765_v19 = vadd.f32 %v18261_v60, %v5664_v51  ;;  %8799 = vperm.xlu1 %15284, %v8737_v31   ;;  %v8680_v51 = vrot.slane %v8621_v49, %v18385_v46 }
 0x4c5   : > { %v5828_v59 = vmax.f32 %v5764_v17, 0.0  ;;  %v5766_v4 = vadd.f32 %v18266_v14, %v5666_v48  ;;  %15152 = vmatprep.subr.bf16.mxu1 %v15151_v27  ;;  %v8654_v13 = vrot.slane %v8638_v56, %v18385_v46  ;;  %v8640_v41 = vcombine.high %v8638_v56, %v8638_v56 }
 0x4c6   : > { %v5829_v20 = vmax.f32 %v5765_v19, 0.0  ;;  %15154 = vmatpush1.bf16.msra.mxu1 %v15153_v5  ;;  %v5891_v10 = vadd.f32 %v5827_v11, %v22955_v36  ;;  %v8725_v17 = vrot.slane %v18420_v0, %v18246_v62  ;;  %v8688_v35 = vcombine.high %v8680_v51, %v8680_v51  ;;  %v22959_v19 = vld [vmem:[#allocation114_spill] sm:$0xff] }
 0x4c7   : > { %v5830_v22 = vmax.f32 %v5766_v4, 0.0  ;;  %v5669_v30 = vpop.f32.mrb[176].mxu0  ;;  %v5892_v28 = vadd.f32 %v5828_v59, %v22957_v57  ;;  %v8741_v61 = vrot.slane %v8654_v13, %v18246_v62  ;;  %v8668_v2 = vrot.slane %v8640_v41, %v18385_v46 }
 0x4c8   : > { %v5893_v63 = vadd.f32 %v5829_v20, %v22956_v6  ;;  %v5670_v50 = vadd.f32 %v5669_v30, %v18229_v26  ;;  %v5671_v39 = vpop.f32.mrb[177].mxu0  ;;  %8787 = vperm.xlu0 %15283, %v8725_v17   ;;  %v8710_v56 = vrot.slane %v8688_v35, %v18385_v46  ;;  %v22960_v20 = vld [vmem:[#allocation115_spill] sm:$0xff]  ;;  %v8673_v57 = vcombine.high %v8621_v49, %v8621_v49 }
 0x4c9   : > { %v5894_v18 = vadd.f32 %v5830_v22, %v22958_v7  ;;  %v5672_v25 = vadd.f32 %v5671_v39, %v18231_v44  ;;  %v5673_v29 = vpop.f32.mrb[178].mxu0  ;;  %15102 = vmatmul.mubr.msk.f32.vlgmr.msra.gmra.mrb[180].mxu1 %vm5912_vm6, %v18291_v45  ;;  %8803 = vperm.xlu1 %15284, %v8741_v61   ;;  %v22961_v22 = vld [vmem:[#allocation108_spill] sm:$0xff] }
 0x4ca   : > { %v15157_v9 = vpack.c.bf16 %v5893_v63, %v5891_v10  ;;  %v5767_v3 = vadd.f32 %v18261_v60, %v5670_v50  ;;  %v5674_v26 = vadd.f32 %v5673_v29, %v18233_v43  ;;  %v5675_v58 = vpop.f32.mrb[179].mxu0  ;;  %6761 = vmatprep.mubr.f32.mxu1 %v22625_v33  ;;  %v8745_v43 = vrot.slane %v8668_v2, %v18246_v62  ;;  %v22962_v63 = vld [vmem:[#allocation109_spill] sm:$0xff] }
 0x4cb   : > { %v5768_v5 = vadd.f32 %v18266_v14, %v5672_v25  ;;  %v5676_v44 = vadd.f32 %v5675_v58, %v18235_v23  ;;  %v15155_v24 = vpack.c.bf16 %v5894_v18, %v5892_v28  ;;  %v8670_v23 = vcombine.high %v8654_v13, %v8654_v13 }
 0x4cc   : > { %v5831_v54 = vmax.f32 %v5767_v3, 0.0  ;;  %v5769_v12 = vadd.f32 %v18261_v60, %v5674_v26  ;;  %v8761_v41 = vrot.slane %v8710_v56, %v18246_v62  ;;  %v8720_v25 = vcombine.high %v8710_v56, %v8710_v56 }
 0x4cd   : > { %v5832_v48 = vmax.f32 %v5768_v5, 0.0  ;;  %v5770_v27 = vadd.f32 %v18266_v14, %v5676_v44  ;;  %15156 = vmatprep.subr.bf16.mxu1 %v15155_v24  ;;  %8807 = vperm.xlu1 %15284, %v8745_v43   ;;  %v8749_v6 = vrot.slane %v8670_v23, %v18246_v62  ;;  %v8672_v26 = vcombine.high %v8668_v2, %v8668_v2  ;;  %v22963_v43 = vld [vmem:[#allocation122_spill] sm:$0xff] }
 0x4ce   : > { %v5833_v11 = vmax.f32 %v5769_v12, 0.0  ;;  %15158 = vmatpush1.bf16.msra.mxu1 %v15157_v9  ;;  %v5895_v31 = vadd.f32 %v5831_v54, %v22959_v19  ;;  %8823 = vperm.xlu0 %15283, %v8761_v41   ;;  %v8769_v49 = vrot.slane %v8720_v25, %v18246_v62  ;;  %v8687_v5 = vrot.slane %v8673_v57, %v18385_v46  ;;  %v22965_v19 = vld [vmem:[#allocation123_spill] sm:$0xff]  ;;  %v22967_v25 = vld [vmem:[#allocation124_spill] sm:$0xff] }
 0x4cf   : > { %v5834_v59 = vmax.f32 %v5770_v27, 0.0  ;;  %v5679_v4 = vpop.f32.mrb[180].mxu0  ;;  %v5896_v0 = vadd.f32 %v5832_v48, %v22960_v20  ;;  %v8753_v24 = vrot.slane %v8672_v26, %v18246_v62  ;;  %v22964_v27 = vld [vmem:[#allocation118_spill] sm:$0xff]  ;;  %v22969_v26 = vld [vmem:[#allocation125_spill] sm:$0xff] }
 0x4d0   : > { %v5897_v30 = vadd.f32 %v5833_v11, %v22961_v22  ;;  %v5680_v36 = vadd.f32 %v5679_v4, %v18237_v15  ;;  %v5681_v10 = vpop.f32.mrb[181].mxu0  ;;  %v8689_v17 = vcombine.high %v8687_v5, %v8687_v5 }
 0x4d1   : > { %v5898_v50 = vadd.f32 %v5834_v59, %v22962_v63  ;;  %v5682_v13 = vadd.f32 %v5681_v10, %v18239_v8  ;;  %v5683_v39 = vpop.f32.mrb[182].mxu0  ;;  %15103 = vmatmul.mubr.msk.f32.vlgmr.msra.gmra.mrb[182].mxu1 %vm5912_vm6, %v18291_v45  ;;  %8811 = vperm.xlu1 %15284, %v8749_v6   ;;  %v22966_v59 = vld [vmem:[#allocation119_spill] sm:$0xff] }
 0x4d2   : > { %v15161_v28 = vpack.c.bf16 %v5897_v30, %v5895_v31  ;;  %v5771_v7 = vadd.f32 %v18261_v60, %v5680_v36  ;;  %v5684_v18 = vadd.f32 %v5683_v39, %v18241_v16  ;;  %v5685_v15 = vpop.f32.mrb[183].mxu0  ;;  %6832 = vmatprep.mubr.f32.mxu1 %v22625_v33  ;;  %8831 = vperm.xlu0 %15283, %v8769_v49  }
 0x4d3   : > { %v5772_v29 = vadd.f32 %v18266_v14, %v5682_v13  ;;  %v5686_v8 = vadd.f32 %v5685_v15, %v18243_v34  ;;  %v15159_v61 = vpack.c.bf16 %v5898_v50, %v5896_v0  ;;  %v8696_v34 = vrot.slane %v8680_v51, %v18385_v46 }
 0x4d4   : > { %v5835_v9 = vmax.f32 %v5771_v7, 0.0  ;;  %v5773_v3 = vadd.f32 %v18261_v60, %v5684_v18  ;;  %v8717_v20 = vrot.slane %v8689_v17, %v18385_v46 }
 0x4d5   : > { %v5836_v58 = vmax.f32 %v5772_v29, 0.0  ;;  %v5774_v16 = vadd.f32 %v18266_v14, %v5686_v8  ;;  %15160 = vmatprep.subr.bf16.mxu1 %v15159_v61  ;;  %8815 = vperm.xlu1 %15284, %v8753_v24   ;;  %v8757_v23 = vrot.slane %v8696_v34, %v18246_v62  ;;  %v8718_v36 = vcombine.high %v8696_v34, %v8696_v34  ;;  %v22968_v8 = vld [vmem:[#allocation120_spill] sm:$0xff] }
 0x4d6   : > { %v5837_v44 = vmax.f32 %v5773_v3, 0.0  ;;  %15162 = vmatpush1.bf16.msra.mxu1 %v15161_v28  ;;  %v5899_v48 = vadd.f32 %v5835_v9, %v22963_v43  ;;  %v8777_v63 = vrot.slane %v8717_v20, %v18246_v62  ;;  %v8721_v39 = vcombine.high %v8717_v20, %v8717_v20  ;;  %v22974_v20 = vld [vmem:[#allocation127_spill] sm:$0xff] }
 0x4d7   : > { %v5838_v54 = vmax.f32 %v5774_v16, 0.0  ;;  %v5689_v12 = vpop.f32.mrb[184].mxu0  ;;  %v5900_v31 = vadd.f32 %v5836_v58, %v22965_v19  ;;  %v8765_v41 = vrot.slane %v8718_v36, %v18246_v62  ;;  %v22970_v16 = vld [vmem:[#allocation121_spill] sm:$0xff] }
 0x4d8   : > { %v5901_v2 = vadd.f32 %v5837_v44, %v22964_v27  ;;  %v5690_v35 = vadd.f32 %v5689_v12, %v18254_v1  ;;  %v5691_v11 = vpop.f32.mrb[185].mxu0  ;;  %8839 = vperm.xlu0 %15283, %v8777_v63   ;;  %v8785_v7 = vrot.slane %v8721_v39, %v18246_v62 }
 0x4d9   : > { %v5902_v4 = vadd.f32 %v5838_v54, %v22966_v59  ;;  %v5692_v51 = vadd.f32 %v5691_v11, %v18256_v53  ;;  %v5693_v56 = vpop.f32.mrb[186].mxu0  ;;  %15104 = vmatmul.mubr.msk.f32.vlgmr.msra.gmra.mrb[184].mxu1 %vm5912_vm6, %v18291_v45  ;;  %8819 = vperm.xlu1 %15284, %v8757_v23  }
 0x4da   : > { %v15165_v0 = vpack.c.bf16 %v5901_v2, %v5899_v48  ;;  %v5775_v22 = vadd.f32 %v18261_v60, %v5690_v35  ;;  %v5694_v1 = vadd.f32 %v5693_v56, %v18258_v40  ;;  %v5695_v30 = vpop.f32.mrb[187].mxu0  ;;  %6903 = vmatprep.mubr.f32.mxu1 %v22625_v33 }
 0x4db   : > { %v5776_v10 = vadd.f32 %v18266_v14, %v5692_v51  ;;  %v5696_v6 = vadd.f32 %v5695_v30, %v18263_v47  ;;  %v15163_v53 = vpack.c.bf16 %v5902_v4, %v5900_v31  ;;  %v8703_v47 = vrot.slane %v8687_v5, %v18385_v46  ;;  %v22971_v31 = vld [vmem:[#allocation128_spill] sm:$0xff]  ;;  %v22972_v4 = vld [vmem:[#allocation126_spill] sm:$0xff] }
 0x4dc   : > { %v5839_v50 = vmax.f32 %v5775_v22, 0.0  ;;  %v5777_v13 = vadd.f32 %v18261_v60, %v5694_v1  ;;  %8847 = vperm.xlu0 %15283, %v8785_v7  }
 0x4dd   : > { %v5840_v57 = vmax.f32 %v5776_v10, 0.0  ;;  %v5778_v40 = vadd.f32 %v18266_v14, %v5696_v6  ;;  %15164 = vmatprep.subr.bf16.mxu1 %v15163_v53  ;;  %8827 = vperm.xlu1 %15284, %v8765_v41   ;;  %v8773_v49 = vrot.slane %v8703_v47, %v18246_v62  ;;  %v8719_v17 = vcombine.high %v8703_v47, %v8703_v47 }
 0x4de   : > { %v5841_v28 = vmax.f32 %v5777_v13, 0.0  ;;  %15166 = vmatpush1.bf16.msra.mxu1 %v15165_v0  ;;  %v5903_v29 = vadd.f32 %v5839_v50, %v22967_v25 }
 0x4df   : > { %v5842_v18 = vmax.f32 %v5778_v40, 0.0  ;;  %v5699_v15 = vpop.f32.mrb[188].mxu0  ;;  %v5904_v58 = vadd.f32 %v5840_v57, %v22969_v26  ;;  %v8781_v35 = vrot.slane %v8719_v17, %v18246_v62 }
 0x4e0   : > { %v5905_v61 = vadd.f32 %v5841_v28, %v22968_v8  ;;  %v5700_v9 = vadd.f32 %v5699_v15, %v18270_v42  ;;  %v5701_v3 = vpop.f32.mrb[189].mxu0 }
 0x4e1   : > { %v5906_v44 = vadd.f32 %v5842_v18, %v22970_v16  ;;  %v5702_v24 = vadd.f32 %v5701_v3, %v18273_v32  ;;  %v5703_v34 = vpop.f32.mrb[190].mxu0  ;;  %15105 = vmatmul.mubr.msk.f32.vlgmr.msra.gmra.mrb[186].mxu1 %vm5912_vm6, %v18291_v45  ;;  %8835 = vperm.xlu1 %15284, %v8773_v49  }
 0x4e2   : > { %v15169_v5 = vpack.c.bf16 %v5905_v61, %v5903_v29  ;;  %v5779_v54 = vadd.f32 %v18261_v60, %v5700_v9  ;;  %v5704_v42 = vadd.f32 %v5703_v34, %v18276_v52  ;;  %v5705_v12 = vpop.f32.mrb[191].mxu0  ;;  %6974 = vmatprep.mubr.f32.mxu1 %v22625_v33 }
 0x4e3   : > { %v5780_v43 = vadd.f32 %v18266_v14, %v5702_v24  ;;  %v5706_v48 = vadd.f32 %v5705_v12, %v18278_v21  ;;  %v15167_v27 = vpack.c.bf16 %v5906_v44, %v5904_v58  ;;  %v22973_v21 = vld [vmem:[#allocation129_spill] sm:$0xff] }
 0x4e4   : > { %v5843_v32 = vmax.f32 %v5779_v54, 0.0  ;;  %v5781_v2 = vadd.f32 %v18261_v60, %v5704_v42 }
 0x4e5   : > { %v5844_v11 = vmax.f32 %v5780_v43, 0.0  ;;  %v5782_v23 = vadd.f32 %v18266_v14, %v5706_v48  ;;  %15168 = vmatprep.subr.bf16.mxu1 %v15167_v27  ;;  %8843 = vperm.xlu1 %15284, %v8781_v35  }
 0x4e6   : > { %v5845_v52 = vmax.f32 %v5781_v2, 0.0  ;;  %15170 = vmatpush1.bf16.msra.mxu1 %v15169_v5  ;;  %v5907_v59 = vadd.f32 %v5843_v32, %v22971_v31 }
 0x4e7   : > { %v5846_v19 = vmax.f32 %v5782_v23, 0.0  ;;  %v5908_v56 = vadd.f32 %v5844_v11, %v22973_v21 }
 0x4e8   : > { %v5909_v51 = vadd.f32 %v5845_v52, %v22972_v4 }
 0x4e9   : > { %v5910_v0 = vadd.f32 %v5846_v19, %v22974_v20  ;;  %15106 = vmatmul.mubr.msk.f32.vlgmr.msra.gmra.mrb[188].mxu1 %vm5912_vm6, %v18291_v45 }
 0x4ea   : > { %v15173_v60 = vpack.c.bf16 %v5909_v51, %v5907_v59  ;;  %7045 = vmatprep.mubr.f32.mxu1 %v22625_v33 }
 0x4eb   : > { %v15171_v14 = vpack.c.bf16 %v5910_v0, %v5908_v56 }
 0x4ed   : > { %15172 = vmatprep.subr.bf16.mxu1 %v15171_v14 }
 0x4ee   : > { %15174 = vmatpush1.bf16.msra.mxu1 %v15173_v60 }
 0x4f1   : > { %15107 = vmatmul.mubr.msk.f32.vlgmr.msra.gmra.mrb[190].mxu1 %vm5912_vm6, %v18291_v45 }
 0x54a   : > { %v5982_v22 = vpop.f32.mrb[160].mxu1 }
 0x54b   : > { %v7052_v1 = vmul.f32 %v5982_v22, %v5982_v22  ;;  %v5984_v30 = vpop.f32.mrb[161].mxu1 }
 0x54c   : > { %v7053_v36 = vmul.f32 %v5984_v30, %v5984_v30  ;;  %7132 = vmatprep.subr.mxu1 %v5984_v30  ;;  %7196 = vmatprep.mubr.f32.mxu1 %v5984_v30 }
 0x54d   : > { %7133 = vmatpush1.xpose.msra.mxu1 %v5982_v22 }
 0x54e   : > { %v7084_v10 = vadd.f32 %v7053_v36, %v7052_v1 }
 0x550   : > { %7197 = vmatmul.mubr.f32.vlgmr.msra.gmra.mrb[192].mxu1 %v5982_v22  ;;  %7085 = vadd.xlane.f32.xlu0 %v7084_v10 }
 0x552   : > { %v6053_v6 = vpop.f32.mrb[162].mxu1 }
 0x553   : > { %v7054_v53 = vmul.f32 %v6053_v6, %v6053_v6  ;;  %v6055_v63 = vpop.f32.mrb[163].mxu1 }
 0x554   : > { %v7055_v50 = vmul.f32 %v6055_v63, %v6055_v63  ;;  %7202 = vmatprep.subr.mxu1 %v6055_v63  ;;  %7266 = vmatprep.mubr.f32.mxu1 %v6055_v63 }
 0x555   : > { %7203 = vmatpush1.xpose.msra.mxu1 %v6053_v6 }
 0x556   : > { %v7087_v13 = vadd.f32 %v7055_v50, %v7054_v53 }
 0x558   : > { %7267 = vmatmul.mubr.f32.vlgmr.msra.gmra.mrb[194].mxu1 %v6053_v6  ;;  %7088 = vadd.xlane.f32.xlu1 %v7087_v13 }
 0x55a   : > { %v6124_v45 = vpop.f32.mrb[164].mxu1 }
 0x55b   : > { %v7056_v39 = vmul.f32 %v6124_v45, %v6124_v45  ;;  %v6126_v41 = vpop.f32.mrb[165].mxu1 }
 0x55c   : > { %v7057_v57 = vmul.f32 %v6126_v41, %v6126_v41  ;;  %7272 = vmatprep.subr.mxu1 %v6126_v41  ;;  %7336 = vmatprep.mubr.f32.mxu1 %v6126_v41 }
 0x55d   : > { %7273 = vmatpush1.xpose.msra.mxu1 %v6124_v45 }
 0x55e   : > { %v7090_v40 = vadd.f32 %v7057_v57, %v7056_v39 }
 0x560   : > { %7337 = vmatmul.mubr.f32.vlgmr.msra.gmra.mrb[196].mxu1 %v6124_v45  ;;  %7091 = vadd.xlane.f32.xlu0 %v7090_v40 }
 0x562   : > { %v6195_v28 = vpop.f32.mrb[166].mxu1 }
 0x563   : > { %v7058_v7 = vmul.f32 %v6195_v28, %v6195_v28  ;;  %v6197_v47 = vpop.f32.mrb[167].mxu1 }
 0x564   : > { %v7059_v18 = vmul.f32 %v6197_v47, %v6197_v47  ;;  %7342 = vmatprep.subr.mxu1 %v6197_v47  ;;  %7406 = vmatprep.mubr.f32.mxu1 %v6197_v47 }
 0x565   : > { %7343 = vmatpush1.xpose.msra.mxu1 %v6195_v28 }
 0x566   : > { %v7093_v15 = vadd.f32 %v7059_v18, %v7058_v7 }
 0x568   : > { %7407 = vmatmul.mubr.f32.vlgmr.msra.gmra.mrb[198].mxu1 %v6195_v28  ;;  %7094 = vadd.xlane.f32.xlu1 %v7093_v15 }
 0x56a   : > { %v6266_v25 = vpop.f32.mrb[168].mxu1 }
 0x56b   : > { %v7060_v29 = vmul.f32 %v6266_v25, %v6266_v25  ;;  %v6268_v8 = vpop.f32.mrb[169].mxu1 }
 0x56c   : > { %v7061_v61 = vmul.f32 %v6268_v8, %v6268_v8  ;;  %7412 = vmatprep.subr.mxu1 %v6268_v8  ;;  %7476 = vmatprep.mubr.f32.mxu1 %v6268_v8  ;;  %v18537_v8 = vpop.permute.xlu1 %8791 }
 0x56d   : > { %7413 = vmatpush1.xpose.msra.mxu1 %v6266_v25 }
 0x56e   : > { %v7096_v9 = vadd.f32 %v7061_v61, %v7060_v29 }
 0x570   : > { %7477 = vmatmul.mubr.f32.vlgmr.msra.gmra.mrb[200].mxu1 %v6266_v25  ;;  %7097 = vadd.xlane.f32.xlu0 %v7096_v9  ;;  %v18539_v61 = vpop.permute.xlu1 %8795 }
 0x571   : > { %22975 = vst [vmem:[#allocation132_spill] sm:$0xff] %v18539_v61 }
 0x572   : > { %v6337_v3 = vpop.f32.mrb[170].mxu1 }
 0x573   : > { %v7062_v49 = vmul.f32 %v6337_v3, %v6337_v3  ;;  %v6339_v26 = vpop.f32.mrb[171].mxu1 }
 0x574   : > { %v7063_v58 = vmul.f32 %v6339_v26, %v6339_v26  ;;  %7482 = vmatprep.subr.mxu1 %v6339_v26  ;;  %7546 = vmatprep.mubr.f32.mxu1 %v6339_v26  ;;  %v18541_v9 = vpop.permute.xlu1 %8799  ;;  %v8788_v26 = vpop.permute.xlu0 %8787 }
 0x575   : > { %7483 = vmatpush1.xpose.msra.mxu1 %v6337_v3  ;;  %22976 = vst [vmem:[#allocation133_spill] sm:$0xff] %v18541_v9 }
 0x576   : > { %v7099_v16 = vadd.f32 %v7063_v58, %v7062_v49 }
 0x578   : > { %7547 = vmatmul.mubr.f32.vlgmr.msra.gmra.mrb[202].mxu1 %v6337_v3  ;;  %7100 = vadd.xlane.f32.xlu1 %v7099_v16  ;;  %v18543_v3 = vpop.permute.xlu1 %8803  ;;  %v18549_v16 = vpop.permute.xlu0 %8823 }
 0x579   : > { %22977 = vst [vmem:[#allocation2_spill] sm:$0xff] %v18543_v3  ;;  %22980 = vst [vmem:[#allocation8_spill] sm:$0xff] %v18549_v16 }
 0x57a   : > { %v6408_v44 = vpop.f32.mrb[172].mxu1 }
 0x57b   : > { %v7064_v24 = vmul.f32 %v6408_v44, %v6408_v44  ;;  %v6410_v34 = vpop.f32.mrb[173].mxu1 }
 0x57c   : > { %v7065_v5 = vmul.f32 %v6410_v34, %v6410_v34  ;;  %7552 = vmatprep.subr.mxu1 %v6410_v34  ;;  %7616 = vmatprep.mubr.f32.mxu1 %v6410_v34  ;;  %v18545_v49 = vpop.permute.xlu1 %8807 }
 0x57d   : > { %7553 = vmatpush1.xpose.msra.mxu1 %v6408_v44  ;;  %22978 = vst [vmem:[#allocation4_spill] sm:$0xff] %v18545_v49 }
 0x57e   : > { %v7102_v54 = vadd.f32 %v7065_v5, %v7064_v24  ;;  %v18553_v24 = vpop.permute.xlu0 %8831 }
 0x57f   : > { %22982 = vst [vmem:[#allocation9_spill] sm:$0xff] %v18553_v24 }
 0x580   : > { %7617 = vmatmul.mubr.f32.vlgmr.msra.gmra.mrb[204].mxu1 %v6408_v44  ;;  %7103 = vadd.xlane.f32.xlu0 %v7102_v54  ;;  %v18547_v58 = vpop.permute.xlu1 %8811 }
 0x581   : > { %22979 = vst [vmem:[#allocation3_spill] sm:$0xff] %v18547_v58 }
 0x582   : > { %v6479_v42 = vpop.f32.mrb[174].mxu1  ;;  %v18557_v5 = vpop.permute.xlu0 %8839 }
 0x583   : > { %v7066_v12 = vmul.f32 %v6479_v42, %v6479_v42  ;;  %v6481_v17 = vpop.f32.mrb[175].mxu1  ;;  %22984 = vst [vmem:[#allocation17_spill] sm:$0xff] %v18557_v5 }
 0x584   : > { %v7067_v43 = vmul.f32 %v6481_v17, %v6481_v17  ;;  %7622 = vmatprep.subr.mxu1 %v6481_v17  ;;  %7686 = vmatprep.mubr.f32.mxu1 %v6481_v17  ;;  %v18551_v44 = vpop.permute.xlu1 %8815 }
 0x585   : > { %7623 = vmatpush1.xpose.msra.mxu1 %v6479_v42  ;;  %22981 = vst [vmem:[#allocation5_spill] sm:$0xff] %v18551_v44 }
 0x586   : > { %v7105_v48 = vadd.f32 %v7067_v43, %v7066_v12 }
 0x588   : > { %7687 = vmatmul.mubr.f32.vlgmr.msra.gmra.mrb[206].mxu1 %v6479_v42  ;;  %7106 = vadd.xlane.f32.xlu1 %v7105_v48  ;;  %v18555_v34 = vpop.permute.xlu1 %8819  ;;  %v18561_v42 = vpop.permute.xlu0 %8847 }
 0x589   : > { %22983 = vst [vmem:[#allocation16_spill] sm:$0xff] %v18555_v34  ;;  %22986 = vst [vmem:[#allocation28_spill] sm:$0xff] %v18561_v42 }
 0x58c   : > { %v6550_v27 = vpop.f32.mrb[176].mxu1  ;;  %v18559_v54 = vpop.permute.xlu1 %8827 }
 0x58d   : > { %v7068_v32 = vmul.f32 %v6550_v27, %v6550_v27  ;;  %v6552_v2 = vpop.f32.mrb[177].mxu1  ;;  %22985 = vst [vmem:[#allocation20_spill] sm:$0xff] %v18559_v54 }
 0x58e   : > { %v7069_v35 = vmul.f32 %v6552_v2, %v6552_v2  ;;  %7692 = vmatprep.subr.mxu1 %v6552_v2  ;;  %7756 = vmatprep.mubr.f32.mxu1 %v6552_v2 }
 0x58f   : > { %7693 = vmatpush1.xpose.msra.mxu1 %v6550_v27 }
 0x590   : > { %v7108_v11 = vadd.f32 %v7069_v35, %v7068_v32  ;;  %v18563_v12 = vpop.permute.xlu1 %8835 }
 0x591   : > { %22987 = vst [vmem:[#allocation21_spill] sm:$0xff] %v18563_v12 }
 0x592   : > { %7757 = vmatmul.mubr.f32.vlgmr.msra.gmra.mrb[208].mxu1 %v6550_v27  ;;  %7109 = vadd.xlane.f32.xlu0 %v7108_v11 }
 0x594   : > { %v6621_v23 = vpop.f32.mrb[178].mxu1  ;;  %v18566_v48 = vpop.permute.xlu1 %8843 }
 0x595   : > { %v7070_v52 = vmul.f32 %v6621_v23, %v6621_v23  ;;  %v6623_v19 = vpop.f32.mrb[179].mxu1  ;;  %22988 = vst [vmem:[#allocation32_spill] sm:$0xff] %v18566_v48 }
 0x596   : > { %v7071_v31 = vmul.f32 %v6623_v19, %v6623_v19  ;;  %7762 = vmatprep.subr.mxu1 %v6623_v19  ;;  %7826 = vmatprep.mubr.f32.mxu1 %v6623_v19 }
 0x597   : > { %7763 = vmatpush1.xpose.msra.mxu1 %v6621_v23 }
 0x598   : > { %v7111_v59 = vadd.f32 %v7071_v31, %v7070_v52 }
 0x59a   : > { %7827 = vmatmul.mubr.f32.vlgmr.msra.gmra.mrb[210].mxu1 %v6621_v23  ;;  %7112 = vadd.xlane.f32.xlu1 %v7111_v59 }
 0x59c   : > { %v6692_v4 = vpop.f32.mrb[180].mxu1 }
 0x59d   : > { %v7072_v51 = vmul.f32 %v6692_v4, %v6692_v4  ;;  %v6694_v21 = vpop.f32.mrb[181].mxu1 }
 0x59e   : > { %v7073_v56 = vmul.f32 %v6694_v21, %v6694_v21  ;;  %7832 = vmatprep.subr.mxu1 %v6694_v21  ;;  %7896 = vmatprep.mubr.f32.mxu1 %v6694_v21 }
 0x59f   : > { %7833 = vmatpush1.xpose.msra.mxu1 %v6692_v4 }
 0x5a0   : > { %v7114_v20 = vadd.f32 %v7073_v56, %v7072_v51 }
 0x5a2   : > { %7897 = vmatmul.mubr.f32.vlgmr.msra.gmra.mrb[212].mxu1 %v6692_v4  ;;  %7115 = vadd.xlane.f32.xlu0 %v7114_v20 }
 0x5a4   : > { %v6763_v0 = vpop.f32.mrb[182].mxu1 }
 0x5a5   : > { %v7074_v60 = vmul.f32 %v6763_v0, %v6763_v0  ;;  %v6765_v14 = vpop.f32.mrb[183].mxu1 }
 0x5a6   : > { %v7075_v22 = vmul.f32 %v6765_v14, %v6765_v14  ;;  %7902 = vmatprep.subr.mxu1 %v6765_v14  ;;  %7966 = vmatprep.mubr.f32.mxu1 %v6765_v14 }
 0x5a7   : > { %7903 = vmatpush1.xpose.msra.mxu1 %v6763_v0 }
 0x5a8   : > { %v7117_v1 = vadd.f32 %v7075_v22, %v7074_v60 }
 0x5aa   : > { %7967 = vmatmul.mubr.f32.vlgmr.msra.gmra.mrb[214].mxu1 %v6763_v0  ;;  %7118 = vadd.xlane.f32.xlu1 %v7117_v1 }
 0x5ac   : > { %v6834_v30 = vpop.f32.mrb[184].mxu1 }
 0x5ad   : > { %v7076_v36 = vmul.f32 %v6834_v30, %v6834_v30  ;;  %v6836_v10 = vpop.f32.mrb[185].mxu1 }
 0x5ae   : > { %v7077_v6 = vmul.f32 %v6836_v10, %v6836_v10  ;;  %7972 = vmatprep.subr.mxu1 %v6836_v10  ;;  %8036 = vmatprep.mubr.f32.mxu1 %v6836_v10 }
 0x5af   : > { %7973 = vmatpush1.xpose.msra.mxu1 %v6834_v30 }
 0x5b0   : > { %v7120_v53 = vadd.f32 %v7077_v6, %v7076_v36 }
 0x5b2   : > { %8037 = vmatmul.mubr.f32.vlgmr.msra.gmra.mrb[216].mxu1 %v6834_v30  ;;  %7121 = vadd.xlane.f32.xlu0 %v7120_v53 }
 0x5b4   : > { %v6905_v63 = vpop.f32.mrb[186].mxu1 }
 0x5b5   : > { %v7078_v50 = vmul.f32 %v6905_v63, %v6905_v63  ;;  %v6907_v13 = vpop.f32.mrb[187].mxu1 }
 0x5b6   : > { %v7079_v45 = vmul.f32 %v6907_v13, %v6907_v13  ;;  %8042 = vmatprep.subr.mxu1 %v6907_v13  ;;  %8106 = vmatprep.mubr.f32.mxu1 %v6907_v13 }
 0x5b7   : > { %8043 = vmatpush1.xpose.msra.mxu1 %v6905_v63 }
 0x5b8   : > { %v7123_v39 = vadd.f32 %v7079_v45, %v7078_v50  ;;  %v18576_v50 = vsub.s32 3, %v22910_v38 }
 0x5ba   : > { %8107 = vmatmul.mubr.f32.vlgmr.msra.gmra.mrb[218].mxu1 %v6905_v63  ;;  %7124 = vadd.xlane.f32.xlu1 %v7123_v39  ;;  %v18573_v63 = vsub.s32 2, %v22910_v38 }
 0x5bc   : > { %v6976_v41 = vpop.f32.mrb[188].mxu1 }
 0x5bd   : > { %v7080_v57 = vmul.f32 %v6976_v41, %v6976_v41  ;;  %v6978_v40 = vpop.f32.mrb[189].mxu1 }
 0x5be   : > { %v7081_v28 = vmul.f32 %v6978_v40, %v6978_v40  ;;  %8112 = vmatprep.subr.mxu1 %v6978_v40  ;;  %8176 = vmatprep.mubr.f32.mxu1 %v6978_v40  ;;  %v18583_v40 = vsub.s32 4, %v22910_v38 }
 0x5bf   : > { %8113 = vmatpush1.xpose.msra.mxu1 %v6976_v41 }
 0x5c0   : > { %v7126_v7 = vadd.f32 %v7081_v28, %v7080_v57 }
 0x5c2   : > { %8177 = vmatmul.mubr.f32.vlgmr.msra.gmra.mrb[220].mxu1 %v6976_v41  ;;  %7127 = vadd.xlane.f32.xlu0 %v7126_v7  ;;  %v18586_v7 = vsub.s32 5, %v22910_v38 }
 0x5c4   : > { %v7047_v47 = vpop.f32.mrb[190].mxu1 }
 0x5c5   : > { %v7082_v18 = vmul.f32 %v7047_v47, %v7047_v47  ;;  %v7049_v15 = vpop.f32.mrb[191].mxu1 }
 0x5c6   : > { %v7083_v25 = vmul.f32 %v7049_v15, %v7049_v15  ;;  %8182 = vmatprep.subr.mxu1 %v7049_v15  ;;  %8246 = vmatprep.mubr.f32.mxu1 %v7049_v15 }
 0x5c7   : > { %8183 = vmatpush1.xpose.msra.mxu1 %v7047_v47 }
 0x5c8   : > { %v7129_v29 = vadd.f32 %v7083_v25, %v7082_v18 }
 0x5ca   : > { %8247 = vmatmul.mubr.f32.vlgmr.msra.gmra.mrb[222].mxu1 %v7047_v47  ;;  %7130 = vadd.xlane.f32.xlu1 %v7129_v29 }
 0x5dd   : > { %v7086_v17 = vpop.xlane.xlu0 %7085 }
 0x5de   : > { %v8271_v43 = vrot.slane %v7086_v17, %v16687_v55 }
 0x5e0   : > { %v8444_v32 = vadd.f32 %v8271_v43, %v7086_v17 }
 0x5e5   : > { %v7089_v11 = vpop.xlane.xlu1 %7088 }
 0x5e6   : > { %v8275_v19 = vrot.slane %v7089_v11, %v16687_v55 }
 0x5e8   : > { %v8445_v59 = vadd.f32 %v8275_v19, %v7089_v11 }
 0x5ed   : > { %v7092_v20 = vpop.xlane.xlu0 %7091 }
 0x5ee   : > { %v8279_v14 = vrot.slane %v7092_v20, %v16687_v55 }
 0x5f0   : > { %v8446_v53 = vadd.f32 %v8279_v14, %v7092_v20 }
 0x5f5   : > { %v7095_v11 = vpop.xlane.xlu1 %7094 }
 0x623   : > { %v7198_v27 = vpop.f32.mrb[192].mxu1 }
 0x624   : > { %v8460_v2 = vmul.f32 2.0, %v7198_v27  ;;  %v7200_v35 = vpop.f32.mrb[193].mxu1  ;;  %v18594_v27 = vsub.s32 6, %v22910_v38 }
 0x626   : > { %v8476_v23 = vsub.f32 %v8444_v32, %v8460_v2  ;;  %v18599_v2 = vsub.s32 7, %v22910_v38 }
 0x628   : > { %v8492_v52 = vmax.f32 %v8476_v23, 0.0 }
 0x62a   : > { %15735 = vrsqrt.f32 %v8492_v52  ;;  %vm8510_vm7 = vcmp.eq.f32.partialorder %v8492_v52, inf  ;;  %v8513_v30 = vand.u32 2147483648, %v8492_v52  ;;  %vm8512_vm8 = vcmp.eq.f32.partialorder %v8492_v52, 0.0 }
 0x62b   : > { %v7268_v31 = vpop.f32.mrb[194].mxu1 }
 0x62c   : > { %v8461_v4 = vmul.f32 2.0, %v7268_v31  ;;  %v7270_v51 = vpop.f32.mrb[195].mxu1 }
 0x62e   : > { %v8477_v21 = vsub.f32 %v8445_v59, %v8461_v4  ;;  %v8283_v59 = vrot.slane %v7095_v11, %v16687_v55 }
 0x630   : > { %v8493_v56 = vmax.f32 %v8477_v21, 0.0 }
 0x632   : > { %15737 = vrsqrt.f32 %v8493_v56  ;;  %vm8517_vm9 = vcmp.eq.f32.partialorder %v8493_v56, inf  ;;  %v8520_v25 = vand.u32 2147483648, %v8493_v56  ;;  %vm8519_vm10 = vcmp.eq.f32.partialorder %v8493_v56, 0.0 }
 0x633   : > { %v7338_v0 = vpop.f32.mrb[196].mxu1 }
 0x634   : > { %v15736_v60 = vpop.eup %15735  ;;  %v7340_v22 = vpop.f32.mrb[197].mxu1  ;;  %v8462_v36 = vmul.f32 2.0, %v7338_v0 }
 0x635   : > { %v8509_v1 = vmul.f32 %v15736_v60, %v8492_v52 }
 0x636   : > { %v8478_v39 = vsub.f32 %v8446_v53, %v8462_v36 }
 0x637   : > { %v8511_v10 = vsel %vm8510_vm7, %v8492_v52, %v8509_v1 }
 0x638   : > { %v18570_v6 = vsel %vm8512_vm8, %v8513_v30, %v8511_v10  ;;  %v8494_v29 = vmax.f32 %v8478_v39, 0.0 }
 0x639   : > { %v8909_v13 = vrot.slane %v18570_v6, %v18252_v37  ;;  %v8902_v45 = vrot.slane %v18570_v6, %v18246_v62  ;;  %v8923_v18 = vrot.slane %v18570_v6, %v18576_v50  ;;  %v8916_v15 = vrot.slane %v18570_v6, %v18573_v63 }
 0x63a   : > { %v8850_v17 = vmul.f32 %v8788_v26, %v18570_v6  ;;  %v8937_v26 = vrot.slane %v18570_v6, %v18586_v7  ;;  %v8930_v23 = vrot.slane %v18570_v6, %v18583_v40  ;;  %15739 = vrsqrt.f32 %v8494_v29 }
 0x63b   : > { %v7408_v41 = vpop.f32.mrb[198].mxu1  ;;  %8911 = vbcast.lane.b32.xlu0 %v8909_v13, 256  ;;  %8904 = vbcast.lane.b32.xlu1 %v8902_v45, 256  ;;  %v8951_v4 = vrot.slane %v18570_v6, %v18599_v2  ;;  %v8944_v51 = vrot.slane %v18570_v6, %v18594_v27  ;;  %v7098_v13 = vpop.xlane.xlu0 %7097  ;;  %vm8524_vm12 = vcmp.eq.f32.partialorder %v8494_v29, inf  ;;  %vm8526_vm13 = vcmp.eq.f32.partialorder %v8494_v29, 0.0 }
 0x63c   : > { %v15738_v57 = vpop.eup %15737  ;;  %v7410_v28 = vpop.f32.mrb[199].mxu1  ;;  %v8867_v52 = vsel %vm8866_vm11, %v8850_v17, 0.0  ;;  %v8463_v21 = vmul.f32 2.0, %v7408_v41 }
 0x63d   : > { %v8516_v47 = vmul.f32 %v15738_v57, %v8493_v56  ;;  %v8527_v28 = vand.u32 2147483648, %v8494_v29 }
 0x63f   : > { %v8518_v43 = vsel %vm8517_vm9, %v8493_v56, %v8516_v47  ;;  %8925 = vbcast.lane.b32.xlu0 %v8923_v18, 256  ;;  %8918 = vbcast.lane.b32.xlu1 %v8916_v15, 256  ;;  %v8447_v56 = vadd.f32 %v8283_v59, %v7095_v11  ;;  %v8287_v47 = vrot.slane %v7098_v13, %v16687_v55 }
 0x640   : > { %v18596_v32 = vsel %vm8519_vm10, %v8520_v25, %v8518_v43 }
 0x641   : > { %v8851_v35 = vmul.f32 %v18537_v8, %v18596_v32  ;;  %v8965_v20 = vrot.slane %v18596_v32, %v18252_v37  ;;  %v8958_v0 = vrot.slane %v18596_v32, %v18246_v62  ;;  %v8479_v60 = vsub.f32 %v8447_v56, %v8463_v21 }
 0x642   : > { %v8979_v30 = vrot.slane %v18596_v32, %v18576_v50  ;;  %v8972_v36 = vrot.slane %v18596_v32, %v18573_v63  ;;  %v8993_v45 = vrot.slane %v18596_v32, %v18586_v7  ;;  %v8986_v39 = vrot.slane %v18596_v32, %v18583_v40 }
 0x643   : > { %v8868_v19 = vsel %vm8866_vm11, %v8851_v35, 0.0  ;;  %v7478_v31 = vpop.f32.mrb[200].mxu1  ;;  %8939 = vbcast.lane.b32.xlu0 %v8937_v26, 256  ;;  %8932 = vbcast.lane.b32.xlu1 %v8930_v23, 256  ;;  %v8495_v10 = vmax.f32 %v8479_v60, 0.0  ;;  %v9007_v15 = vrot.slane %v18596_v32, %v18599_v2  ;;  %v9000_v25 = vrot.slane %v18596_v32, %v18594_v27 }
 0x644   : > { %v18609_v38 = vadd.f32 %v8868_v19, %v8867_v52  ;;  %v7480_v8 = vpop.f32.mrb[201].mxu1  ;;  %v15740_v22 = vpop.eup %15739  ;;  %v8464_v43 = vmul.f32 2.0, %v7478_v31  ;;  %v8448_v35 = vadd.f32 %v8287_v47, %v7098_v13 }
 0x645   : > { %v8523_v53 = vmul.f32 %v15740_v22, %v8494_v29  ;;  %15741 = vrsqrt.f32 %v8495_v10  ;;  %vm8531_vm14 = vcmp.eq.f32.partialorder %v8495_v10, inf  ;;  %vm8533_vm15 = vcmp.eq.f32.partialorder %v8495_v10, 0.0 }
 0x646   : > { %22989 = vst [vmem:[#allocation29_spill] sm:$0xff] %v18609_v38  ;;  %v8480_v23 = vsub.f32 %v8448_v35, %v8464_v43  ;;  %v7104_v35 = vpop.xlane.xlu0 %7103 }
 0x647   : > { %8953 = vbcast.lane.b32.xlu0 %v8951_v4, 256  ;;  %8946 = vbcast.lane.b32.xlu1 %v8944_v51, 256  ;;  %v8525_v41 = vsel %vm8524_vm12, %v8494_v29, %v8523_v53  ;;  %v7101_v51 = vpop.xlane.xlu1 %7100 }
 0x648   : > { %v18635_v17 = vsel %vm8526_vm13, %v8527_v28, %v8525_v41  ;;  %v8496_v8 = vmax.f32 %v8480_v23, 0.0  ;;  %v8291_v60 = vrot.slane %v7101_v51, %v16687_v55 }
 0x649   : > { %v9021_v11 = vrot.slane %v18635_v17, %v18252_v37  ;;  %v9014_v26 = vrot.slane %v18635_v17, %v18246_v62  ;;  %v9035_v59 = vrot.slane %v18635_v17, %v18576_v50  ;;  %v9028_v31 = vrot.slane %v18635_v17, %v18573_v63 }
 0x64a   : > { %v9049_v21 = vrot.slane %v18635_v17, %v18586_v7  ;;  %v9042_v56 = vrot.slane %v18635_v17, %v18583_v40  ;;  %15743 = vrsqrt.f32 %v8496_v8  ;;  %vm8538_vm0 = vcmp.eq.f32.partialorder %v8496_v8, inf }
 0x64b   : > { %v7548_v14 = vpop.f32.mrb[202].mxu1  ;;  %8967 = vbcast.lane.b32.xlu0 %v8965_v20, 256  ;;  %8960 = vbcast.lane.b32.xlu1 %v8958_v0, 256  ;;  %v8534_v0 = vand.u32 2147483648, %v8495_v10  ;;  %vm8540_vm1 = vcmp.eq.f32.partialorder %v8496_v8, 0.0 }
 0x64c   : > { %v7550_v1 = vpop.f32.mrb[203].mxu1  ;;  %v8465_v53 = vmul.f32 2.0, %v7548_v14 }
 0x64d   : > { %v9063_v1 = vrot.slane %v18635_v17, %v18599_v2 }
 0x64f   : > { %8981 = vbcast.lane.b32.xlu0 %v8979_v30, 256  ;;  %8974 = vbcast.lane.b32.xlu1 %v8972_v36, 256  ;;  %v15742_v52 = vpop.eup %15741  ;;  %v9056_v30 = vrot.slane %v18635_v17, %v18594_v27 }
 0x650   : > { %v8530_v4 = vmul.f32 %v15742_v52, %v8495_v10  ;;  %v8541_v52 = vand.u32 2147483648, %v8496_v8 }
 0x652   : > { %v8532_v20 = vsel %vm8531_vm14, %v8495_v10, %v8530_v4 }
 0x653   : > { %v18628_v57 = vpop.f32.mrb[204].mxu1  ;;  %8995 = vbcast.lane.b32.xlu0 %v8993_v45, 256  ;;  %8988 = vbcast.lane.b32.xlu1 %v8986_v39, 256  ;;  %v18658_v36 = vsel %vm8533_vm15, %v8534_v0, %v8532_v20  ;;  %v8449_v45 = vadd.f32 %v8291_v60, %v7101_v51 }
 0x654   : > { %v7620_v18 = vpop.f32.mrb[205].mxu1  ;;  %v9077_v39 = vrot.slane %v18658_v36, %v18252_v37  ;;  %v9070_v10 = vrot.slane %v18658_v36, %v18246_v62  ;;  %v15744_v28 = vpop.eup %15743  ;;  %v9084_v14 = vrot.slane %v18658_v36, %v18573_v63  ;;  %v9112_v4 = vrot.slane %v18658_v36, %v18594_v27 }
 0x655   : > { %v8481_v41 = vsub.f32 %v8449_v45, %v8465_v53  ;;  %v9091_v18 = vrot.slane %v18658_v36, %v18576_v50  ;;  %v8537_v43 = vmul.f32 %v15744_v28, %v8496_v8 }
 0x657   : > { %9009 = vbcast.lane.b32.xlu0 %v9007_v15, 256  ;;  %9002 = vbcast.lane.b32.xlu1 %v9000_v25, 256  ;;  %v8497_v15 = vmax.f32 %v8481_v41, 0.0  ;;  %v8539_v23 = vsel %vm8538_vm0, %v8496_v8, %v8537_v43 }
 0x658   : > { %v18681_v51 = vsel %vm8540_vm1, %v8541_v52, %v8539_v23 }
 0x659   : > { %15745 = vrsqrt.f32 %v8497_v15  ;;  %22990 = vst [vmem:[#allocation41_spill] sm:$0xff] %v18681_v51  ;;  %v9133_v0 = vrot.slane %v18681_v51, %v18252_v37  ;;  %v9126_v8 = vrot.slane %v18681_v51, %v18246_v62  ;;  %v9147_v53 = vrot.slane %v18681_v51, %v18576_v50 }
 0x65a   : > { %v9161_v41 = vrot.slane %v18681_v51, %v18586_v7  ;;  %v9154_v28 = vrot.slane %v18681_v51, %v18583_v40  ;;  %vm8545_vm2 = vcmp.eq.f32.partialorder %v8497_v15, inf  ;;  %vm8547_vm3 = vcmp.eq.f32.partialorder %v8497_v15, 0.0 }
 0x65b   : > { %v18641_v29 = vpop.f32.mrb[206].mxu1  ;;  %9023 = vbcast.lane.b32.xlu0 %v9021_v11, 256  ;;  %9016 = vbcast.lane.b32.xlu1 %v9014_v26, 256  ;;  %v9105_v11 = vrot.slane %v18658_v36, %v18586_v7  ;;  %v9098_v26 = vrot.slane %v18658_v36, %v18583_v40 }
 0x65c   : > { %v7690_v19 = vpop.f32.mrb[207].mxu1  ;;  %v8467_v23 = vmul.f32 2.0, %v18641_v29 }
 0x65d   : > { %v8295_v19 = vrot.slane %v7104_v35, %v16687_v55 }
 0x65f   : > { %9037 = vbcast.lane.b32.xlu0 %v9035_v59, 256  ;;  %9030 = vbcast.lane.b32.xlu1 %v9028_v31, 256  ;;  %v9119_v31 = vrot.slane %v18658_v36, %v18599_v2  ;;  %v8450_v20 = vadd.f32 %v8295_v19, %v7104_v35  ;;  %v9175_v35 = vrot.slane %v18681_v51, %v18599_v2 }
 0x663   : > { %9051 = vbcast.lane.b32.xlu0 %v9049_v21, 256  ;;  %9044 = vbcast.lane.b32.xlu1 %v9042_v56, 256  ;;  %v8466_v21 = vmul.f32 2.0, %v18628_v57  ;;  %v9140_v57 = vrot.slane %v18681_v51, %v18573_v63 }
 0x665   : > { %v18652_v22 = vpop.f32.mrb[208].mxu1  ;;  %v8482_v60 = vsub.f32 %v8450_v20, %v8466_v21 }
 0x666   : > { %v7760_v13 = vpop.f32.mrb[209].mxu1 }
 0x667   : > { %9065 = vbcast.lane.b32.xlu0 %v9063_v1, 256  ;;  %9058 = vbcast.lane.b32.xlu1 %v9056_v30, 256  ;;  %v15746_v1 = vpop.eup %15745  ;;  %v8498_v13 = vmax.f32 %v8482_v60, 0.0 }
 0x669   : > { %15747 = vrsqrt.f32 %v8498_v13  ;;  %vm8552_vm4 = vcmp.eq.f32.partialorder %v8498_v13, inf  ;;  %vm8554_vm6 = vcmp.eq.f32.partialorder %v8498_v13, 0.0 }
 0x66b   : > { %9079 = vbcast.lane.b32.xlu0 %v9077_v39, 256  ;;  %9072 = vbcast.lane.b32.xlu1 %v9070_v10, 256  ;;  %v8544_v39 = vmul.f32 %v15746_v1, %v8497_v15  ;;  %v7107_v10 = vpop.xlane.xlu1 %7106  ;;  %v7110_v1 = vpop.xlane.xlu0 %7109 }
 0x66d   : > { %v18664_v47 = vpop.f32.mrb[210].mxu1 }
 0x66e   : > { %v7830_v25 = vpop.f32.mrb[211].mxu1 }
 0x66f   : > { %9093 = vbcast.lane.b32.xlu0 %v9091_v18, 256  ;;  %9086 = vbcast.lane.b32.xlu1 %v9084_v14, 256  ;;  %v8546_v18 = vsel %vm8545_vm2, %v8497_v15, %v8544_v39  ;;  %v8548_v14 = vand.u32 2147483648, %v8497_v15  ;;  %v8299_v25 = vrot.slane %v7107_v10, %v16687_v55  ;;  %v8555_v39 = vand.u32 2147483648, %v8498_v13 }
 0x671   : > { %v8451_v19 = vadd.f32 %v8299_v25, %v7107_v10  ;;  %v8303_v10 = vrot.slane %v7110_v1, %v16687_v55  ;;  %v8468_v25 = vmul.f32 2.0, %v18652_v22 }
 0x673   : > { %9107 = vbcast.lane.b32.xlu0 %v9105_v11, 256  ;;  %9100 = vbcast.lane.b32.xlu1 %v9098_v26, 256  ;;  %v9168_v11 = vrot.slane %v18681_v51, %v18594_v27  ;;  %v18705_v26 = vsel %vm8547_vm3, %v8548_v14, %v8546_v18  ;;  %v15748_v21 = vpop.eup %15747 }
 0x674   : > { %22991 = vst [vmem:[#allocation33_spill] sm:$0xff] %v18705_v26  ;;  %v9182_v15 = vrot.slane %v18705_v26, %v18246_v62  ;;  %v9203_v20 = vrot.slane %v18705_v26, %v18576_v50  ;;  %v9196_v29 = vrot.slane %v18705_v26, %v18573_v63  ;;  %v8551_v60 = vmul.f32 %v15748_v21, %v8498_v13 }
 0x675   : > { %v18675_v59 = vpop.f32.mrb[212].mxu1  ;;  %v9224_v18 = vrot.slane %v18705_v26, %v18594_v27 }
 0x676   : > { %v7900_v56 = vpop.f32.mrb[213].mxu1  ;;  %v8470_v33 = vmul.f32 2.0, %v18675_v59 }
 0x677   : > { %9121 = vbcast.lane.b32.xlu0 %v9119_v31, 256  ;;  %9114 = vbcast.lane.b32.xlu1 %v9112_v4, 256  ;;  %v9189_v31 = vrot.slane %v18705_v26, %v18252_v37  ;;  %v8483_v4 = vsub.f32 %v8451_v19, %v8467_v23 }
 0x67b   : > { %9135 = vbcast.lane.b32.xlu0 %v9133_v0, 256  ;;  %9128 = vbcast.lane.b32.xlu1 %v9126_v8, 256  ;;  %v8499_v0 = vmax.f32 %v8483_v4, 0.0 }
 0x67d   : > { %v18688_v30 = vpop.f32.mrb[214].mxu1  ;;  %15749 = vrsqrt.f32 %v8499_v0  ;;  %vm8559_vm7 = vcmp.eq.f32.partialorder %v8499_v0, inf  ;;  %vm8561_vm8 = vcmp.eq.f32.partialorder %v8499_v0, 0.0 }
 0x67e   : > { %v7970_v45 = vpop.f32.mrb[215].mxu1 }
 0x67f   : > { %9149 = vbcast.lane.b32.xlu0 %v9147_v53, 256  ;;  %9142 = vbcast.lane.b32.xlu1 %v9140_v57, 256  ;;  %v9217_v53 = vrot.slane %v18705_v26, %v18586_v7  ;;  %v9210_v57 = vrot.slane %v18705_v26, %v18583_v40  ;;  %v8553_v45 = vsel %vm8552_vm4, %v8498_v13, %v8551_v60 }
 0x680   : > { %v18729_v14 = vsel %vm8554_vm6, %v8555_v39, %v8553_v45  ;;  %v8562_v39 = vand.u32 2147483648, %v8499_v0 }
 0x681   : > { %22992 = vst [vmem:[#allocation44_spill] sm:$0xff] %v18729_v14  ;;  %v9245_v23 = vrot.slane %v18729_v14, %v18252_v37  ;;  %v9238_v13 = vrot.slane %v18729_v14, %v18246_v62  ;;  %v9259_v22 = vrot.slane %v18729_v14, %v18576_v50  ;;  %v9252_v4 = vrot.slane %v18729_v14, %v18573_v63 }
 0x683   : > { %9163 = vbcast.lane.b32.xlu0 %v9161_v41, 256  ;;  %9156 = vbcast.lane.b32.xlu1 %v9154_v28, 256  ;;  %v9231_v28 = vrot.slane %v18705_v26, %v18599_v2 }
 0x685   : > { %v18699_v43 = vpop.f32.mrb[216].mxu1 }
 0x686   : > { %v8040_v52 = vpop.f32.mrb[217].mxu1 }
 0x687   : > { %9177 = vbcast.lane.b32.xlu0 %v9175_v35, 256  ;;  %9170 = vbcast.lane.b32.xlu1 %v9168_v11, 256  ;;  %v8452_v11 = vadd.f32 %v8303_v10, %v7110_v1  ;;  %v15750_v19 = vpop.eup %15749  ;;  %v9273_v1 = vrot.slane %v18729_v14, %v18586_v7 }
 0x689   : > { %v8484_v52 = vsub.f32 %v8452_v11, %v8468_v25  ;;  %v9280_v25 = vrot.slane %v18729_v14, %v18594_v27 }
 0x68b   : > { %9191 = vbcast.lane.b32.xlu0 %v9189_v31, 256  ;;  %9184 = vbcast.lane.b32.xlu1 %v9182_v15, 256  ;;  %v7113_v31 = vpop.xlane.xlu1 %7112  ;;  %v8500_v21 = vmax.f32 %v8484_v52, 0.0 }
 0x68d   : > { %v18712_v56 = vpop.f32.mrb[218].mxu1  ;;  %15751 = vrsqrt.f32 %v8500_v21  ;;  %vm8566_vm9 = vcmp.eq.f32.partialorder %v8500_v21, inf  ;;  %vm8568_vm10 = vcmp.eq.f32.partialorder %v8500_v21, 0.0 }
 0x68e   : > { %v8110_v8 = vpop.f32.mrb[219].mxu1  ;;  %v8473_v61 = vmul.f32 2.0, %v18712_v56 }
 0x68f   : > { %9205 = vbcast.lane.b32.xlu0 %v9203_v20, 256  ;;  %9198 = vbcast.lane.b32.xlu1 %v9196_v29, 256  ;;  %v8558_v29 = vmul.f32 %v15750_v19, %v8499_v0  ;;  %v7116_v8 = vpop.xlane.xlu0 %7115  ;;  %v18742_v60 = vpop.xlane.xlu1 %7118 }
 0x691   : > { %v8560_v45 = vsel %vm8559_vm7, %v8499_v0, %v8558_v29 }
 0x693   : > { %9219 = vbcast.lane.b32.xlu0 %v9217_v53, 256  ;;  %9212 = vbcast.lane.b32.xlu1 %v9210_v57, 256  ;;  %v9266_v53 = vrot.slane %v18729_v14, %v18583_v40  ;;  %v8307_v57 = vrot.slane %v7113_v31, %v16687_v55  ;;  %v18749_v10 = vpop.xlane.xlu0 %7121 }
 0x695   : > { %v18723_v41 = vpop.f32.mrb[220].mxu1  ;;  %v8453_v11 = vadd.f32 %v8307_v57, %v7113_v31 }
 0x696   : > { %v8180_v35 = vpop.f32.mrb[221].mxu1 }
 0x697   : > { %9233 = vbcast.lane.b32.xlu0 %v9231_v28, 256  ;;  %9226 = vbcast.lane.b32.xlu1 %v9224_v18, 256  ;;  %v18751_v28 = vpop.xlane.xlu1 %7124  ;;  %v9287_v18 = vrot.slane %v18729_v14, %v18599_v2  ;;  %v18757_v35 = vsel %vm8561_vm8, %v8562_v39, %v8560_v45 }
 0x698   : > { %22993 = vst [vmem:[#allocation40_spill] sm:$0xff] %v18757_v35  ;;  %v9301_v52 = vrot.slane %v18757_v35, %v18252_v37  ;;  %v9294_v19 = vrot.slane %v18757_v35, %v18246_v62  ;;  %v9308_v29 = vrot.slane %v18757_v35, %v18573_v63  ;;  %v9329_v39 = vrot.slane %v18757_v35, %v18586_v7 }
 0x69b   : > { %9247 = vbcast.lane.b32.xlu0 %v9245_v23, 256  ;;  %9240 = vbcast.lane.b32.xlu1 %v9238_v13, 256  ;;  %v8469_v23 = vmul.f32 2.0, %v18664_v47  ;;  %v18760_v13 = vpop.xlane.xlu0 %7127  ;;  %v18762_v0 = vpop.xlane.xlu1 %7130  ;;  %v9315_v47 = vrot.slane %v18757_v35, %v18576_v50 }
 0x69d   : > { %v18736_v15 = vpop.f32.mrb[222].mxu1 }
 0x69e   : > { %v8250_v20 = vpop.f32.mrb[223].mxu1 }
 0x69f   : > { %9261 = vbcast.lane.b32.xlu0 %v9259_v22, 256  ;;  %9254 = vbcast.lane.b32.xlu1 %v9252_v4, 256  ;;  %v8485_v22 = vsub.f32 %v8453_v11, %v8469_v23  ;;  %v15752_v4 = vpop.eup %15751  ;;  %v8569_v23 = vand.u32 2147483648, %v8500_v21 }
 0x6a3   : > { %9275 = vbcast.lane.b32.xlu0 %v9273_v1, 256  ;;  %9268 = vbcast.lane.b32.xlu1 %v9266_v53, 256  ;;  %v8501_v1 = vmax.f32 %v8485_v22, 0.0  ;;  %v8565_v53 = vmul.f32 %v15752_v4, %v8500_v21  ;;  %v9343_v22 = vrot.slane %v18757_v35, %v18599_v2  ;;  %v9336_v4 = vrot.slane %v18757_v35, %v18594_v27 }
 0x6a5   : > { %15753 = vrsqrt.f32 %v8501_v1  ;;  %v8567_v11 = vsel %vm8566_vm9, %v8500_v21, %v8565_v53  ;;  %vm8573_vm12 = vcmp.eq.f32.partialorder %v8501_v1, inf  ;;  %v8576_v5 = vand.u32 2147483648, %v8501_v1 }
 0x6a6   : > { %vm8575_vm13 = vcmp.eq.f32.partialorder %v8501_v1, 0.0 }
 0x6a7   : > { %9289 = vbcast.lane.b32.xlu0 %v9287_v18, 256  ;;  %9282 = vbcast.lane.b32.xlu1 %v9280_v25, 256  ;;  %v9322_v18 = vrot.slane %v18757_v35, %v18583_v40  ;;  %v8311_v25 = vrot.slane %v7116_v8, %v16687_v55 }
 0x6ab   : > { %9303 = vbcast.lane.b32.xlu0 %v9301_v52, 256  ;;  %9296 = vbcast.lane.b32.xlu1 %v9294_v19, 256 }
 0x6ad   : > { %v18768_v20 = vpop.permute.xlu1 %8904  ;;  %v18770_v31 = vpop.permute.xlu0 %8911 }
 0x6af   : > { %9317 = vbcast.lane.b32.xlu0 %v9315_v47, 256  ;;  %9310 = vbcast.lane.b32.xlu1 %v9308_v29, 256  ;;  %v18793_v47 = vsel %vm8568_vm10, %v8569_v23, %v8567_v11  ;;  %v8454_v29 = vadd.f32 %v8311_v25, %v7116_v8  ;;  %v15754_v11 = vpop.eup %15753 }
 0x6b0   : > { %22994 = vst [vmem:[#allocation52_spill] sm:$0xff] %v18793_v47  ;;  %v9371_v59 = vrot.slane %v18793_v47, %v18576_v50  ;;  %v9364_v25 = vrot.slane %v18793_v47, %v18573_v63  ;;  %v9392_v12 = vrot.slane %v18793_v47, %v18594_v27 }
 0x6b1   : > { %v18776_v57 = vpop.permute.xlu1 %8918  ;;  %v18778_v45 = vpop.permute.xlu0 %8925  ;;  %v8486_v42 = vsub.f32 %v8454_v29, %v8470_v33  ;;  %v9385_v29 = vrot.slane %v18793_v47, %v18586_v7 }
 0x6b3   : > { %9331 = vbcast.lane.b32.xlu0 %v9329_v39, 256  ;;  %9324 = vbcast.lane.b32.xlu1 %v9322_v18, 256  ;;  %v9357_v39 = vrot.slane %v18793_v47, %v18252_v37  ;;  %v9350_v18 = vrot.slane %v18793_v47, %v18246_v62 }
 0x6b5   : > { %v18785_v52 = vpop.permute.xlu1 %8932  ;;  %v18787_v19 = vpop.permute.xlu0 %8939 }
 0x6b7   : > { %9345 = vbcast.lane.b32.xlu0 %v9343_v22, 256  ;;  %9338 = vbcast.lane.b32.xlu1 %v9336_v4, 256  ;;  %v8502_v22 = vmax.f32 %v8486_v42, 0.0  ;;  %v8572_v4 = vmul.f32 %v15754_v11, %v8501_v1  ;;  %v8315_v42 = vrot.slane %v18742_v60, %v16687_v55 }
 0x6b9   : > { %v18796_v53 = vpop.permute.xlu1 %8946  ;;  %v18798_v21 = vpop.permute.xlu0 %8953  ;;  %15755 = vrsqrt.f32 %v8502_v22  ;;  %vm8580_vm14 = vcmp.eq.f32.partialorder %v8502_v22, inf  ;;  %v8583_v44 = vand.u32 2147483648, %v8502_v22  ;;  %vm8582_vm15 = vcmp.eq.f32.partialorder %v8502_v22, 0.0 }
 0x6bb   : > { %9359 = vbcast.lane.b32.xlu0 %v9357_v39, 256  ;;  %9352 = vbcast.lane.b32.xlu1 %v9350_v18, 256  ;;  %v9378_v39 = vrot.slane %v18793_v47, %v18583_v40  ;;  %v8574_v18 = vsel %vm8573_vm12, %v8501_v1, %v8572_v4  ;;  %v8455_v4 = vadd.f32 %v8315_v42, %v18742_v60 }
 0x6bc   : > { %v18830_v24 = vsel %vm8575_vm13, %v8576_v5, %v8574_v18 }
 0x6bd   : > { %v18804_v23 = vpop.permute.xlu1 %8960  ;;  %v18806_v8 = vpop.permute.xlu0 %8967  ;;  %22995 = vst [vmem:[#allocation45_spill] sm:$0xff] %v18830_v24  ;;  %v9413_v54 = vrot.slane %v18830_v24, %v18252_v37  ;;  %v9406_v16 = vrot.slane %v18830_v24, %v18246_v62  ;;  %v9420_v60 = vrot.slane %v18830_v24, %v18573_v63  ;;  %v9448_v58 = vrot.slane %v18830_v24, %v18594_v27 }
 0x6bf   : > { %9373 = vbcast.lane.b32.xlu0 %v9371_v59, 256  ;;  %9366 = vbcast.lane.b32.xlu1 %v9364_v25, 256  ;;  %v9399_v25 = vrot.slane %v18793_v47, %v18599_v2 }
 0x6c1   : > { %v18812_v48 = vpop.permute.xlu1 %8974  ;;  %v18814_v33 = vpop.permute.xlu0 %8981 }
 0x6c3   : > { %9387 = vbcast.lane.b32.xlu0 %v9385_v29, 256  ;;  %9380 = vbcast.lane.b32.xlu1 %v9378_v39, 256  ;;  %v8471_v29 = vmul.f32 2.0, %v18688_v30  ;;  %v15756_v5 = vpop.eup %15755  ;;  %v9427_v30 = vrot.slane %v18830_v24, %v18576_v50 }
 0x6c4   : > { %v8579_v42 = vmul.f32 %v15756_v5, %v8502_v22  ;;  %v8319_v5 = vrot.slane %v18749_v10, %v16687_v55 }
 0x6c5   : > { %v18822_v11 = vpop.permute.xlu1 %8988  ;;  %v18824_v59 = vpop.permute.xlu0 %8995  ;;  %v8487_v18 = vsub.f32 %v8455_v4, %v8471_v29  ;;  %v9434_v4 = vrot.slane %v18830_v24, %v18583_v40 }
 0x6c6   : > { %v8581_v29 = vsel %vm8580_vm14, %v8502_v22, %v8579_v42  ;;  %v8456_v42 = vadd.f32 %v8319_v5, %v18749_v10 }
 0x6c7   : > { %9401 = vbcast.lane.b32.xlu0 %v9399_v25, 256  ;;  %9394 = vbcast.lane.b32.xlu1 %v9392_v12, 256  ;;  %v8503_v34 = vmax.f32 %v8487_v18, 0.0  ;;  %v18868_v38 = vsel %vm8582_vm15, %v8583_v44, %v8581_v29 }
 0x6c8   : > { %22996 = vst [vmem:[#allocation60_spill] sm:$0xff] %v18868_v38  ;;  %v9469_v49 = vrot.slane %v18868_v38, %v18252_v37  ;;  %v9462_v35 = vrot.slane %v18868_v38, %v18246_v62  ;;  %v9476_v10 = vrot.slane %v18868_v38, %v18573_v63  ;;  %v9511_v3 = vrot.slane %v18868_v38, %v18599_v2 }
 0x6c9   : > { %v18834_v39 = vpop.permute.xlu1 %9002  ;;  %v18836_v1 = vpop.permute.xlu0 %9009  ;;  %15757 = vrsqrt.f32 %v8503_v34  ;;  %vm8587_vm0 = vcmp.eq.f32.partialorder %v8503_v34, inf  ;;  %vm8589_vm1 = vcmp.eq.f32.partialorder %v8503_v34, 0.0  ;;  %v9504_v9 = vrot.slane %v18868_v38, %v18594_v27 }
 0x6cb   : > { %9415 = vbcast.lane.b32.xlu0 %v9413_v54, 256  ;;  %9408 = vbcast.lane.b32.xlu1 %v9406_v16, 256  ;;  %v9441_v16 = vrot.slane %v18830_v24, %v18586_v7 }
 0x6cd   : > { %v18842_v25 = vpop.permute.xlu1 %9016  ;;  %v18844_v12 = vpop.permute.xlu0 %9023 }
 0x6cf   : > { %9429 = vbcast.lane.b32.xlu0 %v9427_v30, 256  ;;  %9422 = vbcast.lane.b32.xlu1 %v9420_v60, 256  ;;  %v9455_v60 = vrot.slane %v18830_v24, %v18599_v2 }
 0x6d1   : > { %v18850_v47 = vpop.permute.xlu1 %9030  ;;  %v18852_v54 = vpop.permute.xlu0 %9037 }
 0x6d3   : > { %9443 = vbcast.lane.b32.xlu0 %v9441_v16, 256  ;;  %9436 = vbcast.lane.b32.xlu1 %v9434_v4, 256  ;;  %v8472_v16 = vmul.f32 2.0, %v18699_v43  ;;  %v9483_v43 = vrot.slane %v18868_v38, %v18576_v50  ;;  %v15758_v5 = vpop.eup %15757 }
 0x6d4   : > { %v8586_v24 = vmul.f32 %v15758_v5, %v8503_v34 }
 0x6d5   : > { %v18860_v18 = vpop.permute.xlu1 %9044  ;;  %v18862_v30 = vpop.permute.xlu0 %9051  ;;  %v8488_v44 = vsub.f32 %v8456_v42, %v8472_v16  ;;  %v9490_v42 = vrot.slane %v18868_v38, %v18583_v40  ;;  %v8590_v16 = vand.u32 2147483648, %v8503_v34 }
 0x6d7   : > { %9457 = vbcast.lane.b32.xlu0 %v9455_v60, 256  ;;  %9450 = vbcast.lane.b32.xlu1 %v9448_v58, 256  ;;  %v8504_v60 = vmax.f32 %v8488_v44, 0.0  ;;  %v8588_v44 = vsel %vm8587_vm0, %v8503_v34, %v8586_v24 }
 0x6d9   : > { %v18872_v4 = vpop.permute.xlu1 %9058  ;;  %v18874_v22 = vpop.permute.xlu0 %9065  ;;  %15759 = vrsqrt.f32 %v8504_v60  ;;  %vm8594_vm2 = vcmp.eq.f32.partialorder %v8504_v60, inf  ;;  %vm8596_vm3 = vcmp.eq.f32.partialorder %v8504_v60, 0.0 }
 0x6db   : > { %9471 = vbcast.lane.b32.xlu0 %v9469_v49, 256  ;;  %9464 = vbcast.lane.b32.xlu1 %v9462_v35, 256  ;;  %v9497_v35 = vrot.slane %v18868_v38, %v18586_v7 }
 0x6dd   : > { %v18880_v29 = vpop.permute.xlu1 %9072  ;;  %v18882_v58 = vpop.permute.xlu0 %9079 }
 0x6df   : > { %9485 = vbcast.lane.b32.xlu0 %v9483_v43, 256  ;;  %9478 = vbcast.lane.b32.xlu1 %v9476_v10, 256  ;;  %v8323_v43 = vrot.slane %v18751_v28, %v16687_v55 }
 0x6e1   : > { %v18888_v14 = vpop.permute.xlu1 %9086  ;;  %v18890_v49 = vpop.permute.xlu0 %9093 }
 0x6e3   : > { %9499 = vbcast.lane.b32.xlu0 %v9497_v35, 256  ;;  %9492 = vbcast.lane.b32.xlu1 %v9490_v42, 256  ;;  %v18906_v35 = vsel %vm8589_vm1, %v8590_v16, %v8588_v44  ;;  %v8457_v42 = vadd.f32 %v8323_v43, %v18751_v28  ;;  %v15760_v43 = vpop.eup %15759 }
 0x6e4   : > { %22997 = vst [vmem:[#allocation53_spill] sm:$0xff] %v18906_v35  ;;  %v9525_v26 = vrot.slane %v18906_v35, %v18252_v37  ;;  %v9518_v51 = vrot.slane %v18906_v35, %v18246_v62  ;;  %v9539_v56 = vrot.slane %v18906_v35, %v18576_v50  ;;  %v9532_v28 = vrot.slane %v18906_v35, %v18573_v63 }
 0x6e5   : > { %v18898_v10 = vpop.permute.xlu1 %9100  ;;  %v18900_v5 = vpop.permute.xlu0 %9107  ;;  %v8593_v38 = vmul.f32 %v15760_v43, %v8504_v60 }
 0x6e7   : > { %9513 = vbcast.lane.b32.xlu0 %v9511_v3, 256  ;;  %9506 = vbcast.lane.b32.xlu1 %v9504_v9, 256  ;;  %v8489_v3 = vsub.f32 %v8457_v42, %v8473_v61  ;;  %v9553_v61 = vrot.slane %v18906_v35, %v18586_v7  ;;  %v8597_v42 = vand.u32 2147483648, %v8504_v60 }
 0x6e9   : > { %v18910_v24 = vpop.permute.xlu1 %9114  ;;  %v18912_v34 = vpop.permute.xlu0 %9121  ;;  %v8505_v44 = vmax.f32 %v8489_v3, 0.0  ;;  %v8595_v3 = vsel %vm8594_vm2, %v8504_v60, %v8593_v38 }
 0x6ea   : > { %22998 = vst [vmem:[#allocation68_spill] sm:$0xff] %v18910_v24 }
 0x6eb   : > { %9527 = vbcast.lane.b32.xlu0 %v9525_v26, 256  ;;  %9520 = vbcast.lane.b32.xlu1 %v9518_v51, 256  ;;  %v9546_v51 = vrot.slane %v18906_v35, %v18583_v40  ;;  %15761 = vrsqrt.f32 %v8505_v44  ;;  %vm8601_vm4 = vcmp.eq.f32.partialorder %v8505_v44, inf  ;;  %vm8603_vm6 = vcmp.eq.f32.partialorder %v8505_v44, 0.0 }
 0x6ed   : > { %v18918_v9 = vpop.permute.xlu1 %9128  ;;  %v18920_v16 = vpop.permute.xlu0 %9135 }
 0x6ee   : > { %22999 = vst [vmem:[#allocation61_spill] sm:$0xff] %v18918_v9  ;;  %v8474_v9 = vmul.f32 2.0, %v18723_v41 }
 0x6ef   : > { %9541 = vbcast.lane.b32.xlu0 %v9539_v56, 256  ;;  %9534 = vbcast.lane.b32.xlu1 %v9532_v28, 256  ;;  %v8327_v56 = vrot.slane %v18760_v13, %v16687_v55 }
 0x6f1   : > { %v18926_v24 = vpop.permute.xlu1 %9142  ;;  %v18928_v26 = vpop.permute.xlu0 %9149 }
 0x6f2   : > { %23000 = vst [vmem:[#allocation76_spill] sm:$0xff] %v18926_v24  ;;  %23001 = vst [vmem:[#allocation69_spill] sm:$0xff] %v18928_v26  ;;  %v9560_v24 = vrot.slane %v18906_v35, %v18594_v27  ;;  %v9567_v26 = vrot.slane %v18906_v35, %v18599_v2 }
 0x6f3   : > { %9555 = vbcast.lane.b32.xlu0 %v9553_v61, 256  ;;  %9548 = vbcast.lane.b32.xlu1 %v9546_v51, 256  ;;  %v18944_v61 = vsel %vm8596_vm3, %v8597_v42, %v8595_v3  ;;  %v8458_v51 = vadd.f32 %v8327_v56, %v18760_v13 }
 0x6f4   : > { %23004 = vst [vmem:[#allocation92_spill] sm:$0xff] %v18944_v61  ;;  %v9588_v41 = vrot.slane %v18944_v61, %v18573_v63  ;;  %v9595_v13 = vrot.slane %v18944_v61, %v18576_v50 }
 0x6f5   : > { %v18936_v28 = vpop.permute.xlu1 %9156  ;;  %v18938_v43 = vpop.permute.xlu0 %9163 }
 0x6f6   : > { %23002 = vst [vmem:[#allocation84_spill] sm:$0xff] %v18936_v28  ;;  %23003 = vst [vmem:[#allocation77_spill] sm:$0xff] %v18938_v43  ;;  %v9574_v28 = vrot.slane %v18944_v61, %v18246_v62  ;;  %v9581_v43 = vrot.slane %v18944_v61, %v18252_v37  ;;  %v15762_v56 = vpop.eup %15761 }
 0x6f7   : > { %9562 = vbcast.lane.b32.xlu1 %v9560_v24, 256  ;;  %9569 = vbcast.lane.b32.xlu0 %v9567_v26, 256  ;;  %v8490_v24 = vsub.f32 %v8458_v51, %v8474_v9  ;;  %v8600_v35 = vmul.f32 %v15762_v56, %v8505_v44  ;;  %v9602_v9 = vrot.slane %v18944_v61, %v18583_v40  ;;  %v8604_v51 = vand.u32 2147483648, %v8505_v44 }
 0x6f9   : > { %v18948_v38 = vpop.permute.xlu1 %9170  ;;  %v18950_v60 = vpop.permute.xlu0 %9177  ;;  %v8506_v3 = vmax.f32 %v8490_v24, 0.0  ;;  %v8602_v24 = vsel %vm8601_vm4, %v8505_v44, %v8600_v35 }
 0x6fa   : > { %23005 = vst [vmem:[#allocation85_spill] sm:$0xff] %v18948_v38 }
 0x6fb   : > { %9576 = vbcast.lane.b32.xlu1 %v9574_v28, 256  ;;  %9583 = vbcast.lane.b32.xlu0 %v9581_v43, 256  ;;  %v9609_v43 = vrot.slane %v18944_v61, %v18586_v7  ;;  %15763 = vrsqrt.f32 %v8506_v3  ;;  %vm8608_vm7 = vcmp.eq.f32.partialorder %v8506_v3, inf  ;;  %vm8610_vm8 = vcmp.eq.f32.partialorder %v8506_v3, 0.0 }
 0x6fd   : > { %v18956_v26 = vpop.permute.xlu1 %9184  ;;  %v18958_v42 = vpop.permute.xlu0 %9191 }
 0x6fe   : > { %23006 = vst [vmem:[#allocation100_spill] sm:$0xff] %v18956_v26  ;;  %v9623_v26 = vrot.slane %v18944_v61, %v18599_v2 }
 0x6ff   : > { %9590 = vbcast.lane.b32.xlu1 %v9588_v41, 256  ;;  %9597 = vbcast.lane.b32.xlu0 %v9595_v13, 256  ;;  %v8331_v41 = vrot.slane %v18762_v0, %v16687_v55  ;;  %v8475_v55 = vmul.f32 2.0, %v18736_v15 }
 0x701   : > { %v18964_v38 = vpop.permute.xlu1 %9198  ;;  %v18966_v28 = vpop.permute.xlu0 %9205 }
 0x702   : > { %23007 = vst [vmem:[#allocation93_spill] sm:$0xff] %v18964_v38  ;;  %v9616_v38 = vrot.slane %v18944_v61, %v18594_v27 }
 0x703   : > { %9604 = vbcast.lane.b32.xlu1 %v9602_v9, 256  ;;  %9611 = vbcast.lane.b32.xlu0 %v9609_v43, 256  ;;  %v18982_v9 = vsel %vm8603_vm6, %v8604_v51, %v8602_v24  ;;  %v8459_v43 = vadd.f32 %v8331_v41, %v18762_v0 }
 0x704   : > { %23010 = vst [vmem:[#allocation14_spill] sm:$0xff] %v18982_v9  ;;  %v9644_v15 = vrot.slane %v18982_v9, %v18573_v63  ;;  %v9651_v0 = vrot.slane %v18982_v9, %v18576_v50 }
 0x705   : > { %v18974_v13 = vpop.permute.xlu1 %9212  ;;  %v18976_v56 = vpop.permute.xlu0 %9219 }
 0x706   : > { %23008 = vst [vmem:[#allocation6_spill] sm:$0xff] %v18974_v13  ;;  %23009 = vst [vmem:[#allocation101_spill] sm:$0xff] %v18976_v56  ;;  %v9630_v13 = vrot.slane %v18982_v9, %v18246_v62  ;;  %v9637_v56 = vrot.slane %v18982_v9, %v18252_v37  ;;  %v15764_v41 = vpop.eup %15763 }
 0x707   : > { %9618 = vbcast.lane.b32.xlu1 %v9616_v38, 256  ;;  %9625 = vbcast.lane.b32.xlu0 %v9623_v26, 256  ;;  %v8491_v38 = vsub.f32 %v8459_v43, %v8475_v55  ;;  %v8607_v61 = vmul.f32 %v15764_v41, %v8506_v3  ;;  %v9658_v55 = vrot.slane %v18982_v9, %v18583_v40  ;;  %v8611_v43 = vand.u32 2147483648, %v8506_v3 }
 0x708   : > { %v9679_v41 = vrot.slane %v18982_v9, %v18599_v2 }
 0x709   : > { %v18986_v35 = vpop.permute.xlu1 %9226  ;;  %v18988_v44 = vpop.permute.xlu0 %9233  ;;  %v8507_v24 = vmax.f32 %v8491_v38, 0.0 }
 0x70a   : > { %23011 = vst [vmem:[#allocation7_spill] sm:$0xff] %v18986_v35 }
 0x70b   : > { %9632 = vbcast.lane.b32.xlu1 %v9630_v13, 256  ;;  %9639 = vbcast.lane.b32.xlu0 %v9637_v56, 256  ;;  %v9665_v56 = vrot.slane %v18982_v9, %v18586_v7  ;;  %15765 = vrsqrt.f32 %v8507_v24  ;;  %vm8615_vm9 = vcmp.eq.f32.partialorder %v8507_v24, inf  ;;  %vm8617_vm10 = vcmp.eq.f32.partialorder %v8507_v24, 0.0 }
 0x70d   : > { %v18994_v26 = vpop.permute.xlu1 %9240  ;;  %v18996_v51 = vpop.permute.xlu0 %9247 }
 0x70e   : > { %23012 = vst [vmem:[#allocation15_spill] sm:$0xff] %v18994_v26  ;;  %v8609_v26 = vsel %vm8608_vm7, %v8506_v3, %v8607_v61 }
 0x70f   : > { %9646 = vbcast.lane.b32.xlu1 %v9644_v15, 256  ;;  %9653 = vbcast.lane.b32.xlu0 %v9651_v0, 256  ;;  %v9672_v0 = vrot.slane %v18982_v9, %v18594_v27 }
 0x711   : > { %v19002_v35 = vpop.permute.xlu1 %9254  ;;  %v19004_v13 = vpop.permute.xlu0 %9261 }
 0x712   : > { %23013 = vst [vmem:[#allocation18_spill] sm:$0xff] %v19002_v35  ;;  %v19018_v35 = vsel %vm8610_vm8, %v8611_v43, %v8609_v26 }
 0x713   : > { %9660 = vbcast.lane.b32.xlu1 %v9658_v55, 256  ;;  %9667 = vbcast.lane.b32.xlu0 %v9665_v56, 256  ;;  %23016 = vst [vmem:[#allocation27_spill] sm:$0xff] %v19018_v35  ;;  %v9686_v61 = vrot.slane %v19018_v35, %v18246_v62  ;;  %v9693_v3 = vrot.slane %v19018_v35, %v18252_v37 }
 0x714   : > { %v9700_v26 = vrot.slane %v19018_v35, %v18573_v63  ;;  %v9707_v43 = vrot.slane %v19018_v35, %v18576_v50 }
 0x715   : > { %v19010_v15 = vpop.permute.xlu1 %9268  ;;  %v19012_v38 = vpop.permute.xlu0 %9275 }
 0x716   : > { %23014 = vst [vmem:[#allocation26_spill] sm:$0xff] %v19010_v15  ;;  %23015 = vst [vmem:[#allocation19_spill] sm:$0xff] %v19012_v38 }
 0x717   : > { %9674 = vbcast.lane.b32.xlu1 %v9672_v0, 256  ;;  %9681 = vbcast.lane.b32.xlu0 %v9679_v41, 256  ;;  %v15766_v0 = vpop.eup %15765 }
 0x718   : > { %v8614_v41 = vmul.f32 %v15766_v0, %v8507_v24  ;;  %v9735_v0 = vrot.slane %v19018_v35, %v18599_v2 }
 0x719   : > { %v19020_v55 = vpop.permute.xlu1 %9282  ;;  %v19022_v56 = vpop.permute.xlu0 %9289 }
 0x71a   : > { %23017 = vst [vmem:[#allocation30_spill] sm:$0xff] %v19020_v55  ;;  %23018 = vst [vmem:[#allocation38_spill] sm:$0xff] %v19022_v56 }
 0x71b   : > { %9688 = vbcast.lane.b32.xlu1 %v9686_v61, 256  ;;  %9695 = vbcast.lane.b32.xlu0 %v9693_v3, 256  ;;  %v9714_v61 = vrot.slane %v19018_v35, %v18583_v40  ;;  %v9721_v3 = vrot.slane %v19018_v35, %v18586_v7 }
 0x71d   : > { %v19028_v15 = vpop.permute.xlu1 %9296  ;;  %v19030_v38 = vpop.permute.xlu0 %9303 }
 0x71e   : > { %23019 = vst [vmem:[#allocation31_spill] sm:$0xff] %v19028_v15  ;;  %23020 = vst [vmem:[#allocation39_spill] sm:$0xff] %v19030_v38  ;;  %v8618_v15 = vand.u32 2147483648, %v8507_v24  ;;  %v8616_v38 = vsel %vm8615_vm9, %v8507_v24, %v8614_v41 }
 0x71f   : > { %9702 = vbcast.lane.b32.xlu1 %v9700_v26, 256  ;;  %9709 = vbcast.lane.b32.xlu0 %v9707_v43, 256  ;;  %v9728_v43 = vrot.slane %v19018_v35, %v18594_v27 }
 0x721   : > { %v19036_v9 = vpop.permute.xlu1 %9310  ;;  %v19038_v55 = vpop.permute.xlu0 %9317 }
 0x722   : > { %23021 = vst [vmem:[#allocation42_spill] sm:$0xff] %v19036_v9  ;;  %23022 = vst [vmem:[#allocation43_spill] sm:$0xff] %v19038_v55  ;;  %v19052_v9 = vsel %vm8617_vm10, %v8618_v15, %v8616_v38 }
 0x723   : > { %9716 = vbcast.lane.b32.xlu1 %v9714_v61, 256  ;;  %9723 = vbcast.lane.b32.xlu0 %v9721_v3, 256  ;;  %23025 = vst [vmem:[#allocation51_spill] sm:$0xff] %v19052_v9  ;;  %v9742_v24 = vrot.slane %v19052_v9, %v18246_v62  ;;  %v9749_v41 = vrot.slane %v19052_v9, %v18252_v37 }
 0x724   : > { %v9756_v15 = vrot.slane %v19052_v9, %v18573_v63  ;;  %v9763_v38 = vrot.slane %v19052_v9, %v18576_v50  ;;  %v9770_v37 = vrot.slane %v19052_v9, %v18583_v40  ;;  %v9784_v63 = vrot.slane %v19052_v9, %v18594_v27 }
 0x725   : > { %v19044_v56 = vpop.permute.xlu1 %9324  ;;  %v19046_v26 = vpop.permute.xlu0 %9331  ;;  %v9791_v50 = vrot.slane %v19052_v9, %v18599_v2  ;;  %v9946_v40 = vrot.slane %v18570_v6, %v18385_v46 }
 0x726   : > { %23023 = vst [vmem:[#allocation50_spill] sm:$0xff] %v19044_v56  ;;  %23024 = vst [vmem:[#allocation56_spill] sm:$0xff] %v19046_v26 }
 0x727   : > { %9730 = vbcast.lane.b32.xlu1 %v9728_v43, 256  ;;  %9737 = vbcast.lane.b32.xlu0 %v9735_v0, 256  ;;  %v9962_v27 = vrot.slane %v9946_v40, %v18385_v46 }
 0x729   : > { %v19054_v55 = vpop.permute.xlu1 %9338  ;;  %v19056_v61 = vpop.permute.xlu0 %9345 }
 0x72a   : > { %23026 = vst [vmem:[#allocation57_spill] sm:$0xff] %v19054_v55  ;;  %23027 = vst [vmem:[#allocation66_spill] sm:$0xff] %v19056_v61 }
 0x72b   : > { %9744 = vbcast.lane.b32.xlu1 %v9742_v24, 256  ;;  %9751 = vbcast.lane.b32.xlu0 %v9749_v41, 256  ;;  %v9777_v24 = vrot.slane %v19052_v9, %v18586_v7 }
 0x72d   : > { %v19062_v3 = vpop.permute.xlu1 %9352  ;;  %v19064_v56 = vpop.permute.xlu0 %9359 }
 0x72e   : > { %23028 = vst [vmem:[#allocation74_spill] sm:$0xff] %v19062_v3  ;;  %23029 = vst [vmem:[#allocation67_spill] sm:$0xff] %v19064_v56 }
 0x72f   : > { %9758 = vbcast.lane.b32.xlu1 %v9756_v15, 256  ;;  %9765 = vbcast.lane.b32.xlu0 %v9763_v38, 256 }
 0x731   : > { %v19070_v43 = vpop.permute.xlu1 %9366  ;;  %v19072_v0 = vpop.permute.xlu0 %9373 }
 0x732   : > { %23030 = vst [vmem:[#allocation75_spill] sm:$0xff] %v19070_v43  ;;  %23031 = vst [vmem:[#allocation82_spill] sm:$0xff] %v19072_v0 }
 0x733   : > { %9772 = vbcast.lane.b32.xlu1 %v9770_v37, 256  ;;  %9779 = vbcast.lane.b32.xlu0 %v9777_v24, 256  ;;  %v9954_v24 = vcombine.high %v9946_v40, %v9946_v40  ;;  %v9797_v40 = vadd.f32 0.2, %v18776_v57  ;;  %v9798_v57 = vadd.f32 0.2, %v18778_v45 }
 0x734   : > { %v9801_v45 = vadd.f32 0.2, %v18796_v53 }
 0x735   : > { %v19078_v41 = vpop.permute.xlu0 %9387  ;;  %v19084_v15 = vpop.permute.xlu1 %9380  ;;  %v9976_v2 = vrot.slane %v9954_v24, %v18385_v46  ;;  %v9795_v24 = vadd.f32 0.2, %v18768_v20  ;;  %v19124_v20 = vld [vmem:[%s22462_s4 + $0x8] sm:$0xff] }
 0x736   : > { %23032 = vst [vmem:[#allocation90_spill] sm:$0xff] %v19078_v41  ;;  %23033 = vst [vmem:[#allocation83_spill] sm:$0xff] %v19084_v15  ;;  %v9796_v15 = vadd.f32 0.2, %v18770_v31  ;;  %v10726_v31 = vrot.slane %v9962_v27, %v18246_v62 }
 0x737   : > { %9786 = vbcast.lane.b32.xlu1 %v9784_v63, 256  ;;  %9793 = vbcast.lane.b32.xlu0 %v9791_v50, 256  ;;  %v9939_v63 = vcombine.high %v18570_v6, %v18570_v6  ;;  %v10730_v3 = vrot.slane %v9976_v2, %v18246_v62  ;;  %v9986_v0 = vcombine.high %v9976_v2, %v9976_v2 }
 0x739   : > { %v19086_v38 = vpop.permute.xlu0 %9401  ;;  %v19090_v7 = vpop.permute.xlu1 %9394  ;;  %v19107_v41 = vsub.f32 %v9796_v15, %v10730_v3  ;;  %v9799_v3 = vadd.f32 0.2, %v18785_v52  ;;  %v11363_v15 = vsub.f32 %v9795_v24, %v10726_v31 }
 0x73a   : > { %23034 = vst [vmem:[#allocation98_spill] sm:$0xff] %v19086_v38  ;;  %23035 = vst [vmem:[#allocation91_spill] sm:$0xff] %v19090_v7  ;;  %v9984_v38 = vcombine.high %v9962_v27, %v9962_v27  ;;  %v9953_v7 = vrot.slane %v9939_v63, %v18385_v46 }
 0x73b   : > { %v22649_v63 = vmax.f32 %v19107_v41, 0.0  ;;  %v11491_v31 = vmax.f32 %v11363_v15, 0.0 }
 0x73c   : > { %v10734_v6 = vrot.slane %v9984_v38, %v18246_v62  ;;  %v9955_v56 = vcombine.high %v9953_v7, %v9953_v7 }
 0x73d   : > { %v19092_v37 = vpop.permute.xlu0 %9415  ;;  %v19094_v43 = vpop.permute.xlu1 %9408  ;;  %vm13057_vm12 = vcmp.gt.f32.partialorder %v11491_v31, 0.0 }
 0x73e   : > { %23036 = vst [vmem:[#allocation106_spill] sm:$0xff] %v19092_v37  ;;  %23037 = vst [vmem:[#allocation112_spill] sm:$0xff] %v19094_v43  ;;  %v11365_v55 = vsub.f32 %v9797_v40, %v10734_v6  ;;  %v9983_v40 = vrot.slane %v9955_v56, %v18385_v46  ;;  %v11628_v6 = vmul.f32 %v19124_v20, %v22649_v63 }
 0x740   : > { %v11493_v52 = vmax.f32 %v11365_v55, 0.0  ;;  %v19147_v55 = vld [vmem:[%s22462_s4] sm:$0xff]  ;;  %v10746_v53 = vrot.slane %v9983_v40, %v18246_v62 }
 0x741   : > { %v19100_v50 = vpop.permute.xlu0 %9429  ;;  %v19105_v37 = vpop.permute.xlu1 %9422 }
 0x742   : > { %23038 = vst [vmem:[#allocation99_spill] sm:$0xff] %v19100_v50  ;;  %23039 = vst [vmem:[#allocation107_spill] sm:$0xff] %v19105_v37  ;;  %v9969_v50 = vrot.slane %v9953_v7, %v18385_v46  ;;  %v10738_v7 = vrot.slane %v9986_v0, %v18246_v62  ;;  %v9987_v0 = vcombine.high %v9983_v40, %v9983_v40  ;;  %vm13059_vm13 = vcmp.gt.f32.partialorder %v11493_v52, 0.0 }
 0x743   : > { %v11627_v40 = vmul.f32 %v19147_v55, %v11491_v31  ;;  %v19209_v31 = vld [vmem:[%s22462_s4 + $0x38] sm:$0xff] }
 0x744   : > { %v10742_v38 = vrot.slane %v9969_v50, %v18246_v62  ;;  %v9985_v27 = vcombine.high %v9969_v50, %v9969_v50  ;;  %v19141_v50 = vld [vmem:[%s22462_s4 + $0x10] sm:$0xff] }
 0x745   : > { %v19110_v43 = vpop.permute.xlu0 %9443  ;;  %v19119_v37 = vpop.permute.xlu1 %9436 }
 0x746   : > { %23040 = vst [vmem:[#allocation113_spill] sm:$0xff] %v19110_v43  ;;  %23041 = vst [vmem:[#allocation130_spill] sm:$0xff] %v19119_v37  ;;  %v19131_v24 = vsub.f32 %v9799_v3, %v10742_v38  ;;  %v11366_v43 = vsub.f32 %v9798_v57, %v10738_v7  ;;  %v9800_v37 = vadd.f32 0.2, %v18787_v19  ;;  %v10750_v56 = vrot.slane %v9985_v27, %v18246_v62 }
 0x747   : > { %v11758_v38 = vsel %vm2856_vm5, %v11628_v6, 0.0  ;;  %v11629_v7 = vmul.f32 %v19141_v50, %v11493_v52 }
 0x748   : > { %v11495_v15 = vmax.f32 %v19131_v24, 0.0  ;;  %v11369_v19 = vsub.f32 %v9801_v45, %v10750_v56  ;;  %v19157_v27 = vmax.f32 %v11366_v43, 0.0  ;;  %v19159_v63 = vsub.f32 %v9800_v37, %v10746_v53  ;;  %v19166_v24 = vld [vmem:[%s22462_s4 + $0x20] sm:$0xff]  ;;  %v19171_v45 = vld [vmem:[%s22462_s4 + $0x18] sm:$0xff] }
 0x749   : > { %v19127_v2 = vpop.permute.xlu0 %9457  ;;  %v19150_v3 = vpop.permute.xlu1 %9450  ;;  %v10754_v43 = vrot.slane %v9987_v0, %v18246_v62  ;;  %v11761_v37 = vsel %vm2856_vm5, %v11629_v7, 0.0  ;;  %v19187_v0 = vld [vmem:[%s22462_s4 + $0x30] sm:$0xff] }
 0x74a   : > { %23042 = vst [vmem:[#allocation22_spill] sm:$0xff] %v19127_v2  ;;  %23043 = vst [vmem:[#allocation10_spill] sm:$0xff] %v19150_v3  ;;  %v9802_v2 = vadd.f32 0.2, %v18798_v21  ;;  %v19174_v6 = vmax.f32 %v11369_v19, 0.0  ;;  %v11631_v21 = vmul.f32 %v19166_v24, %v11495_v15  ;;  %v11496_v56 = vmax.f32 %v19159_v63, 0.0 }
 0x74b   : > { %v11630_v3 = vmul.f32 %v19171_v45, %v19157_v27  ;;  %v19194_v63 = vld [vmem:[%s22462_s4 + $0x28] sm:$0xff]  ;;  %vm13061_vm15 = vcmp.gt.f32.partialorder %v11495_v15, 0.0  ;;  %vm13060_vm0 = vcmp.gt.f32.partialorder %v19157_v27, 0.0 }
 0x74c   : > { %v11370_v53 = vsub.f32 %v9802_v2, %v10754_v43  ;;  %v9995_v2 = vrot.slane %v18596_v32, %v18385_v46  ;;  %v11767_v7 = vsel %vm2856_vm5, %v11631_v21, 0.0  ;;  %vm13063_vm1 = vcmp.gt.f32.partialorder %v19174_v6, 0.0 }
 0x74d   : > { %v19153_v57 = vpop.permute.xlu0 %9471  ;;  %vm13062_vm2 = vcmp.gt.f32.partialorder %v11496_v56, 0.0 }
 0x74e   : > { %23044 = vst [vmem:[#allocation23_spill] sm:$0xff] %v19153_v57  ;;  %v11755_v57 = vsel %vm2856_vm5, %v11627_v40, 0.0  ;;  %v11633_v40 = vmul.f32 %v19187_v0, %v19174_v6  ;;  %v19201_v43 = vmax.f32 %v11370_v53, 0.0  ;;  %v10011_v21 = vrot.slane %v9995_v2, %v18385_v46 }
 0x74f   : > { %v23049_v53 = vmax.f32 %v19107_v41, 0.0 }
 0x750   : > { %v11773_v26 = vsel %vm2856_vm5, %v11633_v40, 0.0  ;;  %v11634_v52 = vmul.f32 %v19209_v31, %v19201_v43  ;;  %vm13064_vm3 = vcmp.gt.f32.partialorder %v19201_v43, 0.0 }
 0x751   : > { %v19189_v19 = vpop.permute.xlu0 %9485  ;;  %vm13058_vm14 = vcmp.gt.f32.partialorder %v23049_v53, 0.0 }
 0x752   : > { %23046 = vst [vmem:[#allocation34_spill] sm:$0xff] %v19189_v19 }
 0x756   : > { %11759 = vadd.xlane.f32.xlu0 %v11758_v38  ;;  %v19179_v38 = vpop.permute.xlu1 %9464 }
 0x757   : > { %23045 = vst [vmem:[#allocation11_spill] sm:$0xff] %v19179_v38  ;;  %v23047_v38 = vmov 0.0  }
 0x758   : > { %v13185_v19 = vsel %vm13057_vm12, 1.0, %v23047_v38  ;;  %v13187_v35 = vsel %vm13059_vm13, 1.0, %v23047_v38  ;;  %v13186_v41 = vsel %vm13058_vm14, 1.0, %v23047_v38  ;;  %v13189_v15 = vsel %vm13061_vm15, 1.0, %v23047_v38 }
 0x759   : > { %v13191_v6 = vsel %vm13063_vm1, 1.0, %v23047_v38 }
 0x75a   : > { %11762 = vadd.xlane.f32.xlu0 %v11761_v37  ;;  %v11764_v37 = vsel %vm2856_vm5, %v11630_v3, 0.0  ;;  %v19212_v61 = vpop.permute.xlu1 %9478  ;;  %v19216_v3 = vpop.permute.xlu0 %9499 }
 0x75b   : > { %11756 = vadd.xlane.f32.xlu1 %v11755_v57  ;;  %v11632_v57 = vmul.f32 %v19194_v63, %v11496_v56  ;;  %23048 = vst [vmem:[#allocation12_spill] sm:$0xff] %v19212_v61  ;;  %23050 = vst [vmem:[#allocation35_spill] sm:$0xff] %v19216_v3  ;;  %v9988_v61 = vcombine.high %v18596_v32, %v18596_v32  ;;  %v11776_v32 = vsel %vm2856_vm5, %v11634_v52, 0.0  ;;  %v13190_v56 = vsel %vm13062_vm2, 1.0, %v23047_v38 }
 0x75c   : > { %v10758_v3 = vrot.slane %v10011_v21, %v18246_v62 }
 0x75d   : > { %v11770_v9 = vsel %vm2856_vm5, %v11632_v57, 0.0  ;;  %v13315_v57 = vmul.f32 %v13187_v35, %v19141_v50  ;;  %v10002_v27 = vrot.slane %v9988_v61, %v18385_v46  ;;  %v9804_v61 = vadd.f32 0.2, %v18806_v8 }
 0x75e   : > { %11768 = vadd.xlane.f32.xlu0 %v11767_v7  ;;  %v10003_v7 = vcombine.high %v9995_v2, %v9995_v2  ;;  %v10033_v2 = vcombine.high %v10011_v21, %v10011_v21  ;;  %v19232_v53 = vpop.permute.xlu1 %9492  ;;  %v13317_v21 = vmul.f32 %v13189_v15, %v19166_v24 }
 0x75f   : > { %11765 = vadd.xlane.f32.xlu1 %v11764_v37  ;;  %v13313_v37 = vmul.f32 %v13185_v19, %v19147_v55  ;;  %v9803_v19 = vadd.f32 0.2, %v18804_v23  ;;  %23051 = vst [vmem:[#allocation13_spill] sm:$0xff] %v19232_v53  ;;  %v19239_v23 = vpop.permute.xlu0 %9513 }
 0x760   : > { %v10766_v35 = vrot.slane %v10033_v2, %v18246_v62 }
 0x761   : > { %v13441_v40 = vsel %vm2856_vm5, %v13313_v37, 0.0  ;;  %v9805_v37 = vadd.f32 0.2, %v18812_v48  ;;  %v19245_v52 = vsub.f32 %v9803_v19, %v10758_v3  ;;  %v10018_v48 = vrot.slane %v10002_v27, %v18385_v46 }
 0x762   : > { %11774 = vadd.xlane.f32.xlu0 %v11773_v26  ;;  %v10025_v26 = vrot.slane %v10003_v7, %v18385_v46  ;;  %v13188_v7 = vsel %vm13060_vm0, 1.0, %v23047_v38  ;;  %v9806_v19 = vadd.f32 0.2, %v18814_v33  ;;  %v19257_v15 = vpop.permute.xlu1 %9506 }
 0x763   : > { %11771 = vadd.xlane.f32.xlu1 %v11770_v9  ;;  %v13314_v9 = vmul.f32 %v13186_v41, %v19124_v20  ;;  %v13316_v53 = vmul.f32 %v13188_v7, %v19171_v45  ;;  %v11373_v3 = vsub.f32 %v9805_v37, %v10766_v35  ;;  %v11499_v8 = vmax.f32 %v19245_v52, 0.0  ;;  %v19262_v7 = vpop.permute.xlu0 %9527 }
 0x764   : > { %v10035_v41 = vcombine.high %v10025_v26, %v10025_v26  ;;  %v10762_v2 = vrot.slane %v10025_v26, %v18246_v62  ;;  %v13453_v26 = vsel %vm2856_vm5, %v13317_v21, 0.0  ;;  %v10774_v43 = vrot.slane %v10018_v48, %v18246_v62 }
 0x765   : > { %v13450_v33 = vsel %vm2856_vm5, %v13316_v53, 0.0  ;;  %v10034_v37 = vcombine.high %v10018_v48, %v10018_v48  ;;  %v19273_v52 = vmax.f32 %v11373_v3, 0.0  ;;  %v11635_v53 = vmul.f32 %v19147_v55, %v11499_v8 }
 0x766   : > { %13442 = vadd.xlane.f32.xlu0 %v13441_v40  ;;  %v13447_v40 = vsel %vm2856_vm5, %v13315_v57, 0.0  ;;  %v10004_v57 = vcombine.high %v10002_v27, %v10002_v27  ;;  %v10770_v35 = vrot.slane %v10035_v41, %v18246_v62  ;;  %v13318_v27 = vmul.f32 %v13190_v56, %v19194_v63 }
 0x767   : > { %11777 = vadd.xlane.f32.xlu1 %v11776_v32  ;;  %v13444_v32 = vsel %vm2856_vm5, %v13314_v9, 0.0  ;;  %v9807_v9 = vadd.f32 0.2, %v18822_v11  ;;  %v13192_v11 = vsel %vm13064_vm3, 1.0, %v23047_v38  ;;  %v9809_v41 = vadd.f32 0.2, %v18834_v39 }
 0x768   : > { %v11374_v21 = vsub.f32 %v9806_v19, %v10770_v35  ;;  %v9808_v48 = vadd.f32 0.2, %v18824_v59  ;;  %v13456_v3 = vsel %vm2856_vm5, %v13318_v27, 0.0  ;;  %v13320_v19 = vmul.f32 %v13192_v11, %v19209_v31 }
 0x769   : > { %v11637_v27 = vmul.f32 %v19141_v50, %v19273_v52  ;;  %vm13065_vm4 = vcmp.gt.f32.partialorder %v11499_v8, 0.0  ;;  %vm13067_vm6 = vcmp.gt.f32.partialorder %v19273_v52, 0.0 }
 0x76a   : > { %13448 = vadd.xlane.f32.xlu0 %v13447_v40  ;;  %v13319_v40 = vmul.f32 %v13191_v6, %v19187_v0  ;;  %v10032_v6 = vrot.slane %v10004_v57, %v18385_v46  ;;  %v10782_v57 = vrot.slane %v10034_v37, %v18246_v62  ;;  %v19290_v39 = vmax.f32 %v11374_v21, 0.0 }
 0x76b   : > { %13445 = vadd.xlane.f32.xlu1 %v13444_v32  ;;  %v19266_v32 = vsub.f32 %v9804_v61, %v10762_v2  ;;  %v19276_v61 = vsub.f32 %v9807_v9, %v10774_v43  ;;  %v19288_v9 = vpop.permute.xlu0 %9541  ;;  %v9810_v37 = vadd.f32 0.2, %v18836_v1  ;;  %v13462_v11 = vsel %vm2856_vm5, %v13320_v19, 0.0 }
 0x76c   : > { %v13459_v2 = vsel %vm2856_vm5, %v13319_v40, 0.0  ;;  %23052 = vst [vmem:[#allocation36_spill] sm:$0xff] %v19288_v9  ;;  %v10778_v40 = vrot.slane %v10032_v6, %v18246_v62  ;;  %v10036_v35 = vcombine.high %v10032_v6, %v10032_v6  ;;  %v11377_v59 = vsub.f32 %v9809_v41, %v10782_v57 }
 0x76d   : > { %v11500_v56 = vmax.f32 %v19266_v32, 0.0  ;;  %v11503_v32 = vmax.f32 %v19276_v61, 0.0  ;;  %v11638_v57 = vmul.f32 %v19171_v45, %v19290_v39  ;;  %vm13068_vm9 = vcmp.gt.f32.partialorder %v19290_v39, 0.0 }
 0x76e   : > { %13454 = vadd.xlane.f32.xlu0 %v13453_v26  ;;  %v19283_v26 = vpop.permute.xlu1 %9520  ;;  %v19297_v43 = vsub.f32 %v9808_v48, %v10778_v40  ;;  %v10786_v6 = vrot.slane %v10036_v35, %v18246_v62  ;;  %v19305_v61 = vmax.f32 %v11377_v59, 0.0  ;;  %v10044_v40 = vrot.slane %v18635_v17, %v18385_v46 }
 0x76f   : > { %13451 = vadd.xlane.f32.xlu1 %v13450_v33  ;;  %v11779_v33 = vsel %vm2856_vm5, %v11635_v53, 0.0  ;;  %v11636_v21 = vmul.f32 %v19124_v20, %v11500_v56  ;;  %v19307_v41 = vpop.permute.xlu0 %9555  ;;  %v11785_v53 = vsel %vm2856_vm5, %v11637_v27, 0.0  ;;  %v11639_v48 = vmul.f32 %v19166_v24, %v11503_v32 }
 0x770   : > { %23054 = vst [vmem:[#allocation37_spill] sm:$0xff] %v19307_v41  ;;  %v11504_v1 = vmax.f32 %v19297_v43, 0.0  ;;  %v11641_v59 = vmul.f32 %v19187_v0, %v19305_v61  ;;  %v11788_v43 = vsel %vm2856_vm5, %v11638_v57, 0.0  ;;  %vm13066_vm7 = vcmp.gt.f32.partialorder %v11500_v56, 0.0 }
 0x771   : > { %v11782_v19 = vsel %vm2856_vm5, %v11636_v21, 0.0  ;;  %v11791_v35 = vsel %vm2856_vm5, %v11639_v48, 0.0  ;;  %v10060_v21 = vrot.slane %v10044_v40, %v18385_v46  ;;  %v13195_v57 = vsel %vm13067_vm6, 1.0, %v23047_v38 }
 0x772   : > { %13460 = vadd.xlane.f32.xlu0 %v13459_v2  ;;  %v19303_v2 = vpop.permute.xlu1 %9534  ;;  %v13194_v52 = vsel %vm13066_vm7, 1.0, %v23047_v38  ;;  %vm13069_vm8 = vcmp.gt.f32.partialorder %v11503_v32, 0.0  ;;  %vm13071_vm10 = vcmp.gt.f32.partialorder %v19305_v61, 0.0  ;;  %vm13070_vm12 = vcmp.gt.f32.partialorder %v11504_v1, 0.0 }
 0x773   : > { %13457 = vadd.xlane.f32.xlu1 %v13456_v3  ;;  %23053 = vst [vmem:[#allocation24_spill] sm:$0xff] %v19303_v2  ;;  %v11378_v3 = vsub.f32 %v9810_v37, %v10786_v6  ;;  %v11640_v37 = vmul.f32 %v19194_v63, %v11504_v1  ;;  %v19327_v8 = vpop.permute.xlu0 %9569  ;;  %v10052_v6 = vcombine.high %v10044_v40, %v10044_v40 }
 0x774   : > { %23056 = vst [vmem:[#allocation58_spill] sm:$0xff] %v19327_v8  ;;  %v10082_v56 = vcombine.high %v10060_v21, %v10060_v21  ;;  %v13322_v32 = vmul.f32 %v13194_v52, %v19124_v20  ;;  %v13197_v8 = vsel %vm13069_vm8, 1.0, %v23047_v38 }
 0x776   : > { %11780 = vadd.xlane.f32.xlu0 %v11779_v33  ;;  %v19320_v33 = vmax.f32 %v11378_v3, 0.0  ;;  %v19322_v27 = vpop.permute.xlu1 %9548  ;;  %v11794_v3 = vsel %vm2856_vm5, %v11640_v37, 0.0 }
 0x777   : > { %13463 = vadd.xlane.f32.xlu1 %v13462_v11  ;;  %23055 = vst [vmem:[#allocation25_spill] sm:$0xff] %v19322_v27  ;;  %v13193_v11 = vsel %vm13065_vm4, 1.0, %v23047_v38  ;;  %v19345_v37 = vpop.permute.xlu0 %9583  ;;  %v23125_v27 = vld [vmem:[#allocation15_spill] sm:$0xff] }
 0x778   : > { %v13321_v48 = vmul.f32 %v13193_v11, %v19147_v55  ;;  %23058 = vst [vmem:[#allocation59_spill] sm:$0xff] %v19345_v37  ;;  %vm13072_vm13 = vcmp.gt.f32.partialorder %v19320_v33, 0.0  ;;  %v9843_v9 = vadd.f32 0.2, %v23125_v27 }
 0x77a   : > { %11786 = vadd.xlane.f32.xlu0 %v11785_v53  ;;  %v11797_v53 = vsel %vm2856_vm5, %v11641_v59, 0.0  ;;  %v19340_v40 = vpop.permute.xlu1 %9562  ;;  %v9811_v59 = vadd.f32 0.2, %v18842_v25  ;;  %v13465_v11 = vsel %vm2856_vm5, %v13321_v48, 0.0  ;;  %v13196_v25 = vsel %vm13068_vm9, 1.0, %v23047_v38 }
 0x77b   : > { %11783 = vadd.xlane.f32.xlu1 %v11782_v19  ;;  %v11642_v19 = vmul.f32 %v19209_v31, %v19320_v33  ;;  %23057 = vst [vmem:[#allocation48_spill] sm:$0xff] %v19340_v40  ;;  %v10790_v40 = vrot.slane %v10060_v21, %v18246_v62  ;;  %v9813_v48 = vadd.f32 0.2, %v18850_v47  ;;  %v9812_v21 = vadd.f32 0.2, %v18844_v12 }
 0x77c   : > { %v13324_v61 = vmul.f32 %v13196_v25, %v19171_v45  ;;  %v9814_v12 = vadd.f32 0.2, %v18852_v54  ;;  %v9815_v25 = vadd.f32 0.2, %v18860_v18 }
 0x77e   : > { %11792 = vadd.xlane.f32.xlu0 %v11791_v35  ;;  %v10037_v35 = vcombine.high %v18635_v17, %v18635_v17 }
 0x77f   : > { %11789 = vadd.xlane.f32.xlu1 %v11788_v43  ;;  %v10074_v43 = vrot.slane %v10052_v6, %v18385_v46  ;;  %v10798_v6 = vrot.slane %v10082_v56, %v18246_v62  ;;  %v13199_v56 = vsel %vm13071_vm10, 1.0, %v23047_v38 }
 0x780   : > { %v10051_v39 = vrot.slane %v10037_v35, %v18385_v46  ;;  %v19363_v35 = vpop.permute.xlu1 %9576 }
 0x781   : > { %23059 = vst [vmem:[#allocation49_spill] sm:$0xff] %v19363_v35  ;;  %v10794_v47 = vrot.slane %v10074_v43, %v18246_v62 }
 0x782   : > { %11798 = vadd.xlane.f32.xlu0 %v11797_v53  ;;  %v13323_v53 = vmul.f32 %v13195_v57, %v19141_v50  ;;  %v19358_v57 = vsub.f32 %v9811_v59, %v10790_v40  ;;  %v10067_v1 = vrot.slane %v10051_v39, %v18385_v46  ;;  %v19370_v40 = vpop.permute.xlu0 %9597  ;;  %v11381_v59 = vsub.f32 %v9813_v48, %v10798_v6 }
 0x783   : > { %11795 = vadd.xlane.f32.xlu1 %v11794_v3  ;;  %v11800_v3 = vsel %vm2856_vm5, %v11642_v19, 0.0  ;;  %v10084_v19 = vcombine.high %v10074_v43, %v10074_v43  ;;  %23060 = vst [vmem:[#allocation54_spill] sm:$0xff] %v19370_v40  ;;  %v13327_v43 = vmul.f32 %v13199_v56, %v19187_v0  ;;  %v19379_v35 = vsub.f32 %v9812_v21, %v10794_v47 }
 0x784   : > { %v13471_v52 = vsel %vm2856_vm5, %v13323_v53, 0.0  ;;  %v10053_v53 = vcombine.high %v10051_v39, %v10051_v39  ;;  %v13474_v6 = vsel %vm2856_vm5, %v13324_v61, 0.0  ;;  %v10806_v39 = vrot.slane %v10067_v1, %v18246_v62  ;;  %v19389_v21 = vpop.permute.xlu1 %9590 }
 0x785   : > { %v10083_v33 = vcombine.high %v10067_v1, %v10067_v1  ;;  %v13200_v48 = vsel %vm13072_vm13, 1.0, %v23047_v38  ;;  %v19386_v18 = vmax.f32 %v11381_v59, 0.0  ;;  %23061 = vst [vmem:[#allocation46_spill] sm:$0xff] %v19389_v21  ;;  %v13483_v47 = vsel %vm2856_vm5, %v13327_v43, 0.0 }
 0x786   : > { %13466 = vadd.xlane.f32.xlu0 %v13465_v11  ;;  %v13325_v11 = vmul.f32 %v13197_v8, %v19166_v24  ;;  %v13198_v8 = vsel %vm13070_vm12, 1.0, %v23047_v38  ;;  %v19391_v56 = vsub.f32 %v9815_v25, %v10806_v39  ;;  %v19394_v61 = vpop.permute.xlu0 %9611  ;;  %v9816_v59 = vadd.f32 0.2, %v18862_v30 }
 0x787   : > { %11801 = vadd.xlane.f32.xlu1 %v11800_v3  ;;  %v13468_v3 = vsel %vm2856_vm5, %v13322_v32, 0.0  ;;  %v11507_v32 = vmax.f32 %v19358_v57, 0.0  ;;  %v13326_v54 = vmul.f32 %v13198_v8, %v19194_v63  ;;  %23062 = vst [vmem:[#allocation55_spill] sm:$0xff] %v19394_v61  ;;  %v11508_v8 = vmax.f32 %v19379_v35, 0.0 }
 0x788   : > { %v10814_v25 = vrot.slane %v10083_v33, %v18246_v62  ;;  %v11511_v43 = vmax.f32 %v19391_v56, 0.0  ;;  %v11645_v30 = vmul.f32 %v19141_v50, %v19386_v18  ;;  %vm13075_vm15 = vcmp.gt.f32.partialorder %v19386_v18, 0.0 }
 0x789   : > { %v11643_v1 = vmul.f32 %v19147_v55, %v11507_v32  ;;  %vm13073_vm14 = vcmp.gt.f32.partialorder %v11507_v32, 0.0  ;;  %v10086_v32 = vcombine.high %v18658_v36, %v18658_v36  ;;  %vm13074_vm0 = vcmp.gt.f32.partialorder %v11508_v8, 0.0 }
 0x78a   : > { %13472 = vadd.xlane.f32.xlu0 %v13471_v52  ;;  %v13477_v52 = vsel %vm2856_vm5, %v13325_v11, 0.0  ;;  %v10081_v11 = vrot.slane %v10053_v53, %v18385_v46  ;;  %v13328_v53 = vmul.f32 %v13200_v48, %v19209_v31  ;;  %v19413_v48 = vpop.permute.xlu1 %9604  ;;  %vm13077_vm1 = vcmp.gt.f32.partialorder %v11511_v43, 0.0 }
 0x78b   : > { %13469 = vadd.xlane.f32.xlu1 %v13468_v3  ;;  %v10802_v3 = vrot.slane %v10084_v19, %v18246_v62  ;;  %v9817_v19 = vadd.f32 0.2, %v18872_v4  ;;  %v11803_v35 = vsel %vm2856_vm5, %v11643_v1, 0.0  ;;  %23063 = vst [vmem:[#allocation47_spill] sm:$0xff] %v19413_v48  ;;  %v11647_v1 = vmul.f32 %v19166_v24, %v11511_v43 }
 0x78c   : > { %v10810_v4 = vrot.slane %v10081_v11, %v18246_v62  ;;  %v13486_v33 = vsel %vm2856_vm5, %v13328_v53, 0.0 }
 0x78d   : > { %v11382_v57 = vsub.f32 %v9814_v12, %v10802_v3  ;;  %v13480_v12 = vsel %vm2856_vm5, %v13326_v54, 0.0  ;;  %v10085_v3 = vcombine.high %v10081_v11, %v10081_v11  ;;  %v9818_v54 = vadd.f32 0.2, %v18874_v22  ;;  %v19417_v11 = vpop.permute.xlu0 %9625 }
 0x78e   : > { %13478 = vadd.xlane.f32.xlu0 %v13477_v52  ;;  %v19410_v39 = vsub.f32 %v9816_v59, %v10810_v4  ;;  %23064 = vst [vmem:[#allocation72_spill] sm:$0xff] %v19417_v11  ;;  %v19430_v4 = vpop.permute.xlu1 %9618  ;;  %v23113_v11 = vld [vmem:[#allocation131_spill] sm:$0xff] }
 0x78f   : > { %13475 = vadd.xlane.f32.xlu1 %v13474_v6  ;;  %v19403_v52 = vmax.f32 %v11382_v57, 0.0  ;;  %v11385_v6 = vsub.f32 %v9817_v19, %v10814_v25  ;;  %v11644_v57 = vmul.f32 %v19124_v20, %v11508_v8  ;;  %v10818_v56 = vrot.slane %v10085_v3, %v18246_v62  ;;  %23065 = vst [vmem:[#allocation64_spill] sm:$0xff] %v19430_v4  ;;  %v23112_v4 = vld [vmem:[#allocation101_spill] sm:$0xff] }
 0x790   : > { %v11512_v22 = vmax.f32 %v19410_v39, 0.0  ;;  %v10093_v25 = vrot.slane %v18658_v36, %v18385_v46  ;;  %v13202_v8 = vsel %vm13074_vm0, 1.0, %v23047_v38 }
 0x791   : > { %v19420_v19 = vmax.f32 %v11385_v6, 0.0  ;;  %v11386_v59 = vsub.f32 %v9818_v54, %v10818_v56  ;;  %v11646_v53 = vmul.f32 %v19171_v45, %v19403_v52  ;;  %v19432_v3 = vpop.permute.xlu0 %9639  ;;  %v11815_v6 = vsel %vm2856_vm5, %v11647_v1, 0.0 }
 0x792   : > { %13484 = vadd.xlane.f32.xlu0 %v13483_v47  ;;  %v11809_v47 = vsel %vm2856_vm5, %v11645_v30, 0.0  ;;  %23066 = vst [vmem:[#allocation73_spill] sm:$0xff] %v19432_v3  ;;  %v11648_v54 = vmul.f32 %v19194_v63, %v11512_v22  ;;  %v19447_v1 = vpop.permute.xlu1 %9632  ;;  %vm13076_vm2 = vcmp.gt.f32.partialorder %v19403_v52, 0.0  ;;  %vm13078_vm4 = vcmp.gt.f32.partialorder %v11512_v22, 0.0 }
 0x793   : > { %13481 = vadd.xlane.f32.xlu1 %v13480_v12  ;;  %v11806_v12 = vsel %vm2856_vm5, %v11644_v57, 0.0  ;;  %v19437_v30 = vmax.f32 %v11386_v59, 0.0  ;;  %v11812_v39 = vsel %vm2856_vm5, %v11646_v53, 0.0  ;;  %v10101_v57 = vcombine.high %v10093_v25, %v10093_v25  ;;  %23067 = vst [vmem:[#allocation65_spill] sm:$0xff] %v19447_v1 }
 0x794   : > { %v11818_v59 = vsel %vm2856_vm5, %v11648_v54, 0.0  ;;  %v13203_v53 = vsel %vm13075_vm15, 1.0, %v23047_v38  ;;  %v9820_v54 = vadd.f32 0.2, %v18882_v58  ;;  %vm13079_vm3 = vcmp.gt.f32.partialorder %v19420_v19, 0.0 }
 0x795   : > { %v10123_v18 = vrot.slane %v10101_v57, %v18385_v46  ;;  %v9819_v58 = vadd.f32 0.2, %v18880_v29  ;;  %vm13080_vm6 = vcmp.gt.f32.partialorder %v19437_v30, 0.0 }
 0x796   : > { %11804 = vadd.xlane.f32.xlu0 %v11803_v35  ;;  %v11649_v35 = vmul.f32 %v19187_v0, %v19420_v19 }
 0x797   : > { %13487 = vadd.xlane.f32.xlu1 %v13486_v33  ;;  %v13201_v33 = vsel %vm13073_vm14, 1.0, %v23047_v38  ;;  %v10826_v43 = vrot.slane %v10123_v18, %v18246_v62 }
 0x798   : > { %v11821_v56 = vsel %vm2856_vm5, %v11649_v35, 0.0  ;;  %v10109_v35 = vrot.slane %v10093_v25, %v18385_v46  ;;  %v10133_v25 = vcombine.high %v10123_v18, %v10123_v18 }
 0x79a   : > { %11810 = vadd.xlane.f32.xlu0 %v11809_v47  ;;  %v13329_v47 = vmul.f32 %v13201_v33, %v19147_v55  ;;  %v10131_v52 = vcombine.high %v10109_v35, %v10109_v35  ;;  %v10822_v1 = vrot.slane %v10109_v35, %v18246_v62  ;;  %v10834_v22 = vrot.slane %v10133_v25, %v18246_v62 }
 0x79b   : > { %11807 = vadd.xlane.f32.xlu1 %v11806_v12  ;;  %v11650_v12 = vmul.f32 %v19209_v31, %v19437_v30  ;;  %v9824_v25 = vadd.f32 0.2, %v18900_v5 }
 0x79c   : > { %v13489_v33 = vsel %vm2856_vm5, %v13329_v47, 0.0 }
 0x79d   : > { %v11824_v57 = vsel %vm2856_vm5, %v11650_v12, 0.0  ;;  %v19472_v12 = vsub.f32 %v9820_v54, %v10826_v43  ;;  %v11387_v54 = vsub.f32 %v9819_v58, %v10822_v1 }
 0x79e   : > { %11816 = vadd.xlane.f32.xlu0 %v11815_v6  ;;  %v19454_v6 = vpop.permute.xlu0 %9653 }
 0x79f   : > { %11813 = vadd.xlane.f32.xlu1 %v11812_v39  ;;  %23068 = vst [vmem:[#allocation70_spill] sm:$0xff] %v19454_v6  ;;  %v10100_v39 = vrot.slane %v10086_v32, %v18385_v46  ;;  %v13205_v6 = vsel %vm13077_vm1, 1.0, %v23047_v38  ;;  %v13204_v32 = vsel %vm13076_vm2, 1.0, %v23047_v38 }
 0x7a0   : > { %v13332_v19 = vmul.f32 %v13204_v32, %v19171_v45 }
 0x7a1   : > { %v10102_v47 = vcombine.high %v10100_v39, %v10100_v39  ;;  %v10116_v58 = vrot.slane %v10100_v39, %v18385_v46 }
 0x7a2   : > { %11822 = vadd.xlane.f32.xlu0 %v11821_v56  ;;  %v13331_v56 = vmul.f32 %v13203_v53, %v19141_v50  ;;  %v19470_v53 = vpop.permute.xlu1 %9646  ;;  %v13498_v30 = vsel %vm2856_vm5, %v13332_v19, 0.0 }
 0x7a3   : > { %11819 = vadd.xlane.f32.xlu1 %v11818_v59  ;;  %v13330_v59 = vmul.f32 %v13202_v8, %v19124_v20  ;;  %23069 = vst [vmem:[#allocation62_spill] sm:$0xff] %v19470_v53  ;;  %v9822_v8 = vadd.f32 0.2, %v18890_v49  ;;  %v13207_v53 = vsel %vm13079_vm3, 1.0, %v23047_v38  ;;  %v13206_v49 = vsel %vm13078_vm4, 1.0, %v23047_v38 }
 0x7a4   : > { %v13495_v18 = vsel %vm2856_vm5, %v13331_v56, 0.0  ;;  %v10830_v56 = vrot.slane %v10131_v52, %v18246_v62  ;;  %v10130_v35 = vrot.slane %v10102_v47, %v18385_v46  ;;  %v13334_v1 = vmul.f32 %v13206_v49, %v19194_v63 }
 0x7a5   : > { %v13492_v29 = vsel %vm2856_vm5, %v13330_v59, 0.0  ;;  %v11390_v43 = vsub.f32 %v9822_v8, %v10834_v22  ;;  %v11515_v47 = vmax.f32 %v11387_v54, 0.0  ;;  %v9823_v22 = vadd.f32 0.2, %v18898_v10 }
 0x7a6   : > { %13490 = vadd.xlane.f32.xlu0 %v13489_v33  ;;  %v19475_v33 = vpop.permute.xlu0 %9667  ;;  %v9826_v59 = vadd.f32 0.2, %v18912_v34  ;;  %v13504_v39 = vsel %vm2856_vm5, %v13334_v1, 0.0  ;;  %v23073_v54 = vmax.f32 %v19472_v12, 0.0  ;;  %v23075_v34 = vld [vmem:[#allocation68_spill] sm:$0xff] }
 0x7a7   : > { %11825 = vadd.xlane.f32.xlu1 %v11824_v57  ;;  %23070 = vst [vmem:[#allocation71_spill] sm:$0xff] %v19475_v33  ;;  %v13333_v57 = vmul.f32 %v13205_v6, %v19166_v24  ;;  %v9821_v6 = vadd.f32 0.2, %v18888_v14  ;;  %v13208_v14 = vsel %vm13080_vm6, 1.0, %v23047_v38  ;;  %v19502_v5 = vmax.f32 %v11390_v43, 0.0 }
 0x7a8   : > { %v13336_v49 = vmul.f32 %v13208_v14, %v19209_v31  ;;  %vm13081_vm7 = vcmp.gt.f32.partialorder %v11515_v47, 0.0 }
 0x7a9   : > { %v13501_v32 = vsel %vm2856_vm5, %v13333_v57, 0.0  ;;  %v11389_v8 = vsub.f32 %v9821_v6, %v10830_v56  ;;  %v10134_v57 = vcombine.high %v10130_v35, %v10130_v35  ;;  %v11652_v56 = vmul.f32 %v19124_v20, %v23073_v54 }
 0x7aa   : > { %13496 = vadd.xlane.f32.xlu0 %v13495_v18  ;;  %v13335_v18 = vmul.f32 %v13207_v53, %v19187_v0  ;;  %v19499_v52 = vpop.permute.xlu0 %9681  ;;  %v10842_v53 = vrot.slane %v10130_v35, %v18246_v62  ;;  %v10838_v6 = vrot.slane %v10116_v58, %v18246_v62  ;;  %v10132_v35 = vcombine.high %v10116_v58, %v10116_v58 }
 0x7ab   : > { %13493 = vadd.xlane.f32.xlu1 %v13492_v29  ;;  %v19493_v29 = vpop.permute.xlu1 %9660  ;;  %23072 = vst [vmem:[#allocation88_spill] sm:$0xff] %v19499_v52  ;;  %v19513_v43 = vmax.f32 %v11389_v8, 0.0  ;;  %v10850_v10 = vrot.slane %v10134_v57, %v18246_v62  ;;  %v13510_v1 = vsel %vm2856_vm5, %v13336_v49, 0.0  ;;  %v11830_v58 = vsel %vm2856_vm5, %v11652_v56, 0.0 }
 0x7ac   : > { %23071 = vst [vmem:[#allocation63_spill] sm:$0xff] %v19493_v29  ;;  %v13507_v19 = vsel %vm2856_vm5, %v13335_v18, 0.0  ;;  %v11654_v8 = vmul.f32 %v19171_v45, %v19502_v5  ;;  %v10846_v57 = vrot.slane %v10132_v35, %v18246_v62  ;;  %v23078_v35 = vld [vmem:[#allocation41_spill] sm:$0xff]  ;;  %vm13084_vm9 = vcmp.gt.f32.partialorder %v19502_v5, 0.0 }
 0x7ad   : > { %v11394_v54 = vsub.f32 %v9826_v59, %v10850_v10  ;;  %v11653_v49 = vmul.f32 %v19141_v50, %v19513_v43  ;;  %v10142_v10 = vrot.slane %v23078_v35, %v18385_v46  ;;  %vm13083_vm10 = vcmp.gt.f32.partialorder %v19513_v43, 0.0 }
 0x7ae   : > { %13502 = vadd.xlane.f32.xlu0 %v13501_v32  ;;  %v11392_v32 = vsub.f32 %v9824_v25, %v10842_v53  ;;  %v19518_v25 = vsub.f32 %v9823_v22, %v10838_v6  ;;  %v19521_v14 = vpop.permute.xlu0 %9695  ;;  %v11651_v53 = vmul.f32 %v19147_v55, %v11515_v47  ;;  %v10135_v47 = vcombine.high %v23078_v35, %v23078_v35 }
 0x7af   : > { %13499 = vadd.xlane.f32.xlu1 %v13498_v30  ;;  %v19516_v18 = vpop.permute.xlu1 %9674  ;;  %v9825_v30 = vadd.f32 0.2, %v23075_v34  ;;  %23076 = vst [vmem:[#allocation89_spill] sm:$0xff] %v19521_v14  ;;  %v19533_v34 = vmax.f32 %v11394_v54, 0.0  ;;  %v10158_v5 = vrot.slane %v10142_v10, %v18385_v46  ;;  %v13211_v43 = vsel %vm13083_vm10, 1.0, %v23047_v38 }
 0x7b0   : > { %23074 = vst [vmem:[#allocation80_spill] sm:$0xff] %v19516_v18  ;;  %v11519_v22 = vmax.f32 %v19518_v25, 0.0  ;;  %v11827_v6 = vsel %vm2856_vm5, %v11651_v53, 0.0  ;;  %vm1744_vm10 = vcmask 1043459  }
 0x7b1   : > { %vm13088_vm15 = vcmp.gt.f32.partialorder %v19533_v34, 0.0 }
 0x7b2   : > { %13508 = vadd.xlane.f32.xlu0 %v13507_v19  ;;  %v11520_v19 = vmax.f32 %v11392_v32, 0.0  ;;  %v11836_v32 = vsel %vm2856_vm5, %v11654_v8, 0.0  ;;  %v11655_v53 = vmul.f32 %v19166_v24, %v11519_v22  ;;  %v10150_v8 = vcombine.high %v10142_v10, %v10142_v10 }
 0x7b3   : > { %13505 = vadd.xlane.f32.xlu1 %v13504_v39  ;;  %v11393_v39 = vsub.f32 %v9825_v30, %v10846_v57  ;;  %v19535_v59 = vpop.permute.xlu1 %9688  ;;  %v11833_v30 = vsel %vm2856_vm5, %v11653_v49, 0.0  ;;  %v13209_v57 = vsel %vm13081_vm7, 1.0, %v23047_v38  ;;  %vm13085_vm13 = vcmp.gt.f32.partialorder %v11519_v22, 0.0 }
 0x7b4   : > { %23077 = vst [vmem:[#allocation81_spill] sm:$0xff] %v19535_v59  ;;  %v11656_v56 = vmul.f32 %v19194_v63, %v11520_v19  ;;  %vm13086_vm12 = vcmp.gt.f32.partialorder %v11520_v19, 0.0  ;;  %v23085_v19 = vld [vmem:[#allocation61_spill] sm:$0xff]  ;;  %v13339_v59 = vmul.f32 %v13211_v43, %v19141_v50  ;;  %vm1741_vm7 = vcmask 1041409  }
 0x7b5   : > { %v11521_v25 = vmax.f32 %v11393_v39, 0.0 }
 0x7b6   : > { %13511 = vadd.xlane.f32.xlu0 %v13510_v1  ;;  %v19541_v1 = vpop.permute.xlu0 %9709  ;;  %v11842_v54 = vsel %vm2856_vm5, %v11656_v56, 0.0 }
 0x7b7   : > { %11831 = vadd.xlane.f32.xlu1 %v11830_v58  ;;  %23079 = vst [vmem:[#allocation86_spill] sm:$0xff] %v19541_v1  ;;  %v11658_v58 = vmul.f32 %v19209_v31, %v19533_v34  ;;  %v19553_v39 = vpop.permute.xlu1 %9702  ;;  %v11657_v56 = vmul.f32 %v19187_v0, %v11521_v25  ;;  %v13212_v1 = vsel %vm13084_vm9, 1.0, %v23047_v38  ;;  %vm13087_vm14 = vcmp.gt.f32.partialorder %v11521_v25, 0.0  ;;  %v23087_v25 = vld [vmem:[#allocation33_spill] sm:$0xff] }
 0x7b8   : > { %23081 = vst [vmem:[#allocation78_spill] sm:$0xff] %v19553_v39  ;;  %v23091_v34 = vld [vmem:[#allocation77_spill] sm:$0xff] }
 0x7ba   : > { %11828 = vadd.xlane.f32.xlu0 %v11827_v6  ;;  %v23080_v6 = vmax.f32 %v19472_v12, 0.0  ;;  %v19556_v49 = vpop.permute.xlu0 %9723 }
 0x7bb   : > { %11837 = vadd.xlane.f32.xlu1 %v11836_v32  ;;  %23082 = vst [vmem:[#allocation87_spill] sm:$0xff] %v19556_v49  ;;  %v11839_v32 = vsel %vm2856_vm5, %v11655_v53, 0.0  ;;  %v10149_v53 = vrot.slane %v10135_v47, %v18385_v46  ;;  %v19571_v49 = vpop.permute.xlu1 %9716 }
 0x7bc   : > { %vm13082_vm8 = vcmp.gt.f32.partialorder %v23080_v6, 0.0  ;;  %v10172_v6 = vrot.slane %v10150_v8, %v18385_v46  ;;  %23083 = vst [vmem:[#allocation79_spill] sm:$0xff] %v19571_v49 }
 0x7bd   : > { %v13210_v12 = vsel %vm13082_vm8, 1.0, %v23047_v38  ;;  %v10151_v49 = vcombine.high %v10149_v53, %v10149_v53  ;;  %vm1742_vm8 = vcmask 1042434  }
 0x7be   : > { %11834 = vadd.xlane.f32.xlu0 %v11833_v30  ;;  %v11848_v30 = vsel %vm2856_vm5, %v11658_v58, 0.0  ;;  %v11845_v58 = vsel %vm2856_vm5, %v11657_v56, 0.0  ;;  %v10858_v10 = vrot.slane %v10172_v6, %v18246_v62  ;;  %v10182_v39 = vcombine.high %v10172_v6, %v10172_v6  ;;  %v19577_v47 = vpop.permute.xlu0 %9737 }
 0x7bf   : > { %11843 = vadd.xlane.f32.xlu1 %v11842_v54  ;;  %v13337_v54 = vmul.f32 %v13209_v57, %v19147_v55  ;;  %v13338_v57 = vmul.f32 %v13210_v12, %v19124_v20  ;;  %23084 = vst [vmem:[#allocation104_spill] sm:$0xff] %v19577_v47  ;;  %v9827_v56 = vadd.f32 0.2, %v23085_v19  ;;  %v10180_v12 = vcombine.high %v10158_v5, %v10158_v5  ;;  %v19600_v43 = vpop.permute.xlu1 %9730 }
 0x7c0   : > { %v10854_v6 = vrot.slane %v10158_v5, %v18246_v62  ;;  %v13213_v19 = vsel %vm13085_vm13, 1.0, %v23047_v38  ;;  %v10866_v47 = vrot.slane %v10182_v39, %v18246_v62  ;;  %v23088_v5 = vld [vmem:[#allocation76_spill] sm:$0xff]  ;;  %23089 = vst [vmem:[#allocation96_spill] sm:$0xff] %v19600_v43 }
 0x7c1   : > { %v13513_v8 = vsel %vm2856_vm5, %v13337_v54, 0.0  ;;  %v23086_v54 = vld [vmem:[#allocation69_spill] sm:$0xff]  ;;  %v13516_v14 = vsel %vm2856_vm5, %v13338_v57, 0.0  ;;  %v9829_v57 = vadd.f32 0.2, %v23088_v5  ;;  %v13341_v18 = vmul.f32 %v13213_v19, %v19166_v24  ;;  %v23092_v5 = vld [vmem:[#allocation132_spill] sm:$0xff] }
 0x7c2   : > { %11840 = vadd.xlane.f32.xlu0 %v11839_v32  ;;  %v9828_v32 = vadd.f32 0.2, %v18920_v16  ;;  %v13214_v16 = vsel %vm13086_vm12, 1.0, %v23047_v38  ;;  %v19595_v50 = vsub.f32 %v9827_v56, %v10854_v6  ;;  %v9832_v56 = vadd.f32 0.2, %v23091_v34 }
 0x7c3   : > { %11849 = vadd.xlane.f32.xlu1 %v11848_v30  ;;  %v13340_v30 = vmul.f32 %v13212_v1, %v19171_v45  ;;  %v9830_v1 = vadd.f32 0.2, %v23086_v54  ;;  %v13342_v22 = vmul.f32 %v13214_v16, %v19194_v63  ;;  %v19603_v54 = vpop.permute.xlu0 %9751  ;;  %v8852_v43 = vmul.f32 %v23092_v5, %v18635_v17 }
 0x7c4   : > { %23090 = vst [vmem:[#allocation105_spill] sm:$0xff] %v19603_v54  ;;  %v11523_v24 = vmax.f32 %v19595_v50, 0.0  ;;  %v13525_v39 = vsel %vm2856_vm5, %v13341_v18, 0.0  ;;  %v9834_v5 = vadd.f32 0.2, %v18950_v60  ;;  %v19626_v54 = vpop.permute.xlu1 %9744  ;;  %vm1746_vm12 = vcmask 1044484  }
 0x7c5   : > { %v11398_v16 = vsub.f32 %v9830_v1, %v10866_v47  ;;  %v10165_v47 = vrot.slane %v10149_v53, %v18385_v46  ;;  %23094 = vst [vmem:[#allocation97_spill] sm:$0xff] %v19626_v54  ;;  %v19640_v60 = vsel %vm8866_vm11, %v8852_v43, 0.0 }
 0x7c6   : > { %11846 = vadd.xlane.f32.xlu0 %v11845_v58  ;;  %v19581_v58 = vsub.f32 %v9828_v32, %v10858_v10  ;;  %v10191_v32 = vrot.slane %v23087_v25, %v18385_v46  ;;  %v13215_v10 = vsel %vm13087_vm14, 1.0, %v23047_v38  ;;  %vm19715_vm0 = vcmp.gt.f32.partialorder %v11523_v24, 0.0 }
 0x7c7   : > { %13514 = vadd.xlane.f32.xlu1 %v13513_v8  ;;  %v13522_v8 = vsel %vm2856_vm5, %v13340_v30, 0.0  ;;  %v10179_v30 = vrot.slane %v10151_v49, %v18385_v46  ;;  %v13343_v6 = vmul.f32 %v13215_v10, %v19187_v0  ;;  %v13216_v49 = vsel %vm13088_vm15, 1.0, %v23047_v38  ;;  %v23093_v0 = vld [vmem:[#allocation84_spill] sm:$0xff] }
 0x7c8   : > { %v10199_v1 = vcombine.high %v10191_v32, %v10191_v32  ;;  %v19618_v34 = vmax.f32 %v11398_v16, 0.0  ;;  %v9831_v10 = vadd.f32 0.2, %v23093_v0  ;;  %v13344_v17 = vmul.f32 %v13216_v49, %v19209_v31 }
 0x7c9   : > { %v13531_v50 = vsel %vm2856_vm5, %v13343_v6, 0.0  ;;  %v10181_v16 = vcombine.high %v10165_v47, %v10165_v47  ;;  %v19634_v18 = vrot.slane %v10191_v32, %v18385_v46  ;;  %vm1748_vm14 = vcmask 1045509  }
 0x7ca   : > { %13517 = vadd.xlane.f32.xlu0 %v13516_v14  ;;  %v10862_v14 = vrot.slane %v10180_v12, %v18246_v62  ;;  %v13528_v12 = vsel %vm2856_vm5, %v13342_v22, 0.0  ;;  %v10183_v22 = vcombine.high %v10179_v30, %v10179_v30  ;;  %vm13092_vm2 = vcmp.gt.f32.partialorder %v19618_v34, 0.0 }
 0x7cb   : > { %13523 = vadd.xlane.f32.xlu1 %v13522_v8  ;;  %v13519_v8 = vsel %vm2856_vm5, %v13339_v59, 0.0  ;;  %v10184_v59 = vcombine.high %v23087_v25, %v23087_v25 }
 0x7cc   : > { %v11397_v19 = vsub.f32 %v9829_v57, %v10862_v14  ;;  %v23095_v14 = vmax.f32 %v19581_v58, 0.0  ;;  %v10882_v6 = vrot.slane %v10183_v22, %v18246_v62 }
 0x7ce   : > { %13520 = vadd.xlane.f32.xlu0 %v13519_v8  ;;  %v10874_v8 = vrot.slane %v10179_v30, %v18246_v62  ;;  %v11660_v57 = vmul.f32 %v19124_v20, %v23095_v14  ;;  %v10870_v30 = vrot.slane %v10165_v47, %v18246_v62  ;;  %v19646_v20 = vrot.slane %v10199_v1, %v18385_v46  ;;  %v23097_v47 = vld [vmem:[#allocation85_spill] sm:$0xff] }
 0x7cf   : > { %13529 = vadd.xlane.f32.xlu1 %v13528_v12  ;;  %v19637_v12 = vpop.permute.xlu0 %9765  ;;  %v9833_v32 = vadd.f32 0.2, %v23097_v47  ;;  %v23098_v1 = vld [vmem:[#allocation133_spill] sm:$0xff] }
 0x7d0   : > { %v19623_v53 = vsub.f32 %v9832_v56, %v10874_v8  ;;  %v10198_v56 = vrot.slane %v10184_v59, %v18385_v46  ;;  %23096 = vst [vmem:[#allocation102_spill] sm:$0xff] %v19637_v12  ;;  %v19648_v49 = vsub.f32 %v9831_v10, %v10870_v30  ;;  %v13534_v8 = vsel %vm2856_vm5, %v13344_v17, 0.0 }
 0x7d1   : > { %v11659_v59 = vmul.f32 %v19147_v55, %v11523_v24  ;;  %v11854_v43 = vsel %vm2856_vm5, %v11660_v57, 0.0  ;;  %v19659_v22 = vmul.f32 %v23098_v1, %v18658_v36  ;;  %v10878_v10 = vrot.slane %v10181_v16, %v18246_v62  ;;  %v23100_v36 = vld [vmem:[#allocation44_spill] sm:$0xff] }
 0x7d2   : > { %13526 = vadd.xlane.f32.xlu0 %v13525_v39  ;;  %v19642_v39 = vmax.f32 %v11397_v19, 0.0  ;;  %v22654_v0 = vmax.f32 %v19623_v53, 0.0  ;;  %v11662_v19 = vmul.f32 %v19171_v45, %v19618_v34  ;;  %v10229_v17 = vcombine.high %v19634_v18, %v19634_v18 }
 0x7d3   : > { %13532 = vadd.xlane.f32.xlu1 %v13531_v50  ;;  %v11402_v50 = vsub.f32 %v9834_v5, %v10882_v6  ;;  %v19665_v55 = vrot.slane %v10198_v56, %v18385_v46  ;;  %v23099_v5 = vld [vmem:[#allocation2_spill] sm:$0xff]  ;;  %v10200_v57 = vcombine.high %v10198_v56, %v10198_v56  ;;  %v10240_v30 = vrot.slane %v23100_v36, %v18385_v46  ;;  %v19675_v6 = vpop.permute.xlu1 %9758 }
 0x7d4   : > { %v19669_v14 = vmul.f32 %v23099_v5, %v23078_v35  ;;  %23101 = vst [vmem:[#allocation94_spill] sm:$0xff] %v19675_v6  ;;  %v11401_v47 = vsub.f32 %v9833_v32, %v10878_v10  ;;  %v19684_v35 = vld [vmem:[%s22462_s4 + $0x10] sm:$0xff]  ;;  %v10231_v5 = vcombine.high %v19646_v20, %v19646_v20  ;;  %v11860_v32 = vsel %vm2856_vm5, %v11662_v19, 0.0 }
 0x7d5   : > { %v11661_v56 = vmul.f32 %v19684_v35, %v19642_v39  ;;  %v19688_v1 = vmax.f32 %v11402_v50, 0.0  ;;  %v10890_v10 = vrot.slane %v19646_v20, %v18246_v62  ;;  %v19699_v45 = vrot.slane %v10229_v17, %v18246_v62  ;;  %v19764_v20 = vld [vmem:[%s22462_s4 + $0x30] sm:$0xff] }
 0x7d6   : > { %13535 = vadd.xlane.f32.xlu0 %v13534_v8  ;;  %v19678_v8 = vpop.permute.xlu0 %9779  ;;  %v10230_v50 = vcombine.high %v19665_v55, %v19665_v55  ;;  %v10233_v16 = vcombine.high %v23100_v36, %v23100_v36  ;;  %v19709_v19 = vrot.slane %v10240_v30, %v18385_v46  ;;  %v11529_v17 = vmax.f32 %v11401_v47, 0.0 }
 0x7d7   : > { %11855 = vadd.xlane.f32.xlu1 %v11854_v43  ;;  %23102 = vst [vmem:[#allocation103_spill] sm:$0xff] %v19678_v8  ;;  %v11851_v43 = vsel %vm2856_vm5, %v11659_v59, 0.0  ;;  %v11664_v59 = vmul.f32 %v19194_v63, %v22654_v0  ;;  %v23103_v63 = vld [vmem:[#allocation40_spill] sm:$0xff]  ;;  %v10248_v6 = vcombine.high %v10240_v30, %v10240_v30  ;;  %v11857_v54 = vsel %vm2856_vm5, %v11661_v56, 0.0  ;;  %v19731_v24 = vpop.permute.xlu1 %9772 }
 0x7d8   : > { %v19713_v0 = vrot.slane %v23103_v63, %v18385_v46  ;;  %v19729_v12 = vrot.slane %v10231_v5, %v18246_v62  ;;  %23107 = vst [vmem:[#allocation95_spill] sm:$0xff] %v19731_v24  ;;  %v11666_v30 = vmul.f32 %v19209_v31, %v19688_v1  ;;  %v23108_v56 = vmax.f32 %v19581_v58, 0.0 }
 0x7d9   : > { %v11866_v47 = vsel %vm2856_vm5, %v11664_v59, 0.0  ;;  %v19741_v52 = vrot.slane %v10230_v50, %v18246_v62  ;;  %v19744_v5 = vrot.slane %v10233_v16, %v18385_v46  ;;  %v9836_v31 = vadd.f32 0.2, %v18958_v42 }
 0x7da   : > { %11852 = vadd.xlane.f32.xlu0 %v11851_v43  ;;  %v19706_v43 = vrot.slane %v10200_v57, %v18385_v46  ;;  %v19723_v57 = vld [vmem:[%s22462_s4 + $0x20] sm:$0xff]  ;;  %vm13090_vm1 = vcmp.gt.f32.partialorder %v23108_v56, 0.0  ;;  %v10278_v59 = vcombine.high %v19709_v19, %v19709_v19  ;;  %v19758_v16 = vrot.slane %v10248_v6, %v18385_v46 }
 0x7db   : > { %11861 = vadd.xlane.f32.xlu1 %v11860_v32  ;;  %v23106_v32 = vmax.f32 %v19648_v49, 0.0  ;;  %v11665_v42 = vmul.f32 %v19764_v20, %v11529_v17  ;;  %v11872_v6 = vsel %vm2856_vm5, %v11666_v30, 0.0  ;;  %v19782_v33 = vrot.slane %v19744_v5, %v18385_v46 }
 0x7dc   : > { %v10232_v58 = vcombine.high %v19706_v43, %v19706_v43  ;;  %v10906_v56 = vrot.slane %v19706_v43, %v18246_v62  ;;  %vm13091_vm3 = vcmp.gt.f32.partialorder %v19642_v39, 0.0  ;;  %v19788_v30 = vsub.f32 %v9836_v31, %v10890_v10  ;;  %v23114_v10 = vld [vmem:[#allocation100_spill] sm:$0xff] }
 0x7dd   : > { %v11663_v8 = vmul.f32 %v19723_v57, %v23106_v32  ;;  %v19746_v32 = vpop.permute.xlu0 %9793  ;;  %vm13095_vm4 = vcmp.gt.f32.partialorder %v11529_v17, 0.0  ;;  %v19804_v3 = vrot.slane %v10278_v59, %v18246_v62  ;;  %v11869_v31 = vsel %vm2856_vm5, %v11665_v42, 0.0  ;;  %v19815_v17 = vld [vmem:[%s22462_s4 + $0x18] sm:$0xff] }
 0x7de   : > { %11858 = vadd.xlane.f32.xlu0 %v11857_v54  ;;  %23109 = vst [vmem:[#allocation116_spill] sm:$0xff] %v19746_v32  ;;  %v13217_v54 = vsel %vm19715_vm0, 1.0, %v23047_v38  ;;  %v9838_v32 = vadd.f32 0.2, %v18966_v28  ;;  %v19791_v29 = vrot.slane %v10232_v58, %v18246_v62  ;;  %v19798_v28 = vld [vmem:[%s22462_s4 + $0x8] sm:$0xff]  ;;  %v10249_v58 = vcombine.high %v19744_v5, %v19744_v5 }
 0x7df   : > { %11867 = vadd.xlane.f32.xlu1 %v11866_v47  ;;  %v11863_v50 = vsel %vm2856_vm5, %v11663_v8, 0.0  ;;  %v13218_v47 = vsel %vm13090_vm1, 1.0, %v23047_v38  ;;  %v19776_v8 = vld [vmem:[%s22462_s4] sm:$0xff]  ;;  %v13219_v59 = vsel %vm13091_vm3, 1.0, %v23047_v38  ;;  %v9835_v21 = vadd.f32 0.2, %v23114_v10 }
 0x7e0   : > { %v13345_v24 = vmul.f32 %v19776_v8, %v13217_v54  ;;  %v19793_v54 = vpop.permute.xlu1 %9786  ;;  %v11406_v34 = vsub.f32 %v9838_v32, %v19729_v12  ;;  %vm13096_vm13 = vcmp.gt.f32.partialorder %v19688_v1, 0.0 }
 0x7e1   : > { %23110 = vst [vmem:[#allocation110_spill] sm:$0xff] %v19793_v54 }
 0x7e2   : > { %11864 = vadd.xlane.f32.xlu0 %v11863_v50  ;;  %v13220_v50 = vsel %vm13092_vm2, 1.0, %v23047_v38  ;;  %v13537_v54 = vsel %vm2856_vm5, %v13345_v24, 0.0  ;;  %v13223_v24 = vsel %vm13095_vm4, 1.0, %v23047_v38  ;;  %v19838_v61 = vmax.f32 %v11406_v34, 0.0 }
 0x7e3   : > { %11873 = vadd.xlane.f32.xlu1 %v11872_v6  ;;  %v11760_v43 = vpop.xlane.xlu0 %11759  ;;  %v13346_v6 = vmul.f32 %v19798_v28, %v13218_v47  ;;  %v13348_v47 = vmul.f32 %v19815_v17, %v13220_v50  ;;  %v9840_v50 = vadd.f32 0.2, %v23112_v4 }
 0x7e4   : > { %v12274_v12 = vrot.slane %v11760_v43, %v23113_v11  ;;  %vm13100_vm0 = vcmp.gt.f32.partialorder %v19838_v61, 0.0 }
 0x7e5   : > { %v13540_v39 = vsel %vm2856_vm5, %v13346_v6, 0.0  ;;  %v23115_v6 = vmax.f32 %v19623_v53, 0.0 }
 0x7e6   : > { %11870 = vadd.xlane.f32.xlu0 %v11869_v31  ;;  %v23111_v31 = vmax.f32 %v19648_v49, 0.0  ;;  %v13546_v49 = vsel %vm2856_vm5, %v13348_v47, 0.0 }
 0x7e7   : > { %13538 = vadd.xlane.f32.xlu1 %v13537_v54  ;;  %v11763_v5 = vpop.xlane.xlu0 %11762  ;;  %v13347_v54 = vmul.f32 %v19684_v35, %v13219_v59  ;;  %vm13094_vm9 = vcmp.gt.f32.partialorder %v23115_v6, 0.0  ;;  %v19843_v59 = vsub.f32 %v9840_v50, %v10906_v56  ;;  %v23116_v56 = vmax.f32 %v19788_v30, 0.0 }
 0x7e8   : > { %vm13093_vm6 = vcmp.gt.f32.partialorder %v23111_v31, 0.0  ;;  %v11757_v48 = vpop.xlane.xlu1 %11756  ;;  %v12278_v42 = vrot.slane %v11763_v5, %v23113_v11  ;;  %v13351_v31 = vmul.f32 %v19764_v20, %v13223_v24  ;;  %v9842_v5 = vadd.f32 0.2, %v18988_v44 }
 0x7e9   : > { %v12270_v32 = vrot.slane %v11757_v48, %v23113_v11  ;;  %v13221_v4 = vsel %vm13093_vm6, 1.0, %v23047_v38  ;;  %v13543_v34 = vsel %vm2856_vm5, %v13347_v54, 0.0  ;;  %v11668_v44 = vmul.f32 %v19798_v28, %v23116_v56 }
 0x7ea   : > { %13541 = vadd.xlane.f32.xlu0 %v13540_v39  ;;  %v13349_v10 = vmul.f32 %v19723_v57, %v13221_v4  ;;  %v13555_v53 = vsel %vm2856_vm5, %v13351_v31, 0.0  ;;  %v13222_v50 = vsel %vm13094_vm9, 1.0, %v23047_v38  ;;  %v19860_v54 = vrot.slane %v10249_v58, %v18385_v46  ;;  %v23118_v31 = vld [vmem:[#allocation93_spill] sm:$0xff] }
 0x7eb   : > { %v12779_v43 = vsel %vm1741_vm7, %v12274_v12, %v12270_v32  ;;  %13547 = vadd.xlane.f32.xlu1 %v13546_v49  ;;  %v11769_v48 = vpop.xlane.xlu0 %11768  ;;  %v13224_v56 = vsel %vm13096_vm13, 1.0, %v23047_v38 }
 0x7ec   : > { %v11766_v47 = vpop.xlane.xlu1 %11765  ;;  %v12780_v24 = vsel %vm1742_vm8, %v12278_v42, %v12779_v43  ;;  %v12286_v12 = vrot.slane %v11769_v48, %v23113_v11  ;;  %v23117_v42 = vrot.slane %v19634_v18, %v18246_v62  ;;  %v9837_v43 = vadd.f32 0.2, %v23118_v31  ;;  %v23119_v48 = vld [vmem:[#allocation6_spill] sm:$0xff]  ;;  %v23120_v31 = vld [vmem:[#allocation7_spill] sm:$0xff] }
 0x7ed   : > { %v12282_v39 = vrot.slane %v11766_v47, %v23113_v11  ;;  %v9839_v6 = vadd.f32 0.2, %v23119_v48  ;;  %v13549_v58 = vsel %vm2856_vm5, %v13349_v10, 0.0  ;;  %v10279_v10 = vcombine.high %v19782_v33, %v19782_v33 }
 0x7ee   : > { %13544 = vadd.xlane.f32.xlu0 %v13543_v34  ;;  %v11403_v32 = vsub.f32 %v9835_v21, %v23117_v42  ;;  %v10281_v42 = vcombine.high %v19860_v54, %v19860_v54  ;;  %v9841_v48 = vadd.f32 0.2, %v23120_v31  ;;  %v23121_v21 = vcombine.high %v19758_v16, %v19758_v16 }
 0x7ef   : > { %v12781_v49 = vsel %vm1744_vm10, %v12282_v39, %v12780_v24  ;;  %13556 = vadd.xlane.f32.xlu1 %v13555_v53  ;;  %v19863_v4 = vpop.xlane.xlu0 %11774  ;;  %v19875_v24 = vld [vmem:[%s22462_s4 + $0x28] sm:$0xff]  ;;  %v11410_v39 = vsub.f32 %v9842_v5, %v19791_v29  ;;  %v11878_v53 = vsel %vm2856_vm5, %v11668_v44, 0.0  ;;  %v11405_v44 = vsub.f32 %v9837_v43, %v19699_v45  ;;  %v19912_v45 = vld [vmem:[%s22462_s4 + $0x38] sm:$0xff] }
 0x7f0   : > { %v11772_v47 = vpop.xlane.xlu1 %11771  ;;  %v12782_v34 = vsel %vm1746_vm12, %v12286_v12, %v12781_v49  ;;  %v13350_v1 = vmul.f32 %v19875_v24, %v13222_v50  ;;  %v11670_v12 = vmul.f32 %v19815_v17, %v19838_v61  ;;  %v10297_v49 = vcombine.high %v19713_v0, %v19713_v0 }
 0x7f1   : > { %v12290_v18 = vrot.slane %v11772_v47, %v23113_v11  ;;  %v11531_v5 = vmax.f32 %v11403_v32, 0.0  ;;  %v10282_v47 = vcombine.high %v23103_v63, %v23103_v63  ;;  %v19902_v40 = vrot.slane %v23121_v21, %v18246_v62 }
 0x7f2   : > { %13550 = vadd.xlane.f32.xlu0 %v13549_v58  ;;  %v13552_v32 = vsel %vm2856_vm5, %v13350_v1, 0.0  ;;  %v13352_v43 = vmul.f32 %v19912_v45, %v13224_v56  ;;  %v19918_v31 = vmax.f32 %v11410_v39, 0.0  ;;  %v11884_v21 = vsel %vm2856_vm5, %v11670_v12, 0.0 }
 0x7f3   : > { %v19890_v50 = vsel %vm1748_vm14, %v12290_v18, %v12782_v34  ;;  %11879 = vadd.xlane.f32.xlu1 %v11878_v53  ;;  %v13443_v29 = vpop.xlane.xlu0 %13442  ;;  %v19906_v34 = vrot.slane %v19713_v0, %v18385_v46  ;;  %v23122_v18 = vrot.slane %v19665_v55, %v18246_v62  ;;  %v23123_v0 = vmax.f32 %v19843_v59, 0.0 }
 0x7f4   : > { %v19896_v58 = vpop.xlane.xlu1 %11777  ;;  %v10938_v37 = vrot.slane %v19860_v54, %v18246_v62  ;;  %v19927_v41 = vrot.slane %v10279_v10, %v18246_v62  ;;  %v19930_v56 = vrot.slane %v10281_v42, %v18246_v62  ;;  %v19933_v55 = vrot.slane %v10297_v49, %v18385_v46 }
 0x7f5   : > { %v11407_v53 = vsub.f32 %v9839_v6, %v23122_v18  ;;  %v11672_v1 = vmul.f32 %v19875_v24, %v23123_v0  ;;  %v19935_v39 = vmax.f32 %v11405_v44, 0.0  ;;  %v11409_v12 = vsub.f32 %v9841_v48, %v19741_v52 }
 0x7f6   : > { %13553 = vadd.xlane.f32.xlu0 %v13552_v32  ;;  %v19939_v32 = vrot.slane %v10282_v47, %v18385_v46  ;;  %vm13097_vm15 = vcmp.gt.f32.partialorder %v11531_v5, 0.0  ;;  %v13956_v54 = vrot.slane %v13443_v29, %v23113_v11  ;;  %v13558_v42 = vsel %vm2856_vm5, %v13352_v43, 0.0 }
 0x7f7   : > { %11885 = vadd.xlane.f32.xlu1 %v11884_v21  ;;  %v13449_v6 = vpop.xlane.xlu0 %13448  ;;  %v11667_v49 = vmul.f32 %v19776_v8, %v11531_v5  ;;  %v11535_v0 = vmax.f32 %v11407_v53, 0.0  ;;  %v11890_v44 = vsel %vm2856_vm5, %v11672_v1, 0.0  ;;  %v11674_v52 = vmul.f32 %v19912_v45, %v19918_v31  ;;  %v23124_v53 = vld [vmem:[#allocation19_spill] sm:$0xff] }
 0x7f8   : > { %v13446_v18 = vpop.xlane.xlu1 %13445  ;;  %v13964_v21 = vrot.slane %v13449_v6, %v23113_v11  ;;  %v9844_v48 = vadd.f32 0.2, %v18996_v51  ;;  %v11537_v5 = vmax.f32 %v11409_v12, 0.0  ;;  %v9846_v43 = vadd.f32 0.2, %v19004_v13 }
 0x7f9   : > { %v13960_v10 = vrot.slane %v13446_v18, %v23113_v11  ;;  %v13225_v18 = vsel %vm13097_vm15, 1.0, %v23047_v38  ;;  %v9848_v6 = vadd.f32 0.2, %v23124_v53  ;;  %v11896_v61 = vsel %vm2856_vm5, %v11674_v52, 0.0 }
 0x7fa   : > { %13559 = vadd.xlane.f32.xlu0 %v13558_v42  ;;  %v13353_v13 = vmul.f32 %v19776_v8, %v13225_v18  ;;  %v13228_v12 = vsel %vm13100_vm0, 1.0, %v23047_v38  ;;  %vm13101_vm1 = vcmp.gt.f32.partialorder %v11535_v0, 0.0  ;;  %v11414_v52 = vsub.f32 %v9846_v43, %v19902_v40 }
 0x7fb   : > { %v14465_v47 = vsel %vm1741_vm7, %v13960_v10, %v13956_v54  ;;  %11891 = vadd.xlane.f32.xlu1 %v11890_v44  ;;  %v13455_v29 = vpop.xlane.xlu0 %13454  ;;  %v11875_v54 = vsel %vm2856_vm5, %v11667_v49, 0.0  ;;  %v11669_v10 = vmul.f32 %v19684_v35, %v19935_v39  ;;  %v13229_v40 = vsel %vm13101_vm1, 1.0, %v23047_v38 }
 0x7fc   : > { %v13452_v42 = vpop.xlane.xlu1 %13451  ;;  %v14466_v1 = vsel %vm1742_vm8, %v13964_v21, %v14465_v47  ;;  %v13972_v44 = vrot.slane %v13455_v29, %v23113_v11  ;;  %v23126_v21 = vrot.slane %v19758_v16, %v18246_v62  ;;  %v23127_v47 = vld [vmem:[#allocation18_spill] sm:$0xff]  ;;  %v23129_v43 = vmax.f32 %v19788_v30, 0.0 }
 0x7fd   : > { %v13968_v51 = vrot.slane %v13452_v42, %v23113_v11  ;;  %v19971_v53 = vadd.f32 0.2, %v23127_v47  ;;  %v23128_v29 = vld [vmem:[#allocation26_spill] sm:$0xff]  ;;  %v11671_v47 = vmul.f32 %v19723_v57, %v11535_v0  ;;  %vm13103_vm3 = vcmp.gt.f32.partialorder %v11537_v5, 0.0 }
 0x7fe   : > { %11876 = vadd.xlane.f32.xlu0 %v11875_v54  ;;  %v19968_v27 = vsub.f32 %v9844_v48, %v23126_v21  ;;  %v9847_v18 = vadd.f32 0.2, %v23128_v29  ;;  %v19978_v54 = vsub.f32 %v9848_v6, %v10938_v37  ;;  %v11881_v21 = vsel %vm2856_vm5, %v11669_v10, 0.0 }
 0x7ff   : > { %v14467_v49 = vsel %vm1744_vm10, %v13968_v51, %v14466_v1  ;;  %11897 = vadd.xlane.f32.xlu1 %v11896_v61  ;;  %v19974_v42 = vpop.xlane.xlu0 %13460  ;;  %v13356_v1 = vmul.f32 %v19815_v17, %v13228_v12  ;;  %v13561_v51 = vsel %vm2856_vm5, %v13353_v13, 0.0  ;;  %vm13098_vm2 = vcmp.gt.f32.partialorder %v23129_v43, 0.0 }
 0x800   : > { %v13458_v2 = vpop.xlane.xlu1 %13457  ;;  %v14468_v16 = vsel %vm1746_vm12, %v13972_v44, %v14467_v49  ;;  %v23130_v37 = vrot.slane %v19709_v19, %v18246_v62  ;;  %v11673_v44 = vmul.f32 %v19764_v20, %v11537_v5  ;;  %v22655_v61 = vmax.f32 %v19968_v27, 0.0 }
 0x801   : > { %v13976_v48 = vrot.slane %v13458_v2, %v23113_v11  ;;  %v11413_v30 = vsub.f32 %v19971_v53, %v19804_v3  ;;  %v20003_v13 = vmax.f32 %v11414_v52, 0.0  ;;  %v11887_v49 = vsel %vm2856_vm5, %v11671_v47, 0.0  ;;  %v23135_v2 = vld [vmem:[#allocation3_spill] sm:$0xff] }
 0x802   : > { %11882 = vadd.xlane.f32.xlu0 %v11881_v21  ;;  %v19992_v6 = vsub.f32 %v9843_v9, %v23130_v37  ;;  %v23131_v9 = vrot.slane %v19782_v33, %v18246_v62  ;;  %v13357_v29 = vmul.f32 %v19723_v57, %v13229_v40  ;;  %v13226_v5 = vsel %vm13098_vm2, 1.0, %v23047_v38  ;;  %v23132_v21 = vld [vmem:[#allocation38_spill] sm:$0xff]  ;;  %v23134_v40 = vld [vmem:[#allocation29_spill] sm:$0xff] }
 0x803   : > { %v19997_v0 = vsel %vm1748_vm14, %v13976_v48, %v14468_v16  ;;  %13562 = vadd.xlane.f32.xlu1 %v13561_v51  ;;  %v11781_v10 = vpop.xlane.xlu0 %11780  ;;  %v13231_v16 = vsel %vm13103_vm3, 1.0, %v23047_v38  ;;  %v22656_v48 = vmax.f32 %v19978_v54, 0.0  ;;  %v20018_v52 = vadd.f32 0.2, %v23132_v21 }
 0x804   : > { %v20008_v19 = vsub.f32 %v9847_v18, %v23131_v9  ;;  %v20010_v12 = vpop.xlane.xlu1 %13463  ;;  %v13570_v33 = vsel %vm2856_vm5, %v13356_v1, 0.0  ;;  %v23133_v18 = vld [vmem:[#allocation4_spill] sm:$0xff]  ;;  %v11893_v47 = vsel %vm2856_vm5, %v11673_v44, 0.0  ;;  %vm13099_vm4 = vcmp.gt.f32.partialorder %v19935_v39, 0.0 }
 0x805   : > { %v8855_v51 = vmul.f32 %v23133_v18, %v23087_v25  ;;  %v8871_v37 = vadd.f32 %v19640_v60, %v23134_v40  ;;  %v8872_v9 = vsel %vm8866_vm11, %v19659_v22, 0.0  ;;  %v13359_v1 = vmul.f32 %v19764_v20, %v13231_v16  ;;  %v23136_v16 = vld [vmem:[#allocation5_spill] sm:$0xff] }
 0x806   : > { %11888 = vadd.xlane.f32.xlu0 %v11887_v49  ;;  %v13354_v49 = vmul.f32 %v19798_v28, %v13226_v5  ;;  %v8856_v25 = vmul.f32 %v23135_v2, %v23100_v36  ;;  %v12302_v44 = vrot.slane %v11781_v10, %v23113_v11  ;;  %v13573_v60 = vsel %vm2856_vm5, %v13357_v29, 0.0 }
 0x807   : > { %13571 = vadd.xlane.f32.xlu1 %v13570_v33  ;;  %v11787_v43 = vpop.xlane.xlu0 %11786  ;;  %v8874_v33 = vsel %vm8866_vm11, %v19669_v14, 0.0  ;;  %v8873_v18 = vadd.f32 %v8872_v9, %v8871_v37  ;;  %v13227_v5 = vsel %vm13099_vm4, 1.0, %v23047_v38  ;;  %v8857_v40 = vmul.f32 %v23136_v16, %v23103_v63  ;;  %v23138_v63 = vld [vmem:[#allocation52_spill] sm:$0xff] }
 0x808   : > { %v11784_v21 = vpop.xlane.xlu1 %11783  ;;  %v12310_v22 = vrot.slane %v11787_v43, %v23113_v11  ;;  %v8876_v36 = vsel %vm8866_vm11, %v8855_v51, 0.0  ;;  %v11676_v10 = vmul.f32 %v19798_v28, %v22655_v61  ;;  %v23137_v29 = vmax.f32 %v19843_v59, 0.0 }
 0x809   : > { %v12306_v39 = vrot.slane %v11784_v21, %v23113_v11  ;;  %v8875_v43 = vadd.f32 %v8874_v33, %v8873_v18  ;;  %v13564_v9 = vsel %vm2856_vm5, %v13354_v49, 0.0  ;;  %v23139_v21 = vld [vmem:[#allocation16_spill] sm:$0xff]  ;;  %v13355_v16 = vmul.f32 %v19684_v35, %v13227_v5  ;;  %v23140_v18 = vld [vmem:[#allocation45_spill] sm:$0xff] }
 0x80a   : > { %11894 = vadd.xlane.f32.xlu0 %v11893_v47  ;;  %vm13102_vm6 = vcmp.gt.f32.partialorder %v23137_v29, 0.0  ;;  %v8858_v51 = vmul.f32 %v23139_v21, %v23138_v63  ;;  %vm13104_vm9 = vcmp.gt.f32.partialorder %v19918_v31, 0.0  ;;  %v11678_v31 = vmul.f32 %v19815_v17, %v20003_v13 }
 0x80b   : > { %v12786_v2 = vsel %vm1741_vm7, %v12306_v39, %v12302_v44  ;;  %13574 = vadd.xlane.f32.xlu1 %v13573_v60  ;;  %v11793_v14 = vpop.xlane.xlu0 %11792  ;;  %v8878_v44 = vsel %vm8866_vm11, %v8856_v25, 0.0  ;;  %v13579_v60 = vsel %vm2856_vm5, %v13359_v1, 0.0  ;;  %v8877_v61 = vadd.f32 %v8876_v36, %v8875_v43 }
 0x80c   : > { %v11790_v47 = vpop.xlane.xlu1 %11789  ;;  %v12787_v37 = vsel %vm1742_vm8, %v12310_v22, %v12786_v2  ;;  %v12318_v59 = vrot.slane %v11793_v14, %v23113_v11  ;;  %v13230_v33 = vsel %vm13102_vm6, 1.0, %v23047_v38  ;;  %v23141_v22 = vld [vmem:[#allocation8_spill] sm:$0xff]  ;;  %v8880_v2 = vsel %vm8866_vm11, %v8857_v40, 0.0 }
 0x80d   : > { %v12314_v39 = vrot.slane %v11790_v47, %v23113_v11  ;;  %v8859_v49 = vmul.f32 %v23141_v22, %v23140_v18  ;;  %v11418_v25 = vsub.f32 %v20018_v52, %v19930_v56  ;;  %v8879_v5 = vadd.f32 %v8878_v44, %v8877_v61  ;;  %v23142_v47 = vld [vmem:[#allocation60_spill] sm:$0xff]  ;;  %v23144_v44 = vld [vmem:[#allocation53_spill] sm:$0xff] }
 0x80e   : > { %13565 = vadd.xlane.f32.xlu0 %v13564_v9  ;;  %v11902_v43 = vsel %vm2856_vm5, %v11676_v10, 0.0  ;;  %v23143_v9 = vld [vmem:[#allocation20_spill] sm:$0xff]  ;;  %v8882_v40 = vsel %vm8866_vm11, %v8858_v51, 0.0  ;;  %v13567_v52 = vsel %vm2856_vm5, %v13355_v16, 0.0  ;;  %v13232_v61 = vsel %vm13104_vm9, 1.0, %v23047_v38  ;;  %v23145_v10 = vld [vmem:[#allocation9_spill] sm:$0xff] }
 0x80f   : > { %v12788_v29 = vsel %vm1744_vm10, %v12314_v39, %v12787_v37  ;;  %13580 = vadd.xlane.f32.xlu1 %v13579_v60  ;;  %v20065_v1 = vpop.xlane.xlu0 %11798  ;;  %v8860_v21 = vmul.f32 %v23143_v9, %v23142_v47  ;;  %v13358_v37 = vmul.f32 %v19875_v24, %v13230_v33  ;;  %v8881_v39 = vadd.f32 %v8880_v2, %v8879_v5  ;;  %v23146_v51 = vld [vmem:[#allocation30_spill] sm:$0xff] }
 0x810   : > { %v11796_v36 = vpop.xlane.xlu1 %11795  ;;  %v12789_v14 = vsel %vm1746_vm12, %v12318_v59, %v12788_v29  ;;  %v8861_v60 = vmul.f32 %v23145_v10, %v23144_v44  ;;  %v8884_v59 = vsel %vm8866_vm11, %v8859_v49, 0.0  ;;  %v9849_v22 = vadd.f32 0.2, %v23146_v51  ;;  %v23147_v49 = vld [vmem:[#allocation92_spill] sm:$0xff] }
 0x811   : > { %v12322_v56 = vrot.slane %v11796_v36, %v23113_v11  ;;  %v11680_v33 = vmul.f32 %v19875_v24, %v22656_v48  ;;  %v8883_v2 = vadd.f32 %v8882_v40, %v8881_v39  ;;  %v11539_v5 = vmax.f32 %v19992_v6, 0.0  ;;  %v23149_v48 = vld [vmem:[#allocation14_spill] sm:$0xff] }
 0x812   : > { %13568 = vadd.xlane.f32.xlu0 %v13567_v52  ;;  %v23148_v52 = vld [vmem:[#allocation21_spill] sm:$0xff]  ;;  %v13360_v40 = vmul.f32 %v19912_v45, %v13232_v61  ;;  %v20105_v39 = vmax.f32 %v11418_v25, 0.0  ;;  %v11908_v51 = vsel %vm2856_vm5, %v11678_v31, 0.0  ;;  %v8888_v3 = vsel %vm8866_vm11, %v8861_v60, 0.0 }
 0x813   : > { %v20084_v29 = vsel %vm1748_vm14, %v12322_v56, %v12789_v14  ;;  %11903 = vadd.xlane.f32.xlu1 %v11902_v43  ;;  %v13467_v16 = vpop.xlane.xlu0 %13466  ;;  %v8862_v10 = vmul.f32 %v23148_v52, %v23147_v49  ;;  %v8886_v14 = vsel %vm8866_vm11, %v8860_v21, 0.0  ;;  %v20100_v43 = vmax.f32 %v11413_v30, 0.0  ;;  %v23150_v52 = vld [vmem:[#allocation17_spill] sm:$0xff] }
 0x814   : > { %v20092_v9 = vpop.xlane.xlu1 %11801  ;;  %v13576_v56 = vsel %vm2856_vm5, %v13358_v37, 0.0  ;;  %v8885_v6 = vadd.f32 %v8884_v59, %v8883_v2  ;;  %v8863_v36 = vmul.f32 %v23150_v52, %v23149_v48  ;;  %v11543_v53 = vmax.f32 %v20008_v19, 0.0  ;;  %v23153_v2 = vld [vmem:[#allocation27_spill] sm:$0xff] }
 0x815   : > { %v11417_v30 = vsub.f32 %v9849_v22, %v19927_v41  ;;  %v11914_v37 = vsel %vm2856_vm5, %v11680_v33, 0.0  ;;  %v11675_v59 = vmul.f32 %v19776_v8, %v11539_v5  ;;  %vm20115_vm13 = vcmp.gt.f32.partialorder %v11539_v5, 0.0 }
 0x816   : > { %13577 = vadd.xlane.f32.xlu0 %v13576_v56  ;;  %v8887_v25 = vadd.f32 %v8886_v14, %v8885_v6  ;;  %v23154_v56 = vld [vmem:[#allocation32_spill] sm:$0xff]  ;;  %v8890_v60 = vsel %vm8866_vm11, %v8862_v10, 0.0  ;;  %v13988_v19 = vrot.slane %v13467_v16, %v23113_v11  ;;  %v13582_v22 = vsel %vm2856_vm5, %v13360_v40, 0.0  ;;  %v23155_v6 = vld [vmem:[#allocation51_spill] sm:$0xff] }
 0x817   : > { %11909 = vadd.xlane.f32.xlu1 %v11908_v51  ;;  %v13473_v21 = vpop.xlane.xlu0 %13472  ;;  %v8864_v52 = vmul.f32 %v23154_v56, %v23153_v2  ;;  %v11682_v14 = vmul.f32 %v19912_v45, %v20105_v39  ;;  %v23156_v51 = vld [vmem:[#allocation28_spill] sm:$0xff]  ;;  %v8892_v16 = vsel %vm8866_vm11, %v8863_v36, 0.0  ;;  %v11545_v10 = vmax.f32 %v11417_v30, 0.0 }
 0x818   : > { %v13470_v61 = vpop.xlane.xlu1 %13469  ;;  %v8889_v33 = vadd.f32 %v8888_v3, %v8887_v25  ;;  %v13996_v5 = vrot.slane %v13473_v21, %v23113_v11  ;;  %v8865_v56 = vmul.f32 %v23156_v51, %v23155_v6  ;;  %v13233_v3 = vsel %vm20115_vm13, 1.0, %v23047_v38  ;;  %v23157_v25 = vld [vmem:[#allocation39_spill] sm:$0xff] }
 0x819   : > { %v13992_v41 = vrot.slane %v13470_v61, %v23113_v11  ;;  %vm20142_vm15 = vcmp.gt.f32.partialorder %v11543_v53, 0.0  ;;  %v8894_v36 = vsel %vm8866_vm11, %v8864_v52, 0.0  ;;  %v11677_v31 = vmul.f32 %v19684_v35, %v20100_v43 }
 0x81a   : > { %13583 = vadd.xlane.f32.xlu0 %v13582_v22  ;;  %v8891_v21 = vadd.f32 %v8890_v60, %v8889_v33  ;;  %v9852_v22 = vadd.f32 0.2, %v23157_v25  ;;  %v13361_v33 = vmul.f32 %v19776_v8, %v13233_v3  ;;  %v10954_v52 = vrot.slane %v19933_v55, %v18246_v62 }
 0x81b   : > { %v14472_v61 = vsel %vm1741_vm7, %v13992_v41, %v13988_v19  ;;  %11915 = vadd.xlane.f32.xlu1 %v11914_v37  ;;  %v13479_v40 = vpop.xlane.xlu0 %13478  ;;  %v11899_v37 = vsel %vm2856_vm5, %v11675_v59, 0.0  ;;  %v11920_v41 = vsel %vm2856_vm5, %v11682_v14, 0.0  ;;  %v23161_v14 = vcombine.high %v19939_v32, %v19939_v32 }
 0x81c   : > { %v13476_v2 = vpop.xlane.xlu1 %13475  ;;  %v14473_v48 = vsel %vm1742_vm8, %v13996_v5, %v14472_v61  ;;  %v8893_v60 = vadd.f32 %v8892_v16, %v8891_v21  ;;  %v14004_v19 = vrot.slane %v13479_v40, %v23113_v11  ;;  %v8896_v5 = vsel %vm8866_vm11, %v8865_v56, 0.0  ;;  %v23160_v40 = vld [vmem:[#allocation43_spill] sm:$0xff] }
 0x81d   : > { %v14000_v30 = vrot.slane %v13476_v2, %v23113_v11  ;;  %v13237_v16 = vsel %vm20142_vm15, 1.0, %v23047_v38  ;;  %v9854_v21 = vadd.f32 0.2, %v23160_v40  ;;  %v10326_v56 = vrot.slane %v23161_v14, %v18385_v46 }
 0x81e   : > { %11900 = vadd.xlane.f32.xlu0 %v11899_v37  ;;  %v8895_v61 = vadd.f32 %v8894_v36, %v8893_v60  ;;  %vm13111_vm0 = vcmp.gt.f32.partialorder %v11545_v10, 0.0  ;;  %v11905_v51 = vsel %vm2856_vm5, %v11677_v31, 0.0  ;;  %v11679_v36 = vmul.f32 %v19723_v57, %v11543_v53 }
 0x81f   : > { %v14474_v2 = vsel %vm1744_vm10, %v14000_v30, %v14473_v48  ;;  %11921 = vadd.xlane.f32.xlu1 %v11920_v41  ;;  %v20159_v59 = vpop.xlane.xlu0 %13484  ;;  %v20176_v37 = vsub.f32 %v9852_v22, %v10954_v52  ;;  %v23162_v60 = vcombine.high %v19933_v55, %v19933_v55  ;;  %v10327_v40 = vcombine.high %v19906_v34, %v19906_v34  ;;  %v23164_v52 = vld [vmem:[#allocation56_spill] sm:$0xff] }
 0x820   : > { %v13482_v3 = vpop.xlane.xlu1 %13481  ;;  %v14475_v25 = vsel %vm1746_vm12, %v14004_v19, %v14474_v2  ;;  %v8897_v30 = vadd.f32 %v8896_v5, %v8895_v61  ;;  %v13585_v19 = vsel %vm2856_vm5, %v13361_v33, 0.0  ;;  %v13365_v2 = vmul.f32 %v19723_v57, %v13237_v16 }
 0x821   : > { %v14008_v48 = vrot.slane %v13482_v3, %v23113_v11  ;;  %v10962_v41 = vrot.slane %v23162_v60, %v18246_v62  ;;  %v13239_v22 = vsel %vm13111_vm0, 1.0, %v23047_v38  ;;  %v23163_v5 = vmax.f32 %v19968_v27, 0.0 }
 0x822   : > { %11906 = vadd.xlane.f32.xlu0 %v11905_v51  ;;  %8898 = vst.msk [vmem:[%s312_s18 - $0x2] sm:$0xfc] %vm8866_vm11, %v8897_v30  ;;  %v9856_v33 = vadd.f32 0.2, %v23164_v52  ;;  %v10970_v16 = vrot.slane %v10326_v56, %v18246_v62  ;;  %v11911_v14 = vsel %vm2856_vm5, %v11679_v36, 0.0  ;;  %v11681_v3 = vmul.f32 %v19764_v20, %v11545_v10  ;;  %v23165_v10 = vld [vmem:[#allocation31_spill] sm:$0xff] }
 0x823   : > { %v20187_v31 = vsel %vm1748_vm14, %v14008_v48, %v14475_v25  ;;  %13586 = vadd.xlane.f32.xlu1 %v13585_v19  ;;  %v11805_v53 = vpop.xlane.xlu0 %11804  ;;  %vm13106_vm1 = vcmp.gt.f32.partialorder %v23163_v5, 0.0  ;;  %v11422_v55 = vsub.f32 %v9854_v21, %v10962_v41  ;;  %v22657_v25 = vmax.f32 %v20176_v37, 0.0 }
 0x824   : > { %v20194_v61 = vpop.xlane.xlu1 %13487  ;;  %v13597_v48 = vsel %vm2856_vm5, %v13365_v2, 0.0  ;;  %v13367_v27 = vmul.f32 %v19764_v20, %v13239_v22  ;;  %v13234_v51 = vsel %vm13106_vm1, 1.0, %v23047_v38  ;;  %v10950_v21 = vrot.slane %v19906_v34, %v18246_v62  ;;  %v23166_v22 = vld [vmem:[#allocation66_spill] sm:$0xff] }
 0x825   : > { %v20206_v30 = vrot.slane %v10327_v40, %v18246_v62  ;;  %v10330_v60 = vcombine.high %v10326_v56, %v10326_v56  ;;  %vm13107_vm11 = vcmp.gt.f32.partialorder %v20100_v43, 0.0  ;;  %v9851_v41 = vadd.f32 0.2, %v23165_v10 }
 0x826   : > { %11912 = vadd.xlane.f32.xlu0 %v11911_v14  ;;  %v20210_v19 = vmax.f32 %v11422_v55, 0.0  ;;  %v20212_v2 = vsub.f32 %v9856_v33, %v10970_v16  ;;  %v9858_v5 = vadd.f32 0.2, %v23166_v22  ;;  %v12334_v14 = vrot.slane %v11805_v53, %v23113_v11 }
 0x827   : > { %13598 = vadd.xlane.f32.xlu1 %v13597_v48  ;;  %v11811_v36 = vpop.xlane.xlu0 %11810  ;;  %v11917_v40 = vsel %vm2856_vm5, %v11681_v3, 0.0  ;;  %v13362_v56 = vmul.f32 %v19798_v28, %v13234_v51  ;;  %v13603_v43 = vsel %vm2856_vm5, %v13367_v27, 0.0  ;;  %v11684_v55 = vmul.f32 %v19798_v28, %v22657_v25  ;;  %v23167_v27 = vld [vmem:[#allocation42_spill] sm:$0xff] }
 0x828   : > { %v11808_v52 = vpop.xlane.xlu1 %11807  ;;  %v12342_v48 = vrot.slane %v11811_v36, %v23113_v11  ;;  %v13235_v33 = vsel %vm13107_vm11, 1.0, %v23047_v38  ;;  %v10312_v53 = vrot.slane %v19939_v32, %v18385_v46  ;;  %v10978_v16 = vrot.slane %v10330_v60, %v18246_v62 }
 0x829   : > { %v12338_v34 = vrot.slane %v11808_v52, %v23113_v11  ;;  %vm13108_vm2 = vcmp.gt.f32.partialorder %v20003_v13, 0.0  ;;  %v20230_v36 = vsub.f32 %v9851_v41, %v10950_v21  ;;  %v9853_v10 = vadd.f32 0.2, %v23167_v27 }
 0x82a   : > { %11918 = vadd.xlane.f32.xlu0 %v11917_v40  ;;  %v11426_v25 = vsub.f32 %v9858_v5, %v10978_v16  ;;  %v13588_v60 = vsel %vm2856_vm5, %v13362_v56, 0.0  ;;  %v11926_v13 = vsel %vm2856_vm5, %v11684_v55, 0.0  ;;  %v11686_v21 = vmul.f32 %v19815_v17, %v20210_v19 }
 0x82b   : > { %v12793_v3 = vsel %vm1741_vm7, %v12338_v34, %v12334_v14  ;;  %13604 = vadd.xlane.f32.xlu1 %v13603_v43  ;;  %v11817_v51 = vpop.xlane.xlu0 %11816  ;;  %v13363_v14 = vmul.f32 %v19684_v35, %v13235_v33  ;;  %v13236_v41 = vsel %vm13108_vm2, 1.0, %v23047_v38  ;;  %v10966_v43 = vrot.slane %v10312_v53, %v18246_v62 }
 0x82c   : > { %v11814_v52 = vpop.xlane.xlu1 %11813  ;;  %v12794_v40 = vsel %vm1742_vm8, %v12342_v48, %v12793_v3  ;;  %v12350_v34 = vrot.slane %v11817_v51, %v23113_v11  ;;  %v20246_v5 = vrot.slane %v23138_v63, %v18385_v46  ;;  %v23168_v33 = vmax.f32 %v19978_v54, 0.0  ;;  %v23169_v3 = vld [vmem:[#allocation50_spill] sm:$0xff] }
 0x82d   : > { %v12346_v32 = vrot.slane %v11814_v52, %v23113_v11  ;;  %v11547_v55 = vmax.f32 %v20230_v36, 0.0  ;;  %v11421_v16 = vsub.f32 %v9853_v10, %v20206_v30  ;;  %v9855_v51 = vadd.f32 0.2, %v23169_v3 }
 0x82e   : > { %13589 = vadd.xlane.f32.xlu0 %v13588_v60  ;;  %vm13110_vm3 = vcmp.gt.f32.partialorder %v23168_v33, 0.0  ;;  %v10328_v60 = vcombine.high %v10312_v53, %v10312_v53  ;;  %v11932_v54 = vsel %vm2856_vm5, %v11686_v21, 0.0  ;;  %v23171_v36 = vmax.f32 %v20212_v2, 0.0 }
 0x82f   : > { %v12795_v56 = vsel %vm1744_vm10, %v12346_v32, %v12794_v40  ;;  %11927 = vadd.xlane.f32.xlu1 %v11926_v13  ;;  %v20249_v48 = vpop.xlane.xlu0 %11822  ;;  %v13591_v40 = vsel %vm2856_vm5, %v13363_v14, 0.0  ;;  %v13364_v32 = vmul.f32 %v19815_v17, %v13236_v41  ;;  %v20260_v13 = vmax.f32 %v11426_v25, 0.0  ;;  %v23172_v41 = vld [vmem:[#allocation57_spill] sm:$0xff] }
 0x830   : > { %v11820_v27 = vpop.xlane.xlu1 %11819  ;;  %v12796_v52 = vsel %vm1746_vm12, %v12350_v34, %v12795_v56  ;;  %v11688_v30 = vmul.f32 %v19875_v24, %v23171_v36  ;;  %v13238_v10 = vsel %vm13110_vm3, 1.0, %v23047_v38  ;;  %v10346_v53 = vcombine.high %v20246_v5, %v20246_v5 }
 0x831   : > { %v12354_v22 = vrot.slane %v11820_v27, %v23113_v11  ;;  %23170 = vst [vmem:[#allocation117_spill] sm:$0xff] %v20260_v13  ;;  %v10331_v34 = vcombine.high %v23138_v63, %v23138_v63  ;;  %vm13112_vm4 = vcmp.gt.f32.partialorder %v20105_v39, 0.0  ;;  %v20275_v25 = vmax.f32 %v11421_v16, 0.0 }
 0x832   : > { %13592 = vadd.xlane.f32.xlu0 %v13591_v40  ;;  %v20277_v21 = vsub.f32 %v9855_v51, %v10966_v43  ;;  %v9857_v56 = vadd.f32 0.2, %v23172_v41  ;;  %vm13113_vm6 = vcmp.gt.f32.partialorder %v11547_v55, 0.0  ;;  %v13594_v3 = vsel %vm2856_vm5, %v13364_v32, 0.0 }
 0x833   : > { %v20272_v14 = vsel %vm1748_vm14, %v12354_v22, %v12796_v52  ;;  %11933 = vadd.xlane.f32.xlu1 %v11932_v54  ;;  %v13491_v17 = vpop.xlane.xlu0 %13490  ;;  %v13366_v63 = vmul.f32 %v19875_v24, %v13238_v10  ;;  %v10974_v22 = vrot.slane %v10328_v60, %v18246_v62  ;;  %v11938_v27 = vsel %vm2856_vm5, %v11688_v30, 0.0 }
 0x834   : > { %v20280_v33 = vpop.xlane.xlu1 %11825  ;;  %v11690_v39 = vmul.f32 %v19912_v45, %v20260_v13  ;;  %v13240_v43 = vsel %vm13112_vm4, 1.0, %v23047_v38  ;;  %v10368_v16 = vrot.slane %v10346_v53, %v18385_v46  ;;  %v20291_v51 = vrot.slane %v10331_v34, %v18385_v46 }
 0x835   : > { %v13241_v40 = vsel %vm13113_vm6, 1.0, %v23047_v38  ;;  %v11425_v60 = vsub.f32 %v9857_v56, %v10974_v22  ;;  %vm13115_vm9 = vcmp.gt.f32.partialorder %v20275_v25, 0.0  ;;  %v14020_v36 = vrot.slane %v13491_v17, %v23113_v11 }
 0x836   : > { %13595 = vadd.xlane.f32.xlu0 %v13594_v3  ;;  %v13600_v10 = vsel %vm2856_vm5, %v13366_v63, 0.0  ;;  %v13368_v53 = vmul.f32 %v19912_v45, %v13240_v43  ;;  %v11944_v41 = vsel %vm2856_vm5, %v11690_v39, 0.0  ;;  %v13369_v3 = vmul.f32 %v19776_v8, %v13241_v40  ;;  %v23173_v43 = vld [vmem:[#allocation67_spill] sm:$0xff] }
 0x837   : > { %11939 = vadd.xlane.f32.xlu1 %v11938_v27  ;;  %v13497_v52 = vpop.xlane.xlu0 %13496  ;;  %v10378_v27 = vcombine.high %v10368_v16, %v10368_v16  ;;  %v10347_v56 = vcombine.high %v20291_v51, %v20291_v51  ;;  %v20307_v63 = vmax.f32 %v11425_v60, 0.0  ;;  %v9860_v32 = vadd.f32 0.2, %v23173_v43 }
 0x838   : > { %v13494_v54 = vpop.xlane.xlu1 %13493  ;;  %v14028_v34 = vrot.slane %v13497_v52, %v23113_v11  ;;  %v23174_v39 = vmax.f32 %v20277_v21, 0.0  ;;  %v13606_v13 = vsel %vm2856_vm5, %v13368_v53, 0.0  ;;  %v13609_v60 = vsel %vm2856_vm5, %v13369_v3, 0.0 }
 0x839   : > { %v14024_v30 = vrot.slane %v13494_v54, %v23113_v11  ;;  %v13243_v54 = vsel %vm13115_vm9, 1.0, %v23047_v38  ;;  %vm13119_vm15 = vcmp.gt.f32.partialorder %v20307_v63, 0.0  ;;  %vm1750_vm0 = vcmask 1046534  }
 0x83a   : > { %13601 = vadd.xlane.f32.xlu0 %v13600_v10  ;;  %vm13117_vm13 = vcmp.gt.f32.partialorder %v23174_v39, 0.0  ;;  %v13371_v43 = vmul.f32 %v19684_v35, %v13243_v54  ;;  %v12294_v35 = vrot.slane %v19863_v4, %v23113_v11  ;;  %v12298_v54 = vrot.slane %v19896_v58, %v23113_v11 }
 0x83b   : > { %v14479_v22 = vsel %vm1741_vm7, %v14024_v30, %v14020_v36  ;;  %11945 = vadd.xlane.f32.xlu1 %v11944_v41  ;;  %v13503_v17 = vpop.xlane.xlu0 %13502  ;;  %v11683_v36 = vmul.f32 %v19776_v8, %v11547_v55  ;;  %v10986_v30 = vrot.slane %v10368_v16, %v18246_v62  ;;  %v13245_v8 = vsel %vm13117_vm13, 1.0, %v23047_v38  ;;  %v23175_v16 = vld [vmem:[#allocation82_spill] sm:$0xff] }
 0x83c   : > { %v13500_v52 = vpop.xlane.xlu1 %13499  ;;  %v14480_v10 = vsel %vm1742_vm8, %v14028_v34, %v14479_v22  ;;  %v14036_v41 = vrot.slane %v13503_v17, %v23113_v11  ;;  %v10994_v34 = vrot.slane %v10378_v27, %v18246_v62  ;;  %v10375_v22 = vrot.slane %v10347_v56, %v18385_v46  ;;  %v20338_v17 = vld [vmem:[%s22462_s4 + $0x10] sm:$0xff] }
 0x83d   : > { %v14032_v40 = vrot.slane %v13500_v52, %v23113_v11  ;;  %v20326_v55 = vsub.f32 %v9860_v32, %v10986_v30  ;;  %v9862_v53 = vadd.f32 0.2, %v23175_v16  ;;  %v11923_v56 = vsel %vm2856_vm5, %v11683_v36, 0.0 }
 0x83e   : > { %13607 = vadd.xlane.f32.xlu0 %v13606_v13  ;;  %v11685_v32 = vmul.f32 %v20338_v17, %v20275_v25  ;;  %v13373_v4 = vmul.f32 %v19723_v57, %v13245_v8  ;;  %v13247_v30 = vsel %vm13119_vm15, 1.0, %v23047_v38  ;;  %v12784_v25 = vsel %vm1750_vm0, %v12294_v35, %v19890_v50  ;;  %v20359_v57 = vld [vmem:[%s22462_s4 + $0x20] sm:$0xff] }
 0x83f   : > { %v14481_v39 = vsel %vm1744_vm10, %v14032_v40, %v14480_v10  ;;  %13610 = vadd.xlane.f32.xlu1 %v13609_v60  ;;  %v20323_v52 = vpop.xlane.xlu0 %13508  ;;  %v13615_v10 = vsel %vm2856_vm5, %v13371_v43, 0.0  ;;  %v10379_v60 = vcombine.high %v10375_v22, %v10375_v22  ;;  %v23177_v8 = vmax.f32 %v20277_v21, 0.0 }
 0x840   : > { %v13506_v13 = vpop.xlane.xlu1 %13505  ;;  %v14482_v3 = vsel %vm1746_vm12, %v14036_v41, %v14481_v39  ;;  %v11430_v41 = vsub.f32 %v9862_v53, %v10994_v34  ;;  %v23176_v39 = vld [vmem:[#allocation90_spill] sm:$0xff]  ;;  %v11929_v43 = vsel %vm2856_vm5, %v11685_v32, 0.0  ;;  %vm1752_vm1 = vcmask 1047559  }
 0x841   : > { %v14040_v27 = vrot.slane %v13506_v13, %v23113_v11  ;;  %v9864_v16 = vadd.f32 0.2, %v23176_v39  ;;  %v11687_v13 = vmul.f32 %v20359_v57, %v23177_v8  ;;  %v13621_v50 = vsel %vm2856_vm5, %v13373_v4, 0.0 }
 0x842   : > { %11924 = vadd.xlane.f32.xlu0 %v11923_v56  ;;  %v13375_v34 = vmul.f32 %v19764_v20, %v13247_v30  ;;  %v20368_v53 = vsel %vm1752_vm1, %v12298_v54, %v12784_v25  ;;  %v20372_v35 = vrot.slane %v20246_v5, %v18385_v46  ;;  %v23179_v56 = vmax.f32 %v20176_v37, 0.0  ;;  %v20389_v37 = vld [vmem:[%s22462_s4 + $0x30] sm:$0xff] }
 0x843   : > { %v20347_v40 = vsel %vm1748_vm14, %v14040_v27, %v14482_v3  ;;  %13616 = vadd.xlane.f32.xlu1 %v13615_v10  ;;  %v20349_v36 = vpop.xlane.xlu0 %13511  ;;  %v22659_v3 = vmax.f32 %v20326_v55, 0.0  ;;  %23178 = vst [vmem:[#allocation111_spill] sm:$0xff] %v20368_v53  ;;  %v11002_v27 = vrot.slane %v10375_v22, %v18246_v62  ;;  %v11010_v32 = vrot.slane %v10379_v60, %v18246_v62  ;;  %v23180_v10 = vld [vmem:[#allocation98_spill] sm:$0xff] }
 0x844   : > { %v11832_v58 = vpop.xlane.xlu1 %11831  ;;  %vm13114_vm11 = vcmp.gt.f32.partialorder %v23179_v56, 0.0  ;;  %v9866_v4 = vadd.f32 0.2, %v23180_v10  ;;  %v20381_v25 = vmax.f32 %v11430_v41, 0.0  ;;  %v11935_v22 = vsel %vm2856_vm5, %v11687_v13, 0.0 }
 0x845   : > { %v12370_v20 = vrot.slane %v11832_v58, %v23113_v11  ;;  %v20383_v5 = vsub.f32 %v9864_v16, %v11002_v27  ;;  %v11689_v60 = vmul.f32 %v20389_v37, %v20307_v63  ;;  %v13627_v58 = vsel %vm2856_vm5, %v13375_v34, 0.0 }
 0x846   : > { %11930 = vadd.xlane.f32.xlu0 %v11929_v43  ;;  %v11692_v41 = vmul.f32 %v19798_v28, %v22659_v3  ;;  %v13242_v16 = vsel %vm13114_vm11, 1.0, %v23047_v38  ;;  %v10982_v43 = vrot.slane %v20372_v35, %v18246_v62  ;;  %v20403_v8 = vrot.slane %v20291_v51, %v18385_v46 }
 0x847   : > { %13622 = vadd.xlane.f32.xlu1 %v13621_v50  ;;  %v11829_v21 = vpop.xlane.xlu0 %11828  ;;  %v20407_v63 = vrot.slane %v23140_v18, %v18385_v46  ;;  %vm13116_vm2 = vcmp.gt.f32.partialorder %v20210_v19, 0.0  ;;  %v23181_v50 = vld [vmem:[#allocation74_spill] sm:$0xff]  ;;  %v10376_v28 = vcombine.high %v20372_v35, %v20372_v35  ;;  %v11434_v27 = vsub.f32 %v9866_v4, %v11010_v32  ;;  %v20430_v4 = vld [vmem:[%s22462_s4 + $0x18] sm:$0xff] }
 0x848   : > { %v12366_v54 = vrot.slane %v11829_v21, %v23113_v11  ;;  %v11838_v30 = vpop.xlane.xlu1 %11837  ;;  %v9859_v34 = vadd.f32 0.2, %v23181_v50  ;;  %v11950_v32 = vsel %vm2856_vm5, %v11692_v41, 0.0  ;;  %v23183_v50 = vmax.f32 %v20212_v2, 0.0 }
 0x849   : > { %v12378_v10 = vrot.slane %v11838_v30, %v23113_v11  ;;  %v11694_v30 = vmul.f32 %v20430_v4, %v20381_v25  ;;  %v20446_v51 = vmax.f32 %v11434_v27, 0.0  ;;  %v23185_v2 = vmax.f32 %v20383_v5, 0.0 }
 0x84a   : > { %v12800_v39 = vsel %vm1741_vm7, %v12370_v20, %v12366_v54  ;;  %11936 = vadd.xlane.f32.xlu0 %v11935_v22  ;;  %v11941_v20 = vsel %vm2856_vm5, %v11689_v60, 0.0  ;;  %v20422_v54 = vld [vmem:[%s22462_s4 + $0x8] sm:$0xff]  ;;  %v13244_v60 = vsel %vm13116_vm2, 1.0, %v23047_v38  ;;  %vm13118_vm3 = vcmp.gt.f32.partialorder %v23183_v50, 0.0 }
 0x84b   : > { %13628 = vadd.xlane.f32.xlu1 %v13627_v58  ;;  %v11835_v13 = vpop.xlane.xlu0 %11834  ;;  %v13370_v22 = vmul.f32 %v20422_v54, %v13242_v16  ;;  %v10998_v58 = vrot.slane %v20403_v8, %v18246_v62  ;;  %v23182_v16 = vld [vmem:[#allocation83_spill] sm:$0xff]  ;;  %vm13124_vm6 = vcmp.gt.f32.partialorder %v20381_v25, 0.0 }
 0x84c   : > { %v12374_v21 = vrot.slane %v11835_v13, %v23113_v11  ;;  %v20414_v56 = vpop.xlane.xlu1 %11843 }
 0x84e   : > { %v12801_v35 = vsel %vm1742_vm8, %v12374_v21, %v12800_v39  ;;  %11942 = vadd.xlane.f32.xlu0 %v11941_v20  ;;  %v9863_v39 = vadd.f32 0.2, %v23182_v16  ;;  %v20443_v21 = vsub.f32 %v9859_v34, %v10982_v43  ;;  %v23184_v20 = vld [vmem:[#allocation75_spill] sm:$0xff]  ;;  %v13980_v16 = vrot.slane %v19974_v42, %v23113_v11 }
 0x84f   : > { %11951 = vadd.xlane.f32.xlu1 %v11950_v32  ;;  %v12802_v41 = vsel %vm1744_vm10, %v12378_v10, %v12801_v35  ;;  %v11841_v13 = vpop.xlane.xlu0 %11840  ;;  %v9861_v3 = vadd.f32 0.2, %v23184_v20  ;;  %v13612_v32 = vsel %vm2856_vm5, %v13370_v22, 0.0  ;;  %v13372_v10 = vmul.f32 %v20430_v4, %v13244_v60 }
 0x850   : > { %v12382_v19 = vrot.slane %v11841_v13, %v23113_v11  ;;  %v20449_v53 = vpop.xlane.xlu1 %11849  ;;  %v11696_v43 = vmul.f32 %v19875_v24, %v23185_v2  ;;  %v13984_v34 = vrot.slane %v20010_v12, %v23113_v11  ;;  %v11956_v35 = vsel %vm2856_vm5, %v11694_v30, 0.0  ;;  %v23188_v2 = vld [vmem:[#allocation91_spill] sm:$0xff] }
 0x851   : > { %v13246_v13 = vsel %vm13118_vm3, 1.0, %v23047_v38  ;;  %v10990_v42 = vrot.slane %v10376_v28, %v18246_v62  ;;  %v20466_v22 = vsub.f32 %v9863_v39, %v10998_v58  ;;  %v14470_v50 = vsel %vm1750_vm0, %v13980_v16, %v19997_v0 }
 0x852   : > { %v20461_v27 = vsel %vm1746_vm12, %v12382_v19, %v12802_v41  ;;  %13613 = vadd.xlane.f32.xlu0 %v13612_v32  ;;  %v10395_v12 = vcombine.high %v20407_v63, %v20407_v63  ;;  %v23186_v20 = vmax.f32 %v20326_v55, 0.0  ;;  %v11555_v30 = vmax.f32 %v20443_v21, 0.0 }
 0x853   : > { %11957 = vadd.xlane.f32.xlu1 %v11956_v35  ;;  %v20468_v60 = vpop.xlane.xlu0 %11846  ;;  %v11429_v19 = vsub.f32 %v9861_v3, %v10990_v42  ;;  %v13618_v28 = vsel %vm2856_vm5, %v13372_v10, 0.0  ;;  %v13374_v58 = vmul.f32 %v19875_v24, %v13246_v13  ;;  %v10377_v39 = vcombine.high %v20403_v8, %v20403_v8  ;;  %v20508_v42 = vld [vmem:[%s22462_s4] sm:$0xff] }
 0x854   : > { %v13515_v41 = vpop.xlane.xlu1 %13514  ;;  %vm13122_vm4 = vcmp.gt.f32.partialorder %v23186_v20, 0.0  ;;  %v11962_v0 = vsel %vm2856_vm5, %v11696_v43, 0.0  ;;  %v11698_v16 = vmul.f32 %v19912_v45, %v20446_v51  ;;  %v20485_v32 = vsel %vm1752_vm1, %v13984_v34, %v14470_v50 }
 0x855   : > { %23187 = vst [vmem:[#allocation114_spill] sm:$0xff] %v20485_v32  ;;  %v11559_v55 = vmax.f32 %v20466_v22, 0.0  ;;  %v20490_v3 = vrot.slane %v20407_v63, %v18385_v46  ;;  %v10380_v24 = vcombine.high %v23140_v18, %v23140_v18  ;;  %v13250_v10 = vsel %vm13122_vm4, 1.0, %v23047_v38 }
 0x856   : > { %13619 = vadd.xlane.f32.xlu0 %v13618_v28  ;;  %v9865_v43 = vadd.f32 0.2, %v23188_v2  ;;  %v14052_v45 = vrot.slane %v13515_v41, %v23113_v11  ;;  %v20499_v13 = vmax.f32 %v11429_v19, 0.0  ;;  %v20502_v63 = vrot.slane %v10395_v12, %v18385_v46 }
 0x857   : > { %11963 = vadd.xlane.f32.xlu1 %v11962_v0  ;;  %v13518_v8 = vpop.xlane.xlu0 %13517  ;;  %v13624_v18 = vsel %vm2856_vm5, %v13374_v58, 0.0  ;;  %v11691_v22 = vmul.f32 %v20508_v42, %v11555_v30  ;;  %v11006_v50 = vrot.slane %v10377_v39, %v18246_v62  ;;  %v11968_v41 = vsel %vm2856_vm5, %v11698_v16, 0.0 }
 0x858   : > { %v14056_v34 = vrot.slane %v13518_v8, %v23113_v11  ;;  %v13524_v35 = vpop.xlane.xlu1 %13523  ;;  %v13378_v12 = vmul.f32 %v20422_v54, %v13250_v10  ;;  %v10394_v19 = vrot.slane %v10380_v24, %v18385_v46  ;;  %v13252_v58 = vsel %vm13124_vm6, 1.0, %v23047_v38 }
 0x859   : > { %v11433_v0 = vsub.f32 %v9865_v43, %v11006_v50  ;;  %v10425_v39 = vcombine.high %v20490_v3, %v20490_v3  ;;  %vm13125_vm9 = vcmp.gt.f32.partialorder %v11559_v55, 0.0  ;;  %v11018_v16 = vrot.slane %v20502_v63, %v18246_v62 }
 0x85a   : > { %v14486_v25 = vsel %vm1741_vm7, %v14056_v34, %v14052_v45  ;;  %13625 = vadd.xlane.f32.xlu0 %v13624_v18  ;;  %v14064_v10 = vrot.slane %v13524_v35, %v23113_v11  ;;  %v11947_v24 = vsel %vm2856_vm5, %v11691_v22, 0.0  ;;  %v11693_v45 = vmul.f32 %v20338_v17, %v20499_v13 }
 0x85b   : > { %11969 = vadd.xlane.f32.xlu1 %v11968_v41  ;;  %v13521_v28 = vpop.xlane.xlu0 %13520  ;;  %v10427_v43 = vcombine.high %v20502_v63, %v20502_v63  ;;  %v13636_v18 = vsel %vm2856_vm5, %v13378_v12, 0.0  ;;  %v13380_v50 = vmul.f32 %v20430_v4, %v13252_v58  ;;  %v20538_v41 = vrot.slane %v10394_v19, %v18385_v46 }
 0x85c   : > { %v14060_v8 = vrot.slane %v13521_v28, %v23113_v11  ;;  %v20524_v2 = vpop.xlane.xlu1 %13529  ;;  %v20542_v35 = vrot.slane %v23142_v47, %v18385_v46  ;;  %v13253_v63 = vsel %vm13125_vm9, 1.0, %v23047_v38  ;;  %v11561_v20 = vmax.f32 %v11433_v0, 0.0 }
 0x85d   : > { %v23189_v58 = vmax.f32 %v20383_v5, 0.0  ;;  %v13642_v5 = vsel %vm2856_vm5, %v13380_v50, 0.0  ;;  %vm13121_vm15 = vcmp.gt.f32.partialorder %v11555_v30, 0.0  ;;  %vm13123_vm2 = vcmp.gt.f32.partialorder %v20499_v13, 0.0 }
 0x85e   : > { %v14487_v34 = vsel %vm1742_vm8, %v14060_v8, %v14486_v25  ;;  %11948 = vadd.xlane.f32.xlu0 %v11947_v24  ;;  %v10396_v25 = vcombine.high %v10394_v19, %v10394_v19  ;;  %v20552_v24 = vrot.slane %v10425_v39, %v18246_v62  ;;  %v12330_v19 = vrot.slane %v20092_v9, %v23113_v11 }
 0x85f   : > { %13637 = vadd.xlane.f32.xlu1 %v13636_v18  ;;  %v14488_v22 = vsel %vm1744_vm10, %v14064_v10, %v14487_v34  ;;  %v13527_v28 = vpop.xlane.xlu0 %13526  ;;  %vm13126_vm13 = vcmp.gt.f32.partialorder %v23189_v58, 0.0  ;;  %v12326_v18 = vrot.slane %v20065_v1, %v23113_v11  ;;  %v11953_v10 = vsel %vm2856_vm5, %v11693_v45, 0.0  ;;  %v23192_v58 = vld [vmem:[#allocation106_spill] sm:$0xff] }
 0x860   : > { %v14068_v8 = vrot.slane %v13527_v28, %v23113_v11  ;;  %v20547_v12 = vpop.xlane.xlu1 %13532  ;;  %v11695_v34 = vmul.f32 %v20359_v57, %v11559_v55  ;;  %v13381_v28 = vmul.f32 %v20359_v57, %v13253_v63  ;;  %v20566_v39 = vrot.slane %v10427_v43, %v18246_v62  ;;  %v23191_v63 = vld [vmem:[#allocation112_spill] sm:$0xff] }
 0x861   : > { %v13254_v45 = vsel %vm13126_vm13, 1.0, %v23047_v38  ;;  %v12791_v9 = vsel %vm1750_vm0, %v12326_v18, %v20084_v29  ;;  %v11030_v55 = vrot.slane %v20538_v41, %v18246_v62  ;;  %v20578_v50 = vrot.slane %v10396_v25, %v18385_v46  ;;  %v20590_v25 = vld [vmem:[%s22462_s4 + $0x28] sm:$0xff] }
 0x862   : > { %v20561_v0 = vsel %vm1746_vm12, %v14068_v8, %v14488_v22  ;;  %11954 = vadd.xlane.f32.xlu0 %v11953_v10  ;;  %vm13127_vm11 = vcmp.gt.f32.partialorder %v11561_v20, 0.0  ;;  %v9867_v8 = vadd.f32 0.2, %v23191_v63  ;;  %v9868_v10 = vadd.f32 0.2, %v23192_v58  ;;  %v23194_v58 = vld [vmem:[#allocation107_spill] sm:$0xff] }
 0x863   : > { %23190 = vst [vmem:[#allocation115_spill] sm:$0xff] %v20561_v0  ;;  %13643 = vadd.xlane.f32.xlu1 %v13642_v5  ;;  %v20568_v1 = vpop.xlane.xlu0 %13535  ;;  %v11959_v21 = vsel %vm2856_vm5, %v11695_v34, 0.0  ;;  %v11697_v30 = vmul.f32 %v20389_v37, %v11561_v20  ;;  %v13645_v29 = vsel %vm2856_vm5, %v13381_v28, 0.0  ;;  %v13382_v18 = vmul.f32 %v20590_v25, %v13254_v45  ;;  %v23195_v34 = vld [vmem:[#allocation99_spill] sm:$0xff] }
 0x864   : > { %v11856_v22 = vpop.xlane.xlu1 %11855  ;;  %v13249_v5 = vsel %vm13121_vm15, 1.0, %v23047_v38  ;;  %v20595_v63 = vsel %vm1752_vm1, %v12330_v19, %v12791_v9  ;;  %v9869_v43 = vadd.f32 0.2, %v23194_v58  ;;  %v9870_v32 = vadd.f32 0.2, %v23195_v34 }
 0x865   : > { %23193 = vst [vmem:[#allocation108_spill] sm:$0xff] %v20595_v63  ;;  %v13255_v28 = vsel %vm13127_vm11, 1.0, %v23047_v38  ;;  %v12402_v45 = vrot.slane %v11856_v22, %v23113_v11  ;;  %vm13128_vm3 = vcmp.gt.f32.partialorder %v20446_v51, 0.0  ;;  %v23196_v19 = vrot.slane %v20490_v3, %v18246_v62 }
 0x866   : > { %11960 = vadd.xlane.f32.xlu0 %v11959_v21  ;;  %v10426_v21 = vcombine.high %v20538_v41, %v20538_v41  ;;  %v11965_v58 = vsel %vm2856_vm5, %v11697_v30, 0.0  ;;  %v13377_v13 = vmul.f32 %v20508_v42, %v13249_v5  ;;  %v13648_v22 = vsel %vm2856_vm5, %v13382_v18, 0.0  ;;  %v23197_v30 = vld [vmem:[#allocation130_spill] sm:$0xff]  ;;  %v23198_v5 = vld [vmem:[#allocation113_spill] sm:$0xff] }
 0x867   : > { %13646 = vadd.xlane.f32.xlu1 %v13645_v29  ;;  %v11853_v20 = vpop.xlane.xlu0 %11852  ;;  %v20609_v9 = vsub.f32 %v9867_v8, %v23196_v19  ;;  %v20611_v29 = vsub.f32 %v9868_v10, %v11018_v16  ;;  %v13383_v34 = vmul.f32 %v20389_v37, %v13255_v28  ;;  %v13251_v51 = vsel %vm13123_vm2, 1.0, %v23047_v38 }
 0x868   : > { %v12398_v6 = vrot.slane %v11853_v20, %v23113_v11  ;;  %v11862_v0 = vpop.xlane.xlu1 %11861  ;;  %v11437_v20 = vsub.f32 %v9869_v43, %v20552_v24  ;;  %v11438_v3 = vsub.f32 %v9870_v32, %v20566_v39  ;;  %v11034_v16 = vrot.slane %v20578_v50, %v18246_v62 }
 0x869   : > { %v13256_v10 = vsel %vm13128_vm3, 1.0, %v23047_v38  ;;  %v11038_v18 = vrot.slane %v10426_v21, %v18246_v62  ;;  %v12410_v32 = vrot.slane %v11862_v0, %v23113_v11  ;;  %v13633_v39 = vsel %vm2856_vm5, %v13377_v13, 0.0  ;;  %v20640_v21 = vld [vmem:[%s22462_s4 + $0x38] sm:$0xff] }
 0x86a   : > { %v12807_v41 = vsel %vm1741_vm7, %v12402_v45, %v12398_v6  ;;  %11966 = vadd.xlane.f32.xlu0 %v11965_v58  ;;  %v9871_v6 = vadd.f32 0.2, %v23197_v30  ;;  %v9872_v45 = vadd.f32 0.2, %v23198_v5  ;;  %v13379_v43 = vmul.f32 %v20338_v17, %v13251_v51 }
 0x86b   : > { %13649 = vadd.xlane.f32.xlu1 %v13648_v22  ;;  %v11859_v8 = vpop.xlane.xlu0 %11858  ;;  %v13651_v30 = vsel %vm2856_vm5, %v13383_v34, 0.0  ;;  %v20643_v5 = vmax.f32 %v11437_v20, 0.0  ;;  %v20645_v0 = vmax.f32 %v11438_v3, 0.0  ;;  %v10428_v13 = vcombine.high %v20578_v50, %v20578_v50  ;;  %v23201_v20 = vld [vmem:[#allocation22_spill] sm:$0xff] }
 0x86c   : > { %v12406_v28 = vrot.slane %v11859_v8, %v23113_v11  ;;  %v20628_v19 = vpop.xlane.xlu1 %11867  ;;  %v13384_v8 = vmul.f32 %v20640_v21, %v13256_v10  ;;  %v20652_v34 = vsub.f32 %v9872_v45, %v11034_v16  ;;  %v9874_v3 = vadd.f32 0.2, %v23201_v20 }
 0x86d   : > { %v14012_v63 = vrot.slane %v20159_v59, %v23113_v11  ;;  %v13639_v50 = vsel %vm2856_vm5, %v13379_v43, 0.0  ;;  %v14016_v16 = vrot.slane %v20194_v61, %v23113_v11  ;;  %v11042_v59 = vrot.slane %v10428_v13, %v18246_v62 }
 0x86e   : > { %v12808_v22 = vsel %vm1742_vm8, %v12406_v28, %v12807_v41  ;;  %13634 = vadd.xlane.f32.xlu0 %v13633_v39  ;;  %v20650_v28 = vsub.f32 %v9871_v6, %v11030_v55  ;;  %v23199_v39 = vld [vmem:[#allocation10_spill] sm:$0xff]  ;;  %v13654_v45 = vsel %vm2856_vm5, %v13384_v8, 0.0  ;;  %v20677_v43 = vrot.slane %v20542_v35, %v18385_v46 }
 0x86f   : > { %13652 = vadd.xlane.f32.xlu1 %v13651_v30  ;;  %v12809_v41 = vsel %vm1744_vm10, %v12410_v32, %v12808_v22  ;;  %v11865_v51 = vpop.xlane.xlu0 %11864  ;;  %v9873_v58 = vadd.f32 0.2, %v23199_v39  ;;  %v23202_v32 = vmax.f32 %v20609_v9, 0.0  ;;  %v23203_v22 = vmax.f32 %v20611_v29, 0.0 }
 0x870   : > { %v12414_v24 = vrot.slane %v11865_v51, %v23113_v11  ;;  %v20656_v10 = vpop.xlane.xlu1 %11873  ;;  %v10429_v51 = vcombine.high %v23142_v47, %v23142_v47  ;;  %v22661_v20 = vmax.f32 %v20650_v28, 0.0  ;;  %v11701_v47 = vmul.f32 %v20338_v17, %v20643_v5 }
 0x871   : > { %23200 = vst [vmem:[#allocation109_spill] sm:$0xff] %v20656_v10  ;;  %v11699_v55 = vmul.f32 %v20508_v42, %v23202_v32  ;;  %v11700_v30 = vmul.f32 %v20422_v54, %v23203_v22  ;;  %v11441_v8 = vsub.f32 %v9873_v58, %v11038_v18  ;;  %vm13132_vm9 = vcmp.gt.f32.partialorder %v20645_v0, 0.0 }
 0x872   : > { %v20668_v6 = vsel %vm1746_vm12, %v12414_v24, %v12809_v41  ;;  %13640 = vadd.xlane.f32.xlu0 %v13639_v50  ;;  %v14477_v24 = vsel %vm1750_vm0, %v14012_v63, %v20187_v31  ;;  %v23204_v41 = vcombine.high %v20542_v35, %v20542_v35  ;;  %v11442_v50 = vsub.f32 %v9874_v3, %v11042_v59 }
 0x873   : > { %13655 = vadd.xlane.f32.xlu1 %v13654_v45  ;;  %v20681_v61 = vpop.xlane.xlu0 %11870  ;;  %v11971_v32 = vsel %vm2856_vm5, %v11699_v55, 0.0  ;;  %v22660_v45 = vmax.f32 %v20652_v34, 0.0  ;;  %v11974_v31 = vsel %vm2856_vm5, %v11700_v30, 0.0  ;;  %v11702_v63 = vmul.f32 %v20430_v4, %v20645_v0 }
 0x874   : > { %v10466_v39 = vrot.slane %v23204_v41, %v18385_v46  ;;  %v13539_v13 = vpop.xlane.xlu1 %13538  ;;  %v20698_v35 = vsel %vm1752_vm1, %v14016_v16, %v14477_v24  ;;  %v10443_v58 = vrot.slane %v10429_v51, %v18385_v46  ;;  %v20703_v55 = vmax.f32 %v11441_v8, 0.0 }
 0x875   : > { %23205 = vst [vmem:[#allocation122_spill] sm:$0xff] %v20698_v35  ;;  %v14084_v59 = vrot.slane %v13539_v13, %v23113_v11  ;;  %v11977_v24 = vsel %vm2856_vm5, %v11701_v47, 0.0  ;;  %v11703_v51 = vmul.f32 %v20359_v57, %v22661_v20  ;;  %v11980_v13 = vsel %vm2856_vm5, %v11702_v63, 0.0 }
 0x876   : > { %11972 = vadd.xlane.f32.xlu0 %v11971_v32  ;;  %v10476_v22 = vcombine.high %v10466_v39, %v10466_v39  ;;  %v20707_v32 = vmax.f32 %v11442_v50, 0.0  ;;  %v11050_v8 = vrot.slane %v10466_v39, %v18246_v62  ;;  %v11704_v50 = vmul.f32 %v20590_v25, %v22660_v45 }
 0x877   : > { %11975 = vadd.xlane.f32.xlu1 %v11974_v31  ;;  %v13542_v3 = vpop.xlane.xlu0 %13541  ;;  %v10445_v18 = vcombine.high %v10443_v58, %v10443_v58  ;;  %v23206_v16 = vmax.f32 %v20609_v9, 0.0  ;;  %v23207_v39 = vmax.f32 %v20611_v29, 0.0  ;;  %v11983_v29 = vsel %vm2856_vm5, %v11703_v51, 0.0 }
 0x878   : > { %v14088_v30 = vrot.slane %v13542_v3, %v23113_v11  ;;  %v13548_v41 = vpop.xlane.xlu1 %13547  ;;  %v20722_v3 = vrot.slane %v10443_v58, %v18385_v46  ;;  %v20730_v63 = vrot.slane %v10476_v22, %v18246_v62  ;;  %v11705_v58 = vmul.f32 %v20389_v37, %v20703_v55 }
 0x879   : > { %vm13129_vm4 = vcmp.gt.f32.partialorder %v23206_v16, 0.0  ;;  %vm13130_vm6 = vcmp.gt.f32.partialorder %v23207_v39, 0.0  ;;  %v14096_v9 = vrot.slane %v13548_v41, %v23113_v11  ;;  %v11706_v16 = vmul.f32 %v20640_v21, %v20707_v32 }
 0x87a   : > { %v14493_v31 = vsel %vm1741_vm7, %v14088_v30, %v14084_v59  ;;  %11978 = vadd.xlane.f32.xlu0 %v11977_v24  ;;  %v23208_v59 = vld [vmem:[#allocation23_spill] sm:$0xff]  ;;  %v13257_v39 = vsel %vm13129_vm4, 1.0, %v23047_v38  ;;  %v10473_v20 = vrot.slane %v10445_v18, %v18385_v46  ;;  %vm13131_vm13 = vcmp.gt.f32.partialorder %v20643_v5, 0.0 }
 0x87b   : > { %11981 = vadd.xlane.f32.xlu1 %v11980_v13  ;;  %v13545_v47 = vpop.xlane.xlu0 %13544  ;;  %v9876_v30 = vadd.f32 0.2, %v23208_v59  ;;  %v20739_v13 = vrot.slane %v23144_v44, %v18385_v46  ;;  %v13258_v59 = vsel %vm13130_vm6, 1.0, %v23047_v38  ;;  %v12358_v18 = vrot.slane %v20249_v48, %v23113_v11 }
 0x87c   : > { %v14092_v24 = vrot.slane %v13545_v47, %v23113_v11  ;;  %v20733_v45 = vpop.xlane.xlu1 %13556  ;;  %v11986_v47 = vsel %vm2856_vm5, %v11704_v50, 0.0  ;;  %v13386_v0 = vmul.f32 %v20422_v54, %v13258_v59  ;;  %v12362_v5 = vrot.slane %v20280_v33, %v23113_v11 }
 0x87d   : > { %23209 = vst [vmem:[#allocation118_spill] sm:$0xff] %v20733_v45  ;;  %v20753_v51 = vsub.f32 %v9876_v30, %v11050_v8  ;;  %v11989_v45 = vsel %vm2856_vm5, %v11705_v58, 0.0  ;;  %v13260_v30 = vsel %vm13132_vm9, 1.0, %v23047_v38  ;;  %v10475_v58 = vcombine.high %v20722_v3, %v20722_v3 }
 0x87e   : > { %v14494_v22 = vsel %vm1742_vm8, %v14092_v24, %v14493_v31  ;;  %11984 = vadd.xlane.f32.xlu0 %v11983_v29  ;;  %v23210_v31 = vld [vmem:[#allocation34_spill] sm:$0xff]  ;;  %v10477_v48 = vcombine.high %v10473_v20, %v10473_v20  ;;  %v12798_v59 = vsel %vm1750_vm0, %v12358_v18, %v20272_v14  ;;  %vm13135_vm2 = vcmp.gt.f32.partialorder %v20703_v55, 0.0 }
 0x87f   : > { %11987 = vadd.xlane.f32.xlu1 %v11986_v47  ;;  %v14495_v35 = vsel %vm1744_vm10, %v14096_v9, %v14494_v22  ;;  %v13551_v41 = vpop.xlane.xlu0 %13550  ;;  %v9878_v24 = vadd.f32 0.2, %v23210_v31  ;;  %v11992_v9 = vsel %vm2856_vm5, %v11706_v16, 0.0  ;;  %v13385_v22 = vmul.f32 %v20508_v42, %v13257_v39 }
 0x880   : > { %v14100_v50 = vrot.slane %v13551_v41, %v23113_v11  ;;  %v20757_v29 = vpop.xlane.xlu1 %11879  ;;  %v13259_v47 = vsel %vm13131_vm13, 1.0, %v23047_v38  ;;  %v23211_v39 = vmax.f32 %v20650_v28, 0.0  ;;  %v22662_v33 = vmax.f32 %v20753_v51, 0.0 }
 0x881   : > { %v13657_v10 = vsel %vm2856_vm5, %v13385_v22, 0.0  ;;  %v13388_v28 = vmul.f32 %v20430_v4, %v13260_v30  ;;  %v20797_v22 = vsel %vm1752_vm1, %v12362_v5, %v12798_v59  ;;  %v9882_v5 = vadd.f32 0.2, %v19239_v23 }
 0x882   : > { %v14496_v8 = vsel %vm1746_vm12, %v14100_v50, %v14495_v35  ;;  %11990 = vadd.xlane.f32.xlu0 %v11989_v45  ;;  %vm13133_vm15 = vcmp.gt.f32.partialorder %v23211_v39, 0.0  ;;  %v11446_v45 = vsub.f32 %v9878_v24, %v20730_v63  ;;  %v23212_v35 = vld [vmem:[#allocation35_spill] sm:$0xff]  ;;  %v13387_v39 = vmul.f32 %v20338_v17, %v13259_v47  ;;  %23216 = vst [vmem:[#allocation123_spill] sm:$0xff] %v20797_v22 }
 0x883   : > { %11993 = vadd.xlane.f32.xlu1 %v11992_v9  ;;  %v13554_v16 = vpop.xlane.xlu0 %13553  ;;  %v9880_v41 = vadd.f32 0.2, %v23212_v35  ;;  %v13660_v9 = vsel %vm2856_vm5, %v13386_v0, 0.0  ;;  %v13261_v63 = vsel %vm13133_vm15, 1.0, %v23047_v38  ;;  %v23213_v24 = vmax.f32 %v20652_v34, 0.0 }
 0x884   : > { %v14104_v31 = vrot.slane %v13554_v16, %v23113_v11  ;;  %v20780_v50 = vpop.xlane.xlu1 %11885  ;;  %v23217_v0 = vcombine.high %v20677_v43, %v20677_v43  ;;  %v10478_v34 = vcombine.high %v23144_v44, %v23144_v44  ;;  %v20811_v16 = vrot.slane %v10475_v58, %v18246_v62 }
 0x885   : > { %vm20792_vm11 = vcmp.gt.f32.partialorder %v23213_v24, 0.0  ;;  %v20816_v59 = vrot.slane %v20739_v13, %v18385_v46  ;;  %v10493_v35 = vcombine.high %v20739_v13, %v20739_v13  ;;  %v13666_v44 = vsel %vm2856_vm5, %v13388_v28, 0.0  ;;  %v23219_v28 = vld [vmem:[#allocation12_spill] sm:$0xff] }
 0x886   : > { %v20787_v14 = vsel %vm1748_vm14, %v14104_v31, %v14496_v8  ;;  %13658 = vadd.xlane.f32.xlu0 %v13657_v10  ;;  %v11054_v30 = vrot.slane %v23217_v0, %v18246_v62  ;;  %v11066_v10 = vrot.slane %v10473_v20, %v18246_v62  ;;  %v13262_v58 = vsel %vm20792_vm11, 1.0, %v23047_v38 }
 0x887   : > { %13661 = vadd.xlane.f32.xlu1 %v13660_v9  ;;  %v20808_v47 = vpop.xlane.xlu0 %13559  ;;  %v13389_v9 = vmul.f32 %v20359_v57, %v13261_v63  ;;  %v20829_v23 = vmax.f32 %v11446_v45, 0.0  ;;  %v11074_v24 = vrot.slane %v10477_v48, %v18246_v62  ;;  %v13663_v0 = vsel %vm2856_vm5, %v13387_v39, 0.0 }
 0x888   : > { %v20820_v31 = vpop.xlane.xlu1 %11891  ;;  %v20822_v20 = vsub.f32 %v9880_v41, %v11066_v10  ;;  %v11708_v13 = vmul.f32 %v20422_v54, %v22662_v33  ;;  %v23218_v41 = vld [vmem:[#allocation11_spill] sm:$0xff]  ;;  %v9877_v8 = vadd.f32 0.2, %v23219_v28  ;;  %v10492_v63 = vrot.slane %v10478_v34, %v18385_v46 }
 0x889   : > { %v9875_v10 = vadd.f32 0.2, %v23218_v41  ;;  %v11450_v45 = vsub.f32 %v9882_v5, %v11074_v24  ;;  %v12434_v48 = vrot.slane %v20757_v29, %v23113_v11  ;;  %v13390_v33 = vmul.f32 %v20590_v25, %v13262_v58 }
 0x88a   : > { %13667 = vadd.xlane.f32.xlu0 %v13666_v44  ;;  %v20848_v28 = vrot.slane %v10493_v35, %v18385_v46  ;;  %v10523_v34 = vcombine.high %v20816_v59, %v20816_v59  ;;  %v13669_v55 = vsel %vm2856_vm5, %v13389_v9, 0.0  ;;  %v11998_v29 = vsel %vm2856_vm5, %v11708_v13, 0.0  ;;  %v23222_v9 = vld [vmem:[#allocation13_spill] sm:$0xff] }
 0x88b   : > { %13664 = vadd.xlane.f32.xlu1 %v13663_v0  ;;  %v11877_v18 = vpop.xlane.xlu0 %11876  ;;  %v11710_v24 = vmul.f32 %v20430_v4, %v20829_v23  ;;  %v13263_v58 = vsel %vm13135_vm2, 1.0, %v23047_v38  ;;  %v23221_v0 = vrot.slane %v20677_v43, %v18246_v62  ;;  %v10494_v41 = vcombine.high %v10492_v63, %v10492_v63 }
 0x88c   : > { %v12430_v39 = vrot.slane %v11877_v18, %v23113_v11  ;;  %v20843_v44 = vpop.xlane.xlu1 %11897  ;;  %v11445_v18 = vsub.f32 %v9877_v8, %v11054_v30  ;;  %vm13136_vm3 = vcmp.gt.f32.partialorder %v20707_v32, 0.0  ;;  %v14044_v43 = vrot.slane %v20323_v52, %v23113_v11 }
 0x88d   : > { %23220 = vst [vmem:[#allocation119_spill] sm:$0xff] %v20843_v44  ;;  %v20861_v35 = vsub.f32 %v9875_v10, %v23221_v0  ;;  %v13672_v44 = vsel %vm2856_vm5, %v13390_v33, 0.0  ;;  %v14048_v30 = vrot.slane %v20349_v36, %v23113_v11  ;;  %v12442_v8 = vrot.slane %v20780_v50, %v23113_v11 }
 0x88e   : > { %v12814_v5 = vsel %vm1741_vm7, %v12434_v48, %v12430_v39  ;;  %13670 = vadd.xlane.f32.xlu0 %v13669_v55  ;;  %v9879_v48 = vadd.f32 0.2, %v23222_v9  ;;  %v20865_v39 = vmax.f32 %v11450_v45, 0.0  ;;  %v13391_v32 = vmul.f32 %v20389_v37, %v13263_v58 }
 0x88f   : > { %11999 = vadd.xlane.f32.xlu1 %v11998_v29  ;;  %v11883_v22 = vpop.xlane.xlu0 %11882  ;;  %v23223_v45 = vmax.f32 %v20822_v20, 0.0  ;;  %v13264_v29 = vsel %vm13136_vm3, 1.0, %v23047_v38  ;;  %v11573_v52 = vmax.f32 %v11445_v18, 0.0  ;;  %v10525_v36 = vcombine.high %v20848_v28, %v20848_v28 }
 0x890   : > { %v12438_v13 = vrot.slane %v11883_v22, %v23113_v11  ;;  %v20868_v55 = vpop.xlane.xlu1 %13562  ;;  %v12004_v22 = vsel %vm2856_vm5, %v11710_v24, 0.0  ;;  %v20893_v24 = vrot.slane %v10494_v41, %v18385_v46  ;;  %v23224_v18 = vmax.f32 %v20753_v51, 0.0 }
 0x891   : > { %v11712_v33 = vmul.f32 %v20590_v25, %v23223_v45  ;;  %v20918_v45 = vrot.slane %v23147_v49, %v18385_v46  ;;  %vm13139_vm6 = vcmp.gt.f32.partialorder %v11573_v52, 0.0  ;;  %vm13140_vm9 = vcmp.gt.f32.partialorder %v20829_v23, 0.0 }
 0x892   : > { %v12815_v10 = vsel %vm1742_vm8, %v12438_v13, %v12814_v5  ;;  %13673 = vadd.xlane.f32.xlu0 %v13672_v44  ;;  %v14484_v5 = vsel %vm1750_vm0, %v14044_v43, %v20347_v40  ;;  %v20890_v44 = vrot.slane %v10492_v63, %v18385_v46  ;;  %vm13138_vm4 = vcmp.gt.f32.partialorder %v23224_v18, 0.0 }
 0x893   : > { %12005 = vadd.xlane.f32.xlu1 %v12004_v22  ;;  %v12816_v50 = vsel %vm1744_vm10, %v12442_v8, %v12815_v10  ;;  %v11889_v0 = vpop.xlane.xlu0 %11888  ;;  %v22663_v13 = vmax.f32 %v20861_v35, 0.0  ;;  %v13675_v8 = vsel %vm2856_vm5, %v13391_v32, 0.0  ;;  %v13392_v10 = vmul.f32 %v20640_v21, %v13264_v29 }
 0x894   : > { %v12446_v58 = vrot.slane %v11889_v0, %v23113_v11  ;;  %v20896_v9 = vpop.xlane.xlu1 %13571  ;;  %v20904_v40 = vsel %vm1752_vm1, %v14048_v30, %v14484_v5  ;;  %v23226_v63 = vrot.slane %v20722_v3, %v18246_v62  ;;  %v12010_v51 = vsel %vm2856_vm5, %v11712_v33, 0.0 }
 0x895   : > { %23225 = vst [vmem:[#allocation124_spill] sm:$0xff] %v20904_v40  ;;  %v11714_v22 = vmul.f32 %v20640_v21, %v20865_v39  ;;  %v9881_v32 = vadd.f32 0.2, %v19257_v15  ;;  %v13266_v3 = vsel %vm13138_vm4, 1.0, %v23047_v38  ;;  %v20928_v29 = vrot.slane %v10523_v34, %v18246_v62 }
 0x896   : > { %v11447_v41 = vsub.f32 %v9879_v48, %v23226_v63  ;;  %v20910_v43 = vsel %vm1746_vm12, %v12446_v58, %v12816_v50  ;;  %13676 = vadd.xlane.f32.xlu0 %v13675_v8  ;;  %v20931_v15 = vrot.slane %v10525_v36, %v18246_v62  ;;  %v10524_v0 = vcombine.high %v20890_v44, %v20890_v44 }
 0x897   : > { %12011 = vadd.xlane.f32.xlu1 %v12010_v51  ;;  %v20920_v30 = vpop.xlane.xlu0 %11894  ;;  %v10526_v5 = vcombine.high %v20893_v24, %v20893_v24  ;;  %v13678_v58 = vsel %vm2856_vm5, %v13392_v10, 0.0  ;;  %v11707_v18 = vmul.f32 %v20508_v42, %v22663_v13  ;;  %v12016_v34 = vsel %vm2856_vm5, %v11714_v22, 0.0 }
 0x898   : > { %v13575_v50 = vpop.xlane.xlu1 %13574  ;;  %v11575_v8 = vmax.f32 %v11447_v41, 0.0  ;;  %v13394_v36 = vmul.f32 %v20422_v54, %v13266_v3  ;;  %v13267_v63 = vsel %vm13139_vm6, 1.0, %v23047_v38  ;;  %v11449_v51 = vsub.f32 %v9881_v32, %v20811_v16 }
 0x899   : > { %v20949_v10 = vrot.slane %v20918_v45, %v18385_v46  ;;  %v14116_v22 = vrot.slane %v20868_v55, %v23113_v11  ;;  %v11709_v16 = vmul.f32 %v20338_v17, %v11573_v52  ;;  %v20963_v33 = vrot.slane %v10524_v0, %v18246_v62 }
 0x89a   : > { %13679 = vadd.xlane.f32.xlu0 %v13678_v58  ;;  %v13395_v48 = vmul.f32 %v20338_v17, %v13267_v63  ;;  %v20968_v55 = vrot.slane %v10526_v5, %v18246_v62  ;;  %v13684_v52 = vsel %vm2856_vm5, %v13394_v36, 0.0  ;;  %vm13141_vm13 = vcmp.gt.f32.partialorder %v11575_v8, 0.0 }
 0x89b   : > { %12017 = vadd.xlane.f32.xlu1 %v12016_v34  ;;  %v13566_v41 = vpop.xlane.xlu0 %13565  ;;  %v11995_v34 = vsel %vm2856_vm5, %v11707_v18, 0.0  ;;  %v20972_v23 = vmax.f32 %v11449_v51, 0.0  ;;  %v9883_v32 = vadd.f32 0.2, %v19283_v26  ;;  %v10527_v0 = vcombine.high %v23147_v49, %v23147_v49 }
 0x89c   : > { %v14120_v3 = vrot.slane %v13566_v41, %v23113_v11  ;;  %v20956_v58 = vpop.xlane.xlu1 %13580  ;;  %v13268_v17 = vsel %vm13140_vm9, 1.0, %v23047_v38  ;;  %v12386_v5 = vrot.slane %v20414_v56, %v23113_v11  ;;  %v12001_v36 = vsel %vm2856_vm5, %v11709_v16, 0.0 }
 0x89d   : > { %v11711_v51 = vmul.f32 %v20359_v57, %v11575_v8  ;;  %v12390_v26 = vrot.slane %v20468_v60, %v23113_v11  ;;  %v14128_v49 = vrot.slane %v20896_v9, %v23113_v11  ;;  %v14132_v56 = vrot.slane %v13575_v50, %v23113_v11  ;;  %v23227_v60 = vld [vmem:[#allocation24_spill] sm:$0xff] }
 0x89e   : > { %v14500_v41 = vsel %vm1741_vm7, %v14120_v3, %v14116_v22  ;;  %11996 = vadd.xlane.f32.xlu0 %v11995_v34  ;;  %v13687_v3 = vsel %vm2856_vm5, %v13395_v48, 0.0  ;;  %v13269_v34 = vsel %vm13141_vm13, 1.0, %v23047_v38  ;;  %v12804_v8 = vsel %vm1748_vm14, %v12386_v5, %v20461_v27 }
 0x89f   : > { %13685 = vadd.xlane.f32.xlu1 %v13684_v52  ;;  %v13569_v18 = vpop.xlane.xlu0 %13568  ;;  %v9884_v16 = vadd.f32 0.2, %v19262_v7  ;;  %v9885_v13 = vadd.f32 0.2, %v23227_v60  ;;  %v23228_v40 = vmax.f32 %v20861_v35, 0.0  ;;  %v12394_v50 = vrot.slane %v20449_v53, %v23113_v11 }
 0x8a0   : > { %v14124_v63 = vrot.slane %v13569_v18, %v23113_v11  ;;  %v20981_v22 = vpop.xlane.xlu1 %11903  ;;  %v13396_v18 = vmul.f32 %v20430_v4, %v13268_v17  ;;  %v23229_v7 = vmax.f32 %v20822_v20, 0.0  ;;  %v12007_v27 = vsel %vm2856_vm5, %v11711_v51, 0.0 }
 0x8a1   : > { %vm13137_vm15 = vcmp.gt.f32.partialorder %v23228_v40, 0.0  ;;  %v11713_v5 = vmul.f32 %v20389_v37, %v20972_v23  ;;  %v13397_v35 = vmul.f32 %v20359_v57, %v13269_v34  ;;  %v12805_v40 = vsel %vm1750_vm0, %v12390_v26, %v12804_v8 }
 0x8a2   : > { %v14501_v52 = vsel %vm1742_vm8, %v14124_v63, %v14500_v41  ;;  %12002 = vadd.xlane.f32.xlu0 %v12001_v36  ;;  %vm13142_vm11 = vcmp.gt.f32.partialorder %v23229_v7, 0.0  ;;  %v13690_v63 = vsel %vm2856_vm5, %v13396_v18, 0.0  ;;  %v13265_v36 = vsel %vm13137_vm15, 1.0, %v23047_v38 }
 0x8a3   : > { %v14502_v9 = vsel %vm1744_vm10, %v14128_v49, %v14501_v52  ;;  %13688 = vadd.xlane.f32.xlu1 %v13687_v3  ;;  %v13578_v48 = vpop.xlane.xlu0 %13577  ;;  %v21020_v20 = vsel %vm1752_vm1, %v12394_v50, %v12805_v40  ;;  %v23231_v49 = vld [vmem:[#allocation36_spill] sm:$0xff]  ;;  %v13270_v26 = vsel %vm13142_vm11, 1.0, %v23047_v38  ;;  %vm13144_vm2 = vcmp.gt.f32.partialorder %v20865_v39, 0.0 }
 0x8a4   : > { %v14503_v41 = vsel %vm1746_vm12, %v14132_v56, %v14502_v9  ;;  %v14136_v4 = vrot.slane %v13578_v48, %v23113_v11  ;;  %v21005_v17 = vpop.xlane.xlu1 %11909  ;;  %23230 = vst [vmem:[#allocation120_spill] sm:$0xff] %v21020_v20  ;;  %v9886_v51 = vadd.f32 0.2, %v23231_v49  ;;  %v23232_v34 = vcombine.high %v20918_v45, %v20918_v45  ;;  %v23265_v20 = vld [vmem:[#allocation64_spill] sm:$0xff] }
 0x8a5   : > { %v10572_v52 = vcombine.high %v20949_v10, %v20949_v10  ;;  %v10541_v18 = vrot.slane %v10527_v0, %v18385_v46  ;;  %vm13143_vm3 = vcmp.gt.f32.partialorder %v20972_v23, 0.0  ;;  %v23233_v60 = vrot.slane %v20816_v59, %v18246_v62 }
 0x8a6   : > { %v21015_v53 = vsel %vm1748_vm14, %v14136_v4, %v14503_v41  ;;  %12008 = vadd.xlane.f32.xlu0 %v12007_v27  ;;  %v21033_v56 = vrot.slane %v23232_v34, %v18385_v46  ;;  %v23234_v39 = vrot.slane %v20848_v28, %v18246_v62  ;;  %v12013_v48 = vsel %vm2856_vm5, %v11713_v5, 0.0  ;;  %v23235_v4 = vld [vmem:[#allocation25_spill] sm:$0xff] }
 0x8a7   : > { %13691 = vadd.xlane.f32.xlu1 %v13690_v63  ;;  %v21025_v57 = vpop.xlane.xlu0 %13583  ;;  %v21044_v9 = vsub.f32 %v9883_v32, %v23233_v60  ;;  %v13393_v50 = vmul.f32 %v20508_v42, %v13265_v36  ;;  %v11453_v0 = vsub.f32 %v9885_v13, %v20928_v29  ;;  %v13693_v41 = vsel %vm2856_vm5, %v13397_v35, 0.0  ;;  %v23236_v28 = vld [vmem:[#allocation37_spill] sm:$0xff] }
 0x8a8   : > { %v21038_v8 = vpop.xlane.xlu1 %11915  ;;  %v21049_v45 = vsub.f32 %v9884_v16, %v23234_v39  ;;  %v13398_v23 = vmul.f32 %v20590_v25, %v13270_v26  ;;  %v13272_v59 = vsel %vm13144_vm2, 1.0, %v23047_v38  ;;  %v11454_v32 = vsub.f32 %v9886_v51, %v20931_v15 }
 0x8a9   : > { %v9887_v7 = vadd.f32 0.2, %v23235_v4  ;;  %v9888_v16 = vadd.f32 0.2, %v23236_v28  ;;  %v13271_v5 = vsel %vm13143_vm3, 1.0, %v23047_v38  ;;  %v10574_v13 = vcombine.high %v21033_v56, %v21033_v56 }
 0x8aa   : > { %12014 = vadd.xlane.f32.xlu0 %v12013_v48  ;;  %v10543_v29 = vcombine.high %v10541_v18, %v10541_v18  ;;  %v12466_v35 = vrot.slane %v20981_v22, %v23113_v11  ;;  %v11579_v15 = vmax.f32 %v21044_v9, 0.0  ;;  %v11580_v36 = vmax.f32 %v21049_v45, 0.0  ;;  %v21225_v45 = vld [vmem:[%s22462_s4 + $0x30] sm:$0xff]  ;;  %v23247_v9 = vld [vmem:[#allocation59_spill] sm:$0xff] }
 0x8ab   : > { %13694 = vadd.xlane.f32.xlu1 %v13693_v41  ;;  %v11901_v27 = vpop.xlane.xlu0 %11900  ;;  %v13681_v49 = vsel %vm2856_vm5, %v13393_v50, 0.0  ;;  %v13400_v51 = vmul.f32 %v20640_v21, %v13272_v59  ;;  %v21072_v26 = vmax.f32 %v11453_v0, 0.0  ;;  %v13696_v60 = vsel %vm2856_vm5, %v13398_v23, 0.0  ;;  %v23239_v23 = vld [vmem:[#allocation48_spill] sm:$0xff] }
 0x8ac   : > { %v12462_v40 = vrot.slane %v11901_v27, %v23113_v11  ;;  %v21066_v63 = vpop.xlane.xlu1 %11921  ;;  %v13399_v22 = vmul.f32 %v20389_v37, %v13271_v5  ;;  %v21077_v39 = vmax.f32 %v11454_v32, 0.0  ;;  %v23237_v48 = vrot.slane %v20890_v44, %v18246_v62  ;;  %v23240_v37 = vld [vmem:[#allocation58_spill] sm:$0xff] }
 0x8ad   : > { %v23238_v50 = vrot.slane %v20893_v24, %v18246_v62  ;;  %v14076_v0 = vrot.slane %v20547_v12, %v23113_v11  ;;  %v9889_v28 = vadd.f32 0.2, %v23239_v23  ;;  %v9890_v32 = vadd.f32 0.2, %v23240_v37 }
 0x8ae   : > { %v12821_v34 = vsel %vm1741_vm7, %v12466_v35, %v12462_v40  ;;  %13682 = vadd.xlane.f32.xlu0 %v13681_v49  ;;  %v21082_v41 = vsub.f32 %v9887_v7, %v23237_v48  ;;  %v14072_v27 = vrot.slane %v20524_v2, %v23113_v11  ;;  %v14080_v24 = vrot.slane %v20568_v1, %v23113_v11  ;;  %v23241_v49 = vld [vmem:[#allocation115_spill] sm:$0xff] }
 0x8af   : > { %v21087_v59 = vsub.f32 %v9888_v16, %v23238_v50  ;;  %13697 = vadd.xlane.f32.xlu1 %v13696_v60  ;;  %v11907_v4 = vpop.xlane.xlu0 %11906  ;;  %v12474_v16 = vrot.slane %v21005_v17, %v23113_v11  ;;  %v13702_v12 = vsel %vm2856_vm5, %v13400_v51, 0.0  ;;  %v11715_v5 = vmul.f32 %v20508_v42, %v11579_v15  ;;  %v23242_v51 = vld [vmem:[#allocation14_spill] sm:$0xff] }
 0x8b0   : > { %v12470_v44 = vrot.slane %v11907_v4, %v23113_v11  ;;  %v21096_v7 = vpop.xlane.xlu1 %13586  ;;  %v13699_v2 = vsel %vm2856_vm5, %v13399_v22, 0.0  ;;  %v11716_v40 = vmul.f32 %v20422_v54, %v11580_v36  ;;  %v14490_v1 = vsel %vm1748_vm14, %v14072_v27, %v23241_v49 }
 0x8b1   : > { %v21114_v17 = vrot.slane %v10541_v18, %v18385_v46  ;;  %v10583_v60 = vrot.slane %v23242_v51, %v18385_v46  ;;  %v14491_v50 = vsel %vm1750_vm0, %v14076_v0, %v14490_v1  ;;  %v22665_v22 = vmax.f32 %v21082_v41, 0.0 }
 0x8b2   : > { %v12822_v35 = vsel %vm1742_vm8, %v12470_v44, %v12821_v34  ;;  %13703 = vadd.xlane.f32.xlu0 %v13702_v12  ;;  %v22664_v4 = vmax.f32 %v21087_v59, 0.0  ;;  %v21123_v54 = vrot.slane %v10543_v29, %v18385_v46  ;;  %v11457_v37 = vsub.f32 %v9889_v28, %v20963_v33  ;;  %v21133_v44 = vld [vmem:[%s22462_s4 + $0x10] sm:$0xff]  ;;  %v21148_v28 = vld [vmem:[%s22462_s4 + $0x18] sm:$0xff] }
 0x8b3   : > { %13700 = vadd.xlane.f32.xlu1 %v13699_v2  ;;  %v12823_v48 = vsel %vm1744_vm10, %v12474_v16, %v12822_v35  ;;  %v11913_v34 = vpop.xlane.xlu0 %11912  ;;  %v12019_v27 = vsel %vm2856_vm5, %v11715_v5, 0.0  ;;  %v11717_v0 = vmul.f32 %v21133_v44, %v21072_v26  ;;  %v21138_v16 = vsel %vm1752_vm1, %v14080_v24, %v14491_v50 }
 0x8b4   : > { %v12478_v23 = vrot.slane %v11913_v34, %v23113_v11  ;;  %v21126_v18 = vpop.xlane.xlu1 %13598  ;;  %23243 = vst [vmem:[#allocation125_spill] sm:$0xff] %v21138_v16  ;;  %v11458_v29 = vsub.f32 %v9890_v32, %v20968_v55  ;;  %v12022_v33 = vsel %vm2856_vm5, %v11716_v40, 0.0  ;;  %v11718_v5 = vmul.f32 %v21148_v28, %v21077_v39 }
 0x8b5   : > { %v11114_v24 = vrot.slane %v21033_v56, %v18246_v62  ;;  %v21158_v55 = vrot.slane %v10572_v52, %v18246_v62  ;;  %v10573_v32 = vcombine.high %v21114_v17, %v21114_v17  ;;  %v10591_v35 = vcombine.high %v10583_v60, %v10583_v60 }
 0x8b6   : > { %v21142_v12 = vsel %vm1746_vm12, %v12478_v23, %v12823_v48  ;;  %12020 = vadd.xlane.f32.xlu0 %v12019_v27  ;;  %v21165_v40 = vrot.slane %v10574_v13, %v18246_v62  ;;  %v10575_v1 = vcombine.high %v21123_v54, %v21123_v54  ;;  %v21172_v48 = vrot.slane %v10583_v60, %v18385_v46  ;;  %v21182_v13 = vld [vmem:[%s22462_s4 + $0x20] sm:$0xff] }
 0x8b7   : > { %12023 = vadd.xlane.f32.xlu1 %v12022_v33  ;;  %v21162_v2 = vpop.xlane.xlu0 %11918  ;;  %v11585_v34 = vmax.f32 %v11457_v37, 0.0  ;;  %v12025_v23 = vsel %vm2856_vm5, %v11717_v0, 0.0  ;;  %v11719_v27 = vmul.f32 %v21182_v13, %v22665_v22  ;;  %v21187_v33 = vmax.f32 %v11458_v29, 0.0 }
 0x8b8   : > { %v21174_v52 = vpop.xlane.xlu1 %13604  ;;  %v12028_v60 = vsel %vm2856_vm5, %v11718_v5, 0.0  ;;  %v11720_v37 = vmul.f32 %v20590_v25, %v22664_v4  ;;  %vm21195_vm4 = vcmp.gt.f32.partialorder %v11579_v15, 0.0  ;;  %v21200_v49 = vrot.slane %v10573_v32, %v18246_v62 }
 0x8b9   : > { %23244 = vst [vmem:[#allocation121_spill] sm:$0xff] %v21174_v52  ;;  %v21203_v50 = vrot.slane %v10591_v35, %v18385_v46  ;;  %v10576_v29 = vcombine.high %v23242_v51, %v23242_v51  ;;  %vm13146_vm6 = vcmp.gt.f32.partialorder %v11580_v36, 0.0  ;;  %v21210_v25 = vrot.slane %v10575_v1, %v18246_v62 }
 0x8ba   : > { %12026 = vadd.xlane.f32.xlu0 %v12025_v23  ;;  %v14148_v15 = vrot.slane %v21096_v7, %v23113_v11  ;;  %v12031_v23 = vsel %vm2856_vm5, %v11719_v27, 0.0  ;;  %v11721_v36 = vmul.f32 %v21225_v45, %v11585_v34  ;;  %v13273_v7 = vsel %vm21195_vm4, 1.0, %v23047_v38 }
 0x8bb   : > { %12029 = vadd.xlane.f32.xlu1 %v12028_v60  ;;  %v13590_v5 = vpop.xlane.xlu0 %13589  ;;  %v12034_v60 = vsel %vm2856_vm5, %v11720_v37, 0.0  ;;  %v13274_v27 = vsel %vm13146_vm6, 1.0, %v23047_v38  ;;  %v9892_v3 = vadd.f32 0.2, %v23247_v9  ;;  %v10590_v51 = vrot.slane %v10576_v29, %v18385_v46 }
 0x8bc   : > { %v14152_v32 = vrot.slane %v13590_v5, %v23113_v11  ;;  %v21217_v35 = vpop.xlane.xlu1 %11927  ;;  %v11722_v5 = vmul.f32 %v20640_v21, %v21187_v33  ;;  %vm13147_vm9 = vcmp.gt.f32.partialorder %v21072_v26, 0.0  ;;  %vm13151_vm13 = vcmp.gt.f32.partialorder %v11585_v34, 0.0  ;;  %v21255_v26 = vld [vmem:[%s22462_s4 + $0x8] sm:$0xff] }
 0x8bd   : > { %v10623_v9 = vcombine.high %v21203_v50, %v21203_v50  ;;  %v12422_v29 = vrot.slane %v20681_v61, %v23113_v11  ;;  %v13275_v34 = vsel %vm13147_vm9, 1.0, %v23047_v38  ;;  %v21266_v61 = vsub.f32 %v9892_v3, %v11114_v24 }
 0x8be   : > { %v14507_v1 = vsel %vm1741_vm7, %v14152_v32, %v14148_v15  ;;  %12032 = vadd.xlane.f32.xlu0 %v12031_v23  ;;  %v12418_v15 = vrot.slane %v20628_v19, %v23113_v11  ;;  %v13401_v23 = vmul.f32 %v20508_v42, %v13273_v7  ;;  %v13402_v19 = vmul.f32 %v21255_v26, %v13274_v27 }
 0x8bf   : > { %12035 = vadd.xlane.f32.xlu1 %v12034_v60  ;;  %v13593_v0 = vpop.xlane.xlu0 %13592  ;;  %v12037_v60 = vsel %vm2856_vm5, %v11721_v36, 0.0  ;;  %v12040_v42 = vsel %vm2856_vm5, %v11722_v5, 0.0  ;;  %v23248_v36 = vld [vmem:[#allocation54_spill] sm:$0xff]  ;;  %v13279_v27 = vsel %vm13151_vm13, 1.0, %v23047_v38  ;;  %vm13148_vm15 = vcmp.gt.f32.partialorder %v21077_v39, 0.0 }
 0x8c0   : > { %v14156_v37 = vrot.slane %v13593_v0, %v23113_v11  ;;  %v21244_v32 = vpop.xlane.xlu1 %11933  ;;  %v12811_v7 = vsel %vm1748_vm14, %v12418_v15, %v20668_v6  ;;  %v9894_v4 = vadd.f32 0.2, %v23248_v36  ;;  %v13705_v6 = vsel %vm2856_vm5, %v13401_v23, 0.0 }
 0x8c1   : > { %vm13152_vm11 = vcmp.gt.f32.partialorder %v21187_v33, 0.0  ;;  %v14164_v3 = vrot.slane %v21126_v18, %v23113_v11  ;;  %v13708_v56 = vsel %vm2856_vm5, %v13402_v19, 0.0  ;;  %v13403_v24 = vmul.f32 %v21133_v44, %v13275_v34 }
 0x8c2   : > { %v14508_v0 = vsel %vm1742_vm8, %v14156_v37, %v14507_v1  ;;  %12038 = vadd.xlane.f32.xlu0 %v12037_v60  ;;  %v23249_v1 = vld [vmem:[#allocation109_spill] sm:$0xff]  ;;  %v12812_v39 = vsel %vm1750_vm0, %v12422_v29, %v12811_v7  ;;  %v10592_v33 = vcombine.high %v10590_v51, %v10590_v51  ;;  %v13280_v19 = vsel %vm13152_vm11, 1.0, %v23047_v38 }
 0x8c3   : > { %12041 = vadd.xlane.f32.xlu1 %v12040_v42  ;;  %v13596_v22 = vpop.xlane.xlu0 %13595  ;;  %v12426_v5 = vrot.slane %v23249_v1, %v23113_v11  ;;  %v13276_v42 = vsel %vm13148_vm15, 1.0, %v23047_v38  ;;  %v23251_v34 = vmax.f32 %v21082_v41, 0.0  ;;  %v23252_v29 = vld [vmem:[#allocation49_spill] sm:$0xff]  ;;  %v22666_v7 = vmax.f32 %v21266_v61, 0.0 }
 0x8c4   : > { %v14160_v37 = vrot.slane %v13596_v22, %v23113_v11  ;;  %v21274_v60 = vpop.xlane.xlu1 %11939  ;;  %v13407_v22 = vmul.f32 %v21225_v45, %v13279_v27  ;;  %v21296_v27 = vrot.slane %v10590_v51, %v18385_v46  ;;  %v13404_v41 = vmul.f32 %v21148_v28, %v13276_v42 }
 0x8c5   : > { %v21287_v23 = vsel %vm1752_vm1, %v12426_v5, %v12812_v39  ;;  %vm13149_vm2 = vcmp.gt.f32.partialorder %v23251_v34, 0.0  ;;  %v13408_v51 = vmul.f32 %v20640_v21, %v13280_v19  ;;  %v23255_v34 = vld [vmem:[#allocation46_spill] sm:$0xff]  ;;  %v23259_v21 = vld [vmem:[#allocation72_spill] sm:$0xff]  ;;  %v21327_v19 = vrot.slane %v10623_v9, %v18246_v62 }
 0x8c6   : > { %v14509_v15 = vsel %vm1744_vm10, %v14160_v37, %v14508_v0  ;;  %13706 = vadd.xlane.f32.xlu0 %v13705_v6  ;;  %23250 = vst [vmem:[#allocation128_spill] sm:$0xff] %v21287_v23  ;;  %v9891_v0 = vadd.f32 0.2, %v23252_v29  ;;  %v11462_v37 = vsub.f32 %v9894_v4, %v21165_v40  ;;  %v23253_v6 = vld [vmem:[#allocation55_spill] sm:$0xff]  ;;  %v9893_v29 = vadd.f32 0.2, %v23255_v34 }
 0x8c7   : > { %13709 = vadd.xlane.f32.xlu1 %v13708_v56  ;;  %v14510_v18 = vsel %vm1746_vm12, %v14164_v3, %v14509_v15  ;;  %v13602_v36 = vpop.xlane.xlu0 %13601  ;;  %v9896_v3 = vadd.f32 0.2, %v23253_v6  ;;  %v13711_v56 = vsel %vm2856_vm5, %v13403_v24, 0.0  ;;  %v13723_v15 = vsel %vm2856_vm5, %v13407_v22, 0.0 }
 0x8c8   : > { %v14168_v1 = vrot.slane %v13602_v36, %v23113_v11  ;;  %v21299_v5 = vpop.xlane.xlu1 %11945  ;;  %v13277_v36 = vsel %vm13149_vm2, 1.0, %v23047_v38  ;;  %v23256_v4 = vcombine.high %v21172_v48, %v21172_v48  ;;  %v21319_v24 = vrot.slane %v10592_v33, %v18385_v46 }
 0x8c9   : > { %v23258_v22 = vmax.f32 %v21087_v59, 0.0  ;;  %v10622_v6 = vcombine.high %v21296_v27, %v21296_v27  ;;  %v23260_v33 = vrot.slane %v20949_v10, %v18246_v62  ;;  %v21338_v34 = vmax.f32 %v11462_v37, 0.0  ;;  %v23262_v37 = vld [vmem:[#allocation47_spill] sm:$0xff] }
 0x8ca   : > { %v21306_v39 = vsel %vm1748_vm14, %v14168_v1, %v14510_v18  ;;  %13712 = vadd.xlane.f32.xlu0 %v13711_v56  ;;  %v21316_v40 = vrot.slane %v23256_v4, %v18246_v62  ;;  %v9898_v18 = vadd.f32 0.2, %v23259_v21  ;;  %v13714_v59 = vsel %vm2856_vm5, %v13404_v41, 0.0 }
 0x8cb   : > { %23254 = vst [vmem:[#allocation126_spill] sm:$0xff] %v21306_v39  ;;  %13724 = vadd.xlane.f32.xlu1 %v13723_v15  ;;  %v21321_v42 = vpop.xlane.xlu0 %13607  ;;  %vm13150_vm3 = vcmp.gt.f32.partialorder %v23258_v22, 0.0  ;;  %v11459_v15 = vsub.f32 %v9891_v0, %v23260_v33  ;;  %v13405_v4 = vmul.f32 %v21182_v13, %v13277_v36  ;;  %v23261_v9 = vrot.slane %v21123_v54, %v18246_v62  ;;  %v23263_v54 = vld [vmem:[#allocation27_spill] sm:$0xff] }
 0x8cc   : > { %23257 = vst [vmem:[#allocation129_spill] sm:$0xff] %v21321_v42  ;;  %v21333_v56 = vpop.xlane.xlu1 %13610  ;;  %v13726_v21 = vsel %vm2856_vm5, %v13408_v51, 0.0  ;;  %v11724_v1 = vmul.f32 %v21255_v26, %v22666_v7  ;;  %v13278_v10 = vsel %vm13150_vm3, 1.0, %v23047_v38  ;;  %v11461_v0 = vsub.f32 %v9893_v29, %v21158_v55 }
 0x8cd   : > { %v21345_v22 = vsub.f32 %v9896_v3, %v23261_v9  ;;  %v9895_v41 = vadd.f32 0.2, %v23262_v37  ;;  %v10632_v3 = vrot.slane %v23263_v54, %v18385_v46  ;;  %v11466_v51 = vsub.f32 %v9898_v18, %v21210_v25  ;;  %v21373_v25 = vld [vmem:[%s22462_s4 + $0x28] sm:$0xff] }
 0x8ce   : > { %13715 = vadd.xlane.f32.xlu0 %v13714_v59  ;;  %v10624_v59 = vcombine.high %v21319_v24, %v21319_v24  ;;  %v12498_v9 = vrot.slane %v21217_v35, %v23113_v11  ;;  %v11587_v37 = vmax.f32 %v11459_v15, 0.0  ;;  %v21367_v36 = vrot.slane %v10622_v6, %v18246_v62 }
 0x8cf   : > { %13727 = vadd.xlane.f32.xlu1 %v13726_v21  ;;  %v11925_v33 = vpop.xlane.xlu0 %11924  ;;  %v13717_v7 = vsel %vm2856_vm5, %v13405_v4, 0.0  ;;  %v13406_v18 = vmul.f32 %v21373_v25, %v13278_v10  ;;  %v11726_v6 = vmul.f32 %v21148_v28, %v21338_v34  ;;  %v11589_v15 = vmax.f32 %v11461_v0, 0.0 }
 0x8d0   : > { %v12494_v55 = vrot.slane %v11925_v33, %v23113_v11  ;;  %v21364_v29 = vpop.xlane.xlu1 %13616  ;;  %v12046_v33 = vsel %vm2856_vm5, %v11724_v1, 0.0  ;;  %v23264_v4 = vrot.slane %v21114_v17, %v18246_v62  ;;  %v10640_v16 = vcombine.high %v10632_v3, %v10632_v3  ;;  %v23266_v1 = vld [vmem:[#allocation118_spill] sm:$0xff] }
 0x8d1   : > { %v10625_v10 = vcombine.high %v23263_v54, %v23263_v54  ;;  %v14112_v17 = vrot.slane %v20808_v47, %v23113_v11  ;;  %v13720_v54 = vsel %vm2856_vm5, %v13406_v18, 0.0  ;;  %v23268_v18 = vld [vmem:[#allocation73_spill] sm:$0xff]  ;;  %v21416_v52 = vrot.slane %v10632_v3, %v18385_v46 }
 0x8d2   : > { %v12828_v35 = vsel %vm1741_vm7, %v12498_v9, %v12494_v55  ;;  %13718 = vadd.xlane.f32.xlu0 %v13717_v7  ;;  %v21384_v23 = vsub.f32 %v9895_v41, %v23264_v4  ;;  %v9897_v9 = vadd.f32 0.2, %v23265_v20  ;;  %v21389_v7 = vmax.f32 %v11466_v51, 0.0  ;;  %v21404_v20 = vld [vmem:[%s22462_s4] sm:$0xff] }
 0x8d3   : > { %12047 = vadd.xlane.f32.xlu1 %v12046_v33  ;;  %v11931_v21 = vpop.xlane.xlu0 %11930  ;;  %v14108_v55 = vrot.slane %v23266_v1, %v23113_v11  ;;  %v12506_v41 = vrot.slane %v21244_v32, %v23113_v11  ;;  %v11723_v51 = vmul.f32 %v21404_v20, %v11587_v37  ;;  %v23267_v4 = vmax.f32 %v21345_v22, 0.0 }
 0x8d4   : > { %v12502_v0 = vrot.slane %v11931_v21, %v23113_v11  ;;  %v21394_v39 = vpop.xlane.xlu1 %13622  ;;  %v12052_v21 = vsel %vm2856_vm5, %v11726_v6, 0.0  ;;  %v9900_v1 = vadd.f32 0.2, %v23268_v18  ;;  %v21419_v42 = vrot.slane %v10640_v16, %v18385_v46 }
 0x8d5   : > { %v11728_v47 = vmul.f32 %v21373_v25, %v23267_v4  ;;  %v14498_v32 = vsel %vm1750_vm0, %v14108_v55, %v20787_v14  ;;  %v11465_v6 = vsub.f32 %v9897_v9, %v21200_v49  ;;  %vm13153_vm4 = vcmp.gt.f32.partialorder %v11587_v37, 0.0  ;;  %v23270_v9 = vld [vmem:[#allocation65_spill] sm:$0xff] }
 0x8d6   : > { %v12829_v33 = vsel %vm1742_vm8, %v12502_v0, %v12828_v35  ;;  %13721 = vadd.xlane.f32.xlu0 %v13720_v54  ;;  %v21424_v54 = vrot.slane %v10625_v10, %v18385_v46  ;;  %v11591_v3 = vmax.f32 %v21384_v23, 0.0  ;;  %v12043_v55 = vsel %vm2856_vm5, %v11723_v51, 0.0  ;;  %v21445_v23 = vld [vmem:[%s22462_s4 + $0x38] sm:$0xff] }
 0x8d7   : > { %12053 = vadd.xlane.f32.xlu1 %v12052_v21  ;;  %v12830_v35 = vsel %vm1744_vm10, %v12506_v41, %v12829_v33  ;;  %v11937_v0 = vpop.xlane.xlu0 %11936  ;;  %v11725_v16 = vmul.f32 %v21133_v44, %v11589_v15  ;;  %v21433_v21 = vsel %vm1752_vm1, %v14112_v17, %v14498_v32  ;;  %v21436_v41 = vrot.slane %v10624_v59, %v18246_v62 }
 0x8d8   : > { %v12510_v4 = vrot.slane %v11937_v0, %v23113_v11  ;;  %v21427_v14 = vpop.xlane.xlu1 %13628  ;;  %23269 = vst [vmem:[#allocation127_spill] sm:$0xff] %v21433_v21  ;;  %v12058_v10 = vsel %vm2856_vm5, %v11728_v47, 0.0  ;;  %v11730_v37 = vmul.f32 %v21445_v23, %v21389_v7  ;;  %v9899_v17 = vadd.f32 0.2, %v23270_v9 }
 0x8d9   : > { %v23271_v59 = vrot.slane %v21203_v50, %v18246_v62  ;;  %v13281_v47 = vsel %vm13153_vm4, 1.0, %v23047_v38  ;;  %vm13155_vm6 = vcmp.gt.f32.partialorder %v11589_v15, 0.0  ;;  %v21458_v32 = vmax.f32 %v11465_v6, 0.0 }
 0x8da   : > { %v21439_v49 = vsel %vm1746_vm12, %v12510_v4, %v12830_v35  ;;  %12044 = vadd.xlane.f32.xlu0 %v12043_v55  ;;  %v21472_v4 = vrot.slane %v21424_v54, %v18385_v46  ;;  %v12049_v15 = vsel %vm2856_vm5, %v11725_v16, 0.0  ;;  %v11727_v6 = vmul.f32 %v21182_v13, %v11591_v3 }
 0x8db   : > { %v21453_v51 = vsub.f32 %v9900_v1, %v23271_v59  ;;  %12059 = vadd.xlane.f32.xlu1 %v12058_v10  ;;  %v21455_v33 = vpop.xlane.xlu0 %11942  ;;  %v12064_v55 = vsel %vm2856_vm5, %v11730_v37, 0.0  ;;  %v13409_v10 = vmul.f32 %v21404_v20, %v13281_v47  ;;  %v13283_v9 = vsel %vm13155_vm6, 1.0, %v23047_v38  ;;  %v23274_v37 = vld [vmem:[#allocation70_spill] sm:$0xff]  ;;  %v23276_v1 = vld [vmem:[#allocation71_spill] sm:$0xff] }
 0x8dc   : > { %v21466_v50 = vpop.xlane.xlu1 %11951  ;;  %v23272_v59 = vmax.f32 %v21266_v61, 0.0  ;;  %v23273_v35 = vrot.slane %v21172_v48, %v18246_v62  ;;  %vm13156_vm13 = vcmp.gt.f32.partialorder %v21338_v34, 0.0  ;;  %v21491_v47 = vadd.f32 0.2, %v23274_v37 }
 0x8dd   : > { %v14180_v61 = vrot.slane %v21333_v56, %v23113_v11  ;;  %v13411_v34 = vmul.f32 %v21133_v44, %v13283_v9  ;;  %v13729_v56 = vsel %vm2856_vm5, %v13409_v10, 0.0  ;;  %v23275_v0 = vmax.f32 %v21345_v22, 0.0 }
 0x8de   : > { %12050 = vadd.xlane.f32.xlu0 %v12049_v15  ;;  %vm13154_vm9 = vcmp.gt.f32.partialorder %v23272_v59, 0.0  ;;  %v21484_v18 = vsub.f32 %v9899_v17, %v23273_v35  ;;  %v11729_v17 = vmul.f32 %v21225_v45, %v21458_v32  ;;  %v14188_v35 = vrot.slane %v21364_v29, %v23113_v11 }
 0x8df   : > { %12065 = vadd.xlane.f32.xlu1 %v12064_v55  ;;  %v13614_v15 = vpop.xlane.xlu0 %13613  ;;  %v12055_v55 = vsel %vm2856_vm5, %v11727_v6, 0.0  ;;  %v13282_v37 = vsel %vm13154_vm9, 1.0, %v23047_v38  ;;  %vm13158_vm15 = vcmp.gt.f32.partialorder %v23275_v0, 0.0  ;;  %v9904_v21 = vadd.f32 0.2, %v23276_v1 }
 0x8e0   : > { %v14184_v59 = vrot.slane %v13614_v15, %v23113_v11  ;;  %v21496_v48 = vpop.xlane.xlu1 %11957  ;;  %v13284_v15 = vsel %vm13156_vm13, 1.0, %v23047_v38  ;;  %v12454_v29 = vrot.slane %v20920_v30, %v23113_v11  ;;  %vm13157_vm11 = vcmp.gt.f32.partialorder %v11591_v3, 0.0 }
 0x8e1   : > { %v12061_v22 = vsel %vm2856_vm5, %v11729_v17, 0.0  ;;  %v13410_v0 = vmul.f32 %v21255_v26, %v13282_v37  ;;  %v14196_v1 = vrot.slane %v21394_v39, %v23113_v11  ;;  %v13735_v30 = vsel %vm2856_vm5, %v13411_v34, 0.0 }
 0x8e2   : > { %v14514_v16 = vsel %vm1741_vm7, %v14184_v59, %v14180_v61  ;;  %12056 = vadd.xlane.f32.xlu0 %v12055_v55  ;;  %v12450_v61 = vrot.slane %v20820_v31, %v23113_v11  ;;  %v13286_v3 = vsel %vm13158_vm15, 1.0, %v23047_v38  ;;  %v12518_v39 = vrot.slane %v21455_v33, %v23113_v11 }
 0x8e3   : > { %13730 = vadd.xlane.f32.xlu1 %v13729_v56  ;;  %v14515_v6 = vsel %vm1742_vm8, %v14188_v35, %v14514_v16  ;;  %v13620_v9 = vpop.xlane.xlu0 %13619  ;;  %v13412_v16 = vmul.f32 %v21148_v28, %v13284_v15  ;;  %v23277_v35 = vld [vmem:[#allocation119_spill] sm:$0xff]  ;;  %v13285_v56 = vsel %vm13157_vm11, 1.0, %v23047_v38  ;;  %vm13159_vm2 = vcmp.gt.f32.partialorder %v21458_v32, 0.0 }
 0x8e4   : > { %v14192_v10 = vrot.slane %v13620_v9, %v23113_v11  ;;  %v21517_v59 = vpop.xlane.xlu1 %11963  ;;  %v12458_v31 = vrot.slane %v23277_v35, %v23113_v11  ;;  %v12818_v17 = vsel %vm1748_vm14, %v12450_v61, %v20910_v43  ;;  %v12514_v9 = vrot.slane %v21274_v60, %v23113_v11 }
 0x8e5   : > { %v12819_v15 = vsel %vm1750_vm0, %v12454_v29, %v12818_v17  ;;  %v13732_v61 = vsel %vm2856_vm5, %v13410_v0, 0.0  ;;  %v13414_v32 = vmul.f32 %v21373_v25, %v13286_v3  ;;  %v13413_v29 = vmul.f32 %v21182_v13, %v13285_v56 }
 0x8e6   : > { %v14516_v55 = vsel %vm1744_vm10, %v14192_v10, %v14515_v6  ;;  %12062 = vadd.xlane.f32.xlu0 %v12061_v22  ;;  %v11470_v6 = vsub.f32 %v21491_v47, %v21327_v19  ;;  %v21545_v33 = vsel %vm1752_vm1, %v12458_v31, %v12819_v15  ;;  %v13738_v22 = vsel %vm2856_vm5, %v13412_v16, 0.0  ;;  %v23280_v31 = vld [vmem:[#allocation88_spill] sm:$0xff] }
 0x8e7   : > { %13736 = vadd.xlane.f32.xlu1 %v13735_v30  ;;  %v14517_v34 = vsel %vm1746_vm12, %v14196_v1, %v14516_v55  ;;  %v13626_v37 = vpop.xlane.xlu0 %13625  ;;  %v12522_v19 = vrot.slane %v21299_v5, %v23113_v11  ;;  %v13287_v47 = vsel %vm13159_vm2, 1.0, %v23047_v38  ;;  %v12832_v1 = vsel %vm1748_vm14, %v12514_v9, %v21439_v49  ;;  %v23278_v30 = vld [vmem:[#allocation62_spill] sm:$0xff] }
 0x8e8   : > { %v14200_v10 = vrot.slane %v13626_v37, %v23113_v11  ;;  %v21542_v43 = vpop.xlane.xlu1 %11969  ;;  %v9901_v0 = vadd.f32 0.2, %v23278_v30  ;;  %v23279_v16 = vrot.slane %v21319_v24, %v18246_v62  ;;  %vm13160_vm3 = vcmp.gt.f32.partialorder %v21389_v7, 0.0 }
 0x8e9   : > { %v12833_v5 = vsel %vm1750_vm0, %v12518_v39, %v12832_v1  ;;  %v9906_v55 = vadd.f32 0.2, %v23280_v31  ;;  %v12530_v56 = vrot.slane %v21466_v50, %v23113_v11  ;;  %v11595_v24 = vmax.f32 %v21484_v18, 0.0  ;;  %v23283_v1 = vld [vmem:[#allocation80_spill] sm:$0xff] }
 0x8ea   : > { %v21554_v60 = vsel %vm1748_vm14, %v14200_v10, %v14517_v34  ;;  %13733 = vadd.xlane.f32.xlu0 %v13732_v61  ;;  %v21563_v3 = vsub.f32 %v9904_v21, %v23279_v16  ;;  %v21574_v34 = vsel %vm1752_vm1, %v12522_v19, %v12833_v5  ;;  %v21577_v21 = vmax.f32 %v11470_v6, 0.0 }
 0x8eb   : > { %13739 = vadd.xlane.f32.xlu1 %v13738_v22  ;;  %v11949_v35 = vpop.xlane.xlu0 %11948  ;;  %v13744_v7 = vsel %vm2856_vm5, %v13414_v32, 0.0  ;;  %v13415_v39 = vmul.f32 %v21225_v45, %v13287_v47  ;;  %v13741_v50 = vsel %vm2856_vm5, %v13413_v29, 0.0  ;;  %v23281_v15 = vmax.f32 %v21453_v51, 0.0  ;;  %v23282_v22 = vld [vmem:[#allocation63_spill] sm:$0xff] }
 0x8ec   : > { %v12526_v49 = vrot.slane %v11949_v35, %v23113_v11  ;;  %v21571_v17 = vpop.xlane.xlu1 %13637  ;;  %v13288_v10 = vsel %vm13160_vm3, 1.0, %v23047_v38  ;;  %v11469_v61 = vsub.f32 %v9901_v0, %v21316_v40  ;;  %v9903_v6 = vadd.f32 0.2, %v23282_v22 }
 0x8ed   : > { %v11732_v9 = vmul.f32 %v21255_v26, %v23281_v15  ;;  %v11600_v19 = vmax.f32 %v21563_v3, 0.0  ;;  %v14144_v32 = vrot.slane %v21025_v57, %v23113_v11  ;;  %v9905_v30 = vadd.f32 0.2, %v23283_v1 }
 0x8ee   : > { %v12835_v37 = vsel %vm1741_vm7, %v12530_v56, %v12526_v49  ;;  %13745 = vadd.xlane.f32.xlu0 %v13744_v7  ;;  %v11474_v29 = vsub.f32 %v9906_v55, %v21436_v41  ;;  %v14140_v16 = vrot.slane %v20956_v58, %v23113_v11  ;;  %v12538_v40 = vrot.slane %v21496_v48, %v23113_v11 }
 0x8ef   : > { %13742 = vadd.xlane.f32.xlu1 %v13741_v50  ;;  %v11955_v47 = vpop.xlane.xlu0 %11954  ;;  %v13747_v0 = vsel %vm2856_vm5, %v13415_v39, 0.0  ;;  %v13416_v57 = vmul.f32 %v21445_v23, %v13288_v10  ;;  %v11734_v31 = vmul.f32 %v21148_v28, %v21577_v21  ;;  %v12486_v41 = vrot.slane %v21162_v2, %v23113_v11 }
 0x8f0   : > { %v12534_v35 = vrot.slane %v11955_v47, %v23113_v11  ;;  %v21597_v5 = vpop.xlane.xlu1 %13643  ;;  %v12070_v58 = vsel %vm2856_vm5, %v11732_v9, 0.0  ;;  %v14505_v56 = vsel %vm1750_vm0, %v14140_v16, %v21015_v53  ;;  %v23284_v48 = vrot.slane %v21296_v27, %v18246_v62 }
 0x8f1   : > { %v12482_v7 = vrot.slane %v21038_v8, %v23113_v11  ;;  %v21618_v2 = vsel %vm1752_vm1, %v14144_v32, %v14505_v56  ;;  %v11473_v15 = vsub.f32 %v9905_v30, %v21367_v36  ;;  %v21623_v9 = vmax.f32 %v11474_v29, 0.0  ;;  %v23289_v56 = vld [vmem:[#allocation129_spill] sm:$0xff] }
 0x8f2   : > { %v12836_v55 = vsel %vm1742_vm8, %v12534_v35, %v12835_v37  ;;  %13748 = vadd.xlane.f32.xlu0 %v13747_v0  ;;  %v11471_v49 = vsub.f32 %v9903_v6, %v23284_v48  ;;  %v21620_v37 = vmax.f32 %v11469_v61, 0.0  ;;  %v12490_v8 = vrot.slane %v21066_v63, %v23113_v11 }
 0x8f3   : > { %12071 = vadd.xlane.f32.xlu1 %v12070_v58  ;;  %v12837_v39 = vsel %vm1744_vm10, %v12538_v40, %v12836_v55  ;;  %v11961_v50 = vpop.xlane.xlu0 %11960  ;;  %v13750_v10 = vsel %vm2856_vm5, %v13416_v57, 0.0  ;;  %v11731_v22 = vmul.f32 %v21404_v20, %v11595_v24  ;;  %v12825_v61 = vsel %vm1748_vm14, %v12482_v7, %v21142_v12  ;;  %v23290_v7 = vld [vmem:[#allocation81_spill] sm:$0xff] }
 0x8f4   : > { %v12542_v53 = vrot.slane %v11961_v50, %v23113_v11  ;;  %v21626_v27 = vpop.xlane.xlu1 %13646  ;;  %v12076_v6 = vsel %vm2856_vm5, %v11734_v31, 0.0  ;;  %v11736_v32 = vmul.f32 %v21373_v25, %v11600_v19  ;;  %v12826_v63 = vsel %vm1750_vm0, %v12486_v41, %v12825_v61  ;;  %v23291_v50 = vld [vmem:[#allocation121_spill] sm:$0xff] }
 0x8f5   : > { %v11599_v47 = vmax.f32 %v11471_v49, 0.0  ;;  %v23285_v1 = vcombine.high %v21416_v52, %v21416_v52  ;;  %v23286_v12 = vcombine.high %v21419_v42, %v21419_v42  ;;  %v21655_v35 = vsel %vm1752_vm1, %v12490_v8, %v12826_v63  ;;  %v23292_v8 = vld [vmem:[#allocation89_spill] sm:$0xff] }
 0x8f6   : > { %v12838_v36 = vsel %vm1746_vm12, %v12542_v53, %v12837_v39  ;;  %13751 = vadd.xlane.f32.xlu0 %v13750_v10  ;;  %v11190_v40 = vrot.slane %v21472_v4, %v18246_v62  ;;  %v23287_v0 = vcombine.high %v21424_v54, %v21424_v54  ;;  %v10671_v31 = vcombine.high %v21472_v4, %v21472_v4 }
 0x8f7   : > { %v21646_v30 = vrot.slane %v23285_v1, %v18246_v62  ;;  %v21652_v29 = vrot.slane %v23286_v12, %v18246_v62  ;;  %12077 = vadd.xlane.f32.xlu1 %v12076_v6  ;;  %v11967_v16 = vpop.xlane.xlu0 %11966  ;;  %v23288_v55 = vmax.f32 %v21453_v51, 0.0  ;;  %v21671_v58 = vmax.f32 %v11473_v15, 0.0 }
 0x8f8   : > { %v21663_v57 = vrot.slane %v23287_v0, %v18385_v46  ;;  %v21667_v41 = vpop.xlane.xlu1 %13649  ;;  %v14176_v48 = vrot.slane %v23289_v56, %v23113_v11  ;;  %v12067_v49 = vsel %vm2856_vm5, %v11731_v22, 0.0  ;;  %v11733_v54 = vmul.f32 %v21133_v44, %v21620_v37  ;;  %v23293_v0 = vld [vmem:[#allocation126_spill] sm:$0xff] }
 0x8f9   : > { %vm13162_vm4 = vcmp.gt.f32.partialorder %v23288_v55, 0.0  ;;  %v21679_v39 = vadd.f32 0.2, %v23290_v7  ;;  %v14172_v53 = vrot.slane %v23291_v50, %v23113_v11  ;;  %v12082_v51 = vsel %vm2856_vm5, %v11736_v32, 0.0 }
 0x8fa   : > { %12068 = vadd.xlane.f32.xlu0 %v12067_v49  ;;  %v11738_v15 = vmul.f32 %v21445_v23, %v21623_v9  ;;  %v21687_v10 = vadd.f32 0.2, %v23292_v8  ;;  %v11735_v61 = vmul.f32 %v21182_v13, %v11599_v47  ;;  %v13290_v6 = vsel %vm13162_vm4, 1.0, %v23047_v38 }
 0x8fb   : > { %12083 = vadd.xlane.f32.xlu1 %v12082_v51  ;;  %v13635_v22 = vpop.xlane.xlu0 %13634  ;;  %vm13165_vm6 = vcmp.gt.f32.partialorder %v11599_v47, 0.0  ;;  %v14216_v63 = vrot.slane %v21571_v17, %v23113_v11  ;;  %v12550_v1 = vrot.slane %v11967_v16, %v23113_v11  ;;  %v14512_v55 = vsel %vm1750_vm0, %v14172_v53, %v23293_v0  ;;  %v23294_v51 = vld [vmem:[#allocation78_spill] sm:$0xff] }
 0x8fc   : > { %v14212_v32 = vrot.slane %v13635_v22, %v23113_v11  ;;  %v13653_v12 = vpop.xlane.xlu1 %13652  ;;  %v12546_v56 = vrot.slane %v21517_v59, %v23113_v11  ;;  %v12073_v49 = vsel %vm2856_vm5, %v11733_v54, 0.0  ;;  %v11737_v7 = vmul.f32 %v21225_v45, %v21671_v58 }
 0x8fd   : > { %v21703_v47 = vsel %vm1752_vm1, %v14176_v48, %v14512_v55  ;;  %v12088_v16 = vsel %vm2856_vm5, %v11738_v15, 0.0  ;;  %v13418_v50 = vmul.f32 %v21255_v26, %v13290_v6  ;;  %v13293_v53 = vsel %vm13165_vm6, 1.0, %v23047_v38 }
 0x8fe   : > { %v14521_v17 = vsel %vm1741_vm7, %v14216_v63, %v14212_v32  ;;  %12074 = vadd.xlane.f32.xlu0 %v12073_v49  ;;  %v21710_v8 = vadd.f32 0.2, %v23294_v51  ;;  %v12554_v59 = vrot.slane %v21542_v43, %v23113_v11  ;;  %vm13161_vm9 = vcmp.gt.f32.partialorder %v11595_v24, 0.0 }
 0x8ff   : > { %12089 = vadd.xlane.f32.xlu1 %v12088_v16  ;;  %v13641_v54 = vpop.xlane.xlu0 %13640  ;;  %v12839_v48 = vsel %vm1748_vm14, %v12546_v56, %v12838_v36  ;;  %v12079_v6 = vsel %vm2856_vm5, %v11735_v61, 0.0  ;;  %vm13166_vm13 = vcmp.gt.f32.partialorder %v11600_v19, 0.0  ;;  %v14224_v43 = vrot.slane %v21597_v5, %v23113_v11 }
 0x900   : > { %v14220_v22 = vrot.slane %v13641_v54, %v23113_v11  ;;  %v13656_v15 = vpop.xlane.xlu1 %13655  ;;  %v12840_v63 = vsel %vm1750_vm0, %v12550_v1, %v12839_v48  ;;  %v12085_v32 = vsel %vm2856_vm5, %v11737_v7, 0.0  ;;  %v13421_v18 = vmul.f32 %v21182_v13, %v13293_v53 }
 0x901   : > { %v21727_v24 = vsel %vm1752_vm1, %v12554_v59, %v12840_v63  ;;  %v14228_v36 = vrot.slane %v21626_v27, %v23113_v11  ;;  %v13756_v3 = vsel %vm2856_vm5, %v13418_v50, 0.0  ;;  %v13289_v19 = vsel %vm13161_vm9, 1.0, %v23047_v38 }
 0x902   : > { %v14522_v61 = vsel %vm1742_vm8, %v14220_v22, %v14521_v17  ;;  %12080 = vadd.xlane.f32.xlu0 %v12079_v6  ;;  %v14232_v5 = vrot.slane %v21667_v41, %v23113_v11  ;;  %v13294_v55 = vsel %vm13166_vm13, 1.0, %v23047_v38  ;;  %vm13163_vm15 = vcmp.gt.f32.partialorder %v21620_v37, 0.0  ;;  %v23296_v6 = vld [vmem:[#allocation86_spill] sm:$0xff] }
 0x903   : > { %v14523_v1 = vsel %vm1744_vm10, %v14224_v43, %v14522_v61  ;;  %13757 = vadd.xlane.f32.xlu1 %v13756_v3  ;;  %v11973_v0 = vpop.xlane.xlu0 %11972  ;;  %v14236_v27 = vrot.slane %v13653_v12, %v23113_v11  ;;  %vm13167_vm11 = vcmp.gt.f32.partialorder %v21671_v58, 0.0  ;;  %v14240_v17 = vrot.slane %v13656_v15, %v23113_v11 }
 0x904   : > { %v12558_v56 = vrot.slane %v11973_v0, %v23113_v11  ;;  %v11976_v49 = vpop.xlane.xlu1 %11975  ;;  %v14524_v7 = vsel %vm1746_vm12, %v14228_v36, %v14523_v1  ;;  %v13417_v16 = vmul.f32 %v21404_v20, %v13289_v19  ;;  %v13765_v37 = vsel %vm2856_vm5, %v13421_v18, 0.0 }
 0x905   : > { %v12562_v41 = vrot.slane %v11976_v49, %v23113_v11  ;;  %v14525_v50 = vsel %vm1748_vm14, %v14232_v5, %v14524_v7  ;;  %v13422_v12 = vmul.f32 %v21373_v25, %v13294_v55  ;;  %v13291_v53 = vsel %vm13163_vm15, 1.0, %v23047_v38  ;;  %v23299_v49 = vld [vmem:[#allocation87_spill] sm:$0xff] }
 0x906   : > { %12086 = vadd.xlane.f32.xlu0 %v12085_v32  ;;  %v14526_v51 = vsel %vm1750_vm0, %v14236_v27, %v14525_v50  ;;  %v13295_v54 = vsel %vm13167_vm11, 1.0, %v23047_v38  ;;  %vm13164_vm2 = vcmp.gt.f32.partialorder %v21577_v21, 0.0  ;;  %v23295_v22 = vrot.slane %v21416_v52, %v18246_v62  ;;  %v23298_v27 = vld [vmem:[#allocation79_spill] sm:$0xff] }
 0x907   : > { %v12842_v58 = vsel %vm1741_vm7, %v12562_v41, %v12558_v56  ;;  %13766 = vadd.xlane.f32.xlu1 %v13765_v37  ;;  %v11979_v59 = vpop.xlane.xlu0 %11978  ;;  %v21755_v48 = vsel %vm1752_vm1, %v14240_v17, %v14526_v51  ;;  %v9910_v63 = vadd.f32 0.2, %v23296_v6  ;;  %vm13168_vm3 = vcmp.gt.f32.partialorder %v21623_v9, 0.0 }
 0x908   : > { %v21761_v15 = vsub.f32 %v21679_v39, %v23295_v22  ;;  %v12566_v43 = vrot.slane %v11979_v59, %v23113_v11  ;;  %v11982_v32 = vpop.xlane.xlu1 %11981  ;;  %v23297_v18 = vrot.slane %v21419_v42, %v18246_v62  ;;  %v13753_v52 = vsel %vm2856_vm5, %v13417_v16, 0.0  ;;  %v23300_v59 = vld [vmem:[#allocation51_spill] sm:$0xff] }
 0x909   : > { %v12570_v36 = vrot.slane %v11982_v32, %v23113_v11  ;;  %v13419_v39 = vmul.f32 %v21133_v44, %v13291_v53  ;;  %v13768_v3 = vsel %vm2856_vm5, %v13422_v12, 0.0  ;;  %v13423_v19 = vmul.f32 %v21225_v45, %v13295_v54 }
 0x90a   : > { %v21770_v21 = vsub.f32 %v21687_v10, %v23297_v18  ;;  %v12843_v61 = vsel %vm1742_vm8, %v12566_v43, %v12842_v58  ;;  %13754 = vadd.xlane.f32.xlu0 %v13753_v52  ;;  %v13292_v9 = vsel %vm13164_vm2, 1.0, %v23047_v38  ;;  %v11477_v42 = vsub.f32 %v21710_v8, %v21646_v30 }
 0x90b   : > { %v11194_v10 = vrot.slane %v21663_v57, %v18246_v62  ;;  %v12844_v5 = vsel %vm1744_vm10, %v12570_v36, %v12843_v61  ;;  %13769 = vadd.xlane.f32.xlu1 %v13768_v3  ;;  %v11985_v1 = vpop.xlane.xlu0 %11984  ;;  %v13296_v0 = vsel %vm13168_vm3, 1.0, %v23047_v38  ;;  %v11478_v55 = vsub.f32 %v9910_v63, %v21652_v29  ;;  %v23302_v3 = vld [vmem:[#allocation104_spill] sm:$0xff] }
 0x90c   : > { %v9911_v56 = vadd.f32 0.2, %v23298_v27  ;;  %v9912_v7 = vadd.f32 0.2, %v23299_v49  ;;  %v12574_v17 = vrot.slane %v11985_v1, %v23113_v11  ;;  %v11988_v41 = vpop.xlane.xlu1 %11987  ;;  %v11603_v30 = vmax.f32 %v21761_v15, 0.0 }
 0x90d   : > { %v12578_v8 = vrot.slane %v11988_v41, %v23113_v11  ;;  %v13759_v16 = vsel %vm2856_vm5, %v13419_v39, 0.0  ;;  %v13420_v50 = vmul.f32 %v21148_v28, %v13292_v9  ;;  %v11604_v37 = vmax.f32 %v21770_v21, 0.0  ;;  %v23301_v21 = vld [vmem:[#allocation96_spill] sm:$0xff] }
 0x90e   : > { %v12845_v12 = vsel %vm1746_vm12, %v12574_v17, %v12844_v5  ;;  %13760 = vadd.xlane.f32.xlu0 %v13759_v16  ;;  %v13771_v29 = vsel %vm2856_vm5, %v13423_v19, 0.0  ;;  %v13424_v53 = vmul.f32 %v21445_v23, %v13296_v0  ;;  %v21797_v51 = vmax.f32 %v11477_v42, 0.0 }
 0x90f   : > { %v10673_v58 = vcombine.high %v21663_v57, %v21663_v57  ;;  %v21803_v54 = vrot.slane %v23300_v59, %v18385_v46  ;;  %v12846_v22 = vsel %vm1748_vm14, %v12578_v8, %v12845_v12  ;;  %13772 = vadd.xlane.f32.xlu1 %v13771_v29  ;;  %v11991_v6 = vpop.xlane.xlu0 %11990  ;;  %v21806_v63 = vmax.f32 %v11478_v55, 0.0 }
 0x910   : > { %v21811_v43 = vsub.f32 %v9911_v56, %v11190_v40  ;;  %v21813_v32 = vsub.f32 %v9912_v7, %v11194_v10  ;;  %v12582_v18 = vrot.slane %v11991_v6, %v23113_v11  ;;  %v11994_v57 = vpop.xlane.xlu1 %11993  ;;  %v9913_v36 = vadd.f32 0.2, %v23301_v21 }
 0x911   : > { %v12586_v52 = vrot.slane %v11994_v57, %v23113_v11  ;;  %v13762_v39 = vsel %vm2856_vm5, %v13420_v50, 0.0  ;;  %v11739_v61 = vmul.f32 %v21404_v20, %v11603_v30  ;;  %v9914_v19 = vadd.f32 0.2, %v23302_v3 }
 0x912   : > { %13763 = vadd.xlane.f32.xlu0 %v13762_v39  ;;  %v13774_v40 = vsel %vm2856_vm5, %v13424_v53, 0.0  ;;  %v11740_v9 = vmul.f32 %v21255_v26, %v11604_v37  ;;  %v12847_v42 = vsel %vm1750_vm0, %v12582_v18, %v12846_v22  ;;  %v11198_v10 = vrot.slane %v10671_v31, %v18246_v62 }
 0x913   : > { %13775 = vadd.xlane.f32.xlu1 %v13774_v40  ;;  %v13659_v5 = vpop.xlane.xlu0 %13658  ;;  %v21831_v1 = vsel %vm1752_vm1, %v12586_v52, %v12847_v42  ;;  %v11607_v0 = vmax.f32 %v21811_v43, 0.0  ;;  %v11202_v55 = vrot.slane %v10673_v58, %v18246_v62  ;;  %v10689_v27 = vcombine.high %v21803_v54, %v21803_v54  ;;  %v23303_v40 = vld [vmem:[#allocation105_spill] sm:$0xff] }
 0x914   : > { %v14244_v56 = vrot.slane %v13659_v5, %v23113_v11  ;;  %v13662_v49 = vpop.xlane.xlu1 %13661  ;;  %v11481_v7 = vsub.f32 %v9913_v36, %v11198_v10  ;;  %v12091_v4 = vsel %vm2856_vm5, %v11739_v61, 0.0  ;;  %v11741_v31 = vmul.f32 %v21133_v44, %v21797_v51 }
 0x915   : > { %v14248_v17 = vrot.slane %v13662_v49, %v23113_v11  ;;  %v11608_v41 = vmax.f32 %v21813_v32, 0.0  ;;  %v11482_v8 = vsub.f32 %v9914_v19, %v11202_v55  ;;  %v12094_v16 = vsel %vm2856_vm5, %v11740_v9, 0.0  ;;  %v21946_v32 = vld [vmem:[%s22462_s4 + $0x20] sm:$0xff] }
 0x916   : > { %12092 = vadd.xlane.f32.xlu0 %v12091_v4  ;;  %v11742_v50 = vmul.f32 %v21148_v28, %v21806_v63  ;;  %v10674_v12 = vcombine.high %v23300_v59, %v23300_v59  ;;  %v10711_v58 = vrot.slane %v10689_v27, %v18385_v46  ;;  %v21850_v44 = vmax.f32 %v11481_v7, 0.0 }
 0x917   : > { %v14528_v29 = vsel %vm1741_vm7, %v14248_v17, %v14244_v56  ;;  %12095 = vadd.xlane.f32.xlu1 %v12094_v16  ;;  %v13668_v53 = vpop.xlane.xlu0 %13667  ;;  %v12097_v18 = vsel %vm2856_vm5, %v11741_v31, 0.0  ;;  %v11743_v28 = vmul.f32 %v21182_v13, %v11607_v0  ;;  %v21857_v57 = vmax.f32 %v11482_v8, 0.0 }
 0x918   : > { %v13665_v22 = vpop.xlane.xlu1 %13664  ;;  %v14256_v59 = vrot.slane %v13668_v53, %v23113_v11  ;;  %v12100_v21 = vsel %vm2856_vm5, %v11742_v50, 0.0  ;;  %v11744_v36 = vmul.f32 %v21373_v25, %v11608_v41  ;;  %v21865_v52 = vrot.slane %v10674_v12, %v18385_v46 }
 0x919   : > { %v14252_v6 = vrot.slane %v13665_v22, %v23113_v11  ;;  %vm13170_vm4 = vcmp.gt.f32.partialorder %v11604_v37, 0.0  ;;  %vm13169_vm6 = vcmp.gt.f32.partialorder %v11603_v30, 0.0  ;;  %v9916_v9 = vadd.f32 0.2, %v23303_v40 }
 0x91a   : > { %12098 = vadd.xlane.f32.xlu0 %v12097_v18  ;;  %v10721_v42 = vcombine.high %v10711_v58, %v10711_v58  ;;  %v12103_v10 = vsel %vm2856_vm5, %v11743_v28, 0.0  ;;  %v11745_v5 = vmul.f32 %v21225_v45, %v21850_v44  ;;  %v12106_v37 = vsel %vm2856_vm5, %v11744_v36, 0.0  ;;  %v23304_v45 = vld [vmem:[#allocation102_spill] sm:$0xff] }
 0x91b   : > { %v14529_v39 = vsel %vm1742_vm8, %v14252_v6, %v14528_v29  ;;  %12101 = vadd.xlane.f32.xlu1 %v12100_v21  ;;  %v13671_v61 = vpop.xlane.xlu0 %13670  ;;  %v11746_v27 = vmul.f32 %v21445_v23, %v21857_v57  ;;  %v13298_v56 = vsel %vm13170_vm4, 1.0, %v23047_v38  ;;  %v11210_v15 = vrot.slane %v10711_v58, %v18246_v62 }
 0x91c   : > { %v14530_v13 = vsel %vm1744_vm10, %v14256_v59, %v14529_v39  ;;  %v14260_v3 = vrot.slane %v13671_v61, %v23113_v11  ;;  %v21870_v19 = vpop.xlane.xlu1 %11999  ;;  %v10690_v30 = vcombine.high %v21865_v52, %v21865_v52  ;;  %v13297_v7 = vsel %vm13169_vm6, 1.0, %v23047_v38  ;;  %v23305_v39 = vld [vmem:[#allocation103_spill] sm:$0xff] }
 0x91d   : > { %vm13172_vm9 = vcmp.gt.f32.partialorder %v21806_v63, 0.0  ;;  %v9918_v17 = vadd.f32 0.2, %v23304_v45  ;;  %vm13171_vm13 = vcmp.gt.f32.partialorder %v21797_v51, 0.0  ;;  %v21893_v8 = vsub.f32 %v9916_v9, %v11210_v15 }
 0x91e   : > { %v14531_v55 = vsel %vm1746_vm12, %v14260_v3, %v14530_v13  ;;  %12104 = vadd.xlane.f32.xlu0 %v12103_v10  ;;  %v11218_v16 = vrot.slane %v10721_v42, %v18246_v62  ;;  %v12109_v50 = vsel %vm2856_vm5, %v11745_v5, 0.0  ;;  %v13426_v12 = vmul.f32 %v21255_v26, %v13298_v56  ;;  %v21917_v13 = vld [vmem:[%s22462_s4 + $0x18] sm:$0xff] }
 0x91f   : > { %12107 = vadd.xlane.f32.xlu1 %v12106_v37  ;;  %v13674_v49 = vpop.xlane.xlu0 %13673  ;;  %v12112_v63 = vsel %vm2856_vm5, %v11746_v27, 0.0  ;;  %v13425_v53 = vmul.f32 %v21404_v20, %v13297_v7  ;;  %v13300_v58 = vsel %vm13172_vm9, 1.0, %v23047_v38  ;;  %v10697_v51 = vrot.slane %v21803_v54, %v18385_v46  ;;  %v23306_v56 = vld [vmem:[#allocation97_spill] sm:$0xff] }
 0x920   : > { %v14264_v4 = vrot.slane %v13674_v49, %v23113_v11  ;;  %v21890_v31 = vpop.xlane.xlu1 %12005  ;;  %v10718_v22 = vrot.slane %v10690_v30, %v18385_v46  ;;  %v13299_v18 = vsel %vm13171_vm13, 1.0, %v23047_v38  ;;  %vm13173_vm15 = vcmp.gt.f32.partialorder %v11607_v0, 0.0  ;;  %v21924_v0 = vld [vmem:[%s22462_s4 + $0x10] sm:$0xff] }
 0x921   : > { %v11486_v28 = vsub.f32 %v9918_v17, %v11218_v16  ;;  %v11612_v36 = vmax.f32 %v21893_v8, 0.0  ;;  %v9920_v61 = vadd.f32 0.2, %v23305_v39  ;;  %v13780_v54 = vsel %vm2856_vm5, %v13426_v12, 0.0  ;;  %v23307_v17 = vld [vmem:[#allocation116_spill] sm:$0xff] }
 0x922   : > { %v14532_v29 = vsel %vm1748_vm14, %v14264_v4, %v14531_v55  ;;  %12110 = vadd.xlane.f32.xlu0 %v12109_v50  ;;  %v13428_v3 = vmul.f32 %v21917_v13, %v13300_v58  ;;  %v13777_v43 = vsel %vm2856_vm5, %v13425_v53, 0.0  ;;  %v13427_v40 = vmul.f32 %v21924_v0, %v13299_v18  ;;  %v23308_v18 = vld [vmem:[#allocation94_spill] sm:$0xff] }
 0x923   : > { %12113 = vadd.xlane.f32.xlu1 %v12112_v63  ;;  %v13677_v6 = vpop.xlane.xlu0 %13676  ;;  %v13301_v9 = vsel %vm13173_vm15, 1.0, %v23047_v38  ;;  %v10719_v10 = vcombine.high %v10697_v51, %v10697_v51  ;;  %v11226_v5 = vrot.slane %v10718_v22, %v18246_v62  ;;  %v10722_v55 = vcombine.high %v10718_v22, %v10718_v22 }
 0x924   : > { %v14268_v59 = vrot.slane %v13677_v6, %v23113_v11  ;;  %v21909_v21 = vpop.xlane.xlu1 %12011  ;;  %vm13174_vm11 = vcmp.gt.f32.partialorder %v11608_v41, 0.0  ;;  %v11206_v27 = vrot.slane %v10697_v51, %v18246_v62  ;;  %v9915_v15 = vadd.f32 0.2, %v23306_v56 }
 0x925   : > { %v21934_v30 = vmax.f32 %v11486_v28, 0.0  ;;  %v21939_v45 = vsub.f32 %v9920_v61, %v11226_v5  ;;  %v9922_v4 = vadd.f32 0.2, %v23307_v17  ;;  %v13786_v16 = vsel %vm2856_vm5, %v13428_v3, 0.0 }
 0x926   : > { %13781 = vadd.xlane.f32.xlu0 %v13780_v54  ;;  %v14533_v42 = vsel %vm1750_vm0, %v14268_v59, %v14532_v29  ;;  %v13429_v41 = vmul.f32 %v21946_v32, %v13301_v9  ;;  %v13783_v50 = vsel %vm2856_vm5, %v13427_v40, 0.0  ;;  %v11748_v12 = vmul.f32 %v21255_v26, %v11612_v36 }
 0x927   : > { %13778 = vadd.xlane.f32.xlu1 %v13777_v43  ;;  %v13680_v37 = vpop.xlane.xlu0 %13679  ;;  %v13302_v29 = vsel %vm13174_vm11, 1.0, %v23047_v38  ;;  %v11214_v53 = vrot.slane %v10719_v10, %v18246_v62  ;;  %v10704_v58 = vrot.slane %v21865_v52, %v18385_v46  ;;  %v11234_v51 = vrot.slane %v10722_v55, %v18246_v62  ;;  %v23309_v10 = vld [vmem:[#allocation95_spill] sm:$0xff] }
 0x928   : > { %v14272_v49 = vrot.slane %v13680_v37, %v23113_v11  ;;  %v21937_v7 = vpop.xlane.xlu1 %12017  ;;  %vm13175_vm2 = vcmp.gt.f32.partialorder %v21850_v44, 0.0  ;;  %v21962_v6 = vsub.f32 %v9915_v15, %v11206_v27  ;;  %v9917_v26 = vadd.f32 0.2, %v23308_v18  ;;  %v23310_v18 = vld [vmem:[#allocation110_spill] sm:$0xff] }
 0x929   : > { %v12594_v28 = vrot.slane %v21870_v19, %v23113_v11  ;;  %v11616_v61 = vmax.f32 %v21939_v45, 0.0  ;;  %v11490_v46 = vsub.f32 %v9922_v4, %v11234_v51  ;;  %v13789_v52 = vsel %vm2856_vm5, %v13429_v41, 0.0 }
 0x92a   : > { %13787 = vadd.xlane.f32.xlu0 %v13786_v16  ;;  %v21955_v63 = vsel %vm1752_vm1, %v14272_v49, %v14533_v42  ;;  %v13430_v54 = vmul.f32 %v21373_v25, %v13302_v29  ;;  %v12118_v3 = vsel %vm2856_vm5, %v11748_v12, 0.0  ;;  %v11750_v43 = vmul.f32 %v21917_v13, %v21934_v30  ;;  %v21990_v49 = vld [vmem:[%s22462_s4 + $0x30] sm:$0xff] }
 0x92b   : > { %13784 = vadd.xlane.f32.xlu1 %v13783_v50  ;;  %v11997_v22 = vpop.xlane.xlu0 %11996  ;;  %v13303_v19 = vsel %vm13175_vm2, 1.0, %v23047_v38  ;;  %v11485_v9 = vsub.f32 %v9917_v26, %v11214_v53  ;;  %v11222_v42 = vrot.slane %v10704_v58, %v18246_v62  ;;  %v9919_v5 = vadd.f32 0.2, %v23309_v10 }
 0x92c   : > { %v12590_v59 = vrot.slane %v11997_v22, %v23113_v11  ;;  %v21968_v39 = vpop.xlane.xlu1 %13685  ;;  %v11611_v27 = vmax.f32 %v21962_v6, 0.0  ;;  %v12602_v56 = vrot.slane %v21890_v31, %v23113_v11  ;;  %v13792_v15 = vsel %vm2856_vm5, %v13430_v54, 0.0 }
 0x92d   : > { %v13431_v17 = vmul.f32 %v21990_v49, %v13303_v19  ;;  %v21993_v4 = vmax.f32 %v11490_v46, 0.0  ;;  %v12124_v41 = vsel %vm2856_vm5, %v11750_v43, 0.0  ;;  %v11752_v31 = vmul.f32 %v21373_v25, %v11616_v61 }
 0x92e   : > { %v12849_v44 = vsel %vm1741_vm7, %v12594_v28, %v12590_v59  ;;  %13790 = vadd.xlane.f32.xlu0 %v13789_v52  ;;  %v10720_v50 = vcombine.high %v10704_v58, %v10704_v58  ;;  %v11613_v53 = vmax.f32 %v11485_v9, 0.0  ;;  %v11487_v51 = vsub.f32 %v9919_v5, %v11222_v42 }
 0x92f   : > { %12119 = vadd.xlane.f32.xlu1 %v12118_v3  ;;  %v12003_v40 = vpop.xlane.xlu0 %12002  ;;  %vm13178_vm3 = vcmp.gt.f32.partialorder %v11612_v36, 0.0  ;;  %v9921_v26 = vadd.f32 0.2, %v23310_v18  ;;  %v12610_v28 = vrot.slane %v21909_v21, %v23113_v11  ;;  %v13795_v25 = vsel %vm2856_vm5, %v13431_v17, 0.0 }
 0x930   : > { %v12598_v55 = vrot.slane %v12003_v40, %v23113_v11  ;;  %v21981_v37 = vpop.xlane.xlu1 %13688  ;;  %v11747_v58 = vmul.f32 %v21404_v20, %v11611_v27  ;;  %v12130_v46 = vsel %vm2856_vm5, %v11752_v31, 0.0  ;;  %v11754_v52 = vmul.f32 %v21445_v23, %v21993_v4 }
 0x931   : > { %v11230_v8 = vrot.slane %v10720_v50, %v18246_v62  ;;  %v13306_v54 = vsel %vm13178_vm3, 1.0, %v23047_v38  ;;  %v14204_v20 = vrot.slane %v21427_v14, %v23113_v11  ;;  %vm13179_vm4 = vcmp.gt.f32.partialorder %v11613_v53, 0.0  ;;  %v15831_v14 = vld [vmem:[%s22462_s4 + $0x8] sm:$0xff] }
 0x932   : > { %v12850_v16 = vsel %vm1742_vm8, %v12598_v55, %v12849_v44  ;;  %13793 = vadd.xlane.f32.xlu0 %v13792_v15  ;;  %v11615_v44 = vmax.f32 %v11487_v51, 0.0  ;;  %v12618_v40 = vrot.slane %v21937_v7, %v23113_v11  ;;  %v12115_v62 = vsel %vm2856_vm5, %v11747_v58, 0.0 }
 0x933   : > { %12125 = vadd.xlane.f32.xlu1 %v12124_v41  ;;  %v12851_v12 = vsel %vm1744_vm10, %v12602_v56, %v12850_v16  ;;  %v12009_v29 = vpop.xlane.xlu0 %12008  ;;  %v11489_v19 = vsub.f32 %v9921_v26, %v11230_v8  ;;  %v11749_v9 = vmul.f32 %v21924_v0, %v11613_v53  ;;  %v12136_v42 = vsel %vm2856_vm5, %v11754_v52, 0.0 }
 0x934   : > { %v12606_v22 = vrot.slane %v12009_v29, %v23113_v11  ;;  %v22002_v6 = vpop.xlane.xlu1 %13691  ;;  %v13434_v10 = vmul.f32 %v15831_v14, %v13306_v54  ;;  %v22034_v55 = vsel %vm1750_vm0, %v14204_v20, %v21554_v60  ;;  %v13307_v56 = vsel %vm13179_vm4, 1.0, %v23047_v38 }
 0x935   : > { %vm13180_vm6 = vcmp.gt.f32.partialorder %v21934_v30, 0.0  ;;  %v11617_v16 = vmax.f32 %v11489_v19, 0.0  ;;  %v12121_v41 = vsel %vm2856_vm5, %v11749_v9, 0.0  ;;  %v11751_v31 = vmul.f32 %v21946_v32, %v11615_v44 }
 0x936   : > { %v12852_v59 = vsel %vm1746_vm12, %v12606_v22, %v12851_v12  ;;  %13796 = vadd.xlane.f32.xlu0 %v13795_v25  ;;  %v13804_v60 = vsel %vm2856_vm5, %v13434_v10, 0.0  ;;  %v13435_v50 = vmul.f32 %v21924_v0, %v13307_v56  ;;  %v13308_v29 = vsel %vm13180_vm6, 1.0, %v23047_v38 }
 0x937   : > { %12131 = vadd.xlane.f32.xlu1 %v12130_v46  ;;  %v12015_v36 = vpop.xlane.xlu0 %12014  ;;  %v12853_v21 = vsel %vm1748_vm14, %v12610_v28, %v12852_v59  ;;  %vm13177_vm9 = vcmp.gt.f32.partialorder %v11611_v27, 0.0  ;;  %vm13181_vm13 = vcmp.gt.f32.partialorder %v11615_v44, 0.0  ;;  %v12127_v30 = vsel %vm2856_vm5, %v11751_v31, 0.0 }
 0x938   : > { %v12614_v3 = vrot.slane %v12015_v36, %v23113_v11  ;;  %v22021_v43 = vpop.xlane.xlu1 %13694  ;;  %v11753_v51 = vmul.f32 %v21990_v49, %v11617_v16  ;;  %v13807_v22 = vsel %vm2856_vm5, %v13435_v50, 0.0  ;;  %v13436_v18 = vmul.f32 %v21917_v13, %v13308_v29  ;;  %v15832_v13 = vld [vmem:[%s22462_s4] sm:$0xff]  ;;  %v23312_v50 = vld [vmem:[#allocation111_spill] sm:$0xff] }
 0x939   : > { %v13305_v0 = vsel %vm13177_vm9, 1.0, %v23047_v38  ;;  %v13309_v28 = vsel %vm13181_vm13, 1.0, %v23047_v38  ;;  %vm13176_vm15 = vcmp.gt.f32.partialorder %v21857_v57, 0.0  ;;  %vm13182_vm11 = vcmp.gt.f32.partialorder %v11616_v61, 0.0  ;;  %v23311_v61 = vld [vmem:[#allocation117_spill] sm:$0xff] }
 0x93a   : > { %12116 = vadd.xlane.f32.xlu0 %v12115_v62  ;;  %v12854_v5 = vsel %vm1750_vm0, %v12614_v3, %v12853_v21  ;;  %v12133_v25 = vsel %vm2856_vm5, %v11753_v51, 0.0  ;;  %v13433_v58 = vmul.f32 %v15832_v13, %v13305_v0  ;;  %v13810_v59 = vsel %vm2856_vm5, %v13436_v18, 0.0  ;;  %v15834_v62 = vld [vmem:[%s22462_s4 + $0x38] sm:$0xff]  ;;  %v23313_v51 = vld [vmem:[#allocation114_spill] sm:$0xff]  ;;  %v23314_v18 = vld [vmem:[#allocation108_spill] sm:$0xff] }
 0x93b   : > { %12137 = vadd.xlane.f32.xlu1 %v12136_v42  ;;  %v22036_v7 = vpop.xlane.xlu0 %13682  ;;  %v22040_v15 = vsel %vm1752_vm1, %v12618_v40, %v12854_v5  ;;  %v13437_v46 = vmul.f32 %v21946_v32, %v13309_v28  ;;  %v13304_v52 = vsel %vm13176_vm15, 1.0, %v23047_v38  ;;  %v13310_v45 = vsel %vm13182_vm11, 1.0, %v23047_v38  ;;  %v15833_v32 = vld [vmem:[%s22462_s4 + $0x28] sm:$0xff] }
 0x93c   : > { %v22042_v17 = vpop.xlane.xlu1 %13697  ;;  %vm13120_vm2 = vcmp.gt.f32.partialorder %v23311_v61, 0.0  ;;  %vm13183_vm3 = vcmp.gt.f32.partialorder %v11617_v16, 0.0  ;;  %v13801_v36 = vsel %vm2856_vm5, %v13433_v58, 0.0  ;;  %v13432_v54 = vmul.f32 %v21445_v23, %v13304_v52  ;;  %v23315_v58 = vld [vmem:[#allocation123_spill] sm:$0xff] }
 0x93d   : > { %v13813_v21 = vsel %vm2856_vm5, %v13437_v46, 0.0  ;;  %v13438_v44 = vmul.f32 %v15833_v32, %v13310_v45  ;;  %v13248_v20 = vsel %vm13120_vm2, 1.0, %v23047_v38  ;;  %v13311_v19 = vsel %vm13183_vm3, 1.0, %v23047_v38  ;;  %v23316_v46 = vld [vmem:[#allocation122_spill] sm:$0xff] }
 0x93e   : > { %12122 = vadd.xlane.f32.xlu0 %v12121_v41  ;;  %vm13184_vm4 = vcmp.gt.f32.partialorder %v21993_v4, 0.0  ;;  %v13798_v23 = vsel %vm2856_vm5, %v13432_v54, 0.0  ;;  %v13376_v9 = vmul.f32 %v15834_v62, %v13248_v20  ;;  %v13439_v14 = vmul.f32 %v21990_v49, %v13311_v19 }
 0x93f   : > { %13805 = vadd.xlane.f32.xlu1 %v13804_v60  ;;  %v22049_v12 = vpop.xlane.xlu0 %13703  ;;  %v13816_v42 = vsel %vm2856_vm5, %v13438_v44, 0.0  ;;  %v13312_v5 = vsel %vm13184_vm4, 1.0, %v23047_v38  ;;  %v12907_v49 = vsel %vm2856_vm5, %v23312_v50, 0.0  ;;  %v12910_v0 = vsel %vm2856_vm5, %v23314_v18, 0.0  ;;  %v23318_v44 = vld [vmem:[#allocation120_spill] sm:$0xff] }
 0x940   : > { %v22052_v53 = vpop.xlane.xlu1 %13700  ;;  %v13630_v4 = vsel %vm2856_vm5, %v13376_v9, 0.0  ;;  %v13819_v16 = vsel %vm2856_vm5, %v13439_v14, 0.0  ;;  %v13440_v41 = vmul.f32 %v15834_v62, %v13312_v5  ;;  %v14276_v13 = vrot.slane %v22036_v7, %v23113_v11  ;;  %v23319_v9 = vld [vmem:[#allocation125_spill] sm:$0xff] }
 0x941   : > { %v14596_v52 = vsel %vm2856_vm5, %v23316_v46, 0.0  ;;  %v14280_v45 = vrot.slane %v21968_v39, %v23113_v11  ;;  %v14284_v32 = vrot.slane %v21981_v37, %v23113_v11  ;;  %v12916_v20 = vsel %vm2856_vm5, %v23318_v44, 0.0 }
 0x942   : > { %12128 = vadd.xlane.f32.xlu0 %v12127_v30  ;;  %v13822_v29 = vsel %vm2856_vm5, %v13440_v41, 0.0  ;;  %v14288_v62 = vrot.slane %v22002_v6, %v23113_v11  ;;  %v12922_v37 = vsel %vm2856_vm5, %v21545_v33, 0.0  ;;  %v14292_v6 = vrot.slane %v22021_v43, %v23113_v11  ;;  %v23320_v33 = vld [vmem:[#allocation128_spill] sm:$0xff] }
 0x943   : > { %13808 = vadd.xlane.f32.xlu1 %v13807_v22  ;;  %v22059_v26 = vpop.xlane.xlu0 %12020  ;;  %v14593_v22 = vsel %vm2856_vm5, %v23313_v51, 0.0  ;;  %v14535_v54 = vsel %vm1741_vm7, %v14280_v45, %v14276_v13 }
 0x944   : > { %v22063_v27 = vpop.xlane.xlu1 %12023  ;;  %v14536_v39 = vsel %vm1742_vm8, %v14284_v32, %v14535_v54  ;;  %v12622_v5 = vrot.slane %v22059_v26, %v23113_v11  ;;  %v12928_v26 = vsel %vm2856_vm5, %v21574_v34, 0.0  ;;  %v14608_v32 = vsel %vm2856_vm5, %v21618_v2, 0.0 }
 0x945   : > { %v14537_v14 = vsel %vm1744_vm10, %v14288_v62, %v14536_v39 }
 0x946   : > { %12134 = vadd.xlane.f32.xlu0 %v12133_v25 }
 0x947   : > { %13811 = vadd.xlane.f32.xlu1 %v13810_v59  ;;  %v22074_v57 = vpop.xlane.xlu0 %12026  ;;  %v12913_v59 = vsel %vm2856_vm5, %v23315_v58, 0.0  ;;  %v23321_v58 = vld [vmem:[#allocation127_spill] sm:$0xff] }
 0x948   : > { %v22078_v8 = vpop.xlane.xlu1 %12029  ;;  %v12630_v41 = vrot.slane %v22074_v57, %v23113_v11 }
 0x949   : > { %v12634_v43 = vrot.slane %v22078_v8, %v23113_v11 }
 0x94a   : > { %13802 = vadd.xlane.f32.xlu0 %v13801_v36 }
 0x94b   : > { %13814 = vadd.xlane.f32.xlu1 %v13813_v21  ;;  %v22087_v3 = vpop.xlane.xlu0 %12032  ;;  %v23317_v21 = vld [vmem:[#allocation124_spill] sm:$0xff] }
 0x94c   : > { %v22090_v40 = vpop.xlane.xlu1 %12035  ;;  %v14599_v7 = vsel %vm2856_vm5, %v23317_v21, 0.0 }
 0x94e   : > { %13799 = vadd.xlane.f32.xlu0 %v13798_v23 }
 0x94f   : > { %13817 = vadd.xlane.f32.xlu1 %v13816_v42  ;;  %v22099_v10 = vpop.xlane.xlu0 %12038  ;;  %v14602_v42 = vsel %vm2856_vm5, %v23319_v9, 0.0 }
 0x950   : > { %v22102_v56 = vpop.xlane.xlu1 %12041  ;;  %v12646_v54 = vrot.slane %v22099_v10, %v23113_v11  ;;  %v14620_v10 = vsel %vm2856_vm5, %v21955_v63, 0.0  ;;  %v12925_v63 = vsel %vm2856_vm5, %v21655_v35, 0.0 }
 0x952   : > { %13631 = vadd.xlane.f32.xlu0 %v13630_v4  ;;  %v12626_v4 = vrot.slane %v22063_v27, %v23113_v11  ;;  %v14296_v27 = vrot.slane %v22042_v17, %v23113_v11 }
 0x953   : > { %13820 = vadd.xlane.f32.xlu1 %v13819_v16  ;;  %v22106_v31 = vpop.xlane.xlu0 %13706 }
 0x954   : > { %v22108_v60 = vpop.xlane.xlu1 %13709  ;;  %v12856_v51 = vsel %vm1741_vm7, %v12626_v4, %v12622_v5  ;;  %v14308_v13 = vrot.slane %v22106_v31, %v23113_v11 }
 0x955   : > { %v12857_v18 = vsel %vm1742_vm8, %v12630_v41, %v12856_v51  ;;  %v14312_v8 = vrot.slane %v22108_v60, %v23113_v11 }
 0x956   : > { %12908 = vadd.xlane.f32.xlu0 %v12907_v49  ;;  %v12919_v49 = vsel %vm2856_vm5, %v23320_v33, 0.0  ;;  %v12858_v46 = vsel %vm1744_vm10, %v12634_v43, %v12857_v18 }
 0x957   : > { %13823 = vadd.xlane.f32.xlu1 %v13822_v29  ;;  %v22113_v38 = vpop.xlane.xlu0 %13712  ;;  %v14538_v29 = vsel %vm1746_vm12, %v14292_v6, %v14537_v14 }
 0x958   : > { %v22115_v30 = vpop.xlane.xlu1 %13724  ;;  %v14539_v17 = vsel %vm1748_vm14, %v14296_v27, %v14538_v29 }
 0x95a   : > { %14594 = vadd.xlane.f32.xlu0 %v14593_v22  ;;  %v14300_v22 = vrot.slane %v22052_v53, %v23113_v11  ;;  %v14316_v53 = vrot.slane %v22113_v38, %v23113_v11 }
 0x95b   : > { %12911 = vadd.xlane.f32.xlu1 %v12910_v0  ;;  %v22121_v28 = vpop.xlane.xlu0 %13715  ;;  %v12638_v0 = vrot.slane %v22087_v3, %v23113_v11  ;;  %v12934_v3 = vsel %vm2856_vm5, %v21831_v1, 0.0 }
 0x95c   : > { %v22123_v25 = vpop.xlane.xlu1 %13727  ;;  %v14320_v31 = vrot.slane %v22121_v28, %v23113_v11  ;;  %v14540_v1 = vsel %vm1750_vm0, %v14300_v22, %v14539_v17 }
 0x95d   : > { %v12859_v45 = vsel %vm1746_vm12, %v12638_v0, %v12858_v46 }
 0x95e   : > { %12914 = vadd.xlane.f32.xlu0 %v12913_v59  ;;  %v14605_v59 = vsel %vm2856_vm5, %v23321_v58, 0.0 }
 0x95f   : > { %14597 = vadd.xlane.f32.xlu1 %v14596_v52  ;;  %v22133_v61 = vpop.xlane.xlu0 %13718  ;;  %v12642_v52 = vrot.slane %v22090_v40, %v23113_v11  ;;  %v14542_v40 = vsel %vm1741_vm7, %v14312_v8, %v14308_v13  ;;  %v12931_v8 = vsel %vm2856_vm5, %v21727_v24, 0.0 }
 0x960   : > { %v22135_v36 = vpop.xlane.xlu1 %12047  ;;  %v14324_v38 = vrot.slane %v22133_v61, %v23113_v11  ;;  %v14543_v44 = vsel %vm1742_vm8, %v14316_v53, %v14542_v40 }
 0x961   : > { %v12860_v61 = vsel %vm1748_vm14, %v12642_v52, %v12859_v45  ;;  %v12658_v41 = vrot.slane %v22135_v36, %v23113_v11 }
 0x962   : > { %14600 = vadd.xlane.f32.xlu0 %v14599_v7  ;;  %v14304_v7 = vrot.slane %v22049_v12, %v23113_v11  ;;  %v14544_v12 = vsel %vm1744_vm10, %v14320_v31, %v14543_v44  ;;  %v12861_v9 = vsel %vm1750_vm0, %v12646_v54, %v12860_v61  ;;  %v14617_v54 = vsel %vm2856_vm5, %v21755_v48, 0.0 }
 0x963   : > { %12917 = vadd.xlane.f32.xlu1 %v12916_v20  ;;  %v22144_v19 = vpop.xlane.xlu0 %13721  ;;  %v12650_v20 = vrot.slane %v22102_v56, %v23113_v11  ;;  %v14545_v62 = vsel %vm1746_vm12, %v14324_v38, %v14544_v12 }
 0x964   : > { %v22147_v23 = vpop.xlane.xlu1 %12053  ;;  %v14328_v28 = vrot.slane %v22144_v19, %v23113_v11  ;;  %v14541_v19 = vsel %vm1752_vm1, %v14304_v7, %v14540_v1 }
 0x965   : > { %v14623_v14 = vsel %vm2856_vm5, %v14541_v19, 0.0  ;;  %v12862_v6 = vsel %vm1752_vm1, %v12650_v20, %v12861_v9 }
 0x966   : > { %14603 = vadd.xlane.f32.xlu0 %v14602_v42  ;;  %v14546_v42 = vsel %vm1748_vm14, %v14328_v28, %v14545_v62  ;;  %v12940_v43 = vsel %vm2856_vm5, %v12862_v6, 0.0 }
 0x967   : > { %12923 = vadd.xlane.f32.xlu1 %v12922_v37  ;;  %v22160_v16 = vpop.xlane.xlu0 %12044  ;;  %v14332_v37 = vrot.slane %v22115_v30, %v23113_v11 }
 0x968   : > { %v22166_v50 = vpop.xlane.xlu1 %12059  ;;  %v12654_v56 = vrot.slane %v22160_v16, %v23113_v11 }
 0x969   : > { %v14547_v16 = vsel %vm1750_vm0, %v14332_v37, %v14546_v42  ;;  %v12674_v31 = vrot.slane %v22166_v50, %v23113_v11 }
 0x96a   : > { %12920 = vadd.xlane.f32.xlu0 %v12919_v49  ;;  %v14336_v49 = vrot.slane %v22123_v25, %v23113_v11  ;;  %v12863_v27 = vsel %vm1741_vm7, %v12658_v41, %v12654_v56 }
 0x96b   : > { %12929 = vadd.xlane.f32.xlu1 %v12928_v26  ;;  %v22178_v57 = vpop.xlane.xlu0 %12050  ;;  %v14611_v26 = vsel %vm2856_vm5, %v21703_v47, 0.0  ;;  %v12666_v47 = vrot.slane %v22147_v23, %v23113_v11 }
 0x96c   : > { %v22185_v34 = vpop.xlane.xlu1 %12065  ;;  %v12662_v5 = vrot.slane %v22178_v57, %v23113_v11  ;;  %v14548_v0 = vsel %vm1752_vm1, %v14336_v49, %v14547_v16 }
 0x96d   : > { %v14626_v53 = vsel %vm2856_vm5, %v14548_v0, 0.0  ;;  %v12682_v40 = vrot.slane %v22185_v34, %v23113_v11 }
 0x96e   : > { %14606 = vadd.xlane.f32.xlu0 %v14605_v59  ;;  %v12864_v57 = vsel %vm1742_vm8, %v12662_v5, %v12863_v27 }
 0x96f   : > { %12935 = vadd.xlane.f32.xlu1 %v12934_v3  ;;  %v12057_v60 = vpop.xlane.xlu0 %12056  ;;  %v12865_v58 = vsel %vm1744_vm10, %v12666_v47, %v12864_v57 }
 0x970   : > { %v13731_v21 = vpop.xlane.xlu1 %13730  ;;  %v12670_v22 = vrot.slane %v12057_v60, %v23113_v11 }
 0x971   : > { %v14340_v35 = vrot.slane %v13731_v21, %v23113_v11 }
 0x972   : > { %14609 = vadd.xlane.f32.xlu0 %v14608_v32  ;;  %v12866_v3 = vsel %vm1746_vm12, %v12670_v22, %v12865_v58  ;;  %v12937_v32 = vsel %vm2856_vm5, %v22040_v15, 0.0 }
 0x973   : > { %14621 = vadd.xlane.f32.xlu1 %v14620_v10  ;;  %v12063_v39 = vpop.xlane.xlu0 %12062  ;;  %v12867_v21 = vsel %vm1748_vm14, %v12674_v31, %v12866_v3 }
 0x974   : > { %v13737_v2 = vpop.xlane.xlu1 %13736  ;;  %v12678_v46 = vrot.slane %v12063_v39, %v23113_v11 }
 0x975   : > { %v14348_v29 = vrot.slane %v13737_v2, %v23113_v11 }
 0x976   : > { %12926 = vadd.xlane.f32.xlu0 %v12925_v63  ;;  %v12868_v7 = vsel %vm1750_vm0, %v12678_v46, %v12867_v21 }
 0x977   : > { %14624 = vadd.xlane.f32.xlu1 %v14623_v14  ;;  %v13734_v4 = vpop.xlane.xlu0 %13733  ;;  %v12869_v10 = vsel %vm1752_vm1, %v12682_v40, %v12868_v7 }
 0x978   : > { %v14344_v30 = vrot.slane %v13734_v4, %v23113_v11  ;;  %v13740_v33 = vpop.xlane.xlu1 %13739  ;;  %v12943_v39 = vsel %vm2856_vm5, %v12869_v10, 0.0 }
 0x979   : > { %v14352_v36 = vrot.slane %v13740_v33, %v23113_v11 }
 0x97a   : > { %v14549_v51 = vsel %vm1741_vm7, %v14344_v30, %v14340_v35  ;;  %14612 = vadd.xlane.f32.xlu0 %v14611_v26 }
 0x97b   : > { %v14550_v25 = vsel %vm1742_vm8, %v14348_v29, %v14549_v51  ;;  %12941 = vadd.xlane.f32.xlu1 %v12940_v43  ;;  %v13746_v18 = vpop.xlane.xlu0 %13745 }
 0x97c   : > { %v13743_v17 = vpop.xlane.xlu1 %13742  ;;  %v14551_v59 = vsel %vm1744_vm10, %v14352_v36, %v14550_v25  ;;  %v14360_v24 = vrot.slane %v13746_v18, %v23113_v11 }
 0x97d   : > { %v14356_v13 = vrot.slane %v13743_v17, %v23113_v11 }
 0x97e   : > { %12932 = vadd.xlane.f32.xlu0 %v12931_v8 }
 0x97f   : > { %v14552_v52 = vsel %vm1746_vm12, %v14356_v13, %v14551_v59  ;;  %14627 = vadd.xlane.f32.xlu1 %v14626_v53  ;;  %v13749_v23 = vpop.xlane.xlu0 %13748 }
 0x980   : > { %v12072_v60 = vpop.xlane.xlu1 %12071  ;;  %v14364_v45 = vrot.slane %v13749_v23, %v23113_v11  ;;  %v14553_v38 = vsel %vm1748_vm14, %v14360_v24, %v14552_v52 }
 0x981   : > { %v12690_v19 = vrot.slane %v12072_v60, %v23113_v11 }
 0x982   : > { %14618 = vadd.xlane.f32.xlu0 %v14617_v54  ;;  %v14554_v44 = vsel %vm1750_vm0, %v14364_v45, %v14553_v38 }
 0x983   : > { %v13752_v1 = vpop.xlane.xlu0 %13751 }
 0x984   : > { %v14368_v50 = vrot.slane %v13752_v1, %v23113_v11  ;;  %v12078_v28 = vpop.xlane.xlu1 %12077 }
 0x985   : > { %v12698_v63 = vrot.slane %v12078_v28, %v23113_v11 }
 0x986   : > { %12938 = vadd.xlane.f32.xlu0 %v12937_v32  ;;  %v14555_v48 = vsel %vm1752_vm1, %v14368_v50, %v14554_v44 }
 0x987   : > { %v12069_v61 = vpop.xlane.xlu0 %12068  ;;  %v14629_v20 = vsel %vm2856_vm5, %v14555_v48, 0.0 }
 0x988   : > { %v12084_v12 = vpop.xlane.xlu1 %12083  ;;  %14630 = vadd.xlane.f32.xlu1 %v14629_v20  ;;  %v12686_v34 = vrot.slane %v12069_v61, %v23113_v11 }
 0x989   : > { %v12706_v6 = vrot.slane %v12084_v12, %v23113_v11 }
 0x98a   : > { %12944 = vadd.xlane.f32.xlu0 %v12943_v39  ;;  %v12870_v9 = vsel %vm1741_vm7, %v12690_v19, %v12686_v34 }
 0x98b   : > { %v12075_v15 = vpop.xlane.xlu0 %12074 }
 0x98c   : > { %v12694_v62 = vrot.slane %v12075_v15, %v23113_v11  ;;  %v12090_v2 = vpop.xlane.xlu1 %12089 }
 0x98d   : > { %v12714_v33 = vrot.slane %v12090_v2, %v23113_v11 }
 0x98e   : > { %v12871_v42 = vsel %vm1742_vm8, %v12694_v62, %v12870_v9 }
 0x98f   : > { %v12081_v37 = vpop.xlane.xlu0 %12080  ;;  %v12872_v5 = vsel %vm1744_vm10, %v12698_v63, %v12871_v42 }
 0x990   : > { %v12702_v56 = vrot.slane %v12081_v37, %v23113_v11  ;;  %v13758_v14 = vpop.xlane.xlu1 %13757 }
 0x991   : > { %v14376_v25 = vrot.slane %v13758_v14, %v23113_v11 }
 0x992   : > { %v12873_v4 = vsel %vm1746_vm12, %v12702_v56, %v12872_v5 }
 0x993   : > { %v12087_v41 = vpop.xlane.xlu0 %12086  ;;  %v12874_v16 = vsel %vm1748_vm14, %v12706_v6, %v12873_v4 }
 0x994   : > { %v12710_v35 = vrot.slane %v12087_v41, %v23113_v11  ;;  %v13767_v30 = vpop.xlane.xlu1 %13766 }
 0x995   : > { %v14388_v13 = vrot.slane %v13767_v30, %v23113_v11 }
 0x996   : > { %v12875_v49 = vsel %vm1750_vm0, %v12710_v35, %v12874_v16 }
 0x997   : > { %v13755_v29 = vpop.xlane.xlu0 %13754  ;;  %v12876_v26 = vsel %vm1752_vm1, %v12714_v33, %v12875_v49 }
 0x998   : > { %v13770_v27 = vpop.xlane.xlu1 %13769  ;;  %v12946_v51 = vsel %vm2856_vm5, %v12876_v26, 0.0  ;;  %v14372_v43 = vrot.slane %v13755_v29, %v23113_v11 }
 0x999   : > { %12947 = vadd.xlane.f32.xlu1 %v12946_v51  ;;  %v14392_v58 = vrot.slane %v13770_v27, %v23113_v11 }
 0x99a   : > { %v14556_v0 = vsel %vm1741_vm7, %v14376_v25, %v14372_v43 }
 0x99b   : > { %v13761_v36 = vpop.xlane.xlu0 %13760 }
 0x99c   : > { %v13773_v57 = vpop.xlane.xlu1 %13772  ;;  %v14380_v22 = vrot.slane %v13761_v36, %v23113_v11 }
 0x99d   : > { %v14396_v53 = vrot.slane %v13773_v57, %v23113_v11 }
 0x99e   : > { %v14557_v8 = vsel %vm1742_vm8, %v14380_v22, %v14556_v0 }
 0x99f   : > { %v13764_v18 = vpop.xlane.xlu0 %13763 }
 0x9a0   : > { %v14384_v47 = vrot.slane %v13764_v18, %v23113_v11  ;;  %v13776_v17 = vpop.xlane.xlu1 %13775 }
 0x9a1   : > { %v14400_v52 = vrot.slane %v13776_v17, %v23113_v11 }
 0x9a2   : > { %v14558_v59 = vsel %vm1744_vm10, %v14384_v47, %v14557_v8 }
 0x9a3   : > { %v14559_v3 = vsel %vm1746_vm12, %v14388_v13, %v14558_v59  ;;  %v12093_v46 = vpop.xlane.xlu0 %12092 }
 0x9a4   : > { %v12096_v23 = vpop.xlane.xlu1 %12095  ;;  %v14560_v31 = vsel %vm1748_vm14, %v14392_v58, %v14559_v3  ;;  %v12718_v24 = vrot.slane %v12093_v46, %v23113_v11 }
 0x9a5   : > { %v12722_v60 = vrot.slane %v12096_v23, %v23113_v11  ;;  %v14561_v45 = vsel %vm1750_vm0, %v14396_v53, %v14560_v31 }
 0x9a6   : > { %v14562_v54 = vsel %vm1752_vm1, %v14400_v52, %v14561_v45 }
 0x9a7   : > { %v12099_v38 = vpop.xlane.xlu0 %12098  ;;  %v14632_v21 = vsel %vm2856_vm5, %v14562_v54, 0.0  ;;  %v12877_v40 = vsel %vm1741_vm7, %v12722_v60, %v12718_v24 }
 0x9a8   : > { %v12726_v1 = vrot.slane %v12099_v38, %v23113_v11  ;;  %v12102_v7 = vpop.xlane.xlu1 %12101  ;;  %14633 = vadd.xlane.f32.xlu1 %v14632_v21 }
 0x9a9   : > { %v12730_v50 = vrot.slane %v12102_v7, %v23113_v11 }
 0x9aa   : > { %v12878_v28 = vsel %vm1742_vm8, %v12726_v1, %v12877_v40 }
 0x9ab   : > { %v12105_v32 = vpop.xlane.xlu0 %12104  ;;  %v12879_v10 = vsel %vm1744_vm10, %v12730_v50, %v12878_v28 }
 0x9ac   : > { %v12734_v44 = vrot.slane %v12105_v32, %v23113_v11  ;;  %v12108_v48 = vpop.xlane.xlu1 %12107 }
 0x9ad   : > { %v12738_v61 = vrot.slane %v12108_v48, %v23113_v11 }
 0x9ae   : > { %v12880_v20 = vsel %vm1746_vm12, %v12734_v44, %v12879_v10 }
 0x9af   : > { %v12111_v12 = vpop.xlane.xlu0 %12110  ;;  %v12881_v19 = vsel %vm1748_vm14, %v12738_v61, %v12880_v20 }
 0x9b0   : > { %v12742_v34 = vrot.slane %v12111_v12, %v23113_v11  ;;  %v12114_v39 = vpop.xlane.xlu1 %12113 }
 0x9b1   : > { %v12746_v15 = vrot.slane %v12114_v39, %v23113_v11 }
 0x9b2   : > { %v12882_v62 = vsel %vm1750_vm0, %v12742_v34, %v12881_v19 }
 0x9b3   : > { %v13782_v2 = vpop.xlane.xlu0 %13781  ;;  %v12883_v9 = vsel %vm1752_vm1, %v12746_v15, %v12882_v62 }
 0x9b4   : > { %v13779_v42 = vpop.xlane.xlu1 %13778  ;;  %v12949_v63 = vsel %vm2856_vm5, %v12883_v9, 0.0  ;;  %v14408_v29 = vrot.slane %v13782_v2, %v23113_v11 }
 0x9b5   : > { %12950 = vadd.xlane.f32.xlu0 %v12949_v63  ;;  %v14404_v26 = vrot.slane %v13779_v42, %v23113_v11 }
 0x9b7   : > { %v13788_v37 = vpop.xlane.xlu0 %13787  ;;  %v14563_v25 = vsel %vm1741_vm7, %v14408_v29, %v14404_v26 }
 0x9b8   : > { %v13785_v56 = vpop.xlane.xlu1 %13784  ;;  %v14416_v13 = vrot.slane %v13788_v37, %v23113_v11 }
 0x9b9   : > { %v14412_v51 = vrot.slane %v13785_v56, %v23113_v11 }
 0x9bb   : > { %v13791_v14 = vpop.xlane.xlu0 %13790  ;;  %v14564_v0 = vsel %vm1742_vm8, %v14412_v51, %v14563_v25 }
 0x9bc   : > { %v12120_v5 = vpop.xlane.xlu1 %12119  ;;  %v14565_v53 = vsel %vm1744_vm10, %v14416_v13, %v14564_v0  ;;  %v14420_v3 = vrot.slane %v13791_v14, %v23113_v11 }
 0x9bd   : > { %v12754_v22 = vrot.slane %v12120_v5, %v23113_v11 }
 0x9be   : > { %v14566_v40 = vsel %vm1746_vm12, %v14420_v3, %v14565_v53 }
 0x9bf   : > { %v13794_v4 = vpop.xlane.xlu0 %13793 }
 0x9c0   : > { %v12126_v6 = vpop.xlane.xlu1 %12125  ;;  %v14424_v52 = vrot.slane %v13794_v4, %v23113_v11 }
 0x9c1   : > { %v12762_v59 = vrot.slane %v12126_v6, %v23113_v11 }
 0x9c2   : > { %v14567_v28 = vsel %vm1748_vm14, %v14424_v52, %v14566_v40 }
 0x9c3   : > { %v13797_v41 = vpop.xlane.xlu0 %13796 }
 0x9c4   : > { %v12132_v35 = vpop.xlane.xlu1 %12131  ;;  %v14428_v45 = vrot.slane %v13797_v41, %v23113_v11 }
 0x9c5   : > { %v12770_v21 = vrot.slane %v12132_v35, %v23113_v11 }
 0x9c6   : > { %v14568_v20 = vsel %vm1750_vm0, %v14428_v45, %v14567_v28 }
 0x9c7   : > { %v12117_v30 = vpop.xlane.xlu0 %12116 }
 0x9c8   : > { %v12138_v33 = vpop.xlane.xlu1 %12137  ;;  %v12750_v36 = vrot.slane %v12117_v30, %v23113_v11 }
 0x9c9   : > { %v12778_v34 = vrot.slane %v12138_v33, %v23113_v11 }
 0x9ca   : > { %v12884_v47 = vsel %vm1741_vm7, %v12754_v22, %v12750_v36 }
 0x9cb   : > { %v12123_v16 = vpop.xlane.xlu0 %12122 }
 0x9cc   : > { %v13806_v49 = vpop.xlane.xlu1 %13805  ;;  %v12758_v57 = vrot.slane %v12123_v16, %v23113_v11 }
 0x9cd   : > { %v14440_v23 = vrot.slane %v13806_v49, %v23113_v11 }
 0x9ce   : > { %v12885_v8 = vsel %vm1742_vm8, %v12758_v57, %v12884_v47 }
 0x9cf   : > { %v12129_v27 = vpop.xlane.xlu0 %12128  ;;  %v12886_v31 = vsel %vm1744_vm10, %v12762_v59, %v12885_v8 }
 0x9d0   : > { %v13809_v43 = vpop.xlane.xlu1 %13808  ;;  %v12766_v58 = vrot.slane %v12129_v27, %v23113_v11 }
 0x9d1   : > { %v14444_v1 = vrot.slane %v13809_v43, %v23113_v11 }
 0x9d2   : > { %v12887_v54 = vsel %vm1746_vm12, %v12766_v58, %v12886_v31 }
 0x9d3   : > { %v12135_v18 = vpop.xlane.xlu0 %12134  ;;  %v12888_v10 = vsel %vm1748_vm14, %v12770_v21, %v12887_v54 }
 0x9d4   : > { %v13812_v17 = vpop.xlane.xlu1 %13811  ;;  %v12774_v38 = vrot.slane %v12135_v18, %v23113_v11 }
 0x9d5   : > { %v14448_v61 = vrot.slane %v13812_v17, %v23113_v11 }
 0x9d6   : > { %v12889_v12 = vsel %vm1750_vm0, %v12774_v38, %v12888_v10 }
 0x9d7   : > { %v13803_v46 = vpop.xlane.xlu0 %13802  ;;  %v12890_v63 = vsel %vm1752_vm1, %v12778_v34, %v12889_v12 }
 0x9d8   : > { %v14436_v24 = vrot.slane %v13803_v46, %v23113_v11  ;;  %v13815_v60 = vpop.xlane.xlu1 %13814  ;;  %v12952_v6 = vsel %vm2856_vm5, %v12890_v63, 0.0 }
 0x9d9   : > { %v14452_v2 = vrot.slane %v13815_v60, %v23113_v11 }
 0x9da   : > { %v14570_v7 = vsel %vm1741_vm7, %v14440_v23, %v14436_v24 }
 0x9db   : > { %v13800_v50 = vpop.xlane.xlu0 %13799  ;;  %v14571_v32 = vsel %vm1742_vm8, %v14444_v1, %v14570_v7 }
 0x9dc   : > { %v14432_v44 = vrot.slane %v13800_v50, %v23113_v11  ;;  %v13818_v48 = vpop.xlane.xlu1 %13817  ;;  %v14572_v19 = vsel %vm1744_vm10, %v14448_v61, %v14571_v32 }
 0x9dd   : > { %v14456_v37 = vrot.slane %v13818_v48, %v23113_v11  ;;  %v14573_v56 = vsel %vm1746_vm12, %v14452_v2, %v14572_v19 }
 0x9de   : > { %v14569_v39 = vsel %vm1752_vm1, %v14432_v44, %v14568_v20 }
 0x9df   : > { %v13632_v15 = vpop.xlane.xlu0 %13631  ;;  %v14635_v62 = vsel %vm2856_vm5, %v14569_v39, 0.0  ;;  %v14574_v30 = vsel %vm1748_vm14, %v14456_v37, %v14573_v56 }
 0x9e0   : > { %v14208_v9 = vrot.slane %v13632_v15, %v23113_v11  ;;  %v13821_v42 = vpop.xlane.xlu1 %13820  ;;  %14636 = vadd.xlane.f32.xlu1 %v14635_v62 }
 0x9e1   : > { %v14460_v14 = vrot.slane %v13821_v42, %v23113_v11 }
 0x9e2   : > { %v14520_v5 = vsel %vm1752_vm1, %v14208_v9, %v22034_v55 }
 0x9e3   : > { %v12909_v4 = vpop.xlane.xlu0 %12908  ;;  %v14614_v41 = vsel %vm2856_vm5, %v14520_v5, 0.0  ;;  %v14575_v16 = vsel %vm1750_vm0, %v14460_v14, %v14574_v30 }
 0x9e4   : > { %v13824_v35 = vpop.xlane.xlu1 %13823  ;;  %12953 = vadd.xlane.f32.xlu1 %v12952_v6  ;;  %14615 = vadd.xlane.f32.xlu0 %v14614_v41  ;;  %v12974_v52 = vrot.slane %v12909_v4, %v23113_v11 }
 0x9e5   : > { %v14464_v33 = vrot.slane %v13824_v35, %v23113_v11 }
 0x9e7   : > { %v14595_v49 = vpop.xlane.xlu0 %14594  ;;  %v14576_v29 = vsel %vm1752_vm1, %v14464_v33, %v14575_v16 }
 0x9e8   : > { %v12912_v26 = vpop.xlane.xlu1 %12911  ;;  %v14638_v55 = vsel %vm2856_vm5, %v14576_v29, 0.0  ;;  %v14660_v36 = vrot.slane %v14595_v49, %v23113_v11 }
 0x9e9   : > { %14639 = vadd.xlane.f32.xlu1 %v14638_v55  ;;  %v12978_v58 = vrot.slane %v12912_v26, %v23113_v11 }
 0x9eb   : > { %v12915_v27 = vpop.xlane.xlu0 %12914  ;;  %v13035_v60 = vsel %vm1741_vm7, %v12978_v58, %v12974_v52 }
 0x9ec   : > { %v14598_v51 = vpop.xlane.xlu1 %14597  ;;  %v12982_v53 = vrot.slane %v12915_v27, %v23113_v11 }
 0x9ed   : > { %v14664_v43 = vrot.slane %v14598_v51, %v23113_v11 }
 0x9ee   : > { %v13036_v54 = vsel %vm1742_vm8, %v12982_v53, %v13035_v60 }
 0x9ef   : > { %v14721_v57 = vsel %vm1741_vm7, %v14664_v43, %v14660_v36  ;;  %v14601_v22 = vpop.xlane.xlu0 %14600 }
 0x9f0   : > { %v14668_v25 = vrot.slane %v14601_v22, %v23113_v11  ;;  %v12918_v17 = vpop.xlane.xlu1 %12917 }
 0x9f1   : > { %v12986_v23 = vrot.slane %v12918_v17, %v23113_v11 }
 0x9f2   : > { %v14722_v18 = vsel %vm1742_vm8, %v14668_v25, %v14721_v57 }
 0x9f3   : > { %v14604_v0 = vpop.xlane.xlu0 %14603  ;;  %v13037_v21 = vsel %vm1744_vm10, %v12986_v23, %v13036_v54 }
 0x9f4   : > { %v14672_v47 = vrot.slane %v14604_v0, %v23113_v11  ;;  %v12924_v3 = vpop.xlane.xlu1 %12923 }
 0x9f5   : > { %v12994_v50 = vrot.slane %v12924_v3, %v23113_v11 }
 0x9f6   : > { %v14723_v13 = vsel %vm1744_vm10, %v14672_v47, %v14722_v18 }
 0x9f7   : > { %v12921_v8 = vpop.xlane.xlu0 %12920 }
 0x9f8   : > { %v12990_v31 = vrot.slane %v12921_v8, %v23113_v11  ;;  %v12930_v7 = vpop.xlane.xlu1 %12929 }
 0x9f9   : > { %v13002_v44 = vrot.slane %v12930_v7, %v23113_v11 }
 0x9fa   : > { %v13038_v1 = vsel %vm1746_vm12, %v12990_v31, %v13037_v21 }
 0x9fb   : > { %v14607_v59 = vpop.xlane.xlu0 %14606  ;;  %v13039_v48 = vsel %vm1748_vm14, %v12994_v50, %v13038_v1 }
 0x9fc   : > { %v14676_v46 = vrot.slane %v14607_v59, %v23113_v11  ;;  %v12936_v12 = vpop.xlane.xlu1 %12935 }
 0x9fd   : > { %v13010_v6 = vrot.slane %v12936_v12, %v23113_v11 }
 0x9fe   : > { %v14724_v24 = vsel %vm1746_vm12, %v14676_v46, %v14723_v13 }
 0x9ff   : > { %v14610_v45 = vpop.xlane.xlu0 %14609 }
 0xa00   : > { %v14680_v38 = vrot.slane %v14610_v45, %v23113_v11  ;;  %v14622_v34 = vpop.xlane.xlu1 %14621 }
 0xa01   : > { %v14696_v35 = vrot.slane %v14622_v34, %v23113_v11 }
 0xa02   : > { %v14725_v40 = vsel %vm1748_vm14, %v14680_v38, %v14724_v24 }
 0xa03   : > { %v12927_v28 = vpop.xlane.xlu0 %12926 }
 0xa04   : > { %v12998_v32 = vrot.slane %v12927_v28, %v23113_v11  ;;  %v14625_v19 = vpop.xlane.xlu1 %14624 }
 0xa05   : > { %v14700_v51 = vrot.slane %v14625_v19, %v23113_v11 }
 0xa06   : > { %v13040_v10 = vsel %vm1750_vm0, %v12998_v32, %v13039_v48 }
 0xa07   : > { %v13041_v61 = vsel %vm1752_vm1, %v13002_v44, %v13040_v10  ;;  %v14613_v39 = vpop.xlane.xlu0 %14612 }
 0xa08   : > { %v13051_v20 = vsel %vm2856_vm5, %v13041_v61, 0.0  ;;  %v12942_v62 = vpop.xlane.xlu1 %12941  ;;  %v14684_v36 = vrot.slane %v14613_v39, %v23113_v11  ;;  %v15835_v39 = vld [vmem:[%s18395_s23] sm:$0xff] }
 0xa09   : > { %13052 = vadd.xlane.f32.xlu0 %v13051_v20  ;;  %v13018_v26 = vrot.slane %v12942_v62, %v23113_v11  ;;  %v15836_v62 = vld [vmem:[%s18395_s23 + $0x8] sm:$0xff] }
 0xa0a   : > { %v14726_v3 = vsel %vm1750_vm0, %v14684_v36, %v14725_v40 }
 0xa0b   : > { %v12933_v15 = vpop.xlane.xlu0 %12932 }
 0xa0c   : > { %v14628_v9 = vpop.xlane.xlu1 %14627  ;;  %v13006_v56 = vrot.slane %v12933_v15, %v23113_v11 }
 0xa0d   : > { %v14704_v58 = vrot.slane %v14628_v9, %v23113_v11 }
 0xa0e   : > { %v13042_v30 = vsel %vm1741_vm7, %v13010_v6, %v13006_v56 }
 0xa0f   : > { %v14619_v2 = vpop.xlane.xlu0 %14618 }
 0xa10   : > { %v14692_v41 = vrot.slane %v14619_v2, %v23113_v11 }
 0xa12   : > { %v14728_v55 = vsel %vm1741_vm7, %v14696_v35, %v14692_v41 }
 0xa13   : > { %v12939_v63 = vpop.xlane.xlu0 %12938  ;;  %v14729_v22 = vsel %vm1742_vm8, %v14700_v51, %v14728_v55 }
 0xa14   : > { %v13014_v5 = vrot.slane %v12939_v63, %v23113_v11  ;;  %v14730_v31 = vsel %vm1744_vm10, %v14704_v58, %v14729_v22 }
 0xa15   : > { %v14631_v42 = vpop.xlane.xlu1 %14630 }
 0xa16   : > { %v13043_v16 = vsel %vm1742_vm8, %v13014_v5, %v13042_v30  ;;  %v14708_v47 = vrot.slane %v14631_v42, %v23113_v11 }
 0xa17   : > { %v12945_v14 = vpop.xlane.xlu0 %12944  ;;  %v13044_v57 = vsel %vm1744_vm10, %v13018_v26, %v13043_v16  ;;  %vm14765_vm10 = vcmask 0  }
 0xa18   : > { %v13022_v49 = vrot.slane %v12945_v14, %v23113_v11  ;;  %v14731_v45 = vsel %vm1746_vm12, %v14708_v47, %v14730_v31 }
 0xa1a   : > { %v13045_v25 = vsel %vm1746_vm12, %v13022_v49, %v13044_v57 }
 0xa26   : > { %v12948_v37 = vpop.xlane.xlu1 %12947 }
 0xa27   : > { %v13026_v27 = vrot.slane %v12948_v37, %v23113_v11 }
 0xa29   : > { %v13046_v17 = vsel %vm1748_vm14, %v13026_v27, %v13045_v25 }
 0xa35   : > { %v14634_v4 = vpop.xlane.xlu1 %14633 }
 0xa36   : > { %v14712_v59 = vrot.slane %v14634_v4, %v23113_v11 }
 0xa38   : > { %v14732_v38 = vsel %vm1748_vm14, %v14712_v59, %v14731_v45 }
 0xa42   : > { %v12951_v33 = vpop.xlane.xlu0 %12950 }
 0xa43   : > { %v13030_v43 = vrot.slane %v12951_v33, %v23113_v11 }
 0xa45   : > { %v13047_v53 = vsel %vm1750_vm0, %v13030_v43, %v13046_v17 }
 0xa6d   : > { %v14637_v29 = vpop.xlane.xlu1 %14636 }
 0xa6e   : > { %v14716_v46 = vrot.slane %v14637_v29, %v23113_v11 }
 0xa70   : > { %v14733_v1 = vsel %vm1750_vm0, %v14716_v46, %v14732_v38 }
 0xa71   : > { %v12954_v18 = vpop.xlane.xlu1 %12953  ;;  %v14616_v0 = vpop.xlane.xlu0 %14615 }
 0xa72   : > { %v13034_v13 = vrot.slane %v12954_v18, %v23113_v11  ;;  %v14688_v8 = vrot.slane %v14616_v0, %v23113_v11 }
 0xa74   : > { %v13048_v52 = vsel %vm1752_vm1, %v13034_v13, %v13047_v53  ;;  %v14727_v23 = vsel %vm1752_vm1, %v14688_v8, %v14726_v3 }
 0xa75   : > { %v13054_v24 = vsel %vm2856_vm5, %v13048_v52, 0.0  ;;  %v14737_v60 = vsel %vm2856_vm5, %v14727_v23, 0.0 }
 0xa76   : > { %v14640_v54 = vpop.xlane.xlu1 %14639  ;;  %13055 = vadd.xlane.f32.xlu1 %v13054_v24  ;;  %14738 = vadd.xlane.f32.xlu0 %v14737_v60 }
 0xa77   : > { %v14720_v21 = vrot.slane %v14640_v54, %v23113_v11 }
 0xa79   : > { %v14734_v7 = vsel %vm1752_vm1, %v14720_v21, %v14733_v1 }
 0xa7a   : > { %v14740_v40 = vsel %vm2856_vm5, %v14734_v7, 0.0  ;;  %vm14755_vm5 = vcmask 7168  }
 0xa7b   : > { %14741 = vadd.xlane.f32.xlu1 %v14740_v40 }
 0xa96   : > { %v13053_v50 = vpop.xlane.xlu0 %13052 }
 0xb03   : > { %v13056_v28 = vpop.xlane.xlu1 %13055  ;;  %v14739_v32 = vpop.xlane.xlu0 %14738 }
 0xb04   : > { %vm14743_vm7 = vcmp.eq.f32.partialorder %v14739_v32, 0.0 }
 0xb05   : > { %v14745_v44 = vsel %vm14743_vm7, 1.0, %v14739_v32 }
 0xb06   : > { %15767 = vrcp.f32 %v14745_v44 }
 0xb08   : > { %v14742_v48 = vpop.xlane.xlu1 %14741 }
 0xb09   : > { %vm14744_vm8 = vcmp.eq.f32.partialorder %v14742_v48, 0.0 }
 0xb0a   : > { %v14746_v10 = vsel %vm14744_vm8, 1.0, %v14742_v48 }
 0xb0b   : > { %15769 = vrcp.f32 %v14746_v10 }
 0xb10   : > { %v15768_v11 = vpop.eup %15767 }
 0xb11   : > { %v14748_v61 = vmul.f32 %v15768_v11, %v13053_v50 }
 0xb13   : > { %v14751_v20 = vsel %vm14743_vm7, 0.0, %v14748_v61 }
 0xb14   : > { %v14753_v19 = vmul.f32 %v15835_v39, %v14751_v20 }
 0xb15   : > { %v15770_v12 = vpop.eup %15769 }
 0xb16   : > { %v14750_v34 = vmul.f32 %v15770_v12, %v13056_v28  ;;  %v14756_v9 = vsel %vm14755_vm5, %v14753_v19, 0.0 }
 0xb18   : > { %v14752_v15 = vsel %vm14744_vm8, 0.0, %v14750_v34 }
 0xb19   : > { %v14754_v2 = vmul.f32 %v15836_v62, %v14752_v15 }
 0xb1b   : > { %v14757_v42 = vsel %vm14755_vm5, %v14754_v2, 0.0 }
 0xb1c   : > { %v14758_v63 = vadd.f32 %v14757_v42, %v14756_v9 }
 0xb1e   : > { %v14759_v37 = vrot.slane %v14758_v63, 4 }
 0xb20   : > { %v14760_v56 = vadd.f32 %v14759_v37, %v14758_v63 }
 0xb22   : > { %v14761_v14 = vrot.slane %v14760_v56, 2 }
 0xb24   : > { %v14762_v5 = vadd.f32 %v14761_v14, %v14760_v56 }
 0xb26   : > { %v14763_v4 = vrot.slane %v14762_v5, 1 }
 0xb28   : > { %v14764_v6 = vadd.f32 %v14763_v4, %v14762_v5 }
 0xb2a   : > { %14766 = vst.msk [vmem:[%s308_s10] sm:$0x1] %vm14765_vm10, %v14764_v6 }
 0xb2b PF: > { %s18_s24 = sadd.s32 1, %s15843_s24  }
 0xb2c   : > { %p15_p6 = scmp.ge.s32.totalorder %s18_s24, 4  }
 0xb2e   :  { %17 = sbr.rel (!%p15_p6) target bundleno = 1 (0x1), region = 89 }

</bundles_post_ra>
